<compile_context>
chip_gen: v7x
topology: tpu7x:2x2x1
jax: 0.10.0
libtpu: 0.0.40
codegen_flags: <defaults>
</compile_context>

<pallas_src>
import functools

import jax
import jax.numpy as jnp
from jax.experimental import pallas as pl
from jax.experimental.pallas import tpu as pltpu


# ---------------------------------------------------------------------------
# Kernel bodies
# ---------------------------------------------------------------------------

def _conv3x3_matmul(a, m, w_ref, lhs_ref, W):
    """3x3 SAME conv of a whole-image tile as a single MXU matmul (K = 9*C).

    `a` is a (T, C) bf16 tile of flattened-NHWC rows covering whole images, so
    the tap (dy, dx) is a row shift by dy*W+dx; `m` holds per-tap 0/1 edge masks
    (the implicit zero padding, also neutralizing the roll wrap-around).  The
    nine shifted copies are packed along lanes into the `lhs_ref` scratch and
    contracted against the (9*C, Cout) tap-stacked weight in one dot.
    """
    C = a.shape[1]
    for dy in (-1, 0, 1):
        for dx in (-1, 0, 1):
            d = dy * W + dx
            k = 3 * (dy + 1) + (dx + 1)
            if d == 0:
                piece = a
            else:
                piece = jnp.roll(a, -d, axis=0) * m[:, k:k + 1]
            lhs_ref[:, k * C:(k + 1) * C] = piece
    return jnp.dot(lhs_ref[...], w_ref[...], preferred_element_type=jnp.float32)


def _write_stats(st_ref, acc):
    # Per-tile partial BatchNorm statistics: row 0 = sum, row 1 = sum of squares.
    s = jnp.sum(acc, axis=0, keepdims=True)          # (1, C) f32
    sq = jnp.sum(acc * acc, axis=0, keepdims=True)   # (1, C) f32
    st_ref[0, :, :] = jnp.concatenate([s, sq], axis=0)


def _conv1_kernel(x_ref, m_ref, w_ref, y_ref, st_ref, lhs_ref, *, W):
    acc = _conv3x3_matmul(x_ref[...], m_ref[...], w_ref, lhs_ref, W)
    y_ref[...] = acc.astype(y_ref.dtype)             # pre-BN activation (bf16)
    _write_stats(st_ref, acc)


def _bn_relu_conv_kernel(x_ref, m_ref, ss_ref, w_ref, y_ref, st_ref, lhs_ref, *, W):
    ss = ss_ref[...]                                  # (2, C) f32: [scale; shift]
    a = jnp.maximum(x_ref[...].astype(jnp.float32) * ss[0:1, :] + ss[1:2, :], 0.0)
    acc = _conv3x3_matmul(a.astype(jnp.bfloat16), m_ref[...], w_ref, lhs_ref, W)
    y_ref[...] = acc.astype(y_ref.dtype)
    _write_stats(st_ref, acc)


def _bn_relu_kernel(x_ref, ss_ref, o_ref):
    ss = ss_ref[...]
    y = jnp.maximum(x_ref[...].astype(jnp.float32) * ss[0:1, :] + ss[1:2, :], 0.0)
    o_ref[...] = y.astype(o_ref.dtype)


# ---------------------------------------------------------------------------
# Wrapper
# ---------------------------------------------------------------------------

def _vmem_limit_bytes():
    # Budget against the physical VMEM of the chip we are on (v5e/v6e: 128 MiB,
    # v7x: 64 MiB) instead of hard-coding a v6e-era number.
    try:
        info = pltpu.get_tpu_info()
        cap = int(getattr(info, "vmem_capacity_bytes", 64 * 1024 * 1024))
    except Exception:
        cap = 64 * 1024 * 1024
    return int(min(cap // 2, 96 * 1024 * 1024))


def _scale_shift_from_stats(st, gamma, beta, count, eps=1e-5):
    """Reduce per-tile (sum, sumsq) partials to per-channel BN scale/shift."""
    tot = jnp.sum(st, axis=0)                         # (2, C)
    mean = tot[0] / count
    var = jnp.maximum(tot[1] / count - mean * mean, 0.0)
    scale = gamma * jax.lax.rsqrt(var + eps)
    shift = beta - mean * scale
    return jnp.stack([scale, shift], axis=0).astype(jnp.float32)   # (2, C)


def prepare_params(params):
    """One-time parameter prep (hoist out of the per-step path; reuse across calls)."""
    w1 = params["w1"].astype(jnp.float32)             # (3,3,Cin,Cout) HWIO
    w2 = params["w2"].astype(jnp.float32)             # (3,3,Cout,Cout) HWIO
    cin, cout = w1.shape[2], w1.shape[3]
    return {
        # Tap-stacked weights: row (ky*3+kx)*C + ci -> output channel co.
        "w1c": w1.reshape(9 * cin, cout).astype(jnp.bfloat16),
        "w2c": w2.reshape(9 * cout, cout).astype(jnp.bfloat16),
        # Conv biases dropped: batch-stat BatchNorm cancels them exactly.
        "gamma1": params["gamma1"].astype(jnp.float32),
        "beta1": params["beta1"].astype(jnp.float32),
        "gamma2": params["gamma2"].astype(jnp.float32),
        "beta2": params["beta2"].astype(jnp.float32),
    }


def double_conv(x_nchw, prep):
    """DoubleConv forward.  Input NCHW (PyTorch convention), output NCHW.

    TODO(synk): in a stacked UNet keep activations in flattened-NHWC between
    layers and drop the two NCHW<->NHWC transposes (an extra HBM round trip).
    TODO(synk): for very large H*W, sub-image row tiles need +-1 image-row halos.
    """
    N, Cin, H, W = x_nchw.shape
    Cout = prep["w1c"].shape[1]
    HW = H * W
    R = N * HW
    T = HW                 # one image per grid step -> rolls never cross a tile

    # Lane layout: rows = N*H*W, lanes = channels.  Input goes to HBM as bf16.
    x2d = jnp.transpose(x_nchw, (0, 2, 3, 1)).reshape(R, Cin).astype(jnp.bfloat16)

    # Per-tap 0/1 edge masks (implicit zero padding); identical for every tile.
    q = jnp.arange(HW, dtype=jnp.int32)
    hh, ww = q // W, q % W
    mh = {-1: hh >= 1, 0: jnp.full((HW,), True), 1: hh <= H - 2}
    mw = {-1: ww >= 1, 0: jnp.full((HW,), True), 1: ww <= W - 2}
    masks = jnp.stack(
        [mh[dy] & mw[dx] for dy in (-1, 0, 1) for dx in (-1, 0, 1)],
        axis=1).astype(jnp.bfloat16)                   # (HW, 9)

    cparams = pltpu.CompilerParams(
        dimension_semantics=("parallel",),
        vmem_limit_bytes=_vmem_limit_bytes(),
    )
    grid = (N,)

    def tile_spec(c):
        return pl.BlockSpec((T, c), lambda i: (i, 0))

    def const_spec(shape):
        nd = len(shape)
        return pl.BlockSpec(shape, lambda i, _nd=nd: (0,) * _nd)

    stats_spec = pl.BlockSpec((1, 2, Cout), lambda i: (i, 0, 0))
    stats_shape = jax.ShapeDtypeStruct((N, 2, Cout), jnp.float32)

    # ---- Pass 1: conv1 + per-tile BN1 partial stats -------------------------
    y1, st1 = pl.pallas_call(
        functools.partial(_conv1_kernel, W=W),
        out_shape=(jax.ShapeDtypeStruct((R, Cout), jnp.bfloat16), stats_shape),
        grid=grid,
        in_specs=[tile_spec(Cin), const_spec((HW, 9)), const_spec((9 * Cin, Cout))],
        out_specs=(tile_spec(Cout), stats_spec),
        scratch_shapes=[pltpu.VMEM((T, 9 * Cin), jnp.bfloat16)],
        compiler_params=cparams,
    )(x2d, masks, prep["w1c"])
    ss1 = _scale_shift_from_stats(st1, prep["gamma1"], prep["beta1"], R)

    # ---- Pass 2: BN1 + ReLU + conv2 + per-tile BN2 partial stats ------------
    y2, st2 = pl.pallas_call(
        functools.partial(_bn_relu_conv_kernel, W=W),
        out_shape=(jax.ShapeDtypeStruct((R, Cout), jnp.bfloat16), stats_shape),
        grid=grid,
        in_specs=[tile_spec(Cout), const_spec((HW, 9)), const_spec((2, Cout)),
                  const_spec((9 * Cout, Cout))],
        out_specs=(tile_spec(Cout), stats_spec),
        scratch_shapes=[pltpu.VMEM((T, 9 * Cout), jnp.bfloat16)],
        compiler_params=cparams,
    )(y1, masks, ss1, prep["w2c"])
    ss2 = _scale_shift_from_stats(st2, prep["gamma2"], prep["beta2"], R)

    # ---- Pass 3: BN2 + ReLU --------------------------------------------------
    out2d = pl.pallas_call(
        _bn_relu_kernel,
        out_shape=jax.ShapeDtypeStruct((R, Cout), jnp.float32),
        grid=grid,
        in_specs=[tile_spec(Cout), const_spec((2, Cout))],
        out_specs=tile_spec(Cout),
        compiler_params=cparams,
    )(y2, ss2)

    out = out2d.reshape(N, H, W, Cout)
    return jnp.transpose(out, (0, 3, 1, 2))            # back to NCHW


# ---------------------------------------------------------------------------
# Reference, params, test
# ---------------------------------------------------------------------------

def _reference(x_nchw, params):
    """Pure-JAX f32 reference (lax conv + batch-stat BN + ReLU), NCHW in/out."""
    x = jnp.transpose(x_nchw, (0, 2, 3, 1)).astype(jnp.float32)
    dn = ("NHWC", "HWIO", "NHWC")
    eps = 1e-5

    def block(h, w, b, g, be):
        y = jax.lax.conv_general_dilated(h, w, (1, 1), "SAME", dimension_numbers=dn) + b
        m = jnp.mean(y, axis=(0, 1, 2))
        v = jnp.mean((y - m) ** 2, axis=(0, 1, 2))
        y = (y - m) / jnp.sqrt(v + eps) * g + be
        return jnp.maximum(y, 0.0)

    h = block(x, params["w1"], params["b1"], params["gamma1"], params["beta1"])
    h = block(h, params["w2"], params["b2"], params["gamma2"], params["beta2"])
    return jnp.transpose(h, (0, 3, 1, 2))


def init_params(key, in_channels, out_channels):
    ks = jax.random.split(key, 4)
    return {
        # conv weights in HWIO (PyTorch OIHW transposed: (2, 3, 1, 0))
        "w1": 0.1 * jax.random.normal(ks[0], (3, 3, in_channels, out_channels), jnp.float32),
        "b1": 0.1 * jax.random.normal(ks[1], (out_channels,), jnp.float32),
        "gamma1": jnp.ones((out_channels,), jnp.float32),
        "beta1": jnp.zeros((out_channels,), jnp.float32),
        "w2": 0.1 * jax.random.normal(ks[2], (3, 3, out_channels, out_channels), jnp.float32),
        "b2": 0.1 * jax.random.normal(ks[3], (out_channels,), jnp.float32),
        "gamma2": jnp.ones((out_channels,), jnp.float32),
        "beta2": jnp.zeros((out_channels,), jnp.float32),
    }


if __name__ == "__main__":
    key = jax.random.PRNGKey(0)
    k_x, k_p = jax.random.split(key)

    N, Cin, Cout, H, W = 2, 4, 8, 16, 16
    x = jax.random.normal(k_x, (N, Cin, H, W), jnp.float32)   # NCHW like PyTorch
    params = init_params(k_p, Cin, Cout)

    # Pre-round x and conv weights to bf16 values so the f32 reference and the
    # bf16-matmul kernel see identical operands.
    x = x.astype(jnp.bfloat16).astype(jnp.float32)
    params["w1"] = params["w1"].astype(jnp.bfloat16).astype(jnp.float32)
    params["w2"] = params["w2"].astype(jnp.bfloat16).astype(jnp.float32)

    prep = prepare_params(params)                      # hoisted one-time prep
    fwd = jax.jit(double_conv)

    out = jax.block_until_ready(fwd(x, prep))
    ref = _reference(x, params)

    assert out.shape == (N, Cout, H, W)
    # Tolerance covers the kernel's internal bf16 rounding of the matmul LHS and
    # of the two inter-pass activations (stored as bf16 to halve HBM traffic).
    assert jnp.allclose(out, ref, rtol=2e-2, atol=3e-2), "mismatch vs JAX reference"

    print("KERNEL_OK")
</pallas_src>

<mosaic_0001>
module attributes {stable_mosaic.version = 11 : i64} {
  func.func @_conv1_kernel(%arg0: i32, %arg1: memref<256x4xbf16, #tpu.memory_space<vmem>>, %arg2: memref<256x9xbf16, #tpu.memory_space<vmem>>, %arg3: memref<36x8xbf16, #tpu.memory_space<vmem>>, %arg4: memref<256x8xbf16, #tpu.memory_space<vmem>>, %arg5: memref<1x2x8xf32, #tpu.memory_space<vmem>>, %arg6: memref<256x36xbf16, #tpu.memory_space<vmem>>) attributes {dimension_semantics = [#tpu.dimension_semantics<parallel>], iteration_bounds = array<i64: 2>, scalar_prefetch = 0 : i64, scratch_operands = 1 : i64, tpu.core_type = #tpu.core_type<tc>, window_params = [{transform_indices = @transform_0, window_bounds = array<i64: 256, 4>}, {pipeline_mode = #tpu.pipeline_mode<synchronous>, transform_indices = @transform_1, window_bounds = array<i64: 256, 9>}, {pipeline_mode = #tpu.pipeline_mode<synchronous>, transform_indices = @transform_2, window_bounds = array<i64: 36, 8>}, {transform_indices = @transform_3, window_bounds = array<i64: 256, 8>}, {transform_indices = @transform_4, window_bounds = array<i64: 1, 2, 8>}]} {
    %c0 = arith.constant 0 : index
    %c0_0 = arith.constant 0 : index
    %0 = vector.load %arg1[%c0, %c0_0] : memref<256x4xbf16, #tpu.memory_space<vmem>>, vector<256x4xbf16>
    %c0_1 = arith.constant 0 : index
    %c0_2 = arith.constant 0 : index
    %1 = vector.load %arg2[%c0_1, %c0_2] : memref<256x9xbf16, #tpu.memory_space<vmem>>, vector<256x9xbf16>
    %2 = vector.extract_strided_slice %0 {offsets = [239, 0], sizes = [17, 4], strides = [1, 1]} : vector<256x4xbf16> to vector<17x4xbf16>
    %3 = vector.extract_strided_slice %0 {offsets = [0, 0], sizes = [239, 4], strides = [1, 1]} : vector<256x4xbf16> to vector<239x4xbf16>
    %4 = tpu.concatenate %2, %3 in 0 : vector<17x4xbf16>, vector<239x4xbf16> -> vector<256x4xbf16>
    %5 = vector.extract_strided_slice %1 {offsets = [0, 0], sizes = [256, 1], strides = [1, 1]} : vector<256x9xbf16> to vector<256x1xbf16>
    %6 = vector.broadcast %5 : vector<256x1xbf16> to vector<256x4xbf16>
    %7 = arith.mulf %4, %6 : vector<256x4xbf16>
    %c0_3 = arith.constant 0 : index
    %c0_4 = arith.constant 0 : index
    %8 = vector.load %arg6[%c0_3, %c0_4] : memref<256x36xbf16, #tpu.memory_space<vmem>>, vector<256x4xbf16>
    tpu.vector_store %arg6[%c0_3, %c0_4], %7 {strides = array<i32>} : memref<256x36xbf16, #tpu.memory_space<vmem>>, vector<256x4xbf16>,
    %9 = vector.extract_strided_slice %0 {offsets = [240, 0], sizes = [16, 4], strides = [1, 1]} : vector<256x4xbf16> to vector<16x4xbf16>
    %10 = vector.extract_strided_slice %0 {offsets = [0, 0], sizes = [240, 4], strides = [1, 1]} : vector<256x4xbf16> to vector<240x4xbf16>
    %11 = tpu.concatenate %9, %10 in 0 : vector<16x4xbf16>, vector<240x4xbf16> -> vector<256x4xbf16>
    %12 = vector.extract_strided_slice %1 {offsets = [0, 1], sizes = [256, 1], strides = [1, 1]} : vector<256x9xbf16> to vector<256x1xbf16>
    %13 = vector.broadcast %12 : vector<256x1xbf16> to vector<256x4xbf16>
    %14 = arith.mulf %11, %13 : vector<256x4xbf16>
    %c0_5 = arith.constant 0 : index
    %c4 = arith.constant 4 : index
    %15 = vector.load %arg6[%c0_5, %c4] : memref<256x36xbf16, #tpu.memory_space<vmem>>, vector<256x4xbf16>
    tpu.vector_store %arg6[%c0_5, %c4], %14 {strides = array<i32>} : memref<256x36xbf16, #tpu.memory_space<vmem>>, vector<256x4xbf16>,
    %16 = vector.extract_strided_slice %0 {offsets = [241, 0], sizes = [15, 4], strides = [1, 1]} : vector<256x4xbf16> to vector<15x4xbf16>
    %17 = vector.extract_strided_slice %0 {offsets = [0, 0], sizes = [241, 4], strides = [1, 1]} : vector<256x4xbf16> to vector<241x4xbf16>
    %18 = tpu.concatenate %16, %17 in 0 : vector<15x4xbf16>, vector<241x4xbf16> -> vector<256x4xbf16>
    %19 = vector.extract_strided_slice %1 {offsets = [0, 2], sizes = [256, 1], strides = [1, 1]} : vector<256x9xbf16> to vector<256x1xbf16>
    %20 = vector.broadcast %19 : vector<256x1xbf16> to vector<256x4xbf16>
    %21 = arith.mulf %18, %20 : vector<256x4xbf16>
    %c0_6 = arith.constant 0 : index
    %c8 = arith.constant 8 : index
    %22 = vector.load %arg6[%c0_6, %c8] : memref<256x36xbf16, #tpu.memory_space<vmem>>, vector<256x4xbf16>
    tpu.vector_store %arg6[%c0_6, %c8], %21 {strides = array<i32>} : memref<256x36xbf16, #tpu.memory_space<vmem>>, vector<256x4xbf16>,
    %23 = vector.extract_strided_slice %0 {offsets = [255, 0], sizes = [1, 4], strides = [1, 1]} : vector<256x4xbf16> to vector<1x4xbf16>
    %24 = vector.extract_strided_slice %0 {offsets = [0, 0], sizes = [255, 4], strides = [1, 1]} : vector<256x4xbf16> to vector<255x4xbf16>
    %25 = tpu.concatenate %23, %24 in 0 : vector<1x4xbf16>, vector<255x4xbf16> -> vector<256x4xbf16>
    %26 = vector.extract_strided_slice %1 {offsets = [0, 3], sizes = [256, 1], strides = [1, 1]} : vector<256x9xbf16> to vector<256x1xbf16>
    %27 = vector.broadcast %26 : vector<256x1xbf16> to vector<256x4xbf16>
    %28 = arith.mulf %25, %27 : vector<256x4xbf16>
    %c0_7 = arith.constant 0 : index
    %c12 = arith.constant 12 : index
    %29 = vector.load %arg6[%c0_7, %c12] : memref<256x36xbf16, #tpu.memory_space<vmem>>, vector<256x4xbf16>
    tpu.vector_store %arg6[%c0_7, %c12], %28 {strides = array<i32>} : memref<256x36xbf16, #tpu.memory_space<vmem>>, vector<256x4xbf16>,
    %c0_8 = arith.constant 0 : index
    %c16 = arith.constant 16 : index
    %30 = vector.load %arg6[%c0_8, %c16] : memref<256x36xbf16, #tpu.memory_space<vmem>>, vector<256x4xbf16>
    tpu.vector_store %arg6[%c0_8, %c16], %0 {strides = array<i32>} : memref<256x36xbf16, #tpu.memory_space<vmem>>, vector<256x4xbf16>,
    %31 = vector.extract_strided_slice %0 {offsets = [1, 0], sizes = [255, 4], strides = [1, 1]} : vector<256x4xbf16> to vector<255x4xbf16>
    %32 = vector.extract_strided_slice %0 {offsets = [0, 0], sizes = [1, 4], strides = [1, 1]} : vector<256x4xbf16> to vector<1x4xbf16>
    %33 = tpu.concatenate %31, %32 in 0 : vector<255x4xbf16>, vector<1x4xbf16> -> vector<256x4xbf16>
    %34 = vector.extract_strided_slice %1 {offsets = [0, 5], sizes = [256, 1], strides = [1, 1]} : vector<256x9xbf16> to vector<256x1xbf16>
    %35 = vector.broadcast %34 : vector<256x1xbf16> to vector<256x4xbf16>
    %36 = arith.mulf %33, %35 : vector<256x4xbf16>
    %c0_9 = arith.constant 0 : index
    %c20 = arith.constant 20 : index
    %37 = vector.load %arg6[%c0_9, %c20] : memref<256x36xbf16, #tpu.memory_space<vmem>>, vector<256x4xbf16>
    tpu.vector_store %arg6[%c0_9, %c20], %36 {strides = array<i32>} : memref<256x36xbf16, #tpu.memory_space<vmem>>, vector<256x4xbf16>,
    %38 = vector.extract_strided_slice %0 {offsets = [15, 0], sizes = [241, 4], strides = [1, 1]} : vector<256x4xbf16> to vector<241x4xbf16>
    %39 = vector.extract_strided_slice %0 {offsets = [0, 0], sizes = [15, 4], strides = [1, 1]} : vector<256x4xbf16> to vector<15x4xbf16>
    %40 = tpu.concatenate %38, %39 in 0 : vector<241x4xbf16>, vector<15x4xbf16> -> vector<256x4xbf16>
    %41 = vector.extract_strided_slice %1 {offsets = [0, 6], sizes = [256, 1], strides = [1, 1]} : vector<256x9xbf16> to vector<256x1xbf16>
    %42 = vector.broadcast %41 : vector<256x1xbf16> to vector<256x4xbf16>
    %43 = arith.mulf %40, %42 : vector<256x4xbf16>
    %c0_10 = arith.constant 0 : index
    %c24 = arith.constant 24 : index
    %44 = vector.load %arg6[%c0_10, %c24] : memref<256x36xbf16, #tpu.memory_space<vmem>>, vector<256x4xbf16>
    tpu.vector_store %arg6[%c0_10, %c24], %43 {strides = array<i32>} : memref<256x36xbf16, #tpu.memory_space<vmem>>, vector<256x4xbf16>,
    %45 = vector.extract_strided_slice %0 {offsets = [16, 0], sizes = [240, 4], strides = [1, 1]} : vector<256x4xbf16> to vector<240x4xbf16>
    %46 = vector.extract_strided_slice %0 {offsets = [0, 0], sizes = [16, 4], strides = [1, 1]} : vector<256x4xbf16> to vector<16x4xbf16>
    %47 = tpu.concatenate %45, %46 in 0 : vector<240x4xbf16>, vector<16x4xbf16> -> vector<256x4xbf16>
    %48 = vector.extract_strided_slice %1 {offsets = [0, 7], sizes = [256, 1], strides = [1, 1]} : vector<256x9xbf16> to vector<256x1xbf16>
    %49 = vector.broadcast %48 : vector<256x1xbf16> to vector<256x4xbf16>
    %50 = arith.mulf %47, %49 : vector<256x4xbf16>
    %c0_11 = arith.constant 0 : index
    %c28 = arith.constant 28 : index
    %51 = vector.load %arg6[%c0_11, %c28] : memref<256x36xbf16, #tpu.memory_space<vmem>>, vector<256x4xbf16>
    tpu.vector_store %arg6[%c0_11, %c28], %50 {strides = array<i32>} : memref<256x36xbf16, #tpu.memory_space<vmem>>, vector<256x4xbf16>,
    %52 = vector.extract_strided_slice %0 {offsets = [17, 0], sizes = [239, 4], strides = [1, 1]} : vector<256x4xbf16> to vector<239x4xbf16>
    %53 = vector.extract_strided_slice %0 {offsets = [0, 0], sizes = [17, 4], strides = [1, 1]} : vector<256x4xbf16> to vector<17x4xbf16>
    %54 = tpu.concatenate %52, %53 in 0 : vector<239x4xbf16>, vector<17x4xbf16> -> vector<256x4xbf16>
    %55 = vector.extract_strided_slice %1 {offsets = [0, 8], sizes = [256, 1], strides = [1, 1]} : vector<256x9xbf16> to vector<256x1xbf16>
    %56 = vector.broadcast %55 : vector<256x1xbf16> to vector<256x4xbf16>
    %57 = arith.mulf %54, %56 : vector<256x4xbf16>
    %c0_12 = arith.constant 0 : index
    %c32 = arith.constant 32 : index
    %58 = vector.load %arg6[%c0_12, %c32] : memref<256x36xbf16, #tpu.memory_space<vmem>>, vector<256x4xbf16>
    tpu.vector_store %arg6[%c0_12, %c32], %57 {strides = array<i32>} : memref<256x36xbf16, #tpu.memory_space<vmem>>, vector<256x4xbf16>,
    %c0_13 = arith.constant 0 : index
    %c0_14 = arith.constant 0 : index
    %59 = vector.load %arg6[%c0_13, %c0_14] : memref<256x36xbf16, #tpu.memory_space<vmem>>, vector<256x36xbf16>
    %c0_15 = arith.constant 0 : index
    %c0_16 = arith.constant 0 : index
    %60 = vector.load %arg3[%c0_15, %c0_16] : memref<36x8xbf16, #tpu.memory_space<vmem>>, vector<36x8xbf16>
    %cst = arith.constant dense<0.000000e+00> : vector<256x8xf32>
    %61 = tpu.matmul %59, %60, %cst {dimension_numbers = #tpu.dot_dimension_numbers<[1], [0], [0], [1], [0, 0, 1, 1], [], []>} : vector<256x36xbf16>, vector<36x8xbf16>, vector<256x8xf32> -> vector<256x8xf32>
    %62 = arith.truncf %61 : vector<256x8xf32> to vector<256x8xbf16>
    %c0_17 = arith.constant 0 : index
    %c0_18 = arith.constant 0 : index
    %63 = vector.load %arg4[%c0_17, %c0_18] : memref<256x8xbf16, #tpu.memory_space<vmem>>, vector<256x8xbf16>
    tpu.vector_store %arg4[%c0_17, %c0_18], %62 {strides = array<i32>} : memref<256x8xbf16, #tpu.memory_space<vmem>>, vector<256x8xbf16>,
    %cst_19 = arith.constant dense<0.000000e+00> : vector<8xf32>
    %64 = vector.multi_reduction <add>, %61, %cst_19 [0] : vector<256x8xf32> to vector<8xf32>
    %65 = vector.shape_cast %64 : vector<8xf32> to vector<1x8xf32>
    %66 = arith.mulf %61, %61 : vector<256x8xf32>
    %cst_20 = arith.constant dense<0.000000e+00> : vector<8xf32>
    %67 = vector.multi_reduction <add>, %66, %cst_20 [0] : vector<256x8xf32> to vector<8xf32>
    %68 = vector.shape_cast %67 : vector<8xf32> to vector<1x8xf32>
    %69 = tpu.concatenate %65, %68 in 0 : vector<1x8xf32>, vector<1x8xf32> -> vector<2x8xf32>
    %c0_21 = arith.constant 0 : index
    %c0_22 = arith.constant 0 : index
    %c0_23 = arith.constant 0 : index
    %70 = vector.load %arg5[%c0_21, %c0_22, %c0_23] : memref<1x2x8xf32, #tpu.memory_space<vmem>>, vector<1x2x8xf32>
    %71 = vector.shape_cast %70 : vector<1x2x8xf32> to vector<2x8xf32>
    %72 = vector.shape_cast %69 : vector<2x8xf32> to vector<1x2x8xf32>
    tpu.vector_store %arg5[%c0_21, %c0_22, %c0_23], %72 {strides = array<i32>} : memref<1x2x8xf32, #tpu.memory_space<vmem>>, vector<1x2x8xf32>,
    return
  }
  func.func @transform_0(%arg0: i32) -> (i32, i32) {
    %c0_i32 = arith.constant 0 : i32
    %c0_i32_0 = arith.constant 0 : i32
    return %arg0, %c0_i32 : i32, i32
  }
  func.func @transform_1(%arg0: i32) -> (i32, i32) {
    %c0_i32 = arith.constant 0 : i32
    %c0_i32_0 = arith.constant 0 : i32
    %c0_i32_1 = arith.constant 0 : i32
    return %c0_i32, %c0_i32_0 : i32, i32
  }
  func.func @transform_2(%arg0: i32) -> (i32, i32) {
    %c0_i32 = arith.constant 0 : i32
    %c0_i32_0 = arith.constant 0 : i32
    %c0_i32_1 = arith.constant 0 : i32
    return %c0_i32, %c0_i32_0 : i32, i32
  }
  func.func @transform_3(%arg0: i32) -> (i32, i32) {
    %c0_i32 = arith.constant 0 : i32
    %c0_i32_0 = arith.constant 0 : i32
    return %arg0, %c0_i32 : i32, i32
  }
  func.func @transform_4(%arg0: i32) -> (i32, i32, i32) {
    %c0_i32 = arith.constant 0 : i32
    %c0_i32_0 = arith.constant 0 : i32
    %c0_i32_1 = arith.constant 0 : i32
    return %arg0, %c0_i32, %c0_i32_0 : i32, i32, i32
  }
}

module attributes {stable_mosaic.version = 11 : i64} {
  func.func @_bn_relu_kernel(%arg0: i32, %arg1: memref<256x8xbf16, #tpu.memory_space<vmem>>, %arg2: memref<2x8xf32, #tpu.memory_space<vmem>>, %arg3: memref<256x8xf32, #tpu.memory_space<vmem>>) attributes {dimension_semantics = [#tpu.dimension_semantics<parallel>], iteration_bounds = array<i64: 2>, scalar_prefetch = 0 : i64, scratch_operands = 0 : i64, tpu.core_type = #tpu.core_type<tc>, window_params = [{transform_indices = @transform_0, window_bounds = array<i64: 256, 8>}, {pipeline_mode = #tpu.pipeline_mode<synchronous>, transform_indices = @transform_1, window_bounds = array<i64: 2, 8>}, {transform_indices = @transform_2, window_bounds = array<i64: 256, 8>}]} {
    %c0 = arith.constant 0 : index
    %c0_0 = arith.constant 0 : index
    %0 = vector.load %arg2[%c0, %c0_0] : memref<2x8xf32, #tpu.memory_space<vmem>>, vector<2x8xf32>
    %c0_1 = arith.constant 0 : index
    %c0_2 = arith.constant 0 : index
    %1 = vector.load %arg1[%c0_1, %c0_2] : memref<256x8xbf16, #tpu.memory_space<vmem>>, vector<256x8xbf16>
    %2 = arith.extf %1 : vector<256x8xbf16> to vector<256x8xf32>
    %3 = vector.extract_strided_slice %0 {offsets = [0, 0], sizes = [1, 8], strides = [1, 1]} : vector<2x8xf32> to vector<1x8xf32>
    %4 = vector.broadcast %3 : vector<1x8xf32> to vector<256x8xf32>
    %5 = arith.mulf %2, %4 : vector<256x8xf32>
    %6 = vector.extract_strided_slice %0 {offsets = [1, 0], sizes = [1, 8], strides = [1, 1]} : vector<2x8xf32> to vector<1x8xf32>
    %7 = vector.broadcast %6 : vector<1x8xf32> to vector<256x8xf32>
    %8 = arith.addf %5, %7 : vector<256x8xf32>
    %cst = arith.constant 0.000000e+00 : f32
    %9 = vector.broadcast %cst : f32 to vector<256x8xf32>
    %10 = arith.maximumf %8, %9 : vector<256x8xf32>
    %c0_3 = arith.constant 0 : index
    %c0_4 = arith.constant 0 : index
    %11 = vector.load %arg3[%c0_3, %c0_4] : memref<256x8xf32, #tpu.memory_space<vmem>>, vector<256x8xf32>
    tpu.vector_store %arg3[%c0_3, %c0_4], %10 {strides = array<i32>} : memref<256x8xf32, #tpu.memory_space<vmem>>, vector<256x8xf32>,
    return
  }
  func.func @transform_0(%arg0: i32) -> (i32, i32) {
    %c0_i32 = arith.constant 0 : i32
    %c0_i32_0 = arith.constant 0 : i32
    return %arg0, %c0_i32 : i32, i32
  }
  func.func @transform_1(%arg0: i32) -> (i32, i32) {
    %c0_i32 = arith.constant 0 : i32
    %c0_i32_0 = arith.constant 0 : i32
    %c0_i32_1 = arith.constant 0 : i32
    return %c0_i32, %c0_i32_0 : i32, i32
  }
  func.func @transform_2(%arg0: i32) -> (i32, i32) {
    %c0_i32 = arith.constant 0 : i32
    %c0_i32_0 = arith.constant 0 : i32
    return %arg0, %c0_i32 : i32, i32
  }
}

module attributes {stable_mosaic.version = 11 : i64} {
  func.func @_bn_relu_conv_kernel(%arg0: i32, %arg1: memref<256x8xbf16, #tpu.memory_space<vmem>>, %arg2: memref<256x9xbf16, #tpu.memory_space<vmem>>, %arg3: memref<2x8xf32, #tpu.memory_space<vmem>>, %arg4: memref<72x8xbf16, #tpu.memory_space<vmem>>, %arg5: memref<256x8xbf16, #tpu.memory_space<vmem>>, %arg6: memref<1x2x8xf32, #tpu.memory_space<vmem>>, %arg7: memref<256x72xbf16, #tpu.memory_space<vmem>>) attributes {dimension_semantics = [#tpu.dimension_semantics<parallel>], iteration_bounds = array<i64: 2>, scalar_prefetch = 0 : i64, scratch_operands = 1 : i64, tpu.core_type = #tpu.core_type<tc>, window_params = [{transform_indices = @transform_0, window_bounds = array<i64: 256, 8>}, {pipeline_mode = #tpu.pipeline_mode<synchronous>, transform_indices = @transform_1, window_bounds = array<i64: 256, 9>}, {pipeline_mode = #tpu.pipeline_mode<synchronous>, transform_indices = @transform_2, window_bounds = array<i64: 2, 8>}, {pipeline_mode = #tpu.pipeline_mode<synchronous>, transform_indices = @transform_3, window_bounds = array<i64: 72, 8>}, {transform_indices = @transform_4, window_bounds = array<i64: 256, 8>}, {transform_indices = @transform_5, window_bounds = array<i64: 1, 2, 8>}]} {
    %c0 = arith.constant 0 : index
    %c0_0 = arith.constant 0 : index
    %0 = vector.load %arg3[%c0, %c0_0] : memref<2x8xf32, #tpu.memory_space<vmem>>, vector<2x8xf32>
    %c0_1 = arith.constant 0 : index
    %c0_2 = arith.constant 0 : index
    %1 = vector.load %arg1[%c0_1, %c0_2] : memref<256x8xbf16, #tpu.memory_space<vmem>>, vector<256x8xbf16>
    %2 = arith.extf %1 : vector<256x8xbf16> to vector<256x8xf32>
    %3 = vector.extract_strided_slice %0 {offsets = [0, 0], sizes = [1, 8], strides = [1, 1]} : vector<2x8xf32> to vector<1x8xf32>
    %4 = vector.broadcast %3 : vector<1x8xf32> to vector<256x8xf32>
    %5 = arith.mulf %2, %4 : vector<256x8xf32>
    %6 = vector.extract_strided_slice %0 {offsets = [1, 0], sizes = [1, 8], strides = [1, 1]} : vector<2x8xf32> to vector<1x8xf32>
    %7 = vector.broadcast %6 : vector<1x8xf32> to vector<256x8xf32>
    %8 = arith.addf %5, %7 : vector<256x8xf32>
    %cst = arith.constant 0.000000e+00 : f32
    %9 = vector.broadcast %cst : f32 to vector<256x8xf32>
    %10 = arith.maximumf %8, %9 : vector<256x8xf32>
    %11 = arith.truncf %10 : vector<256x8xf32> to vector<256x8xbf16>
    %c0_3 = arith.constant 0 : index
    %c0_4 = arith.constant 0 : index
    %12 = vector.load %arg2[%c0_3, %c0_4] : memref<256x9xbf16, #tpu.memory_space<vmem>>, vector<256x9xbf16>
    %13 = vector.extract_strided_slice %11 {offsets = [239, 0], sizes = [17, 8], strides = [1, 1]} : vector<256x8xbf16> to vector<17x8xbf16>
    %14 = vector.extract_strided_slice %11 {offsets = [0, 0], sizes = [239, 8], strides = [1, 1]} : vector<256x8xbf16> to vector<239x8xbf16>
    %15 = tpu.concatenate %13, %14 in 0 : vector<17x8xbf16>, vector<239x8xbf16> -> vector<256x8xbf16>
    %16 = vector.extract_strided_slice %12 {offsets = [0, 0], sizes = [256, 1], strides = [1, 1]} : vector<256x9xbf16> to vector<256x1xbf16>
    %17 = vector.broadcast %16 : vector<256x1xbf16> to vector<256x8xbf16>
    %18 = arith.mulf %15, %17 : vector<256x8xbf16>
    %c0_5 = arith.constant 0 : index
    %c0_6 = arith.constant 0 : index
    %19 = vector.load %arg7[%c0_5, %c0_6] : memref<256x72xbf16, #tpu.memory_space<vmem>>, vector<256x8xbf16>
    tpu.vector_store %arg7[%c0_5, %c0_6], %18 {strides = array<i32>} : memref<256x72xbf16, #tpu.memory_space<vmem>>, vector<256x8xbf16>,
    %20 = vector.extract_strided_slice %11 {offsets = [240, 0], sizes = [16, 8], strides = [1, 1]} : vector<256x8xbf16> to vector<16x8xbf16>
    %21 = vector.extract_strided_slice %11 {offsets = [0, 0], sizes = [240, 8], strides = [1, 1]} : vector<256x8xbf16> to vector<240x8xbf16>
    %22 = tpu.concatenate %20, %21 in 0 : vector<16x8xbf16>, vector<240x8xbf16> -> vector<256x8xbf16>
    %23 = vector.extract_strided_slice %12 {offsets = [0, 1], sizes = [256, 1], strides = [1, 1]} : vector<256x9xbf16> to vector<256x1xbf16>
    %24 = vector.broadcast %23 : vector<256x1xbf16> to vector<256x8xbf16>
    %25 = arith.mulf %22, %24 : vector<256x8xbf16>
    %c0_7 = arith.constant 0 : index
    %c8 = arith.constant 8 : index
    %26 = vector.load %arg7[%c0_7, %c8] : memref<256x72xbf16, #tpu.memory_space<vmem>>, vector<256x8xbf16>
    tpu.vector_store %arg7[%c0_7, %c8], %25 {strides = array<i32>} : memref<256x72xbf16, #tpu.memory_space<vmem>>, vector<256x8xbf16>,
    %27 = vector.extract_strided_slice %11 {offsets = [241, 0], sizes = [15, 8], strides = [1, 1]} : vector<256x8xbf16> to vector<15x8xbf16>
    %28 = vector.extract_strided_slice %11 {offsets = [0, 0], sizes = [241, 8], strides = [1, 1]} : vector<256x8xbf16> to vector<241x8xbf16>
    %29 = tpu.concatenate %27, %28 in 0 : vector<15x8xbf16>, vector<241x8xbf16> -> vector<256x8xbf16>
    %30 = vector.extract_strided_slice %12 {offsets = [0, 2], sizes = [256, 1], strides = [1, 1]} : vector<256x9xbf16> to vector<256x1xbf16>
    %31 = vector.broadcast %30 : vector<256x1xbf16> to vector<256x8xbf16>
    %32 = arith.mulf %29, %31 : vector<256x8xbf16>
    %c0_8 = arith.constant 0 : index
    %c16 = arith.constant 16 : index
    %33 = vector.load %arg7[%c0_8, %c16] : memref<256x72xbf16, #tpu.memory_space<vmem>>, vector<256x8xbf16>
    tpu.vector_store %arg7[%c0_8, %c16], %32 {strides = array<i32>} : memref<256x72xbf16, #tpu.memory_space<vmem>>, vector<256x8xbf16>,
    %34 = vector.extract_strided_slice %11 {offsets = [255, 0], sizes = [1, 8], strides = [1, 1]} : vector<256x8xbf16> to vector<1x8xbf16>
    %35 = vector.extract_strided_slice %11 {offsets = [0, 0], sizes = [255, 8], strides = [1, 1]} : vector<256x8xbf16> to vector<255x8xbf16>
    %36 = tpu.concatenate %34, %35 in 0 : vector<1x8xbf16>, vector<255x8xbf16> -> vector<256x8xbf16>
    %37 = vector.extract_strided_slice %12 {offsets = [0, 3], sizes = [256, 1], strides = [1, 1]} : vector<256x9xbf16> to vector<256x1xbf16>
    %38 = vector.broadcast %37 : vector<256x1xbf16> to vector<256x8xbf16>
    %39 = arith.mulf %36, %38 : vector<256x8xbf16>
    %c0_9 = arith.constant 0 : index
    %c24 = arith.constant 24 : index
    %40 = vector.load %arg7[%c0_9, %c24] : memref<256x72xbf16, #tpu.memory_space<vmem>>, vector<256x8xbf16>
    tpu.vector_store %arg7[%c0_9, %c24], %39 {strides = array<i32>} : memref<256x72xbf16, #tpu.memory_space<vmem>>, vector<256x8xbf16>,
    %c0_10 = arith.constant 0 : index
    %c32 = arith.constant 32 : index
    %41 = vector.load %arg7[%c0_10, %c32] : memref<256x72xbf16, #tpu.memory_space<vmem>>, vector<256x8xbf16>
    tpu.vector_store %arg7[%c0_10, %c32], %11 {strides = array<i32>} : memref<256x72xbf16, #tpu.memory_space<vmem>>, vector<256x8xbf16>,
    %42 = vector.extract_strided_slice %11 {offsets = [1, 0], sizes = [255, 8], strides = [1, 1]} : vector<256x8xbf16> to vector<255x8xbf16>
    %43 = vector.extract_strided_slice %11 {offsets = [0, 0], sizes = [1, 8], strides = [1, 1]} : vector<256x8xbf16> to vector<1x8xbf16>
    %44 = tpu.concatenate %42, %43 in 0 : vector<255x8xbf16>, vector<1x8xbf16> -> vector<256x8xbf16>
    %45 = vector.extract_strided_slice %12 {offsets = [0, 5], sizes = [256, 1], strides = [1, 1]} : vector<256x9xbf16> to vector<256x1xbf16>
    %46 = vector.broadcast %45 : vector<256x1xbf16> to vector<256x8xbf16>
    %47 = arith.mulf %44, %46 : vector<256x8xbf16>
    %c0_11 = arith.constant 0 : index
    %c40 = arith.constant 40 : index
    %48 = vector.load %arg7[%c0_11, %c40] : memref<256x72xbf16, #tpu.memory_space<vmem>>, vector<256x8xbf16>
    tpu.vector_store %arg7[%c0_11, %c40], %47 {strides = array<i32>} : memref<256x72xbf16, #tpu.memory_space<vmem>>, vector<256x8xbf16>,
    %49 = vector.extract_strided_slice %11 {offsets = [15, 0], sizes = [241, 8], strides = [1, 1]} : vector<256x8xbf16> to vector<241x8xbf16>
    %50 = vector.extract_strided_slice %11 {offsets = [0, 0], sizes = [15, 8], strides = [1, 1]} : vector<256x8xbf16> to vector<15x8xbf16>
    %51 = tpu.concatenate %49, %50 in 0 : vector<241x8xbf16>, vector<15x8xbf16> -> vector<256x8xbf16>
    %52 = vector.extract_strided_slice %12 {offsets = [0, 6], sizes = [256, 1], strides = [1, 1]} : vector<256x9xbf16> to vector<256x1xbf16>
    %53 = vector.broadcast %52 : vector<256x1xbf16> to vector<256x8xbf16>
    %54 = arith.mulf %51, %53 : vector<256x8xbf16>
    %c0_12 = arith.constant 0 : index
    %c48 = arith.constant 48 : index
    %55 = vector.load %arg7[%c0_12, %c48] : memref<256x72xbf16, #tpu.memory_space<vmem>>, vector<256x8xbf16>
    tpu.vector_store %arg7[%c0_12, %c48], %54 {strides = array<i32>} : memref<256x72xbf16, #tpu.memory_space<vmem>>, vector<256x8xbf16>,
    %56 = vector.extract_strided_slice %11 {offsets = [16, 0], sizes = [240, 8], strides = [1, 1]} : vector<256x8xbf16> to vector<240x8xbf16>
    %57 = vector.extract_strided_slice %11 {offsets = [0, 0], sizes = [16, 8], strides = [1, 1]} : vector<256x8xbf16> to vector<16x8xbf16>
    %58 = tpu.concatenate %56, %57 in 0 : vector<240x8xbf16>, vector<16x8xbf16> -> vector<256x8xbf16>
    %59 = vector.extract_strided_slice %12 {offsets = [0, 7], sizes = [256, 1], strides = [1, 1]} : vector<256x9xbf16> to vector<256x1xbf16>
    %60 = vector.broadcast %59 : vector<256x1xbf16> to vector<256x8xbf16>
    %61 = arith.mulf %58, %60 : vector<256x8xbf16>
    %c0_13 = arith.constant 0 : index
    %c56 = arith.constant 56 : index
    %62 = vector.load %arg7[%c0_13, %c56] : memref<256x72xbf16, #tpu.memory_space<vmem>>, vector<256x8xbf16>
    tpu.vector_store %arg7[%c0_13, %c56], %61 {strides = array<i32>} : memref<256x72xbf16, #tpu.memory_space<vmem>>, vector<256x8xbf16>,
    %63 = vector.extract_strided_slice %11 {offsets = [17, 0], sizes = [239, 8], strides = [1, 1]} : vector<256x8xbf16> to vector<239x8xbf16>
    %64 = vector.extract_strided_slice %11 {offsets = [0, 0], sizes = [17, 8], strides = [1, 1]} : vector<256x8xbf16> to vector<17x8xbf16>
    %65 = tpu.concatenate %63, %64 in 0 : vector<239x8xbf16>, vector<17x8xbf16> -> vector<256x8xbf16>
    %66 = vector.extract_strided_slice %12 {offsets = [0, 8], sizes = [256, 1], strides = [1, 1]} : vector<256x9xbf16> to vector<256x1xbf16>
    %67 = vector.broadcast %66 : vector<256x1xbf16> to vector<256x8xbf16>
    %68 = arith.mulf %65, %67 : vector<256x8xbf16>
    %c0_14 = arith.constant 0 : index
    %c64 = arith.constant 64 : index
    %69 = vector.load %arg7[%c0_14, %c64] : memref<256x72xbf16, #tpu.memory_space<vmem>>, vector<256x8xbf16>
    tpu.vector_store %arg7[%c0_14, %c64], %68 {strides = array<i32>} : memref<256x72xbf16, #tpu.memory_space<vmem>>, vector<256x8xbf16>,
    %c0_15 = arith.constant 0 : index
    %c0_16 = arith.constant 0 : index
    %70 = vector.load %arg7[%c0_15, %c0_16] : memref<256x72xbf16, #tpu.memory_space<vmem>>, vector<256x72xbf16>
    %c0_17 = arith.constant 0 : index
    %c0_18 = arith.constant 0 : index
    %71 = vector.load %arg4[%c0_17, %c0_18] : memref<72x8xbf16, #tpu.memory_space<vmem>>, vector<72x8xbf16>
    %cst_19 = arith.constant dense<0.000000e+00> : vector<256x8xf32>
    %72 = tpu.matmul %70, %71, %cst_19 {dimension_numbers = #tpu.dot_dimension_numbers<[1], [0], [0], [1], [0, 0, 1, 1], [], []>} : vector<256x72xbf16>, vector<72x8xbf16>, vector<256x8xf32> -> vector<256x8xf32>
    %73 = arith.truncf %72 : vector<256x8xf32> to vector<256x8xbf16>
    %c0_20 = arith.constant 0 : index
    %c0_21 = arith.constant 0 : index
    %74 = vector.load %arg5[%c0_20, %c0_21] : memref<256x8xbf16, #tpu.memory_space<vmem>>, vector<256x8xbf16>
    tpu.vector_store %arg5[%c0_20, %c0_21], %73 {strides = array<i32>} : memref<256x8xbf16, #tpu.memory_space<vmem>>, vector<256x8xbf16>,
    %cst_22 = arith.constant dense<0.000000e+00> : vector<8xf32>
    %75 = vector.multi_reduction <add>, %72, %cst_22 [0] : vector<256x8xf32> to vector<8xf32>
    %76 = vector.shape_cast %75 : vector<8xf32> to vector<1x8xf32>
    %77 = arith.mulf %72, %72 : vector<256x8xf32>
    %cst_23 = arith.constant dense<0.000000e+00> : vector<8xf32>
    %78 = vector.multi_reduction <add>, %77, %cst_23 [0] : vector<256x8xf32> to vector<8xf32>
    %79 = vector.shape_cast %78 : vector<8xf32> to vector<1x8xf32>
    %80 = tpu.concatenate %76, %79 in 0 : vector<1x8xf32>, vector<1x8xf32> -> vector<2x8xf32>
    %c0_24 = arith.constant 0 : index
    %c0_25 = arith.constant 0 : index
    %c0_26 = arith.constant 0 : index
    %81 = vector.load %arg6[%c0_24, %c0_25, %c0_26] : memref<1x2x8xf32, #tpu.memory_space<vmem>>, vector<1x2x8xf32>
    %82 = vector.shape_cast %81 : vector<1x2x8xf32> to vector<2x8xf32>
    %83 = vector.shape_cast %80 : vector<2x8xf32> to vector<1x2x8xf32>
    tpu.vector_store %arg6[%c0_24, %c0_25, %c0_26], %83 {strides = array<i32>} : memref<1x2x8xf32, #tpu.memory_space<vmem>>, vector<1x2x8xf32>,
    return
  }
  func.func @transform_0(%arg0: i32) -> (i32, i32) {
    %c0_i32 = arith.constant 0 : i32
    %c0_i32_0 = arith.constant 0 : i32
    return %arg0, %c0_i32 : i32, i32
  }
  func.func @transform_1(%arg0: i32) -> (i32, i32) {
    %c0_i32 = arith.constant 0 : i32
    %c0_i32_0 = arith.constant 0 : i32
    %c0_i32_1 = arith.constant 0 : i32
    return %c0_i32, %c0_i32_0 : i32, i32
  }
  func.func @transform_2(%arg0: i32) -> (i32, i32) {
    %c0_i32 = arith.constant 0 : i32
    %c0_i32_0 = arith.constant 0 : i32
    %c0_i32_1 = arith.constant 0 : i32
    return %c0_i32, %c0_i32_0 : i32, i32
  }
  func.func @transform_3(%arg0: i32) -> (i32, i32) {
    %c0_i32 = arith.constant 0 : i32
    %c0_i32_0 = arith.constant 0 : i32
    %c0_i32_1 = arith.constant 0 : i32
    return %c0_i32, %c0_i32_0 : i32, i32
  }
  func.func @transform_4(%arg0: i32) -> (i32, i32) {
    %c0_i32 = arith.constant 0 : i32
    %c0_i32_0 = arith.constant 0 : i32
    return %arg0, %c0_i32 : i32, i32
  }
  func.func @transform_5(%arg0: i32) -> (i32, i32, i32) {
    %c0_i32 = arith.constant 0 : i32
    %c0_i32_0 = arith.constant 0 : i32
    %c0_i32_1 = arith.constant 0 : i32
    return %arg0, %c0_i32, %c0_i32_0 : i32, i32, i32
  }
}

</mosaic_0001>

<bundles_post_ra>
// kernel: double_conv.5
= control target key start
LH: loop header
LB: loop body
LE: loop exit
PB: predicated region body
PF: predicated region fallthrough
CT: control target
= control target key end

     0   :  { %s526_s9 = smov 0   ;;  %s702_s0 = inlined_call_operand.vmem [shape: bf16[512,8], index: 0, kind: input, shape index: {}]   ;;  %s703_s1 = inlined_call_operand.vmem [shape: f32[2,8], index: 1, kind: input, shape index: {}]   ;;  %s704_s2 = inlined_call_operand.vmem [shape: f32[512,8], index: 2, kind: output, shape index: {}]  }
   0x1 LB: > { %s405_s10 = sadd.s32 4294967295, %s509_s9   ;;  %p409_p0 = scmp.ge.s32.totalorder %s509_s9, 1  ;;  %s509_s9 = sphi %s526_s9, %s12_s9  }
   0x2   : > { %p113_p1 = scmp.lt.s32.totalorder %s509_s9, 3 }
   0x4   : > { %p114_p2 = pnand %p409_p0, %p113_p1 }
   0x5   : > { %s410_s11 = sshll.u32 (!%p114_p2), %s405_s10, 5  ;;  %v212_v0 = vlaneseq (!%p114_p2)  ;;  %v147_v2 = vld [vmem:[%s703_s1] sm:$0x3] (!%p114_p2)  ;;  %vm316_vm0 = vcmask (!%p114_p2), 64512  }
   0x6   : > { %117 = sbr.rel (%p114_p2) target bundleno = 53 (0x35), region = 28  ;;  %p136_p3 = scmp.lt.s32.totalorder (!%p114_p2), %s410_s11, 63 }
   0x7   : > { %v213_v1 = vshrl.u32 (!%p114_p2), %v212_v0, 7 }
   0x9   : > { %v214_v3 = vsub.s32 (!%p114_p2), 0, %v213_v1  ;;  %v250_v4 = vsub.s32 (!%p114_p2), 1, %v213_v1 }
   0xb   : > { %v545_v5 = vrot.slane (!%p114_p2), %v147_v2, %v214_v3  ;;  %v548_v7 = vrot.slane (!%p114_p2), %v147_v2, %v250_v4 }
   0xd   : > { %s706_s11 = smov (!%p136_p3, %s410_s11), 63 }
   0xe   : > { %s411_s14 = sshll.u32 %s706_s11, 2  ;;  %s413_s18 = sshll.u32 %s706_s11, 3 }
   0xf   : > { %s543_s17 = scalar_lea.vmem %s702_s0, %s411_s14  ;;  %s569_s21 = scalar_lea.vmem %s704_s2, %s413_s18 }
  0x10   : > { %v417_v6 = vld [vmem:[%s543_s17] sm:$0xff]   ;;  %v480_v8 = vld [vmem:[%s543_s17 + $0x8] sm:$0xff]   ;;  %v481_v9 = vld [vmem:[%s543_s17 + $0x10] sm:$0xff]  }
  0x11   : > { %v418_v10 = vunpack.c.l.bf16 %v417_v6  ;;  %v419_v11 = vunpack.c.h.bf16 %v417_v6  ;;  %v422_v12 = vunpack.c.l.bf16 %v480_v8  ;;  %v423_v13 = vunpack.c.h.bf16 %v480_v8  ;;  %v482_v14 = vld [vmem:[%s543_s17 + $0x18] sm:$0xff]   ;;  %v483_v35 = vld [vmem:[%s543_s17 + $0x20] sm:$0xff]   ;;  %v484_v36 = vld [vmem:[%s543_s17 + $0x28] sm:$0xff]  }
  0x12   : > { %v426_v15 = vunpack.c.l.bf16 %v481_v9  ;;  %v427_v16 = vunpack.c.h.bf16 %v481_v9  ;;  %v430_v17 = vunpack.c.l.bf16 %v482_v14  ;;  %v431_v18 = vunpack.c.h.bf16 %v482_v14  ;;  %v485_v41 = vld [vmem:[%s543_s17 + $0x30] sm:$0xff]   ;;  %v486_v42 = vld [vmem:[%s543_s17 + $0x38] sm:$0xff]   ;;  %v487_v9 = vld [vmem:[%s543_s17 + $0x40] sm:$0xff]  }
  0x13   : > { %v216_v19 = vmul.f32 %v418_v10, %v545_v5  ;;  %v217_v20 = vmul.f32 %v419_v11, %v545_v5  ;;  %v218_v21 = vmul.f32 %v422_v12, %v545_v5  ;;  %v219_v22 = vmul.f32 %v423_v13, %v545_v5  ;;  %v488_v10 = vld [vmem:[%s543_s17 + $0x48] sm:$0xff]  }
  0x14   : > { %v220_v23 = vmul.f32 %v426_v15, %v545_v5  ;;  %v221_v24 = vmul.f32 %v427_v16, %v545_v5  ;;  %v222_v25 = vmul.f32 %v430_v17, %v545_v5  ;;  %v223_v26 = vmul.f32 %v431_v18, %v545_v5  ;;  %v489_v15 = vld [vmem:[%s543_s17 + $0x50] sm:$0xff]   ;;  %v490_v16 = vld [vmem:[%s543_s17 + $0x58] sm:$0xff]  }
  0x15   : > { %v252_v27 = vadd.f32 %v548_v7, %v216_v19  ;;  %v253_v28 = vadd.f32 %v548_v7, %v217_v20  ;;  %v254_v29 = vadd.f32 %v548_v7, %v218_v21  ;;  %v255_v30 = vadd.f32 %v548_v7, %v219_v22 }
  0x16   : > { %v256_v31 = vadd.f32 %v548_v7, %v220_v23  ;;  %v257_v32 = vadd.f32 %v548_v7, %v221_v24  ;;  %v258_v33 = vadd.f32 %v548_v7, %v222_v25  ;;  %v259_v34 = vadd.f32 %v548_v7, %v223_v26 }
  0x17   : > { %v284_v37 = vmax.f32 %v252_v27, 0.0  ;;  %v285_v38 = vmax.f32 %v253_v28, 0.0  ;;  %v286_v39 = vmax.f32 %v254_v29, 0.0  ;;  %v287_v40 = vmax.f32 %v255_v30, 0.0 }
  0x18   : > { %v288_v43 = vmax.f32 %v256_v31, 0.0  ;;  %v289_v44 = vmax.f32 %v257_v32, 0.0  ;;  %v290_v45 = vmax.f32 %v258_v33, 0.0  ;;  %v291_v46 = vmax.f32 %v259_v34, 0.0 }
  0x19   : > { %317 = vst.msk [vmem:[%s569_s21] sm:$0xff] %vm316_vm0, %v284_v37  ;;  %318 = vst.msk [vmem:[%s569_s21 + $0x8] sm:$0xff] %vm316_vm0, %v285_v38  ;;  %v434_v47 = vunpack.c.l.bf16 %v483_v35  ;;  %v435_v48 = vunpack.c.h.bf16 %v483_v35  ;;  %v438_v49 = vunpack.c.l.bf16 %v484_v36  ;;  %v439_v50 = vunpack.c.h.bf16 %v484_v36 }
  0x1a   : > { %319 = vst.msk [vmem:[%s569_s21 + $0x10] sm:$0xff] %vm316_vm0, %v286_v39  ;;  %320 = vst.msk [vmem:[%s569_s21 + $0x18] sm:$0xff] %vm316_vm0, %v287_v40  ;;  %v442_v51 = vunpack.c.l.bf16 %v485_v41  ;;  %v443_v52 = vunpack.c.h.bf16 %v485_v41  ;;  %v446_v53 = vunpack.c.l.bf16 %v486_v42  ;;  %v447_v54 = vunpack.c.h.bf16 %v486_v42 }
  0x1b   : > { %321 = vst.msk [vmem:[%s569_s21 + $0x20] sm:$0xff] %vm316_vm0, %v288_v43  ;;  %322 = vst.msk [vmem:[%s569_s21 + $0x28] sm:$0xff] %vm316_vm0, %v289_v44  ;;  %v224_v55 = vmul.f32 %v434_v47, %v545_v5  ;;  %v225_v56 = vmul.f32 %v435_v48, %v545_v5  ;;  %v226_v57 = vmul.f32 %v438_v49, %v545_v5  ;;  %v450_v21 = vunpack.c.l.bf16 %v487_v9 }
  0x1c   : > { %323 = vst.msk [vmem:[%s569_s21 + $0x30] sm:$0xff] %vm316_vm0, %v290_v45  ;;  %324 = vst.msk [vmem:[%s569_s21 + $0x38] sm:$0xff] %vm316_vm0, %v291_v46  ;;  %v227_v58 = vmul.f32 %v439_v50, %v545_v5  ;;  %v228_v59 = vmul.f32 %v442_v51, %v545_v5  ;;  %v229_v60 = vmul.f32 %v443_v52, %v545_v5  ;;  %v451_v22 = vunpack.c.h.bf16 %v487_v9  ;;  %v491_v45 = vld [vmem:[%s543_s17 + $0x60] sm:$0xff]   ;;  %v492_v46 = vld [vmem:[%s543_s17 + $0x68] sm:$0xff]  }
  0x1d   : > { %v230_v61 = vmul.f32 %v446_v53, %v545_v5  ;;  %v231_v62 = vmul.f32 %v447_v54, %v545_v5  ;;  %v260_v63 = vadd.f32 %v548_v7, %v224_v55  ;;  %v261_v0 = vadd.f32 %v548_v7, %v225_v56  ;;  %v493_v51 = vld [vmem:[%s543_s17 + $0x70] sm:$0xff]   ;;  %v494_v52 = vld [vmem:[%s543_s17 + $0x78] sm:$0xff]  }
  0x1e   : > { %v262_v1 = vadd.f32 %v548_v7, %v226_v57  ;;  %v263_v2 = vadd.f32 %v548_v7, %v227_v58  ;;  %v264_v3 = vadd.f32 %v548_v7, %v228_v59  ;;  %v265_v4 = vadd.f32 %v548_v7, %v229_v60 }
  0x1f   : > { %v266_v6 = vadd.f32 %v548_v7, %v230_v61  ;;  %v267_v8 = vadd.f32 %v548_v7, %v231_v62  ;;  %v292_v11 = vmax.f32 %v260_v63, 0.0  ;;  %v293_v12 = vmax.f32 %v261_v0, 0.0 }
  0x20   : > { %v294_v13 = vmax.f32 %v262_v1, 0.0  ;;  %v295_v14 = vmax.f32 %v263_v2, 0.0  ;;  %v296_v17 = vmax.f32 %v264_v3, 0.0  ;;  %v297_v18 = vmax.f32 %v265_v4, 0.0 }
  0x21   : > { %v298_v19 = vmax.f32 %v266_v6, 0.0  ;;  %v299_v20 = vmax.f32 %v267_v8, 0.0  ;;  %325 = vst.msk [vmem:[%s569_s21 + $0x40] sm:$0xff] %vm316_vm0, %v292_v11  ;;  %326 = vst.msk [vmem:[%s569_s21 + $0x48] sm:$0xff] %vm316_vm0, %v293_v12  ;;  %v454_v23 = vunpack.c.l.bf16 %v488_v10  ;;  %v455_v24 = vunpack.c.h.bf16 %v488_v10 }
  0x22   : > { %327 = vst.msk [vmem:[%s569_s21 + $0x50] sm:$0xff] %vm316_vm0, %v294_v13  ;;  %328 = vst.msk [vmem:[%s569_s21 + $0x58] sm:$0xff] %vm316_vm0, %v295_v14  ;;  %v458_v25 = vunpack.c.l.bf16 %v489_v15  ;;  %v459_v26 = vunpack.c.h.bf16 %v489_v15  ;;  %v462_v27 = vunpack.c.l.bf16 %v490_v16  ;;  %v463_v28 = vunpack.c.h.bf16 %v490_v16 }
  0x23   : > { %329 = vst.msk [vmem:[%s569_s21 + $0x60] sm:$0xff] %vm316_vm0, %v296_v17  ;;  %330 = vst.msk [vmem:[%s569_s21 + $0x68] sm:$0xff] %vm316_vm0, %v297_v18  ;;  %v232_v29 = vmul.f32 %v450_v21, %v545_v5  ;;  %v233_v30 = vmul.f32 %v451_v22, %v545_v5  ;;  %v234_v31 = vmul.f32 %v454_v23, %v545_v5  ;;  %v466_v57 = vunpack.c.l.bf16 %v491_v45 }
  0x24   : > { %331 = vst.msk [vmem:[%s569_s21 + $0x70] sm:$0xff] %vm316_vm0, %v298_v19  ;;  %332 = vst.msk [vmem:[%s569_s21 + $0x78] sm:$0xff] %vm316_vm0, %v299_v20  ;;  %v235_v32 = vmul.f32 %v455_v24, %v545_v5  ;;  %v236_v33 = vmul.f32 %v458_v25, %v545_v5  ;;  %v237_v34 = vmul.f32 %v459_v26, %v545_v5  ;;  %v467_v58 = vunpack.c.h.bf16 %v491_v45 }
  0x25   : > { %v238_v35 = vmul.f32 %v462_v27, %v545_v5  ;;  %v239_v36 = vmul.f32 %v463_v28, %v545_v5  ;;  %v268_v37 = vadd.f32 %v548_v7, %v232_v29  ;;  %v269_v38 = vadd.f32 %v548_v7, %v233_v30 }
  0x26   : > { %v270_v39 = vadd.f32 %v548_v7, %v234_v31  ;;  %v271_v40 = vadd.f32 %v548_v7, %v235_v32  ;;  %v272_v41 = vadd.f32 %v548_v7, %v236_v33  ;;  %v273_v42 = vadd.f32 %v548_v7, %v237_v34 }
  0x27   : > { %v274_v43 = vadd.f32 %v548_v7, %v238_v35  ;;  %v275_v44 = vadd.f32 %v548_v7, %v239_v36  ;;  %v300_v47 = vmax.f32 %v268_v37, 0.0  ;;  %v301_v48 = vmax.f32 %v269_v38, 0.0 }
  0x28   : > { %v302_v49 = vmax.f32 %v270_v39, 0.0  ;;  %v303_v50 = vmax.f32 %v271_v40, 0.0  ;;  %v304_v53 = vmax.f32 %v272_v41, 0.0  ;;  %v305_v54 = vmax.f32 %v273_v42, 0.0 }
  0x29   : > { %v306_v55 = vmax.f32 %v274_v43, 0.0  ;;  %v307_v56 = vmax.f32 %v275_v44, 0.0  ;;  %333 = vst.msk [vmem:[%s569_s21 + $0x80] sm:$0xff] %vm316_vm0, %v300_v47  ;;  %334 = vst.msk [vmem:[%s569_s21 + $0x88] sm:$0xff] %vm316_vm0, %v301_v48  ;;  %v470_v59 = vunpack.c.l.bf16 %v492_v46  ;;  %v471_v60 = vunpack.c.h.bf16 %v492_v46 }
  0x2a   : > { %335 = vst.msk [vmem:[%s569_s21 + $0x90] sm:$0xff] %vm316_vm0, %v302_v49  ;;  %336 = vst.msk [vmem:[%s569_s21 + $0x98] sm:$0xff] %vm316_vm0, %v303_v50  ;;  %v474_v61 = vunpack.c.l.bf16 %v493_v51  ;;  %v475_v62 = vunpack.c.h.bf16 %v493_v51  ;;  %v478_v63 = vunpack.c.l.bf16 %v494_v52  ;;  %v479_v0 = vunpack.c.h.bf16 %v494_v52 }
  0x2b   : > { %337 = vst.msk [vmem:[%s569_s21 + $0xa0] sm:$0xff] %vm316_vm0, %v304_v53  ;;  %338 = vst.msk [vmem:[%s569_s21 + $0xa8] sm:$0xff] %vm316_vm0, %v305_v54  ;;  %v240_v1 = vmul.f32 %v466_v57, %v545_v5  ;;  %v241_v2 = vmul.f32 %v467_v58, %v545_v5  ;;  %v242_v3 = vmul.f32 %v470_v59, %v545_v5 }
  0x2c   : > { %339 = vst.msk [vmem:[%s569_s21 + $0xb0] sm:$0xff] %vm316_vm0, %v306_v55  ;;  %340 = vst.msk [vmem:[%s569_s21 + $0xb8] sm:$0xff] %vm316_vm0, %v307_v56  ;;  %v243_v4 = vmul.f32 %v471_v60, %v545_v5  ;;  %v244_v6 = vmul.f32 %v474_v61, %v545_v5  ;;  %v245_v8 = vmul.f32 %v475_v62, %v545_v5 }
  0x2d   : > { %v246_v9 = vmul.f32 %v478_v63, %v545_v5  ;;  %v247_v10 = vmul.f32 %v479_v0, %v545_v5  ;;  %v276_v11 = vadd.f32 %v548_v7, %v240_v1  ;;  %v277_v12 = vadd.f32 %v548_v7, %v241_v2 }
  0x2e   : > { %v278_v13 = vadd.f32 %v548_v7, %v242_v3  ;;  %v279_v14 = vadd.f32 %v548_v7, %v243_v4  ;;  %v280_v15 = vadd.f32 %v548_v7, %v244_v6  ;;  %v281_v16 = vadd.f32 %v548_v7, %v245_v8 }
  0x2f   : > { %v282_v5 = vadd.f32 %v548_v7, %v246_v9  ;;  %v283_v17 = vadd.f32 %v548_v7, %v247_v10  ;;  %v308_v18 = vmax.f32 %v276_v11, 0.0  ;;  %v309_v19 = vmax.f32 %v277_v12, 0.0 }
  0x30   : > { %v310_v20 = vmax.f32 %v278_v13, 0.0  ;;  %v311_v21 = vmax.f32 %v279_v14, 0.0  ;;  %v312_v22 = vmax.f32 %v280_v15, 0.0  ;;  %v313_v23 = vmax.f32 %v281_v16, 0.0 }
  0x31   : > { %v314_v24 = vmax.f32 %v282_v5, 0.0  ;;  %v315_v25 = vmax.f32 %v283_v17, 0.0  ;;  %341 = vst.msk [vmem:[%s569_s21 + $0xc0] sm:$0xff] %vm316_vm0, %v308_v18  ;;  %342 = vst.msk [vmem:[%s569_s21 + $0xc8] sm:$0xff] %vm316_vm0, %v309_v19 }
  0x32   : > { %343 = vst.msk [vmem:[%s569_s21 + $0xd0] sm:$0xff] %vm316_vm0, %v310_v20  ;;  %344 = vst.msk [vmem:[%s569_s21 + $0xd8] sm:$0xff] %vm316_vm0, %v311_v21 }
  0x33   : > { %345 = vst.msk [vmem:[%s569_s21 + $0xe0] sm:$0xff] %vm316_vm0, %v312_v22  ;;  %346 = vst.msk [vmem:[%s569_s21 + $0xe8] sm:$0xff] %vm316_vm0, %v313_v23 }
  0x34   : > { %347 = vst.msk [vmem:[%s569_s21 + $0xf0] sm:$0xff] %vm316_vm0, %v314_v24  ;;  %348 = vst.msk [vmem:[%s569_s21 + $0xf8] sm:$0xff] %vm316_vm0, %v315_v25 }
  0x35 PF: > { %s12_s9 = sadd.s32 1, %s509_s9  }
  0x36   : > { %p9_p4 = scmp.ge.s32.totalorder %s12_s9, 4  }
  0x38   :  { %11 = sbr.rel (!%p9_p4) target bundleno = 1 (0x1), region = 58 }

// kernel: double_conv.4
= control target key start
LH: loop header
LB: loop body
LE: loop exit
PB: predicated region body
PF: predicated region fallthrough
CT: control target
= control target key end

     0   :  { %s6333_s18 = smov 0   ;;  %s8436_s0 = inlined_call_operand.vmem [shape: bf16[512,8], index: 0, kind: input, shape index: {}]   ;;  %s8437_s1 = inlined_call_operand.vmem [shape: bf16[256,9], index: 1, kind: input, shape index: {}]   ;;  %s8438_s2 = inlined_call_operand.vmem [shape: f32[2,8], index: 2, kind: input, shape index: {}]   ;;  %s8439_s3 = inlined_call_operand.vmem [shape: bf16[72,8], index: 3, kind: input, shape index: {}]   ;;  %s8440_s4 = inlined_call_operand.vmem [shape: bf16[512,8], index: 4, kind: output, shape index: {0}]   ;;  %s8441_s5 = inlined_call_operand.vmem [shape: f32[2,2,8], index: 5, kind: output, shape index: {1}]  }
   0x1 LB: > { %s6339_s19 = sadd.s32 4294967295, %s6284_s18   ;;  %p5774_p0 = scmp.ge.s32.totalorder %s6284_s18, 1  ;;  %s6284_s18 = sphi %s6333_s18, %s16_s18  }
   0x2   : > { %p191_p1 = scmp.lt.s32.totalorder %s6284_s18, 3 }
   0x4   : > { %p192_p2 = pnand %p5774_p0, %p191_p1 }
   0x6   : > { %195 = sbr.rel (%p192_p2) target bundleno = 1652 (0x674), region = 36 }
   0xd   : > { %v6346_v0 = vld [vmem:[%s8437_s1 + $0x8] sm:$0xf]  ;;  %v6351_v1 = vld [vmem:[%s8437_s1] sm:$0xf]  ;;  %v6286_v2 = vmov 0   ;;  %v6287_v33 = vmov 1   ;;  %v305_v34 = vlaneseq }
   0xe   : > { %6175 = vset.pattern.permute.xlu1 %v6286_v2  ;;  %6174 = vset.pattern.permute.xlu0 %v6286_v2  ;;  %v6358_v3 = vld [vmem:[%s8437_s1 + $0xc] sm:$0xf]  ;;  %v426_v4 = vld [vmem:[%s8437_s1 + $0x4] sm:$0xf]  ;;  %v6367_v5 = vld [vmem:[%s8437_s1 + $0x14] sm:$0xf] }
   0xf   : > { %631 = vperm.xlu1 %6175, %v6346_v0   ;;  %607 = vperm.xlu0 %6174, %v6351_v1   ;;  %v429_v6 = vld [vmem:[%s8437_s1 + $0x10] sm:$0xf]  ;;  %v432_v7 = vld [vmem:[%s8437_s1 + $0x1c] sm:$0xf]  ;;  %v431_v8 = vld [vmem:[%s8437_s1 + $0x18] sm:$0xf] }
  0x10   : > { %v6382_v9 = vld [vmem:[%s8437_s1 + $0x24] sm:$0xf]  ;;  %v433_v10 = vld [vmem:[%s8437_s1 + $0x20] sm:$0xf]  ;;  %v436_v11 = vld [vmem:[%s8437_s1 + $0x2c] sm:$0xf] }
  0x11   : > { %v435_v12 = vld [vmem:[%s8437_s1 + $0x28] sm:$0xf]  ;;  %v438_v13 = vld [vmem:[%s8437_s1 + $0x34] sm:$0xf]  ;;  %v437_v14 = vld [vmem:[%s8437_s1 + $0x30] sm:$0xf] }
  0x12   : > { %v440_v15 = vld [vmem:[%s8437_s1 + $0x3c] sm:$0xf]  ;;  %v439_v16 = vld [vmem:[%s8437_s1 + $0x38] sm:$0xf]  ;;  %v6409_v17 = vld [vmem:[%s8437_s1 + $0x44] sm:$0xf] }
  0x13   : > { %643 = vperm.xlu1 %6175, %v6358_v3   ;;  %619 = vperm.xlu0 %6174, %v426_v4   ;;  %v6414_v18 = vld [vmem:[%s8437_s1 + $0x40] sm:$0xf]  ;;  %v6421_v19 = vld [vmem:[%s8437_s1 + $0x4c] sm:$0xf]  ;;  %v6426_v20 = vld [vmem:[%s8437_s1 + $0x48] sm:$0xf] }
  0x14   : > { %v6433_v21 = vld [vmem:[%s8437_s1 + $0x54] sm:$0xf]  ;;  %v6438_v22 = vld [vmem:[%s8437_s1 + $0x50] sm:$0xf]  ;;  %v6445_v23 = vld [vmem:[%s8437_s1 + $0x5c] sm:$0xf] }
  0x15   : > { %v6450_v24 = vld [vmem:[%s8437_s1 + $0x58] sm:$0xf]  ;;  %v6457_v25 = vld [vmem:[%s8437_s1 + $0x64] sm:$0xf]  ;;  %v6462_v26 = vld [vmem:[%s8437_s1 + $0x60] sm:$0xf] }
  0x16   : > { %v6469_v27 = vld [vmem:[%s8437_s1 + $0x6c] sm:$0xf]  ;;  %v6474_v28 = vld [vmem:[%s8437_s1 + $0x68] sm:$0xf]  ;;  %v6481_v29 = vld [vmem:[%s8437_s1 + $0x74] sm:$0xf] }
  0x17   : > { %667 = vperm.xlu1 %6175, %v6367_v5   ;;  %655 = vperm.xlu0 %6174, %v429_v6   ;;  %v6486_v30 = vld [vmem:[%s8437_s1 + $0x70] sm:$0xf]  ;;  %v6493_v31 = vld [vmem:[%s8437_s1 + $0x7c] sm:$0xf]  ;;  %v6498_v32 = vld [vmem:[%s8437_s1 + $0x78] sm:$0xf] }
  0x18   : > { %s5775_s13 = sshll.u32 %s6339_s19, 5  ;;  %v6510_v35 = vshrl.u32 %v305_v34, 7  ;;  %v240_v37 = vld [vmem:[%s8438_s2] sm:$0x3]  ;;  %vm457_vm0 = vsmask.f32 256 }
  0x19   : > { %p224_p3 = scmp.lt.s32.totalorder %s5775_s13, 63  ;;  %vm602_vm1 = vcmask 1040384   ;;  %vm1101_vm3 = vcmask 64512   ;;  %s6290_s22 = smov 8   ;;  %vm1646_vm4 = vcmask 130112   ;;  %vm1728_vm6 = vcmask 1047552  }
  0x1a   : > { %v307_v36 = vsub.s32 0, %v6510_v35  ;;  %v343_v43 = vsub.s32 1, %v6510_v35  ;;  %vm603_vm2 = vmand %vm602_vm1, %vm457_vm0  ;;  %vm1666_vm5 = vsmask.f32 7424  ;;  %s6292_s24 = smov 16   ;;  %vm2259_vm8 = vcmask 195712  }
  0x1b   : > { %691 = vperm.xlu1 %6175, %v432_v7   ;;  %679 = vperm.xlu0 %6174, %v431_v8   ;;  %s8729_s13 = smov (!%p224_p3, %s5775_s13), 63  ;;  %vm1729_vm7 = vmand %vm1728_vm6, %vm1666_vm5  ;;  %s6294_s25 = smov 24   ;;  %vm2804_vm9 = vcmask 261312   ;;  %vm2885_vm10 = vcmask 326912   ;;  %vm3430_vm11 = vcmask 392512   ;;  %vm5183_vm12 = vcmask 1043456  }
  0x1c   : > { %s5776_s14 = sshll.u32 %s8729_s13, 2  ;;  %v6528_v42 = vrot.slane %v240_v37, %v307_v36  ;;  %v6534_v53 = vrot.slane %v240_v37, %v343_v43  ;;  %s6295_s26 = smov 32   ;;  %vm3975_vm13 = vcmask 458112   ;;  %vm4520_vm14 = vcmask 523712  }
  0x1d   : > { %s6518_s17 = scalar_lea.vmem %s8436_s0, %s5776_s14  ;;  %s6297_s27 = smov 40   ;;  %vm5065_vm15 = vcmask 589312  }
  0x1e   : > { %v5996_v38 = vld [vmem:[%s6518_s17] sm:$0xff]   ;;  %v6073_v39 = vld [vmem:[%s6518_s17 + $0x78] sm:$0xff]   ;;  %v6059_v40 = vld [vmem:[%s6518_s17 + $0x8] sm:$0xff]   ;;  %s6300_s23 = smov 48   ;;  %s6302_s6 = smov 64  }
  0x1f   : > { %715 = vperm.xlu1 %6175, %v6382_v9   ;;  %703 = vperm.xlu0 %6174, %v433_v10   ;;  %v6060_v41 = vld [vmem:[%s6518_s17 + $0x10] sm:$0xff]   ;;  %v5997_v44 = vunpack.c.l.bf16 %v5996_v38  ;;  %v5998_v45 = vunpack.c.h.bf16 %v5996_v38  ;;  %v6057_v46 = vunpack.c.l.bf16 %v6073_v39  ;;  %v6058_v47 = vunpack.c.h.bf16 %v6073_v39  ;;  %p235_p4 = scmp.lt.s32.totalorder %s6339_s19, 1 }
  0x20   : > { %v6072_v48 = vld [vmem:[%s6518_s17 + $0x70] sm:$0xff]   ;;  %v6001_v49 = vunpack.c.l.bf16 %v6059_v40  ;;  %v6002_v50 = vunpack.c.h.bf16 %v6059_v40  ;;  %v6005_v51 = vunpack.c.l.bf16 %v6060_v41  ;;  %v6006_v52 = vunpack.c.h.bf16 %v6060_v41 }
  0x21   : > { %v6053_v54 = vunpack.c.l.bf16 %v6072_v48  ;;  %v6054_v55 = vunpack.c.h.bf16 %v6072_v48  ;;  %v309_v56 = vmul.f32 %v5997_v44, %v6528_v42  ;;  %v310_v57 = vmul.f32 %v5998_v45, %v6528_v42  ;;  %s8731_s19 = smov (!%p235_p4, %s6339_s19), 1 }
  0x22   : > { %v339_v58 = vmul.f32 %v6057_v46, %v6528_v42  ;;  %v340_v59 = vmul.f32 %v6058_v47, %v6528_v42  ;;  %v311_v60 = vmul.f32 %v6001_v49, %v6528_v42  ;;  %v312_v61 = vmul.f32 %v6002_v50, %v6528_v42  ;;  %s5779_s13 = sshll.u32 %s8731_s19, 1 }
  0x23   : > { %739 = vperm.xlu1 %6175, %v436_v11   ;;  %727 = vperm.xlu0 %6174, %v435_v12   ;;  %v313_v62 = vmul.f32 %v6005_v51, %v6528_v42  ;;  %v314_v63 = vmul.f32 %v6006_v52, %v6528_v42  ;;  %v338_v2 = vmul.f32 %v6054_v55, %v6528_v42  ;;  %v6064_v52 = vld [vmem:[%s6518_s17 + $0x30] sm:$0xff]  }
  0x27   : > { %763 = vperm.xlu1 %6175, %v438_v13   ;;  %751 = vperm.xlu0 %6174, %v437_v14  }
  0x2b   : > { %787 = vperm.xlu1 %6175, %v440_v15   ;;  %775 = vperm.xlu0 %6174, %v439_v16  }
  0x2f   : > { %811 = vperm.xlu1 %6175, %v6409_v17   ;;  %799 = vperm.xlu0 %6174, %v6414_v18  }
  0x33   : > { %835 = vperm.xlu1 %6175, %v6421_v19   ;;  %823 = vperm.xlu0 %6174, %v6426_v20  }
  0x37   : > { %859 = vperm.xlu1 %6175, %v6433_v21   ;;  %847 = vperm.xlu0 %6174, %v6438_v22  }
  0x3b   : > { %883 = vperm.xlu1 %6175, %v6445_v23   ;;  %871 = vperm.xlu0 %6174, %v6450_v24  }
  0x3f   : > { %907 = vperm.xlu1 %6175, %v6457_v25   ;;  %895 = vperm.xlu0 %6174, %v6462_v26  }
  0x43   : > { %931 = vperm.xlu1 %6175, %v6469_v27   ;;  %919 = vperm.xlu0 %6174, %v6474_v28  }
  0x47   : > { %955 = vperm.xlu1 %6175, %v6481_v29   ;;  %943 = vperm.xlu0 %6174, %v6486_v30  }
  0x4b   : > { %979 = vperm.xlu1 %6175, %v6493_v31   ;;  %967 = vperm.xlu0 %6174, %v6498_v32  }
  0x4f   : > { %6177 = vset.pattern.permute.xlu1 %v6287_v33  ;;  %6176 = vset.pattern.permute.xlu0 %v6287_v33 }
  0x50   : > { %1130 = vperm.xlu1 %6177, %v426_v4   ;;  %1119 = vperm.xlu0 %6176, %v6351_v1   ;;  %v337_v1 = vmul.f32 %v6053_v54, %v6528_v42  ;;  %v346_v4 = vadd.f32 %v6534_v53, %v310_v57  ;;  %v6288_v54 = vmov 839922192  }
  0x51   : > { %v611_v55 = vunpack.c.l.s4 %v6288_v54 }
  0x54   : > { %1141 = vperm.xlu1 %6177, %v6346_v0   ;;  %1152 = vperm.xlu0 %6176, %v6358_v3   ;;  %v6061_v0 = vld [vmem:[%s6518_s17 + $0x18] sm:$0xff]   ;;  %v345_v3 = vadd.f32 %v6534_v53, %v309_v56 }
  0x58   : > { %1163 = vperm.xlu1 %6177, %v429_v6   ;;  %1174 = vperm.xlu0 %6176, %v6367_v5   ;;  %v375_v5 = vadd.f32 %v6534_v53, %v339_v58  ;;  %v376_v6 = vadd.f32 %v6534_v53, %v340_v59 }
  0x5c   : > { %1185 = vperm.xlu1 %6177, %v431_v8   ;;  %1196 = vperm.xlu0 %6176, %v432_v7   ;;  %v347_v7 = vadd.f32 %v6534_v53, %v311_v60  ;;  %v348_v8 = vadd.f32 %v6534_v53, %v312_v61 }
  0x60   : > { %1207 = vperm.xlu1 %6177, %v433_v10   ;;  %1218 = vperm.xlu0 %6176, %v6382_v9   ;;  %v349_v9 = vadd.f32 %v6534_v53, %v313_v62  ;;  %v6009_v10 = vunpack.c.l.bf16 %v6061_v0 }
  0x62   : > { %v315_v33 = vmul.f32 %v6009_v10, %v6528_v42 }
  0x64   : > { %1229 = vperm.xlu1 %6177, %v435_v12   ;;  %1240 = vperm.xlu0 %6176, %v436_v11   ;;  %v350_v11 = vadd.f32 %v6534_v53, %v314_v63  ;;  %v6010_v12 = vunpack.c.h.bf16 %v6061_v0  ;;  %v351_v44 = vadd.f32 %v6534_v53, %v315_v33 }
  0x66   : > { %v382_v34 = vmax.f32 %v350_v11, 0.0  ;;  %v316_v36 = vmul.f32 %v6010_v12, %v6528_v42  ;;  %v383_v57 = vmax.f32 %v351_v44, 0.0  ;;  %v6065_v12 = vld [vmem:[%s6518_s17 + $0x38] sm:$0xff]  }
  0x68   : > { %1251 = vperm.xlu1 %6177, %v437_v14   ;;  %1262 = vperm.xlu0 %6176, %v438_v13   ;;  %v373_v13 = vadd.f32 %v6534_v53, %v337_v1  ;;  %v374_v14 = vadd.f32 %v6534_v53, %v338_v2  ;;  %v352_v46 = vadd.f32 %v6534_v53, %v316_v36 }
  0x6a   : > { %v405_v41 = vmax.f32 %v373_v13, 0.0  ;;  %v406_v43 = vmax.f32 %v374_v14, 0.0  ;;  %v384_v59 = vmax.f32 %v352_v46, 0.0  ;;  %v612_v14 = vunpack.c.0.s8 %v611_v55 }
  0x6c   : > { %1273 = vperm.xlu1 %6177, %v439_v16   ;;  %1284 = vperm.xlu0 %6176, %v440_v15   ;;  %v6062_v15 = vld [vmem:[%s6518_s17 + $0x20] sm:$0xff]   ;;  %v377_v16 = vmax.f32 %v345_v3, 0.0 }
  0x6d   : > { %v6013_v37 = vunpack.c.l.bf16 %v6062_v15  ;;  %v6014_v38 = vunpack.c.h.bf16 %v6062_v15 }
  0x6f   : > { %v317_v47 = vmul.f32 %v6013_v37, %v6528_v42  ;;  %v318_v48 = vmul.f32 %v6014_v38, %v6528_v42 }
  0x70   : > { %1295 = vperm.xlu1 %6177, %v6414_v18   ;;  %1306 = vperm.xlu0 %6176, %v6409_v17   ;;  %v378_v17 = vmax.f32 %v346_v4, 0.0  ;;  %v407_v18 = vmax.f32 %v375_v5, 0.0 }
  0x71   : > { %v353_v60 = vadd.f32 %v6534_v53, %v317_v47  ;;  %v354_v61 = vadd.f32 %v6534_v53, %v318_v48 }
  0x72   : > { %v6566_v39 = vpack.c.bf16 %v378_v17, %v377_v16 }
  0x73   : > { %v385_v10 = vmax.f32 %v353_v60, 0.0  ;;  %v386_v11 = vmax.f32 %v354_v61, 0.0 }
  0x74   : > { %1317 = vperm.xlu1 %6177, %v6426_v20   ;;  %1328 = vperm.xlu0 %6176, %v6421_v19   ;;  %v408_v19 = vmax.f32 %v376_v6, 0.0  ;;  %v379_v20 = vmax.f32 %v347_v7, 0.0  ;;  %8560 = vst [vmem:[#allocation3_spill] sm:$0xff] %v6566_v39  ;;  %v8471_v62 = vshll.u32 %v6566_v39, 16  ;;  %v6022_v7 = vunpack.c.h.bf16 %v6064_v52 }
  0x76   : > { %v6568_v40 = vpack.c.bf16 %v408_v19, %v407_v18  ;;  %v322_v18 = vmul.f32 %v6022_v7, %v6528_v42  ;;  %v6025_v19 = vunpack.c.l.bf16 %v6065_v12 }
  0x78   : > { %1339 = vperm.xlu1 %6177, %v6438_v22   ;;  %1350 = vperm.xlu0 %6176, %v6433_v21   ;;  %v380_v21 = vmax.f32 %v348_v8, 0.0  ;;  %v381_v22 = vmax.f32 %v349_v9, 0.0  ;;  %8561 = vst [vmem:[#allocation4_spill] sm:$0xff] %v6568_v40  ;;  %v8472_v51 = vshrl.u32 %v6568_v40, 16  ;;  %v8473_v3 = vshll.u32 %v6568_v40, 16 }
  0x79   : > { %v6611_v9 = vpack.c.bf16 %v384_v59, %v383_v57  ;;  %v358_v46 = vadd.f32 %v6534_v53, %v322_v18  ;;  %v323_v47 = vmul.f32 %v6025_v19, %v6528_v42 }
  0x7a   : > { %v6576_v45 = vpack.c.bf16 %v382_v34, %v381_v22  ;;  %v465_v0 = vrot.slane %v8472_v51, 7  ;;  %v6636_v34 = vpack.c.bf16 %v386_v11, %v385_v10  ;;  %v7129_v51 = vld [vmem:[%s8437_s1 + $0x70] sm:$0xf] }
  0x7b   : > { %v8464_v33 = vshrl.u32 %v6611_v9, 16  ;;  %v8465_v54 = vshll.u32 %v6611_v9, 16  ;;  %v390_v10 = vmax.f32 %v358_v46, 0.0  ;;  %v359_v11 = vadd.f32 %v6534_v53, %v323_v47  ;;  %8584 = vst [vmem:[#allocation27_spill] sm:$0xff] %v7129_v51 }
  0x7c   : > { %1361 = vperm.xlu1 %6177, %v6450_v24   ;;  %1372 = vperm.xlu0 %6176, %v6445_v23   ;;  %v6063_v24 = vld [vmem:[%s6518_s17 + $0x28] sm:$0xff]   ;;  %v6573_v23 = vpack.c.bf16 %v380_v21, %v379_v20  ;;  %v8466_v58 = vshrl.u32 %v6576_v45, 16  ;;  %v8468_v6 = vshll.u32 %v6576_v45, 16  ;;  %v468_v17 = vor.u32 %v8473_v3, %v465_v0 }
  0x7d   : > { %v6017_v49 = vunpack.c.l.bf16 %v6063_v24  ;;  %v6018_v50 = vunpack.c.h.bf16 %v6063_v24  ;;  %v6026_v20 = vunpack.c.h.bf16 %v6065_v12  ;;  %v6661_v60 = vrot.slane %v8464_v33, 7  ;;  %v7086_v33 = vld [vmem:[%s8437_s1 + $0x54] sm:$0xf] }
  0x7e   : > { %v8467_v56 = vshrl.u32 %v6573_v23, 16  ;;  %v8469_v5 = vshll.u32 %v6573_v23, 16  ;;  %v6609_v8 = vrot.slane %v8466_v58, 7  ;;  %v8462_v61 = vshrl.u32 %v6636_v34, 16  ;;  %v7098_v58 = vld [vmem:[%s8437_s1 + $0x5c] sm:$0xf] }
  0x7f   : > { %v319_v63 = vmul.f32 %v6017_v49, %v6528_v42  ;;  %v324_v48 = vmul.f32 %v6026_v20, %v6528_v42  ;;  %v501_v19 = vor.u32 %v8465_v54, %v6661_v60  ;;  %v391_v47 = vmax.f32 %v359_v11, 0.0  ;;  %v7092_v54 = vld [vmem:[%s8437_s1 + $0x58] sm:$0xf] }
  0x80   : > { %1383 = vperm.xlu1 %6177, %v6462_v26   ;;  %1394 = vperm.xlu0 %6176, %v6457_v25   ;;  %v8470_v26 = vshrl.u32 %v6566_v39, 16  ;;  %v6583_v25 = vpack.c.bf16 %v406_v43, %v405_v41  ;;  %v482_v4 = vrot.slane %v8467_v56, 7  ;;  %v493_v22 = vor.u32 %v8468_v6, %v6609_v8  ;;  %v7104_v56 = vld [vmem:[%s8437_s1 + $0x60] sm:$0xf]  ;;  %v7110_v6 = vld [vmem:[%s8437_s1 + $0x64] sm:$0xf] }
  0x81   : > { %v6641_v43 = vsub.s32 %v612_v14, %v6510_v35  ;;  %v360_v12 = vadd.f32 %v6534_v53, %v324_v48  ;;  %v6680_v20 = vrot.slane %v8462_v61, 7  ;;  %v7074_v61 = vld [vmem:[%s8437_s1 + $0x4c] sm:$0xf] }
  0x82   : > { %8562 = vst [vmem:[#allocation5_spill] sm:$0xff] %v6583_v25  ;;  %v475_v1 = vrot.slane %v8470_v26, 7  ;;  %v8442_v2 = vshrl.u32 %v6583_v25, 16  ;;  %v485_v21 = vor.u32 %v8469_v5, %v482_v4  ;;  %v7116_v5 = vld [vmem:[%s8437_s1 + $0x68] sm:$0xf] }
  0x83   : > { %v392_v48 = vmax.f32 %v360_v12, 0.0 }
  0x84   : > { %1405 = vperm.xlu1 %6177, %v6474_v28   ;;  %1416 = vperm.xlu0 %6176, %v6469_v27   ;;  %v320_v28 = vmul.f32 %v6018_v50, %v6528_v42  ;;  %v6021_v27 = vunpack.c.l.bf16 %v6064_v52  ;;  %v478_v15 = vor.u32 %v8471_v62, %v475_v1  ;;  %v6621_v16 = vrot.slane %v8442_v2, 7  ;;  %v7123_v62 = vld [vmem:[%s8437_s1 + $0x6c] sm:$0xf] }
  0x85   : > { %v6289_v50 = vmov 2   ;;  %v6653_v35 = vsel %vm457_vm0, %v475_v1, %v485_v21  ;;  %v6656_v52 = vsel %vm457_vm0, %v482_v4, %v493_v22  ;;  %v8463_v21 = vshll.u32 %v6636_v34, 16 }
  0x86   : > { %v321_v13 = vmul.f32 %v6021_v27, %v6528_v42  ;;  %v6643_v24 = vsel %vm603_vm2, %v465_v0, %v478_v15  ;;  %v6647_v44 = vsel %vm457_vm0, %v6621_v16, %v468_v17  ;;  %8565 = vst [vmem:[#allocation8_spill] sm:$0xff] %v6653_v35  ;;  %8566 = vst [vmem:[#allocation9_spill] sm:$0xff] %v6656_v52  ;;  %v6067_v27 = vld [vmem:[%s6518_s17 + $0x48] sm:$0xff]   ;;  %vm5476_vm2 = vcmask 60416  }
  0x87   : > { %8563 = vst [vmem:[#allocation6_spill] sm:$0xff] %v6643_v24  ;;  %8564 = vst [vmem:[#allocation7_spill] sm:$0xff] %v6647_v44  ;;  %v6033_v15 = vunpack.c.l.bf16 %v6067_v27  ;;  %v6034_v22 = vunpack.c.h.bf16 %v6067_v27  ;;  %v509_v12 = vor.u32 %v8463_v21, %v6680_v20  ;;  %v7080_v21 = vld [vmem:[%s8437_s1 + $0x50] sm:$0xf] }
  0x88   : > { %1427 = vperm.xlu1 %6177, %v6486_v30   ;;  %1438 = vperm.xlu0 %6176, %v6481_v29   ;;  %v355_v30 = vadd.f32 %v6534_v53, %v319_v63  ;;  %v356_v29 = vadd.f32 %v6534_v53, %v320_v28  ;;  %v357_v41 = vadd.f32 %v6534_v53, %v321_v13 }
  0x8a   : > { %v387_v37 = vmax.f32 %v355_v30, 0.0  ;;  %v388_v38 = vmax.f32 %v356_v29, 0.0  ;;  %v389_v28 = vmax.f32 %v357_v41, 0.0 }
  0x8c   : > { %1449 = vperm.xlu1 %6177, %v6498_v32   ;;  %1460 = vperm.xlu0 %6176, %v6493_v31   ;;  %v6066_v32 = vld [vmem:[%s6518_s17 + $0x40] sm:$0xff]   ;;  %v6664_v63 = vpack.c.bf16 %v388_v38, %v387_v37  ;;  %v6068_v38 = vld [vmem:[%s6518_s17 + $0x50] sm:$0xff]   ;;  %v6689_v46 = vpack.c.bf16 %v390_v10, %v389_v28  ;;  %v6698_v28 = vsel %vm457_vm0, %v6609_v8, %v501_v19 }
  0x8d   : > { %v6029_v49 = vunpack.c.l.bf16 %v6066_v32  ;;  %v6030_v55 = vunpack.c.h.bf16 %v6066_v32  ;;  %8567 = vst [vmem:[#allocation10_spill] sm:$0xff] %v6698_v28 }
  0x8e   : > { %v632_v31 = vpop.permute.xlu1 %631  ;;  %v608_v36 = vpop.permute.xlu0 %607  ;;  %v8446_v41 = vshrl.u32 %v6664_v63, 16  ;;  %v8447_v8 = vshll.u32 %v6664_v63, 16 }
  0x8f   : > { %v640_v0 = vrot.slane %v632_v31, %v6641_v43  ;;  %v616_v1 = vrot.slane %v608_v36, %v6641_v43  ;;  %v325_v30 = vmul.f32 %v6029_v49, %v6528_v42  ;;  %v326_v14 = vmul.f32 %v6030_v55, %v6528_v42 }
  0x90   : > { %6178 = vset.pattern.permute.xlu1 %v6289_v50  ;;  %6179 = vset.pattern.permute.xlu0 %v6289_v50 }
  0x91   : > { %v361_v50 = vadd.f32 %v6534_v53, %v325_v30  ;;  %v362_v55 = vadd.f32 %v6534_v53, %v326_v14  ;;  %v6069_v30 = vld [vmem:[%s6518_s17 + $0x58] sm:$0xff]   ;;  %v6714_v14 = vpack.c.bf16 %v392_v48, %v391_v47 }
  0x92   : > { %v644_v57 = vpop.permute.xlu1 %643  ;;  %v620_v59 = vpop.permute.xlu0 %619 }
  0x93   : > { %v652_v4 = vrot.slane %v644_v57, %v6641_v43  ;;  %v628_v7 = vrot.slane %v620_v59, %v6641_v43  ;;  %v327_v57 = vmul.f32 %v6033_v15, %v6528_v42 }
  0x95   : > { %v5781_v29 = vcombine.low %v640_v0, %v652_v4  ;;  %v5780_v13 = vcombine.low %v616_v1, %v628_v7  ;;  %v328_v0 = vmul.f32 %v6034_v22, %v6528_v42  ;;  %v6037_v1 = vunpack.c.l.bf16 %v6068_v38 }
  0x96   : > { %v668_v17 = vpop.permute.xlu1 %667  ;;  %v656_v18 = vpop.permute.xlu0 %655  ;;  %v6038_v4 = vunpack.c.h.bf16 %v6068_v38  ;;  %v363_v19 = vadd.f32 %v6534_v53, %v327_v57  ;;  %v6041_v38 = vunpack.c.l.bf16 %v6069_v30 }
  0x97   : > { %v1086_v32 = vmul.bf16 %v5781_v29, %v6643_v24  ;;  %v1085_v31 = vmul.bf16 %v5780_v13, %v6647_v44  ;;  %v676_v36 = vrot.slane %v668_v17, %v6641_v43  ;;  %v664_v37 = vrot.slane %v656_v18, %v6641_v43  ;;  %v7142_v44 = vld [vmem:[%s8437_s1 + $0x78] sm:$0xf] }
  0x98   : > { %v6710_v29 = vrot.slane %v8446_v41, 7  ;;  %v8443_v13 = vshrl.u32 %v6689_v46, 16  ;;  %v393_v17 = vmax.f32 %v361_v50, 0.0  ;;  %v394_v18 = vmax.f32 %v362_v55, 0.0  ;;  %8585 = vst [vmem:[#allocation28_spill] sm:$0xff] %v7142_v44 }
  0x99   : > { %v5782_v49 = vcombine.low %v664_v37, %v676_v36  ;;  %1102 = vst.msk [vmem:[#allocation2] sm:$0xff] %vm1101_vm3, %v1085_v31  ;;  %1103 = vst.msk [vmem:[#allocation2 + $0x8] sm:$0xff] %vm1101_vm3, %v1086_v32  ;;  %v364_v31 = vadd.f32 %v6534_v53, %v328_v0  ;;  %v329_v36 = vmul.f32 %v6037_v1, %v6528_v42  ;;  %v6042_v50 = vunpack.c.h.bf16 %v6069_v30 }
  0x9a   : > { %v692_v59 = vpop.permute.xlu1 %691  ;;  %v680_v27 = vpop.permute.xlu0 %679  ;;  %v330_v37 = vmul.f32 %v6038_v4, %v6528_v42  ;;  %v6726_v55 = vsel %vm457_vm0, %v6661_v60, %v509_v12  ;;  %v517_v57 = vor.u32 %v8447_v8, %v6710_v29  ;;  %v8444_v1 = vshrl.u32 %v6714_v14, 16 }
  0x9b   : > { %v1087_v7 = vmul.bf16 %v5782_v49, %v6653_v35  ;;  %v700_v10 = vrot.slane %v692_v59, %v6641_v43  ;;  %v688_v11 = vrot.slane %v680_v27, %v6641_v43  ;;  %8568 = vst [vmem:[#allocation11_spill] sm:$0xff] %v6726_v55  ;;  %v6733_v59 = vrot.slane %v8443_v13, 7 }
  0x9c   : > { %v8445_v27 = vshll.u32 %v6689_v46, 16  ;;  %v6737_v4 = vpack.c.bf16 %v394_v18, %v393_v17  ;;  %v396_v12 = vmax.f32 %v364_v31, 0.0  ;;  %v365_v30 = vadd.f32 %v6534_v53, %v329_v36 }
  0x9d   : > { %v5783_v15 = vcombine.low %v688_v11, %v700_v10  ;;  %1104 = vst.msk [vmem:[#allocation2 + $0x10] sm:$0xff] %vm1101_vm3, %v1087_v7  ;;  %v395_v7 = vmax.f32 %v363_v19, 0.0  ;;  %v6070_v10 = vld [vmem:[%s6518_s17 + $0x60] sm:$0xff]   ;;  %v332_v18 = vmul.f32 %v6042_v50, %v6528_v42  ;;  %v6750_v19 = vsel %vm457_vm0, %v6680_v20, %v517_v57 }
  0x9e   : > { %v716_v22 = vpop.permute.xlu1 %715  ;;  %v704_v32 = vpop.permute.xlu0 %703  ;;  %8569 = vst [vmem:[#allocation12_spill] sm:$0xff] %v6737_v4  ;;  %8570 = vst [vmem:[#allocation13_spill] sm:$0xff] %v6750_v19  ;;  %v525_v31 = vor.u32 %v8445_v27, %v6733_v59  ;;  %v6045_v36 = vunpack.c.l.bf16 %v6070_v10 }
  0x9f   : > { %v1088_v47 = vmul.bf16 %v5783_v15, %v6656_v52  ;;  %v724_v48 = vrot.slane %v716_v22, %v6641_v43  ;;  %v712_v49 = vrot.slane %v704_v32, %v6641_v43  ;;  %v366_v15 = vadd.f32 %v6534_v53, %v330_v37 }
  0xa0   : > { %v331_v22 = vmul.f32 %v6041_v38, %v6528_v42  ;;  %v6046_v37 = vunpack.c.h.bf16 %v6070_v10  ;;  %v530_v38 = vrot.slane %v8444_v1, 7  ;;  %v6761_v57 = vpack.c.bf16 %v396_v12, %v395_v7 }
  0xa1   : > { %v5784_v0 = vcombine.low %v712_v49, %v724_v48  ;;  %1105 = vst.msk [vmem:[#allocation2 + $0x18] sm:$0xff] %vm1101_vm3, %v1088_v47  ;;  %v8449_v49 = vshll.u32 %v6714_v14, 16  ;;  %v398_v2 = vmax.f32 %v366_v15, 0.0  ;;  %v368_v1 = vadd.f32 %v6534_v53, %v332_v18 }
  0xa2   : > { %v740_v60 = vpop.permute.xlu1 %739  ;;  %v728_v11 = vpop.permute.xlu0 %727  ;;  %v367_v13 = vadd.f32 %v6534_v53, %v331_v22  ;;  %v333_v27 = vmul.f32 %v6045_v36, %v6528_v42  ;;  %v6772_v12 = vsel %vm457_vm0, %v6710_v29, %v525_v31  ;;  %v8451_v15 = vshll.u32 %v6737_v4, 16 }
  0xa3   : > { %v1089_v32 = vmul.bf16 %v5784_v0, %v6698_v28  ;;  %v748_v48 = vrot.slane %v740_v60, %v6641_v43  ;;  %v736_v17 = vrot.slane %v728_v11, %v6641_v43  ;;  %v8448_v0 = vshrl.u32 %v6737_v4, 16  ;;  %v6071_v60 = vld [vmem:[%s6518_s17 + $0x68] sm:$0xff]   ;;  %8571 = vst [vmem:[#allocation14_spill] sm:$0xff] %v6772_v12 }
  0xa4   : > { %v397_v11 = vmax.f32 %v365_v30, 0.0  ;;  %v6049_v41 = vunpack.c.l.bf16 %v6071_v60  ;;  %v6050_v8 = vunpack.c.h.bf16 %v6071_v60  ;;  %v533_v30 = vor.u32 %v8449_v49, %v530_v38 }
  0xa5   : > { %v5785_v47 = vcombine.low %v736_v17, %v748_v48  ;;  %1106 = vst.msk [vmem:[#allocation2 + $0x20] sm:$0xff] %vm1101_vm3, %v1089_v32  ;;  %v334_v32 = vmul.f32 %v6046_v37, %v6528_v42  ;;  %v538_v36 = vrot.slane %v8448_v0, 7  ;;  %v8450_v37 = vshrl.u32 %v6761_v57, 16 }
  0xa6   : > { %v764_v50 = vpop.permute.xlu1 %763  ;;  %v752_v20 = vpop.permute.xlu0 %751  ;;  %v399_v60 = vmax.f32 %v367_v13, 0.0  ;;  %v336_v0 = vmul.f32 %v6050_v8, %v6528_v42  ;;  %v8591_v28 = vshrl.u32 %v6566_v39, 16 }
  0xa7   : > { %v1090_v10 = vmul.bf16 %v5785_v47, %v6726_v55  ;;  %v772_v48 = vrot.slane %v764_v50, %v6641_v43  ;;  %v760_v17 = vrot.slane %v752_v20, %v6641_v43  ;;  %v6781_v47 = vpack.c.bf16 %v398_v2, %v397_v11 }
  0xa8   : > { %v400_v20 = vmax.f32 %v368_v1, 0.0  ;;  %v6792_v2 = vsel %vm457_vm0, %v6733_v59, %v533_v30  ;;  %v541_v1 = vor.u32 %v8451_v15, %v538_v36 }
  0xa9   : > { %v5786_v7 = vcombine.low %v760_v17, %v772_v48  ;;  %1107 = vst.msk [vmem:[#allocation2 + $0x28] sm:$0xff] %vm1101_vm3, %v1090_v10  ;;  %8572 = vst [vmem:[#allocation15_spill] sm:$0xff] %v6781_v47  ;;  %v369_v48 = vadd.f32 %v6534_v53, %v333_v27  ;;  %v370_v10 = vadd.f32 %v6534_v53, %v334_v32  ;;  %v546_v27 = vrot.slane %v8450_v37, 7 }
  0xaa   : > { %v788_v22 = vpop.permute.xlu1 %787  ;;  %v776_v18 = vpop.permute.xlu0 %775  ;;  %v335_v17 = vmul.f32 %v6049_v41, %v6528_v42  ;;  %8573 = vst [vmem:[#allocation16_spill] sm:$0xff] %v6792_v2  ;;  %v8461_v32 = vshll.u32 %v6761_v57, 16  ;;  %v8459_v41 = vshrl.u32 %v6781_v47, 16  ;;  %v6810_v15 = vsel %vm457_vm0, %v530_v38, %v541_v1 }
  0xab   : > { %v1091_v29 = vmul.bf16 %v5786_v7, %v6750_v19  ;;  %v796_v31 = vrot.slane %v788_v22, %v6641_v43  ;;  %v784_v50 = vrot.slane %v776_v18, %v6641_v43  ;;  %v6804_v7 = vpack.c.bf16 %v400_v20, %v399_v60  ;;  %8575 = vst [vmem:[#allocation18_spill] sm:$0xff] %v6810_v15 }
  0xac   : > { %v401_v30 = vmax.f32 %v369_v48, 0.0  ;;  %v402_v22 = vmax.f32 %v370_v10, 0.0  ;;  %v371_v18 = vadd.f32 %v6534_v53, %v335_v17  ;;  %v8460_v60 = vshll.u32 %v6781_v47, 16 }
  0xad   : > { %v5787_v49 = vcombine.low %v784_v50, %v796_v31  ;;  %1108 = vst.msk [vmem:[#allocation2 + $0x30] sm:$0xff] %vm1101_vm3, %v1091_v29  ;;  %8574 = vst [vmem:[#allocation17_spill] sm:$0xff] %v6804_v7  ;;  %v372_v29 = vadd.f32 %v6534_v53, %v336_v0  ;;  %v554_v53 = vrot.slane %v8459_v41, 7  ;;  %v8453_v0 = vshrl.u32 %v6804_v7, 16  ;;  %v7056_v41 = vld [vmem:[%s8437_s1 + $0x40] sm:$0xf] }
  0xae   : > { %v812_v13 = vpop.permute.xlu1 %811  ;;  %v800_v11 = vpop.permute.xlu0 %799  ;;  %v6821_v17 = vpack.c.bf16 %v402_v22, %v401_v30  ;;  %v403_v38 = vmax.f32 %v371_v18, 0.0  ;;  %v8456_v18 = vshll.u32 %v6804_v7, 16 }
  0xaf   : > { %v1092_v42 = vmul.bf16 %v5787_v49, %v6772_v12  ;;  %v820_v8 = vrot.slane %v812_v13, %v6641_v43  ;;  %v808_v59 = vrot.slane %v800_v11, %v6641_v43  ;;  %v549_v49 = vor.u32 %v8461_v32, %v546_v27  ;;  %v7068_v32 = vld [vmem:[%s8437_s1 + $0x48] sm:$0xf] }
  0xb0   : > { %8576 = vst [vmem:[#allocation19_spill] sm:$0xff] %v6821_v17  ;;  %v404_v13 = vmax.f32 %v372_v29, 0.0  ;;  %v557_v30 = vor.u32 %v8460_v60, %v554_v53  ;;  %v562_v22 = vrot.slane %v8453_v0, 7  ;;  %v8452_v29 = vshrl.u32 %v6821_v17, 16  ;;  %v7062_v60 = vld [vmem:[%s8437_s1 + $0x44] sm:$0xf] }
  0xb1   : > { %v5788_v31 = vcombine.low %v808_v59, %v820_v8  ;;  %1109 = vst.msk [vmem:[#allocation2 + $0x38] sm:$0xff] %vm1101_vm3, %v1092_v42  ;;  %v6825_v8 = vsel %vm457_vm0, %v538_v36, %v549_v49  ;;  %v8589_v12 = vshll.u32 %v6566_v39, 16 }
  0xb2   : > { %v836_v50 = vpop.permute.xlu1 %835  ;;  %v824_v37 = vpop.permute.xlu0 %823  ;;  %8577 = vst [vmem:[#allocation20_spill] sm:$0xff] %v6825_v8 }
  0xb3   : > { %v1093_v20 = vmul.bf16 %v5788_v31, %v6792_v2  ;;  %v844_v48 = vrot.slane %v836_v50, %v6641_v43  ;;  %v832_v10 = vrot.slane %v824_v37, %v6641_v43  ;;  %v6836_v50 = vpack.c.bf16 %v404_v13, %v403_v38 }
  0xb4   : > { %v570_v38 = vrot.slane %v8452_v29, 7  ;;  %v8454_v13 = vshll.u32 %v6821_v17, 16 }
  0xb5   : > { %v5789_v11 = vcombine.low %v832_v10, %v844_v48  ;;  %1110 = vst.msk [vmem:[#allocation2 + $0x40] sm:$0xff] %vm1101_vm3, %v1093_v20  ;;  %8578 = vst [vmem:[#allocation21_spill] sm:$0xff] %v6836_v50 }
  0xb6   : > { %v860_v1 = vpop.permute.xlu1 %859  ;;  %v848_v42 = vpop.permute.xlu0 %847  ;;  %v573_v29 = vor.u32 %v8454_v13, %v570_v38 }
  0xb7   : > { %v1094_v59 = vmul.bf16 %v5789_v11, %v6810_v15  ;;  %v868_v37 = vrot.slane %v860_v1, %v6641_v43  ;;  %v856_v31 = vrot.slane %v848_v42, %v6641_v43  ;;  %v6842_v11 = vsel %vm457_vm0, %v546_v27, %v557_v30 }
  0xb8   : > { %8579 = vst [vmem:[#allocation22_spill] sm:$0xff] %v6842_v11  ;;  %v565_v42 = vor.u32 %v8456_v18, %v562_v22 }
  0xb9   : > { %v5790_v36 = vcombine.low %v856_v31, %v868_v37  ;;  %1111 = vst.msk [vmem:[#allocation2 + $0x48] sm:$0xff] %vm1101_vm3, %v1094_v59  ;;  %v8455_v59 = vshrl.u32 %v6836_v50, 16 }
  0xba   : > { %v884_v49 = vpop.permute.xlu1 %883  ;;  %v872_v20 = vpop.permute.xlu0 %871 }
  0xbb   : > { %v1095_v48 = vmul.bf16 %v5790_v36, %v6825_v8  ;;  %v892_v10 = vrot.slane %v884_v49, %v6641_v43  ;;  %v880_v1 = vrot.slane %v872_v20, %v6641_v43  ;;  %v6856_v20 = vsel %vm457_vm0, %v554_v53, %v565_v42 }
  0xbc   : > { %8580 = vst [vmem:[#allocation23_spill] sm:$0xff] %v6856_v20  ;;  %v578_v0 = vrot.slane %v8455_v59, 7  ;;  %v6868_v42 = vsel %vm457_vm0, %v562_v22, %v573_v29  ;;  %v8457_v59 = vshll.u32 %v6583_v25, 16 }
  0xbd   : > { %v5791_v37 = vcombine.low %v880_v1, %v892_v10  ;;  %1112 = vst.msk [vmem:[#allocation2 + $0x50] sm:$0xff] %vm1101_vm3, %v1095_v48  ;;  %v8458_v10 = vshll.u32 %v6836_v50, 16  ;;  %8581 = vst [vmem:[#allocation24_spill] sm:$0xff] %v6868_v42 }
  0xbe   : > { %v908_v31 = vpop.permute.xlu1 %907  ;;  %v896_v36 = vpop.permute.xlu0 %895  ;;  %v585_v22 = vor.u32 %v8457_v59, %v6621_v16 }
  0xbf   : > { %v1096_v27 = vmul.bf16 %v5791_v37, %v6842_v11  ;;  %v916_v30 = vrot.slane %v908_v31, %v6641_v43  ;;  %v904_v49 = vrot.slane %v896_v36, %v6641_v43  ;;  %v581_v13 = vor.u32 %v8458_v10, %v578_v0  ;;  %v7050_v10 = vld [vmem:[%s8437_s1 + $0x3c] sm:$0xf] }
  0xc1   : > { %v5792_v48 = vcombine.low %v904_v49, %v916_v30  ;;  %1113 = vst.msk [vmem:[#allocation2 + $0x58] sm:$0xff] %vm1101_vm3, %v1096_v27 }
  0xc2   : > { %v932_v1 = vpop.permute.xlu1 %931  ;;  %v920_v37 = vpop.permute.xlu0 %919 }
  0xc3   : > { %v1097_v31 = vmul.bf16 %v5792_v48, %v6856_v20  ;;  %v940_v36 = vrot.slane %v932_v1, %v6641_v43  ;;  %v928_v53 = vrot.slane %v920_v37, %v6641_v43  ;;  %v6878_v37 = vsel %vm457_vm0, %v570_v38, %v581_v13 }
  0xc4   : > { %8582 = vst [vmem:[#allocation25_spill] sm:$0xff] %v6878_v37 }
  0xc5   : > { %v5793_v18 = vcombine.low %v928_v53, %v940_v36  ;;  %1114 = vst.msk [vmem:[#allocation2 + $0x60] sm:$0xff] %vm1101_vm3, %v1097_v31 }
  0xc6   : > { %v956_v27 = vpop.permute.xlu1 %955  ;;  %v944_v30 = vpop.permute.xlu0 %943 }
  0xc7   : > { %v1098_v49 = vmul.bf16 %v5793_v18, %v6868_v42  ;;  %v964_v48 = vrot.slane %v956_v27, %v6641_v43  ;;  %v952_v1 = vrot.slane %v944_v30, %v6641_v43  ;;  %v6888_v30 = vsel %vm457_vm0, %v578_v0, %v585_v22 }
  0xc8   : > { %8583 = vst [vmem:[#allocation26_spill] sm:$0xff] %v6888_v30  ;;  %v6291_v42 = vmov 3   ;;  %vm5134_vm0 = vcmask 588800  }
  0xc9   : > { %v5794_v29 = vcombine.low %v952_v1, %v964_v48  ;;  %1115 = vst.msk [vmem:[#allocation2 + $0x68] sm:$0xff] %vm1101_vm3, %v1098_v49 }
  0xca   : > { %v980_v36 = vpop.permute.xlu1 %979  ;;  %v968_v31 = vpop.permute.xlu0 %967 }
  0xcb   : > { %v1099_v53 = vmul.bf16 %v5794_v29, %v6878_v37  ;;  %v988_v18 = vrot.slane %v980_v36, %v6641_v43  ;;  %v976_v27 = vrot.slane %v968_v31, %v6641_v43 }
  0xcd   : > { %v5795_v38 = vcombine.low %v976_v27, %v988_v18  ;;  %1116 = vst.msk [vmem:[#allocation2 + $0x70] sm:$0xff] %vm1101_vm3, %v1099_v53 }
  0xcf   : > { %v1100_v13 = vmul.bf16 %v5795_v38, %v6888_v30  ;;  %v1131_v16 = vpop.permute.xlu1 %1130  ;;  %v1120_v48 = vpop.permute.xlu0 %1119 }
  0xd0   : > { %v1139_v49 = vrot.slane %v1131_v16, %v6641_v43  ;;  %v1128_v1 = vrot.slane %v1120_v48, %v6641_v43 }
  0xd1   : > { %1117 = vst.msk [vmem:[#allocation2 + $0x78] sm:$0xff] %vm1101_vm3, %v1100_v13 }
  0xd2   : > { %v5796_v29 = vcombine.low %v1128_v1, %v1139_v49 }
  0xd3   : > { %v1142_v36 = vpop.permute.xlu1 %1141  ;;  %v1153_v59 = vpop.permute.xlu0 %1152 }
  0xd4   : > { %v1150_v31 = vrot.slane %v1142_v36, %v6641_v43  ;;  %v1161_v0 = vrot.slane %v1153_v59, %v6641_v43  ;;  %v1566_v22 = vmul.bf16 %v5796_v29, %v6568_v40 }
  0xd6   : > { %v5797_v53 = vcombine.low %v1150_v31, %v1161_v0  ;;  %1598 = vrot.lane.b32.xlu1 %v1566_v22, %s6290_s22 }
  0xd7   : > { %v1164_v18 = vpop.permute.xlu1 %1163  ;;  %v1175_v27 = vpop.permute.xlu0 %1174 }
  0xd8   : > { %v1172_v38 = vrot.slane %v1164_v18, %v6641_v43  ;;  %v1183_v16 = vrot.slane %v1175_v27, %v6641_v43  ;;  %v1567_v13 = vmul.bf16 %v5797_v53, %v6566_v39 }
  0xda   : > { %v5798_v48 = vcombine.low %v1172_v38, %v1183_v16  ;;  %1600 = vrot.lane.b32.xlu0 %v1567_v13, %s6290_s22 }
  0xdb   : > { %v1186_v49 = vpop.permute.xlu1 %1185  ;;  %v1197_v1 = vpop.permute.xlu0 %1196 }
  0xdc   : > { %v1194_v59 = vrot.slane %v1186_v49, %v6641_v43  ;;  %v1205_v29 = vrot.slane %v1197_v1, %v6641_v43  ;;  %v1568_v36 = vmul.bf16 %v5798_v48, %v6573_v23 }
  0xde   : > { %v5799_v31 = vcombine.low %v1194_v59, %v1205_v29  ;;  %1602 = vrot.lane.b32.xlu1 %v1568_v36, %s6290_s22 }
  0xdf   : > { %v1208_v0 = vpop.permute.xlu1 %1207  ;;  %v1219_v22 = vpop.permute.xlu0 %1218 }
  0xe0   : > { %v1216_v18 = vrot.slane %v1208_v0, %v6641_v43  ;;  %v1227_v53 = vrot.slane %v1219_v22, %v6641_v43  ;;  %v1569_v27 = vmul.bf16 %v5799_v31, %v6576_v45 }
  0xe2   : > { %v5800_v38 = vcombine.low %v1216_v18, %v1227_v53  ;;  %1604 = vrot.lane.b32.xlu0 %v1569_v27, %s6290_s22 }
  0xe3   : > { %v1230_v16 = vpop.permute.xlu1 %1229  ;;  %v1241_v13 = vpop.permute.xlu0 %1240 }
  0xe4   : > { %v1238_v49 = vrot.slane %v1230_v16, %v6641_v43  ;;  %v1249_v48 = vrot.slane %v1241_v13, %v6641_v43  ;;  %v1570_v1 = vmul.bf16 %v5800_v38, %v6611_v9 }
  0xe6   : > { %v5801_v59 = vcombine.low %v1238_v49, %v1249_v48  ;;  %1606 = vrot.lane.b32.xlu1 %v1570_v1, %s6290_s22 }
  0xe7   : > { %v1252_v29 = vpop.permute.xlu1 %1251  ;;  %v1263_v36 = vpop.permute.xlu0 %1262 }
  0xe8   : > { %v1260_v0 = vrot.slane %v1252_v29, %v6641_v43  ;;  %v1271_v31 = vrot.slane %v1263_v36, %v6641_v43  ;;  %v1571_v22 = vmul.bf16 %v5801_v59, %v6636_v34 }
  0xea   : > { %v5802_v18 = vcombine.low %v1260_v0, %v1271_v31  ;;  %1608 = vrot.lane.b32.xlu0 %v1571_v22, %s6290_s22 }
  0xeb   : > { %v1274_v53 = vpop.permute.xlu1 %1273  ;;  %v1285_v27 = vpop.permute.xlu0 %1284 }
  0xec   : > { %v1282_v16 = vrot.slane %v1274_v53, %v6641_v43  ;;  %v1293_v38 = vrot.slane %v1285_v27, %v6641_v43  ;;  %v1572_v13 = vmul.bf16 %v5802_v18, %v6664_v63 }
  0xee   : > { %v5803_v49 = vcombine.low %v1282_v16, %v1293_v38  ;;  %1610 = vrot.lane.b32.xlu1 %v1572_v13, %s6290_s22 }
  0xef   : > { %v1296_v48 = vpop.permute.xlu1 %1295  ;;  %v1307_v1 = vpop.permute.xlu0 %1306 }
  0xf0   : > { %v1304_v29 = vrot.slane %v1296_v48, %v6641_v43  ;;  %v1315_v59 = vrot.slane %v1307_v1, %v6641_v43  ;;  %v1573_v36 = vmul.bf16 %v5803_v49, %v6689_v46 }
  0xf2   : > { %v5804_v0 = vcombine.low %v1304_v29, %v1315_v59  ;;  %1612 = vrot.lane.b32.xlu0 %v1573_v36, %s6290_s22 }
  0xf3   : > { %v1318_v31 = vpop.permute.xlu1 %1317  ;;  %v1329_v22 = vpop.permute.xlu0 %1328 }
  0xf4   : > { %v1326_v53 = vrot.slane %v1318_v31, %v6641_v43  ;;  %v1337_v18 = vrot.slane %v1329_v22, %v6641_v43  ;;  %v1574_v27 = vmul.bf16 %v5804_v0, %v6714_v14 }
  0xf6   : > { %v5805_v16 = vcombine.low %v1326_v53, %v1337_v18  ;;  %1614 = vrot.lane.b32.xlu1 %v1574_v27, %s6290_s22 }
  0xf7   : > { %v1340_v38 = vpop.permute.xlu1 %1339  ;;  %v1351_v13 = vpop.permute.xlu0 %1350 }
  0xf8   : > { %v1348_v48 = vrot.slane %v1340_v38, %v6641_v43  ;;  %v1359_v49 = vrot.slane %v1351_v13, %v6641_v43  ;;  %v1575_v1 = vmul.bf16 %v5805_v16, %v6737_v4 }
  0xfa   : > { %v5806_v29 = vcombine.low %v1348_v48, %v1359_v49  ;;  %1616 = vrot.lane.b32.xlu0 %v1575_v1, %s6290_s22 }
  0xfb   : > { %v1362_v59 = vpop.permute.xlu1 %1361  ;;  %v1373_v36 = vpop.permute.xlu0 %1372 }
  0xfc   : > { %v1370_v31 = vrot.slane %v1362_v59, %v6641_v43  ;;  %v1381_v0 = vrot.slane %v1373_v36, %v6641_v43  ;;  %v1576_v22 = vmul.bf16 %v5806_v29, %v6761_v57 }
  0xfe   : > { %v5807_v53 = vcombine.low %v1370_v31, %v1381_v0  ;;  %1618 = vrot.lane.b32.xlu1 %v1576_v22, %s6290_s22 }
  0xff   : > { %v1384_v18 = vpop.permute.xlu1 %1383  ;;  %v1395_v27 = vpop.permute.xlu0 %1394 }
 0x100   : > { %v1392_v38 = vrot.slane %v1384_v18, %v6641_v43  ;;  %v1403_v16 = vrot.slane %v1395_v27, %v6641_v43  ;;  %v1577_v13 = vmul.bf16 %v5807_v53, %v6781_v47 }
 0x102   : > { %v5808_v48 = vcombine.low %v1392_v38, %v1403_v16  ;;  %1620 = vrot.lane.b32.xlu0 %v1577_v13, %s6290_s22 }
 0x103   : > { %v1406_v49 = vpop.permute.xlu1 %1405  ;;  %v1417_v1 = vpop.permute.xlu0 %1416 }
 0x104   : > { %v1414_v59 = vrot.slane %v1406_v49, %v6641_v43  ;;  %v1425_v29 = vrot.slane %v1417_v1, %v6641_v43  ;;  %v1578_v36 = vmul.bf16 %v5808_v48, %v6804_v7 }
 0x106   : > { %v5809_v31 = vcombine.low %v1414_v59, %v1425_v29  ;;  %1622 = vrot.lane.b32.xlu1 %v1578_v36, %s6290_s22  ;;  %v6959_v36 = vld [vmem:[%s8437_s1] sm:$0xf] }
 0x107   : > { %v1428_v0 = vpop.permute.xlu1 %1427  ;;  %v1439_v22 = vpop.permute.xlu0 %1438 }
 0x108   : > { %v1436_v18 = vrot.slane %v1428_v0, %v6641_v43  ;;  %v1447_v53 = vrot.slane %v1439_v22, %v6641_v43  ;;  %v1579_v27 = vmul.bf16 %v5809_v31, %v6821_v17  ;;  %v6966_v31 = vld [vmem:[%s8437_s1 + $0x8] sm:$0xf]  ;;  %v6972_v0 = vld [vmem:[%s8437_s1 + $0x4] sm:$0xf]  ;;  %v6978_v22 = vld [vmem:[%s8437_s1 + $0xc] sm:$0xf] }
 0x10a   : > { %v5810_v38 = vcombine.low %v1436_v18, %v1447_v53  ;;  %1624 = vrot.lane.b32.xlu0 %v1579_v27, %s6290_s22  ;;  %v6984_v18 = vld [vmem:[%s8437_s1 + $0x10] sm:$0xf]  ;;  %v6990_v53 = vld [vmem:[%s8437_s1 + $0x14] sm:$0xf]  ;;  %v6996_v27 = vld [vmem:[%s8437_s1 + $0x18] sm:$0xf] }
 0x10b   : > { %v1450_v16 = vpop.permute.xlu1 %1449  ;;  %v1461_v13 = vpop.permute.xlu0 %1460 }
 0x10c   : > { %v1458_v49 = vrot.slane %v1450_v16, %v6641_v43  ;;  %v1469_v48 = vrot.slane %v1461_v13, %v6641_v43  ;;  %v1580_v1 = vmul.bf16 %v5810_v38, %v6836_v50  ;;  %v7002_v38 = vld [vmem:[%s8437_s1 + $0x1c] sm:$0xf]  ;;  %v7008_v16 = vld [vmem:[%s8437_s1 + $0x20] sm:$0xf]  ;;  %v7014_v13 = vld [vmem:[%s8437_s1 + $0x24] sm:$0xf] }
 0x10e   : > { %v5811_v59 = vcombine.low %v1458_v49, %v1469_v48  ;;  %1626 = vrot.lane.b32.xlu1 %v1580_v1, %s6290_s22  ;;  %v7020_v49 = vld [vmem:[%s8437_s1 + $0x28] sm:$0xf]  ;;  %v7026_v48 = vld [vmem:[%s8437_s1 + $0x2c] sm:$0xf]  ;;  %v7032_v1 = vld [vmem:[%s8437_s1 + $0x30] sm:$0xf] }
 0x110   : > { %v1581_v29 = vmul.bf16 %v5811_v59, %v6583_v25  ;;  %v7038_v59 = vld [vmem:[%s8437_s1 + $0x34] sm:$0xf] }
 0x112   : > { %1732 = vperm.xlu1 %6178, %v6959_v36   ;;  %1628 = vrot.lane.b32.xlu0 %v1581_v29, %s6290_s22  ;;  %v7044_v29 = vld [vmem:[%s8437_s1 + $0x38] sm:$0xf] }
 0x116   : > { %1754 = vperm.xlu1 %6178, %v6966_v31   ;;  %1743 = vperm.xlu0 %6179, %v6972_v0  }
 0x11a   : > { %1765 = vperm.xlu1 %6178, %v6978_v22   ;;  %1776 = vperm.xlu0 %6179, %v6984_v18  }
 0x11e   : > { %1787 = vperm.xlu1 %6178, %v6990_v53   ;;  %1798 = vperm.xlu0 %6179, %v6996_v27  }
 0x122   : > { %1809 = vperm.xlu1 %6178, %v7002_v38   ;;  %1820 = vperm.xlu0 %6179, %v7008_v16  }
 0x126   : > { %1831 = vperm.xlu1 %6178, %v7014_v13   ;;  %1842 = vperm.xlu0 %6179, %v7020_v49  }
 0x12a   : > { %1853 = vperm.xlu1 %6178, %v7026_v48   ;;  %1864 = vperm.xlu0 %6179, %v7032_v1  }
 0x12e   : > { %1875 = vperm.xlu1 %6178, %v7038_v59   ;;  %1886 = vperm.xlu0 %6179, %v7044_v29  }
 0x132   : > { %1897 = vperm.xlu1 %6178, %v7050_v10   ;;  %1908 = vperm.xlu0 %6179, %v7056_v41  }
 0x136   : > { %1919 = vperm.xlu1 %6178, %v7062_v60   ;;  %1930 = vperm.xlu0 %6179, %v7068_v32  }
 0x13a   : > { %1941 = vperm.xlu1 %6178, %v7074_v61   ;;  %1952 = vperm.xlu0 %6179, %v7080_v21  }
 0x13e   : > { %1963 = vperm.xlu1 %6178, %v7086_v33   ;;  %1974 = vperm.xlu0 %6179, %v7092_v54  }
 0x142   : > { %1985 = vperm.xlu1 %6178, %v7098_v58   ;;  %1996 = vperm.xlu0 %6179, %v7104_v56  }
 0x146   : > { %2007 = vperm.xlu1 %6178, %v7110_v6   ;;  %2018 = vperm.xlu0 %6179, %v7116_v5  }
 0x148   : > { %v1599_v26 = vpop.permute.xlu1 %1598 }
 0x149   : > { %1647 = vst.msk [vmem:[#allocation2] sm:$0xff] %vm1646_vm4, %v1599_v26  ;;  %v7136_v26 = vld [vmem:[%s8437_s1 + $0x74] sm:$0xf] }
 0x14a   : > { %2029 = vperm.xlu1 %6178, %v7123_v62   ;;  %2040 = vperm.xlu0 %6179, %v7129_v51  }
 0x14c   : > { %v1601_v3 = vpop.permute.xlu0 %1600 }
 0x14d   : > { %1648 = vst.msk [vmem:[#allocation2 + $0x8] sm:$0xff] %vm1646_vm4, %v1601_v3  ;;  %v7149_v3 = vld [vmem:[%s8437_s1 + $0x7c] sm:$0xf] }
 0x14e   : > { %2051 = vperm.xlu1 %6178, %v7136_v26   ;;  %2062 = vperm.xlu0 %6179, %v7142_v44   ;;  %8586 = vst [vmem:[#allocation29_spill] sm:$0xff] %v7149_v3 }
 0x150   : > { %v1603_v30 = vpop.permute.xlu1 %1602 }
 0x151   : > { %1649 = vst.msk [vmem:[#allocation2 + $0x10] sm:$0xff] %vm1646_vm4, %v1603_v30 }
 0x152   : > { %2073 = vperm.xlu1 %6178, %v7149_v3   ;;  %6180 = vset.pattern.permute.xlu0 %v6291_v42 }
 0x154   : > { %v1605_v37 = vpop.permute.xlu0 %1604 }
 0x155   : > { %1650 = vst.msk [vmem:[#allocation2 + $0x18] sm:$0xff] %vm1646_vm4, %v1605_v37 }
 0x156   : > { %6181 = vset.pattern.permute.xlu1 %v6291_v42 }
 0x158   : > { %v1607_v20 = vpop.permute.xlu1 %1606 }
 0x159   : > { %1651 = vst.msk [vmem:[#allocation2 + $0x20] sm:$0xff] %vm1646_vm4, %v1607_v20 }
 0x15c   : > { %v1609_v11 = vpop.permute.xlu0 %1608 }
 0x15d   : > { %1652 = vst.msk [vmem:[#allocation2 + $0x28] sm:$0xff] %vm1646_vm4, %v1609_v11 }
 0x160   : > { %v1611_v30 = vpop.permute.xlu1 %1610 }
 0x161   : > { %1653 = vst.msk [vmem:[#allocation2 + $0x30] sm:$0xff] %vm1646_vm4, %v1611_v30 }
 0x164   : > { %v1613_v8 = vpop.permute.xlu0 %1612 }
 0x165   : > { %1654 = vst.msk [vmem:[#allocation2 + $0x38] sm:$0xff] %vm1646_vm4, %v1613_v8 }
 0x168   : > { %v1615_v15 = vpop.permute.xlu1 %1614 }
 0x169   : > { %1655 = vst.msk [vmem:[#allocation2 + $0x40] sm:$0xff] %vm1646_vm4, %v1615_v15  ;;  %v8587_v15 = vshll.u32 %v6568_v40, 16 }
 0x16c   : > { %v1617_v2 = vpop.permute.xlu0 %1616 }
 0x16d   : > { %1656 = vst.msk [vmem:[#allocation2 + $0x48] sm:$0xff] %vm1646_vm4, %v1617_v2  ;;  %v7167_v2 = vrot.slane %v8587_v15, 1 }
 0x170   : > { %v1619_v37 = vpop.permute.xlu1 %1618 }
 0x171   : > { %1657 = vst.msk [vmem:[#allocation2 + $0x50] sm:$0xff] %vm1646_vm4, %v1619_v37 }
 0x174   : > { %v1621_v42 = vpop.permute.xlu0 %1620 }
 0x175   : > { %1658 = vst.msk [vmem:[#allocation2 + $0x58] sm:$0xff] %vm1646_vm4, %v1621_v42  ;;  %v8588_v42 = vshrl.u32 %v6568_v40, 16  ;;  %v8592_v40 = vshll.u32 %v6573_v23, 16 }
 0x177   : > { %v1669_v35 = vrot.slane %v8592_v40, 1 }
 0x178   : > { %v1623_v20 = vpop.permute.xlu1 %1622 }
 0x179   : > { %1659 = vst.msk [vmem:[#allocation2 + $0x60] sm:$0xff] %vm1646_vm4, %v1623_v20  ;;  %v1664_v20 = vor.u32 %v7167_v2, %v8588_v42 }
 0x17c   : > { %v1625_v11 = vpop.permute.xlu0 %1624 }
 0x17d   : > { %1660 = vst.msk [vmem:[#allocation2 + $0x68] sm:$0xff] %vm1646_vm4, %v1625_v11  ;;  %v1667_v11 = vrot.slane %v8589_v12, 1 }
 0x17f   : > { %v7177_v15 = vsel %vm1729_vm7, %v1664_v20, %v1667_v11  ;;  %v1668_v52 = vor.u32 %v1667_v11, %v8591_v28  ;;  %v8595_v28 = vshrl.u32 %v6573_v23, 16 }
 0x180   : > { %v1627_v30 = vpop.permute.xlu1 %1626  ;;  %8590 = vst [vmem:[#allocation30_spill] sm:$0xff] %v7177_v15 }
 0x181   : > { %1661 = vst.msk [vmem:[#allocation2 + $0x70] sm:$0xff] %vm1646_vm4, %v1627_v30  ;;  %v1671_v11 = vor.u32 %v1669_v35, %v8595_v28 }
 0x184   : > { %v1629_v8 = vpop.permute.xlu0 %1628 }
 0x185   : > { %1662 = vst.msk [vmem:[#allocation2 + $0x78] sm:$0xff] %vm1646_vm4, %v1629_v8 }
 0x191   : > { %v1733_v37 = vpop.permute.xlu1 %1732 }
 0x192   : > { %v1741_v8 = vrot.slane %v1733_v37, %v6641_v43  ;;  %v7187_v37 = vsel %vm1666_vm5, %v1668_v52, %v1669_v35  ;;  %v8598_v35 = vshll.u32 %v6611_v9, 16 }
 0x193   : > { %8593 = vst [vmem:[#allocation31_spill] sm:$0xff] %v7187_v37 }
 0x195   : > { %v1755_v30 = vpop.permute.xlu1 %1754  ;;  %v1744_v19 = vpop.permute.xlu0 %1743 }
 0x196   : > { %v1752_v55 = vrot.slane %v1744_v19, %v6641_v43  ;;  %v1763_v12 = vrot.slane %v1755_v30, %v6641_v43  ;;  %v8594_v19 = vshll.u32 %v6576_v45, 16 }
 0x198   : > { %v5812_v42 = vcombine.low %v1741_v8, %v1752_v55  ;;  %v1672_v20 = vrot.slane %v8594_v19, 1 }
 0x199   : > { %v1766_v24 = vpop.permute.xlu1 %1765  ;;  %v1777_v44 = vpop.permute.xlu0 %1776 }
 0x19a   : > { %v2179_v51 = vmul.bf16 %v5812_v42, %v7177_v15  ;;  %v1774_v3 = vrot.slane %v1766_v24, %v6641_v43  ;;  %v1785_v8 = vrot.slane %v1777_v44, %v6641_v43  ;;  %v7198_v52 = vsel %vm1666_vm5, %v1671_v11, %v1672_v20 }
 0x19b   : > { %8596 = vst [vmem:[#allocation32_spill] sm:$0xff] %v7198_v52  ;;  %v8597_v42 = vshrl.u32 %v6576_v45, 16  ;;  %v8600_v15 = vshrl.u32 %v6611_v9, 16 }
 0x19c   : > { %v5813_v39 = vcombine.low %v1763_v12, %v1774_v3  ;;  %2211 = vrot.lane.b32.xlu0 %v2179_v51, %s6292_s24  ;;  %v1675_v3 = vrot.slane %v8598_v35, 1 }
 0x19d   : > { %v1788_v40 = vpop.permute.xlu1 %1787  ;;  %v1799_v55 = vpop.permute.xlu0 %1798  ;;  %v1674_v19 = vor.u32 %v1672_v20, %v8597_v42  ;;  %v8601_v42 = vshll.u32 %v6636_v34, 16 }
 0x19e   : > { %v2180_v30 = vmul.bf16 %v5813_v39, %v7187_v37  ;;  %v1796_v24 = vrot.slane %v1788_v40, %v6641_v43  ;;  %v1807_v44 = vrot.slane %v1799_v55, %v6641_v43  ;;  %v1677_v20 = vor.u32 %v1675_v3, %v8600_v15 }
 0x19f   : > { %v7209_v11 = vsel %vm1666_vm5, %v1674_v19, %v1675_v3  ;;  %v1678_v35 = vrot.slane %v8601_v42, 1  ;;  %v8604_v3 = vshll.u32 %v6664_v63, 16 }
 0x1a0   : > { %v5814_v12 = vcombine.low %v1785_v8, %v1796_v24  ;;  %2213 = vrot.lane.b32.xlu1 %v2180_v30, %s6292_s24  ;;  %8599 = vst [vmem:[#allocation33_spill] sm:$0xff] %v7209_v11 }
 0x1a1   : > { %v1810_v51 = vpop.permute.xlu1 %1809  ;;  %v1821_v28 = vpop.permute.xlu0 %1820  ;;  %v7220_v19 = vsel %vm1666_vm5, %v1677_v20, %v1678_v35  ;;  %v1681_v42 = vrot.slane %v8604_v3, 1 }
 0x1a2   : > { %v2181_v39 = vmul.bf16 %v5814_v12, %v7198_v52  ;;  %v1818_v40 = vrot.slane %v1810_v51, %v6641_v43  ;;  %v1829_v55 = vrot.slane %v1821_v28, %v6641_v43  ;;  %8602 = vst [vmem:[#allocation34_spill] sm:$0xff] %v7220_v19  ;;  %v8603_v52 = vshrl.u32 %v6636_v34, 16 }
 0x1a4   : > { %v5815_v8 = vcombine.low %v1807_v44, %v1818_v40  ;;  %2215 = vrot.lane.b32.xlu0 %v2181_v39, %s6292_s24  ;;  %v1680_v15 = vor.u32 %v1678_v35, %v8603_v52  ;;  %v8607_v35 = vshll.u32 %v6689_v46, 16 }
 0x1a5   : > { %v1832_v30 = vpop.permute.xlu1 %1831  ;;  %v1843_v24 = vpop.permute.xlu0 %1842 }
 0x1a6   : > { %v2182_v12 = vmul.bf16 %v5815_v8, %v7209_v11  ;;  %v1840_v51 = vrot.slane %v1832_v30, %v6641_v43  ;;  %v1851_v28 = vrot.slane %v1843_v24, %v6641_v43  ;;  %v7231_v20 = vsel %vm1666_vm5, %v1680_v15, %v1681_v42 }
 0x1a7   : > { %8605 = vst [vmem:[#allocation35_spill] sm:$0xff] %v7231_v20  ;;  %v8606_v11 = vshrl.u32 %v6664_v63, 16  ;;  %v1684_v3 = vrot.slane %v8607_v35, 1 }
 0x1a8   : > { %v5816_v44 = vcombine.low %v1829_v55, %v1840_v51  ;;  %2217 = vrot.lane.b32.xlu1 %v2182_v12, %s6292_s24 }
 0x1a9   : > { %v1854_v39 = vpop.permute.xlu1 %1853  ;;  %v1865_v40 = vpop.permute.xlu0 %1864  ;;  %v1683_v52 = vor.u32 %v1681_v42, %v8606_v11  ;;  %v8610_v42 = vshll.u32 %v6714_v14, 16 }
 0x1aa   : > { %v2183_v8 = vmul.bf16 %v5816_v44, %v7220_v19  ;;  %v1862_v30 = vrot.slane %v1854_v39, %v6641_v43  ;;  %v1873_v24 = vrot.slane %v1865_v40, %v6641_v43  ;;  %v8609_v19 = vshrl.u32 %v6689_v46, 16 }
 0x1ab   : > { %v7242_v15 = vsel %vm1666_vm5, %v1683_v52, %v1684_v3  ;;  %v1687_v35 = vrot.slane %v8610_v42, 1 }
 0x1ac   : > { %v5817_v55 = vcombine.low %v1851_v28, %v1862_v30  ;;  %2219 = vrot.lane.b32.xlu0 %v2183_v8, %s6292_s24  ;;  %8608 = vst [vmem:[#allocation36_spill] sm:$0xff] %v7242_v15  ;;  %v1686_v11 = vor.u32 %v1684_v3, %v8609_v19  ;;  %v8613_v3 = vshll.u32 %v6737_v4, 16 }
 0x1ad   : > { %v1876_v12 = vpop.permute.xlu1 %1875  ;;  %v1887_v51 = vpop.permute.xlu0 %1886 }
 0x1ae   : > { %v2184_v44 = vmul.bf16 %v5817_v55, %v7231_v20  ;;  %v1884_v39 = vrot.slane %v1876_v12, %v6641_v43  ;;  %v1895_v40 = vrot.slane %v1887_v51, %v6641_v43  ;;  %v7253_v52 = vsel %vm1666_vm5, %v1686_v11, %v1687_v35 }
 0x1af   : > { %8611 = vst [vmem:[#allocation37_spill] sm:$0xff] %v7253_v52  ;;  %v8612_v20 = vshrl.u32 %v6714_v14, 16  ;;  %v1690_v42 = vrot.slane %v8613_v3, 1 }
 0x1b0   : > { %v5818_v28 = vcombine.low %v1873_v24, %v1884_v39  ;;  %2221 = vrot.lane.b32.xlu1 %v2184_v44, %s6292_s24 }
 0x1b1   : > { %v1898_v8 = vpop.permute.xlu1 %1897  ;;  %v1909_v30 = vpop.permute.xlu0 %1908  ;;  %v1689_v19 = vor.u32 %v1687_v35, %v8612_v20  ;;  %v8616_v35 = vshll.u32 %v6761_v57, 16 }
 0x1b2   : > { %v2185_v55 = vmul.bf16 %v5818_v28, %v7242_v15  ;;  %v1906_v12 = vrot.slane %v1898_v8, %v6641_v43  ;;  %v1917_v51 = vrot.slane %v1909_v30, %v6641_v43  ;;  %v8615_v15 = vshrl.u32 %v6737_v4, 16 }
 0x1b3   : > { %v7264_v11 = vsel %vm1666_vm5, %v1689_v19, %v1690_v42  ;;  %v1693_v3 = vrot.slane %v8616_v35, 1 }
 0x1b4   : > { %v5819_v24 = vcombine.low %v1895_v40, %v1906_v12  ;;  %2223 = vrot.lane.b32.xlu0 %v2185_v55, %s6292_s24  ;;  %8614 = vst [vmem:[#allocation38_spill] sm:$0xff] %v7264_v11  ;;  %v1692_v20 = vor.u32 %v1690_v42, %v8615_v15  ;;  %v8619_v42 = vshll.u32 %v6781_v47, 16 }
 0x1b5   : > { %v1920_v44 = vpop.permute.xlu1 %1919  ;;  %v1931_v39 = vpop.permute.xlu0 %1930 }
 0x1b6   : > { %v2186_v28 = vmul.bf16 %v5819_v24, %v7253_v52  ;;  %v1928_v8 = vrot.slane %v1920_v44, %v6641_v43  ;;  %v1939_v30 = vrot.slane %v1931_v39, %v6641_v43  ;;  %v7275_v19 = vsel %vm1666_vm5, %v1692_v20, %v1693_v3 }
 0x1b7   : > { %8617 = vst [vmem:[#allocation39_spill] sm:$0xff] %v7275_v19  ;;  %v8618_v52 = vshrl.u32 %v6761_v57, 16  ;;  %v1696_v35 = vrot.slane %v8619_v42, 1 }
 0x1b8   : > { %v5820_v40 = vcombine.low %v1917_v51, %v1928_v8  ;;  %2225 = vrot.lane.b32.xlu1 %v2186_v28, %s6292_s24 }
 0x1b9   : > { %v1942_v55 = vpop.permute.xlu1 %1941  ;;  %v1953_v12 = vpop.permute.xlu0 %1952  ;;  %v1695_v15 = vor.u32 %v1693_v3, %v8618_v52  ;;  %v8622_v3 = vshll.u32 %v6804_v7, 16 }
 0x1ba   : > { %v2187_v24 = vmul.bf16 %v5820_v40, %v7264_v11  ;;  %v1950_v44 = vrot.slane %v1942_v55, %v6641_v43  ;;  %v1961_v39 = vrot.slane %v1953_v12, %v6641_v43  ;;  %v8621_v11 = vshrl.u32 %v6781_v47, 16 }
 0x1bb   : > { %v7286_v20 = vsel %vm1666_vm5, %v1695_v15, %v1696_v35  ;;  %v1699_v42 = vrot.slane %v8622_v3, 1 }
 0x1bc   : > { %v5821_v51 = vcombine.low %v1939_v30, %v1950_v44  ;;  %2227 = vrot.lane.b32.xlu0 %v2187_v24, %s6292_s24  ;;  %8620 = vst [vmem:[#allocation40_spill] sm:$0xff] %v7286_v20  ;;  %v1698_v52 = vor.u32 %v1696_v35, %v8621_v11  ;;  %v8625_v35 = vshll.u32 %v6821_v17, 16 }
 0x1bd   : > { %v1964_v28 = vpop.permute.xlu1 %1963  ;;  %v1975_v8 = vpop.permute.xlu0 %1974 }
 0x1be   : > { %v2188_v40 = vmul.bf16 %v5821_v51, %v7275_v19  ;;  %v1972_v55 = vrot.slane %v1964_v28, %v6641_v43  ;;  %v1983_v12 = vrot.slane %v1975_v8, %v6641_v43  ;;  %v7297_v15 = vsel %vm1666_vm5, %v1698_v52, %v1699_v42 }
 0x1bf   : > { %8623 = vst [vmem:[#allocation41_spill] sm:$0xff] %v7297_v15  ;;  %v8624_v19 = vshrl.u32 %v6804_v7, 16  ;;  %v1702_v3 = vrot.slane %v8625_v35, 1 }
 0x1c0   : > { %v5822_v30 = vcombine.low %v1961_v39, %v1972_v55  ;;  %2229 = vrot.lane.b32.xlu1 %v2188_v40, %s6292_s24 }
 0x1c1   : > { %v1986_v24 = vpop.permute.xlu1 %1985  ;;  %v1997_v44 = vpop.permute.xlu0 %1996  ;;  %v1701_v11 = vor.u32 %v1699_v42, %v8624_v19  ;;  %v8628_v42 = vshll.u32 %v6836_v50, 16 }
 0x1c2   : > { %v2189_v51 = vmul.bf16 %v5822_v30, %v7286_v20  ;;  %v1994_v28 = vrot.slane %v1986_v24, %v6641_v43  ;;  %v2005_v8 = vrot.slane %v1997_v44, %v6641_v43  ;;  %v8627_v20 = vshrl.u32 %v6821_v17, 16 }
 0x1c3   : > { %v7308_v52 = vsel %vm1666_vm5, %v1701_v11, %v1702_v3  ;;  %v1705_v35 = vrot.slane %v8628_v42, 1 }
 0x1c4   : > { %v5823_v39 = vcombine.low %v1983_v12, %v1994_v28  ;;  %2231 = vrot.lane.b32.xlu0 %v2189_v51, %s6292_s24  ;;  %8626 = vst [vmem:[#allocation42_spill] sm:$0xff] %v7308_v52  ;;  %v1704_v19 = vor.u32 %v1702_v3, %v8627_v20  ;;  %v8631_v3 = vshll.u32 %v6583_v25, 16 }
 0x1c5   : > { %v2008_v40 = vpop.permute.xlu1 %2007  ;;  %v2019_v55 = vpop.permute.xlu0 %2018 }
 0x1c6   : > { %v2190_v30 = vmul.bf16 %v5823_v39, %v7297_v15  ;;  %v2016_v24 = vrot.slane %v2008_v40, %v6641_v43  ;;  %v2027_v44 = vrot.slane %v2019_v55, %v6641_v43  ;;  %v7319_v11 = vsel %vm1666_vm5, %v1704_v19, %v1705_v35 }
 0x1c7   : > { %8629 = vst [vmem:[#allocation43_spill] sm:$0xff] %v7319_v11  ;;  %v8630_v15 = vshrl.u32 %v6836_v50, 16  ;;  %v1708_v42 = vrot.slane %v8631_v3, 1 }
 0x1c8   : > { %v5824_v12 = vcombine.low %v2005_v8, %v2016_v24  ;;  %2233 = vrot.lane.b32.xlu1 %v2190_v30, %s6292_s24 }
 0x1c9   : > { %v2030_v51 = vpop.permute.xlu1 %2029  ;;  %v2041_v28 = vpop.permute.xlu0 %2040  ;;  %v1707_v20 = vor.u32 %v1705_v35, %v8630_v15 }
 0x1ca   : > { %v2191_v39 = vmul.bf16 %v5824_v12, %v7308_v52  ;;  %v2038_v40 = vrot.slane %v2030_v51, %v6641_v43  ;;  %v2049_v12 = vrot.slane %v2041_v28, %v6641_v43  ;;  %v8633_v52 = vshrl.u32 %v6583_v25, 16 }
 0x1cb   : > { %v7330_v51 = vsel %vm1666_vm5, %v1707_v20, %v1708_v42 }
 0x1cc   : > { %v5825_v8 = vcombine.low %v2027_v44, %v2038_v40  ;;  %2235 = vrot.lane.b32.xlu0 %v2191_v39, %s6292_s24  ;;  %8632 = vst [vmem:[#allocation44_spill] sm:$0xff] %v7330_v51  ;;  %v1710_v15 = vor.u32 %v1708_v42, %v8633_v52  ;;  %v8635_v42 = vld [vmem:[#allocation29_spill] sm:$0xff] }
 0x1cd   : > { %v2052_v30 = vpop.permute.xlu1 %2051  ;;  %v2063_v19 = vpop.permute.xlu0 %2062 }
 0x1ce   : > { %v2192_v24 = vmul.bf16 %v5825_v8, %v7319_v11  ;;  %v2060_v55 = vrot.slane %v2052_v30, %v6641_v43  ;;  %v2071_v40 = vrot.slane %v2063_v19, %v6641_v43  ;;  %v7340_v28 = vsel %vm1666_vm5, %v1710_v15, %v7167_v2  ;;  %v8636_v30 = vld [vmem:[#allocation27_spill] sm:$0xff]  ;;  %v8639_v11 = vld [vmem:[#allocation8_spill] sm:$0xff] }
 0x1cf   : > { %8634 = vst [vmem:[#allocation45_spill] sm:$0xff] %v7340_v28 }
 0x1d0   : > { %v5826_v35 = vcombine.low %v2049_v12, %v2060_v55  ;;  %2237 = vrot.lane.b32.xlu1 %v2192_v24, %s6292_s24  ;;  %v8637_v12 = vld [vmem:[#allocation28_spill] sm:$0xff] }
 0x1d1   : > { %v2074_v44 = vpop.permute.xlu1 %2073 }
 0x1d2   : > { %v2193_v39 = vmul.bf16 %v5826_v35, %v7330_v51  ;;  %v2082_v3 = vrot.slane %v2074_v44, %v6641_v43 }
 0x1d4   : > { %v5827_v20 = vcombine.low %v2071_v40, %v2082_v3  ;;  %2239 = vrot.lane.b32.xlu0 %v2193_v39, %s6292_s24 }
 0x1d6   : > { %v2194_v8 = vmul.bf16 %v5827_v20, %v7340_v28 }
 0x1d8   : > { %2277 = vperm.xlu0 %6180, %v6959_v36   ;;  %2241 = vrot.lane.b32.xlu1 %v2194_v8, %s6292_s24  ;;  %v6293_v8 = vmov 5  }
 0x1dc   : > { %2310 = vperm.xlu0 %6180, %v6978_v22   ;;  %2288 = vperm.xlu1 %6181, %v6972_v0  }
 0x1e0   : > { %2332 = vperm.xlu0 %6180, %v6990_v53   ;;  %2299 = vperm.xlu1 %6181, %v6966_v31  }
 0x1e4   : > { %2354 = vperm.xlu0 %6180, %v7002_v38   ;;  %2321 = vperm.xlu1 %6181, %v6984_v18  }
 0x1e8   : > { %2376 = vperm.xlu0 %6180, %v7014_v13   ;;  %2343 = vperm.xlu1 %6181, %v6996_v27  }
 0x1ec   : > { %2398 = vperm.xlu0 %6180, %v7026_v48   ;;  %2365 = vperm.xlu1 %6181, %v7008_v16  }
 0x1f0   : > { %2420 = vperm.xlu0 %6180, %v7038_v59   ;;  %2387 = vperm.xlu1 %6181, %v7020_v49  }
 0x1f4   : > { %2442 = vperm.xlu0 %6180, %v7050_v10   ;;  %2409 = vperm.xlu1 %6181, %v7032_v1  }
 0x1f8   : > { %2464 = vperm.xlu0 %6180, %v7062_v60   ;;  %2431 = vperm.xlu1 %6181, %v7044_v29  }
 0x1fc   : > { %2486 = vperm.xlu0 %6180, %v7074_v61   ;;  %2453 = vperm.xlu1 %6181, %v7056_v41  }
 0x200   : > { %2508 = vperm.xlu0 %6180, %v7086_v33   ;;  %2475 = vperm.xlu1 %6181, %v7068_v32  }
 0x204   : > { %2530 = vperm.xlu0 %6180, %v7098_v58   ;;  %2497 = vperm.xlu1 %6181, %v7080_v21  }
 0x208   : > { %2552 = vperm.xlu0 %6180, %v7110_v6   ;;  %2519 = vperm.xlu1 %6181, %v7092_v54  }
 0x20c   : > { %2574 = vperm.xlu0 %6180, %v7123_v62   ;;  %2541 = vperm.xlu1 %6181, %v7104_v56  }
 0x20e   : > { %v2212_v2 = vpop.permute.xlu0 %2211 }
 0x20f   : > { %2260 = vst.msk [vmem:[#allocation2] sm:$0xff] %vm2259_vm8, %v2212_v2 }
 0x210   : > { %2596 = vperm.xlu0 %6180, %v7136_v26   ;;  %2563 = vperm.xlu1 %6181, %v7116_v5  }
 0x212   : > { %v2214_v52 = vpop.permute.xlu1 %2213 }
 0x213   : > { %2261 = vst.msk [vmem:[#allocation2 + $0x8] sm:$0xff] %vm2259_vm8, %v2214_v52 }
 0x214   : > { %2618 = vperm.xlu0 %6180, %v8635_v42   ;;  %2585 = vperm.xlu1 %6181, %v8636_v30  }
 0x216   : > { %v2216_v24 = vpop.permute.xlu0 %2215 }
 0x217   : > { %2262 = vst.msk [vmem:[#allocation2 + $0x10] sm:$0xff] %vm2259_vm8, %v2216_v24 }
 0x218   : > { %2607 = vperm.xlu1 %6181, %v8637_v12   ;;  %6183 = vset.pattern.permute.xlu0 %v6293_v8 }
 0x21a   : > { %v2218_v55 = vpop.permute.xlu1 %2217 }
 0x21b   : > { %2263 = vst.msk [vmem:[#allocation2 + $0x18] sm:$0xff] %vm2259_vm8, %v2218_v55 }
 0x21c   : > { %6182 = vset.pattern.permute.xlu1 %v6293_v8 }
 0x21e   : > { %v2220_v19 = vpop.permute.xlu0 %2219 }
 0x21f   : > { %2264 = vst.msk [vmem:[#allocation2 + $0x20] sm:$0xff] %vm2259_vm8, %v2220_v19 }
 0x222   : > { %v2222_v15 = vpop.permute.xlu1 %2221 }
 0x223   : > { %2265 = vst.msk [vmem:[#allocation2 + $0x28] sm:$0xff] %vm2259_vm8, %v2222_v15 }
 0x226   : > { %v2224_v35 = vpop.permute.xlu0 %2223 }
 0x227   : > { %2266 = vst.msk [vmem:[#allocation2 + $0x30] sm:$0xff] %vm2259_vm8, %v2224_v35 }
 0x22a   : > { %v2226_v44 = vpop.permute.xlu1 %2225 }
 0x22b   : > { %2267 = vst.msk [vmem:[#allocation2 + $0x38] sm:$0xff] %vm2259_vm8, %v2226_v44 }
 0x22e   : > { %v2228_v39 = vpop.permute.xlu0 %2227 }
 0x22f   : > { %2268 = vst.msk [vmem:[#allocation2 + $0x40] sm:$0xff] %vm2259_vm8, %v2228_v39 }
 0x232   : > { %v2230_v40 = vpop.permute.xlu1 %2229 }
 0x233   : > { %2269 = vst.msk [vmem:[#allocation2 + $0x48] sm:$0xff] %vm2259_vm8, %v2230_v40 }
 0x236   : > { %v2232_v3 = vpop.permute.xlu0 %2231 }
 0x237   : > { %2270 = vst.msk [vmem:[#allocation2 + $0x50] sm:$0xff] %vm2259_vm8, %v2232_v3 }
 0x23a   : > { %v2234_v20 = vpop.permute.xlu1 %2233 }
 0x23b   : > { %2271 = vst.msk [vmem:[#allocation2 + $0x58] sm:$0xff] %vm2259_vm8, %v2234_v20 }
 0x23e   : > { %v2236_v2 = vpop.permute.xlu0 %2235 }
 0x23f   : > { %2272 = vst.msk [vmem:[#allocation2 + $0x60] sm:$0xff] %vm2259_vm8, %v2236_v2  ;;  %v8638_v2 = vld [vmem:[#allocation6_spill] sm:$0xff] }
 0x242   : > { %v2238_v52 = vpop.permute.xlu1 %2237 }
 0x243   : > { %2273 = vst.msk [vmem:[#allocation2 + $0x68] sm:$0xff] %vm2259_vm8, %v2238_v52 }
 0x246   : > { %v2240_v24 = vpop.permute.xlu0 %2239 }
 0x247   : > { %2274 = vst.msk [vmem:[#allocation2 + $0x70] sm:$0xff] %vm2259_vm8, %v2240_v24 }
 0x24a   : > { %v2242_v55 = vpop.permute.xlu1 %2241 }
 0x24b   : > { %2275 = vst.msk [vmem:[#allocation2 + $0x78] sm:$0xff] %vm2259_vm8, %v2242_v55 }
 0x257   : > { %v2278_v19 = vpop.permute.xlu0 %2277 }
 0x258   : > { %v2286_v15 = vrot.slane %v2278_v19, %v6641_v43 }
 0x25b   : > { %v2311_v35 = vpop.permute.xlu0 %2310  ;;  %v2289_v44 = vpop.permute.xlu1 %2288 }
 0x25c   : > { %v2297_v39 = vrot.slane %v2289_v44, %v6641_v43  ;;  %v2319_v8 = vrot.slane %v2311_v35, %v6641_v43 }
 0x25e   : > { %v5828_v40 = vcombine.low %v2286_v15, %v2297_v39 }
 0x25f   : > { %v2333_v3 = vpop.permute.xlu0 %2332  ;;  %v2300_v20 = vpop.permute.xlu1 %2299 }
 0x260   : > { %v2724_v52 = vmul.bf16 %v5828_v40, %v8638_v2  ;;  %v2308_v28 = vrot.slane %v2300_v20, %v6641_v43  ;;  %v2341_v19 = vrot.slane %v2333_v3, %v6641_v43  ;;  %v8640_v20 = vld [vmem:[#allocation9_spill] sm:$0xff] }
 0x262   : > { %v5829_v24 = vcombine.low %v2308_v28, %v2319_v8  ;;  %2756 = vrot.lane.b32.xlu1 %v2724_v52, %s6294_s25 }
 0x263   : > { %v2355_v55 = vpop.permute.xlu0 %2354  ;;  %v2322_v51 = vpop.permute.xlu1 %2321 }
 0x264   : > { %v2725_v37 = vmul.bf16 %v5829_v24, %v8639_v11  ;;  %v2330_v15 = vrot.slane %v2322_v51, %v6641_v43  ;;  %v2363_v40 = vrot.slane %v2355_v55, %v6641_v43  ;;  %v8641_v11 = vld [vmem:[#allocation10_spill] sm:$0xff] }
 0x266   : > { %v5830_v44 = vcombine.low %v2330_v15, %v2341_v19  ;;  %2758 = vrot.lane.b32.xlu0 %v2725_v37, %s6294_s25 }
 0x267   : > { %v2377_v35 = vpop.permute.xlu0 %2376  ;;  %v2344_v39 = vpop.permute.xlu1 %2343 }
 0x268   : > { %v2726_v28 = vmul.bf16 %v5830_v44, %v8640_v20  ;;  %v2352_v8 = vrot.slane %v2344_v39, %v6641_v43  ;;  %v2385_v24 = vrot.slane %v2377_v35, %v6641_v43  ;;  %v8642_v20 = vld [vmem:[#allocation11_spill] sm:$0xff] }
 0x26a   : > { %v5831_v52 = vcombine.low %v2352_v8, %v2363_v40  ;;  %2760 = vrot.lane.b32.xlu1 %v2726_v28, %s6294_s25 }
 0x26b   : > { %v2399_v2 = vpop.permute.xlu0 %2398  ;;  %v2366_v3 = vpop.permute.xlu1 %2365 }
 0x26c   : > { %v2727_v51 = vmul.bf16 %v5831_v52, %v8641_v11  ;;  %v2374_v19 = vrot.slane %v2366_v3, %v6641_v43  ;;  %v2407_v44 = vrot.slane %v2399_v2, %v6641_v43  ;;  %v8643_v11 = vld [vmem:[#allocation13_spill] sm:$0xff] }
 0x26e   : > { %v5832_v37 = vcombine.low %v2374_v19, %v2385_v24  ;;  %2762 = vrot.lane.b32.xlu0 %v2727_v51, %s6294_s25 }
 0x26f   : > { %v2421_v15 = vpop.permute.xlu0 %2420  ;;  %v2388_v55 = vpop.permute.xlu1 %2387 }
 0x270   : > { %v2728_v39 = vmul.bf16 %v5832_v37, %v8642_v20  ;;  %v2396_v40 = vrot.slane %v2388_v55, %v6641_v43  ;;  %v2429_v52 = vrot.slane %v2421_v15, %v6641_v43  ;;  %v8644_v20 = vld [vmem:[#allocation14_spill] sm:$0xff] }
 0x272   : > { %v5833_v28 = vcombine.low %v2396_v40, %v2407_v44  ;;  %2764 = vrot.lane.b32.xlu1 %v2728_v39, %s6294_s25 }
 0x273   : > { %v2443_v8 = vpop.permute.xlu0 %2442  ;;  %v2410_v35 = vpop.permute.xlu1 %2409 }
 0x274   : > { %v2729_v3 = vmul.bf16 %v5833_v28, %v8643_v11  ;;  %v2418_v24 = vrot.slane %v2410_v35, %v6641_v43  ;;  %v2451_v37 = vrot.slane %v2443_v8, %v6641_v43  ;;  %v8645_v11 = vld [vmem:[#allocation16_spill] sm:$0xff] }
 0x276   : > { %v5834_v51 = vcombine.low %v2418_v24, %v2429_v52  ;;  %2766 = vrot.lane.b32.xlu0 %v2729_v3, %s6294_s25 }
 0x277   : > { %v2465_v19 = vpop.permute.xlu0 %2464  ;;  %v2432_v2 = vpop.permute.xlu1 %2431 }
 0x278   : > { %v2730_v55 = vmul.bf16 %v5834_v51, %v8644_v20  ;;  %v2440_v44 = vrot.slane %v2432_v2, %v6641_v43  ;;  %v2473_v28 = vrot.slane %v2465_v19, %v6641_v43  ;;  %v8646_v20 = vld [vmem:[#allocation18_spill] sm:$0xff] }
 0x27a   : > { %v5835_v39 = vcombine.low %v2440_v44, %v2451_v37  ;;  %2768 = vrot.lane.b32.xlu1 %v2730_v55, %s6294_s25 }
 0x27b   : > { %v2487_v40 = vpop.permute.xlu0 %2486  ;;  %v2454_v15 = vpop.permute.xlu1 %2453 }
 0x27c   : > { %v2731_v35 = vmul.bf16 %v5835_v39, %v8645_v11  ;;  %v2462_v52 = vrot.slane %v2454_v15, %v6641_v43  ;;  %v2495_v51 = vrot.slane %v2487_v40, %v6641_v43  ;;  %v8647_v11 = vld [vmem:[#allocation20_spill] sm:$0xff] }
 0x27e   : > { %v5836_v3 = vcombine.low %v2462_v52, %v2473_v28  ;;  %2770 = vrot.lane.b32.xlu0 %v2731_v35, %s6294_s25 }
 0x27f   : > { %v2509_v24 = vpop.permute.xlu0 %2508  ;;  %v2476_v8 = vpop.permute.xlu1 %2475 }
 0x280   : > { %v2732_v2 = vmul.bf16 %v5836_v3, %v8646_v20  ;;  %v2484_v37 = vrot.slane %v2476_v8, %v6641_v43  ;;  %v2517_v39 = vrot.slane %v2509_v24, %v6641_v43  ;;  %v8648_v20 = vld [vmem:[#allocation22_spill] sm:$0xff] }
 0x282   : > { %v5837_v55 = vcombine.low %v2484_v37, %v2495_v51  ;;  %2772 = vrot.lane.b32.xlu1 %v2732_v2, %s6294_s25 }
 0x283   : > { %v2531_v44 = vpop.permute.xlu0 %2530  ;;  %v2498_v19 = vpop.permute.xlu1 %2497 }
 0x284   : > { %v2733_v15 = vmul.bf16 %v5837_v55, %v8647_v11  ;;  %v2506_v28 = vrot.slane %v2498_v19, %v6641_v43  ;;  %v2539_v3 = vrot.slane %v2531_v44, %v6641_v43  ;;  %v8649_v11 = vld [vmem:[#allocation23_spill] sm:$0xff] }
 0x286   : > { %v5838_v35 = vcombine.low %v2506_v28, %v2517_v39  ;;  %2774 = vrot.lane.b32.xlu0 %v2733_v15, %s6294_s25 }
 0x287   : > { %v2553_v52 = vpop.permute.xlu0 %2552  ;;  %v2520_v40 = vpop.permute.xlu1 %2519 }
 0x288   : > { %v2734_v8 = vmul.bf16 %v5838_v35, %v8648_v20  ;;  %v2528_v51 = vrot.slane %v2520_v40, %v6641_v43  ;;  %v2561_v55 = vrot.slane %v2553_v52, %v6641_v43  ;;  %v8650_v20 = vld [vmem:[#allocation24_spill] sm:$0xff] }
 0x28a   : > { %v5839_v2 = vcombine.low %v2528_v51, %v2539_v3  ;;  %2776 = vrot.lane.b32.xlu1 %v2734_v8, %s6294_s25 }
 0x28b   : > { %v2575_v37 = vpop.permute.xlu0 %2574  ;;  %v2542_v24 = vpop.permute.xlu1 %2541 }
 0x28c   : > { %v2735_v19 = vmul.bf16 %v5839_v2, %v8649_v11  ;;  %v2550_v39 = vrot.slane %v2542_v24, %v6641_v43  ;;  %v2583_v35 = vrot.slane %v2575_v37, %v6641_v43  ;;  %v8651_v2 = vld [vmem:[#allocation25_spill] sm:$0xff] }
 0x28e   : > { %v5840_v15 = vcombine.low %v2550_v39, %v2561_v55  ;;  %2778 = vrot.lane.b32.xlu0 %v2735_v19, %s6294_s25 }
 0x28f   : > { %v2597_v28 = vpop.permute.xlu0 %2596  ;;  %v2564_v44 = vpop.permute.xlu1 %2563 }
 0x290   : > { %v2736_v40 = vmul.bf16 %v5840_v15, %v8650_v20  ;;  %v2572_v3 = vrot.slane %v2564_v44, %v6641_v43  ;;  %v2605_v52 = vrot.slane %v2597_v28, %v6641_v43  ;;  %v8652_v15 = vld [vmem:[#allocation26_spill] sm:$0xff] }
 0x292   : > { %v5841_v8 = vcombine.low %v2572_v3, %v2583_v35  ;;  %2780 = vrot.lane.b32.xlu1 %v2736_v40, %s6294_s25  ;;  %v8653_v40 = vld [vmem:[#allocation7_spill] sm:$0xff] }
 0x293   : > { %v2586_v51 = vpop.permute.xlu1 %2585  ;;  %v2619_v55 = vpop.permute.xlu0 %2618  ;;  %v8654_v3 = vld [vmem:[#allocation3_spill] sm:$0xff] }
 0x294   : > { %v2737_v11 = vmul.bf16 %v5841_v8, %v8651_v2  ;;  %v2594_v24 = vrot.slane %v2586_v51, %v6641_v43  ;;  %v2627_v37 = vrot.slane %v2619_v55, %v6641_v43  ;;  %v8679_v2 = vmov 8  }
 0x296   : > { %v5842_v19 = vcombine.low %v2594_v24, %v2605_v52  ;;  %2782 = vrot.lane.b32.xlu0 %v2737_v11, %s6294_s25  ;;  %v8655_v11 = vld [vmem:[#allocation4_spill] sm:$0xff] }
 0x297   : > { %v2608_v39 = vpop.permute.xlu1 %2607 }
 0x298   : > { %v2738_v20 = vmul.bf16 %v5842_v19, %v8652_v15  ;;  %v2616_v44 = vrot.slane %v2608_v39, %v6641_v43 }
 0x29a   : > { %v5843_v35 = vcombine.low %v2616_v44, %v2627_v37  ;;  %2784 = vrot.lane.b32.xlu1 %v2738_v20, %s6294_s25  ;;  %v8656_v44 = vld [vmem:[#allocation31_spill] sm:$0xff] }
 0x29c   : > { %v2739_v28 = vmul.bf16 %v5843_v35, %v8653_v40 }
 0x29e   : > { %2786 = vrot.lane.b32.xlu0 %v2739_v28, %s6294_s25  ;;  %2837 = vrot.lane.b32.xlu1 %v8654_v3, %s6295_s26  ;;  %s238_s25 = scalar_lea.vmem %s8441_s5, %s5779_s13 }
 0x2a2   : > { %2839 = vrot.lane.b32.xlu0 %v6573_v23, %s6295_s26  ;;  %2841 = vrot.lane.b32.xlu1 %v6576_v45, %s6295_s26 }
 0x2a6   : > { %2843 = vrot.lane.b32.xlu0 %v6611_v9, %s6295_s26  ;;  %2845 = vrot.lane.b32.xlu1 %v6636_v34, %s6295_s26 }
 0x2aa   : > { %2847 = vrot.lane.b32.xlu0 %v6664_v63, %s6295_s26  ;;  %2849 = vrot.lane.b32.xlu1 %v6689_v46, %s6295_s26 }
 0x2ae   : > { %2851 = vrot.lane.b32.xlu0 %v6714_v14, %s6295_s26  ;;  %2853 = vrot.lane.b32.xlu1 %v6737_v4, %s6295_s26 }
 0x2b2   : > { %2855 = vrot.lane.b32.xlu0 %v6761_v57, %s6295_s26  ;;  %2857 = vrot.lane.b32.xlu1 %v6781_v47, %s6295_s26 }
 0x2b6   : > { %2859 = vrot.lane.b32.xlu0 %v6804_v7, %s6295_s26  ;;  %2861 = vrot.lane.b32.xlu1 %v6821_v17, %s6295_s26 }
 0x2ba   : > { %2863 = vrot.lane.b32.xlu0 %v6836_v50, %s6295_s26  ;;  %2865 = vrot.lane.b32.xlu1 %v6583_v25, %s6295_s26 }
 0x2be   : > { %2867 = vrot.lane.b32.xlu0 %v8655_v11, %s6295_s26  ;;  %2903 = vperm.xlu1 %6182, %v6959_v36   ;;  %v8677_v11 = vmov 7   ;;  %s6301_s26 = smov 56  }
 0x2c2   : > { %2914 = vperm.xlu0 %6183, %v6972_v0   ;;  %2925 = vperm.xlu1 %6182, %v6966_v31  }
 0x2c6   : > { %2947 = vperm.xlu0 %6183, %v6984_v18   ;;  %2936 = vperm.xlu1 %6182, %v6978_v22  }
 0x2ca   : > { %2969 = vperm.xlu0 %6183, %v6996_v27   ;;  %2958 = vperm.xlu1 %6182, %v6990_v53  }
 0x2ce   : > { %2991 = vperm.xlu0 %6183, %v7008_v16   ;;  %2980 = vperm.xlu1 %6182, %v7002_v38  }
 0x2d2   : > { %3013 = vperm.xlu0 %6183, %v7020_v49   ;;  %3002 = vperm.xlu1 %6182, %v7014_v13  }
 0x2d4   : > { %v2757_v36 = vpop.permute.xlu1 %2756 }
 0x2d5   : > { %2805 = vst.msk [vmem:[#allocation2] sm:$0xff] %vm2804_vm9, %v2757_v36 }
 0x2d6   : > { %3035 = vperm.xlu0 %6183, %v7032_v1   ;;  %3024 = vperm.xlu1 %6182, %v7026_v48  }
 0x2d8   : > { %v2759_v31 = vpop.permute.xlu0 %2758 }
 0x2d9   : > { %2806 = vst.msk [vmem:[#allocation2 + $0x8] sm:$0xff] %vm2804_vm9, %v2759_v31 }
 0x2da   : > { %3057 = vperm.xlu0 %6183, %v7044_v29   ;;  %3046 = vperm.xlu1 %6182, %v7038_v59  }
 0x2dc   : > { %v2761_v0 = vpop.permute.xlu1 %2760 }
 0x2dd   : > { %2807 = vst.msk [vmem:[#allocation2 + $0x10] sm:$0xff] %vm2804_vm9, %v2761_v0 }
 0x2de   : > { %3079 = vperm.xlu0 %6183, %v7056_v41   ;;  %3068 = vperm.xlu1 %6182, %v7050_v10  }
 0x2e0   : > { %v2763_v22 = vpop.permute.xlu0 %2762 }
 0x2e1   : > { %2808 = vst.msk [vmem:[#allocation2 + $0x18] sm:$0xff] %vm2804_vm9, %v2763_v22 }
 0x2e2   : > { %3101 = vperm.xlu0 %6183, %v7068_v32   ;;  %3090 = vperm.xlu1 %6182, %v7062_v60  }
 0x2e4   : > { %v2765_v18 = vpop.permute.xlu1 %2764 }
 0x2e5   : > { %2809 = vst.msk [vmem:[#allocation2 + $0x20] sm:$0xff] %vm2804_vm9, %v2765_v18 }
 0x2e6   : > { %3123 = vperm.xlu0 %6183, %v7080_v21   ;;  %3112 = vperm.xlu1 %6182, %v7074_v61  }
 0x2e8   : > { %v2767_v53 = vpop.permute.xlu0 %2766 }
 0x2e9   : > { %2810 = vst.msk [vmem:[#allocation2 + $0x28] sm:$0xff] %vm2804_vm9, %v2767_v53  ;;  %v8657_v53 = vld [vmem:[#allocation32_spill] sm:$0xff] }
 0x2ea   : > { %3145 = vperm.xlu0 %6183, %v7092_v54   ;;  %3134 = vperm.xlu1 %6182, %v7086_v33  }
 0x2ec   : > { %v2769_v41 = vpop.permute.xlu1 %2768 }
 0x2ed   : > { %2811 = vst.msk [vmem:[#allocation2 + $0x30] sm:$0xff] %vm2804_vm9, %v2769_v41 }
 0x2ee   : > { %3167 = vperm.xlu0 %6183, %v7104_v56   ;;  %3156 = vperm.xlu1 %6182, %v7098_v58  }
 0x2f0   : > { %v2771_v32 = vpop.permute.xlu0 %2770 }
 0x2f1   : > { %2812 = vst.msk [vmem:[#allocation2 + $0x38] sm:$0xff] %vm2804_vm9, %v2771_v32 }
 0x2f2   : > { %3189 = vperm.xlu0 %6183, %v7116_v5   ;;  %3178 = vperm.xlu1 %6182, %v7110_v6   ;;  %v8550_v5 = vmov 6  }
 0x2f4   : > { %v2773_v61 = vpop.permute.xlu1 %2772 }
 0x2f5   : > { %2813 = vst.msk [vmem:[#allocation2 + $0x40] sm:$0xff] %vm2804_vm9, %v2773_v61 }
 0x2f6   : > { %3211 = vperm.xlu0 %6183, %v8636_v30   ;;  %3200 = vperm.xlu1 %6182, %v7123_v62  }
 0x2f8   : > { %v2775_v33 = vpop.permute.xlu0 %2774 }
 0x2f9   : > { %2814 = vst.msk [vmem:[#allocation2 + $0x48] sm:$0xff] %vm2804_vm9, %v2775_v33 }
 0x2fa   : > { %3233 = vperm.xlu0 %6183, %v8637_v12   ;;  %3222 = vperm.xlu1 %6182, %v7136_v26  }
 0x2fc   : > { %v2777_v56 = vpop.permute.xlu1 %2776 }
 0x2fd   : > { %2815 = vst.msk [vmem:[#allocation2 + $0x50] sm:$0xff] %vm2804_vm9, %v2777_v56 }
 0x2fe   : > { %3244 = vperm.xlu1 %6182, %v8635_v42   ;;  %6184 = vset.pattern.permute.xlu0 %v8550_v5 }
 0x300   : > { %v2779_v58 = vpop.permute.xlu0 %2778 }
 0x301   : > { %2816 = vst.msk [vmem:[#allocation2 + $0x58] sm:$0xff] %vm2804_vm9, %v2779_v58 }
 0x302   : > { %6185 = vset.pattern.permute.xlu1 %v8550_v5 }
 0x304   : > { %v2781_v62 = vpop.permute.xlu1 %2780 }
 0x305   : > { %2817 = vst.msk [vmem:[#allocation2 + $0x60] sm:$0xff] %vm2804_vm9, %v2781_v62  ;;  %v8658_v62 = vld [vmem:[#allocation33_spill] sm:$0xff] }
 0x308   : > { %v2783_v6 = vpop.permute.xlu0 %2782 }
 0x309   : > { %2818 = vst.msk [vmem:[#allocation2 + $0x68] sm:$0xff] %vm2804_vm9, %v2783_v6 }
 0x30c   : > { %v2785_v54 = vpop.permute.xlu1 %2784 }
 0x30d   : > { %2819 = vst.msk [vmem:[#allocation2 + $0x70] sm:$0xff] %vm2804_vm9, %v2785_v54 }
 0x310   : > { %v2787_v21 = vpop.permute.xlu0 %2786  ;;  %v2838_v60 = vpop.permute.xlu1 %2837 }
 0x311   : > { %2820 = vst.msk [vmem:[#allocation2 + $0x78] sm:$0xff] %vm2804_vm9, %v2787_v21 }
 0x312   : > { %2886 = vst.msk [vmem:[#allocation2] sm:$0xff] %vm2885_vm10, %v2838_v60 }
 0x314   : > { %v2842_v10 = vpop.permute.xlu1 %2841  ;;  %v2840_v27 = vpop.permute.xlu0 %2839 }
 0x315   : > { %2888 = vst.msk [vmem:[#allocation2 + $0x10] sm:$0xff] %vm2885_vm10, %v2842_v10  ;;  %2887 = vst.msk [vmem:[#allocation2 + $0x8] sm:$0xff] %vm2885_vm10, %v2840_v27 }
 0x318   : > { %v2846_v38 = vpop.permute.xlu1 %2845  ;;  %v2844_v16 = vpop.permute.xlu0 %2843 }
 0x319   : > { %2890 = vst.msk [vmem:[#allocation2 + $0x20] sm:$0xff] %vm2885_vm10, %v2846_v38  ;;  %2889 = vst.msk [vmem:[#allocation2 + $0x18] sm:$0xff] %vm2885_vm10, %v2844_v16  ;;  %v8659_v38 = vld [vmem:[#allocation34_spill] sm:$0xff] }
 0x31c   : > { %v2850_v13 = vpop.permute.xlu1 %2849  ;;  %v2848_v49 = vpop.permute.xlu0 %2847 }
 0x31d   : > { %2892 = vst.msk [vmem:[#allocation2 + $0x30] sm:$0xff] %vm2885_vm10, %v2850_v13  ;;  %2891 = vst.msk [vmem:[#allocation2 + $0x28] sm:$0xff] %vm2885_vm10, %v2848_v49 }
 0x320   : > { %v2854_v48 = vpop.permute.xlu1 %2853  ;;  %v2852_v1 = vpop.permute.xlu0 %2851 }
 0x321   : > { %2894 = vst.msk [vmem:[#allocation2 + $0x40] sm:$0xff] %vm2885_vm10, %v2854_v48  ;;  %2893 = vst.msk [vmem:[#allocation2 + $0x38] sm:$0xff] %vm2885_vm10, %v2852_v1 }
 0x324   : > { %v2858_v59 = vpop.permute.xlu1 %2857  ;;  %v2856_v29 = vpop.permute.xlu0 %2855 }
 0x325   : > { %2896 = vst.msk [vmem:[#allocation2 + $0x50] sm:$0xff] %vm2885_vm10, %v2858_v59  ;;  %2895 = vst.msk [vmem:[#allocation2 + $0x48] sm:$0xff] %vm2885_vm10, %v2856_v29  ;;  %v8660_v29 = vld [vmem:[#allocation35_spill] sm:$0xff] }
 0x328   : > { %v2862_v26 = vpop.permute.xlu1 %2861  ;;  %v2860_v42 = vpop.permute.xlu0 %2859 }
 0x329   : > { %2898 = vst.msk [vmem:[#allocation2 + $0x60] sm:$0xff] %vm2885_vm10, %v2862_v26  ;;  %2897 = vst.msk [vmem:[#allocation2 + $0x58] sm:$0xff] %vm2885_vm10, %v2860_v42 }
 0x32c   : > { %v2866_v30 = vpop.permute.xlu1 %2865  ;;  %v2864_v12 = vpop.permute.xlu0 %2863 }
 0x32d   : > { %2900 = vst.msk [vmem:[#allocation2 + $0x70] sm:$0xff] %vm2885_vm10, %v2866_v30  ;;  %2899 = vst.msk [vmem:[#allocation2 + $0x68] sm:$0xff] %vm2885_vm10, %v2864_v12 }
 0x330   : > { %v2868_v20 = vpop.permute.xlu0 %2867 }
 0x331   : > { %2901 = vst.msk [vmem:[#allocation2 + $0x78] sm:$0xff] %vm2885_vm10, %v2868_v20 }
 0x33d   : > { %v2904_v8 = vpop.permute.xlu1 %2903 }
 0x33e   : > { %v2912_v24 = vrot.slane %v2904_v8, %v6641_v43 }
 0x341   : > { %v2915_v51 = vpop.permute.xlu0 %2914  ;;  %v2926_v52 = vpop.permute.xlu1 %2925 }
 0x342   : > { %v2923_v55 = vrot.slane %v2915_v51, %v6641_v43  ;;  %v2934_v28 = vrot.slane %v2926_v52, %v6641_v43  ;;  %v8661_v51 = vld [vmem:[#allocation36_spill] sm:$0xff] }
 0x344   : > { %v5844_v19 = vcombine.low %v2912_v24, %v2923_v55 }
 0x345   : > { %v2948_v39 = vpop.permute.xlu0 %2947  ;;  %v2937_v37 = vpop.permute.xlu1 %2936 }
 0x346   : > { %v3350_v35 = vmul.bf16 %v5844_v19, %v8656_v44  ;;  %v2945_v36 = vrot.slane %v2937_v37, %v6641_v43  ;;  %v2956_v18 = vrot.slane %v2948_v39, %v6641_v43 }
 0x348   : > { %v5845_v31 = vcombine.low %v2934_v28, %v2945_v36  ;;  %3382 = vrot.lane.b32.xlu0 %v3350_v35, %s6297_s27  ;;  %v8662_v35 = vld [vmem:[#allocation37_spill] sm:$0xff] }
 0x349   : > { %v2970_v0 = vpop.permute.xlu0 %2969  ;;  %v2959_v22 = vpop.permute.xlu1 %2958 }
 0x34a   : > { %v3351_v41 = vmul.bf16 %v5845_v31, %v8657_v53  ;;  %v2967_v32 = vrot.slane %v2959_v22, %v6641_v43  ;;  %v2978_v58 = vrot.slane %v2970_v0, %v6641_v43 }
 0x34c   : > { %v5846_v61 = vcombine.low %v2956_v18, %v2967_v32  ;;  %3384 = vrot.lane.b32.xlu1 %v3351_v41, %s6297_s27  ;;  %v8663_v41 = vld [vmem:[#allocation38_spill] sm:$0xff] }
 0x34d   : > { %v2992_v33 = vpop.permute.xlu0 %2991  ;;  %v2981_v56 = vpop.permute.xlu1 %2980 }
 0x34e   : > { %v3352_v6 = vmul.bf16 %v5846_v61, %v8658_v62  ;;  %v2989_v54 = vrot.slane %v2981_v56, %v6641_v43  ;;  %v3000_v27 = vrot.slane %v2992_v33, %v6641_v43 }
 0x350   : > { %v5847_v21 = vcombine.low %v2978_v58, %v2989_v54  ;;  %3386 = vrot.lane.b32.xlu0 %v3352_v6, %s6297_s27  ;;  %v8664_v54 = vld [vmem:[#allocation39_spill] sm:$0xff] }
 0x351   : > { %v3014_v60 = vpop.permute.xlu0 %3013  ;;  %v3003_v10 = vpop.permute.xlu1 %3002 }
 0x352   : > { %v3353_v16 = vmul.bf16 %v5847_v21, %v8659_v38  ;;  %v3011_v13 = vrot.slane %v3003_v10, %v6641_v43  ;;  %v3022_v59 = vrot.slane %v3014_v60, %v6641_v43 }
 0x354   : > { %v5848_v49 = vcombine.low %v3000_v27, %v3011_v13  ;;  %3388 = vrot.lane.b32.xlu1 %v3353_v16, %s6297_s27 }
 0x355   : > { %v3036_v48 = vpop.permute.xlu0 %3035  ;;  %v3025_v1 = vpop.permute.xlu1 %3024 }
 0x356   : > { %v3354_v26 = vmul.bf16 %v5848_v49, %v8660_v29  ;;  %v3033_v42 = vrot.slane %v3025_v1, %v6641_v43  ;;  %v3044_v8 = vrot.slane %v3036_v48, %v6641_v43  ;;  %v8665_v49 = vld [vmem:[#allocation40_spill] sm:$0xff] }
 0x358   : > { %v5849_v30 = vcombine.low %v3022_v59, %v3033_v42  ;;  %3390 = vrot.lane.b32.xlu0 %v3354_v26, %s6297_s27 }
 0x359   : > { %v3058_v12 = vpop.permute.xlu0 %3057  ;;  %v3047_v20 = vpop.permute.xlu1 %3046 }
 0x35a   : > { %v3355_v52 = vmul.bf16 %v5849_v30, %v8661_v51  ;;  %v3055_v24 = vrot.slane %v3047_v20, %v6641_v43  ;;  %v3066_v37 = vrot.slane %v3058_v12, %v6641_v43  ;;  %v8666_v12 = vld [vmem:[#allocation41_spill] sm:$0xff] }
 0x35c   : > { %v5850_v55 = vcombine.low %v3044_v8, %v3055_v24  ;;  %3392 = vrot.lane.b32.xlu1 %v3355_v52, %s6297_s27 }
 0x35d   : > { %v3080_v19 = vpop.permute.xlu0 %3079  ;;  %v3069_v39 = vpop.permute.xlu1 %3068 }
 0x35e   : > { %v3356_v28 = vmul.bf16 %v5850_v55, %v8662_v35  ;;  %v3077_v36 = vrot.slane %v3069_v39, %v6641_v43  ;;  %v3088_v18 = vrot.slane %v3080_v19, %v6641_v43  ;;  %v8667_v39 = vld [vmem:[#allocation42_spill] sm:$0xff] }
 0x360   : > { %v5851_v31 = vcombine.low %v3066_v37, %v3077_v36  ;;  %3394 = vrot.lane.b32.xlu0 %v3356_v28, %s6297_s27 }
 0x361   : > { %v3102_v0 = vpop.permute.xlu0 %3101  ;;  %v3091_v22 = vpop.permute.xlu1 %3090 }
 0x362   : > { %v3357_v32 = vmul.bf16 %v5851_v31, %v8663_v41  ;;  %v3099_v61 = vrot.slane %v3091_v22, %v6641_v43  ;;  %v3110_v6 = vrot.slane %v3102_v0, %v6641_v43 }
 0x364   : > { %v5852_v33 = vcombine.low %v3088_v18, %v3099_v61  ;;  %3396 = vrot.lane.b32.xlu1 %v3357_v32, %s6297_s27  ;;  %v8668_v18 = vld [vmem:[#allocation43_spill] sm:$0xff] }
 0x365   : > { %v3124_v56 = vpop.permute.xlu0 %3123  ;;  %v3113_v58 = vpop.permute.xlu1 %3112 }
 0x366   : > { %v3358_v21 = vmul.bf16 %v5852_v33, %v8664_v54  ;;  %v3121_v60 = vrot.slane %v3113_v58, %v6641_v43  ;;  %v3132_v13 = vrot.slane %v3124_v56, %v6641_v43 }
 0x368   : > { %v5853_v10 = vcombine.low %v3110_v6, %v3121_v60  ;;  %3398 = vrot.lane.b32.xlu0 %v3358_v21, %s6297_s27  ;;  %v8669_v6 = vld [vmem:[#allocation44_spill] sm:$0xff] }
 0x369   : > { %v3146_v27 = vpop.permute.xlu0 %3145  ;;  %v3135_v16 = vpop.permute.xlu1 %3134 }
 0x36a   : > { %v3359_v48 = vmul.bf16 %v5853_v10, %v8665_v49  ;;  %v3143_v1 = vrot.slane %v3135_v16, %v6641_v43  ;;  %v3154_v30 = vrot.slane %v3146_v27, %v6641_v43 }
 0x36c   : > { %v5854_v59 = vcombine.low %v3132_v13, %v3143_v1  ;;  %3400 = vrot.lane.b32.xlu1 %v3359_v48, %s6297_s27  ;;  %v8670_v48 = vld [vmem:[#allocation45_spill] sm:$0xff] }
 0x36d   : > { %v3168_v26 = vpop.permute.xlu0 %3167  ;;  %v3157_v42 = vpop.permute.xlu1 %3156 }
 0x36e   : > { %v3360_v20 = vmul.bf16 %v5854_v59, %v8666_v12  ;;  %v3165_v8 = vrot.slane %v3157_v42, %v6641_v43  ;;  %v3176_v19 = vrot.slane %v3168_v26, %v6641_v43  ;;  %v8671_v42 = vld [vmem:[#allocation30_spill] sm:$0xff] }
 0x370   : > { %v5855_v52 = vcombine.low %v3154_v30, %v3165_v8  ;;  %3402 = vrot.lane.b32.xlu0 %v3360_v20, %s6297_s27  ;;  %v7605_v20 = vld [vmem:[%s8437_s1] sm:$0xf]  ;;  %v7612_v8 = vld [vmem:[%s8437_s1 + $0xc] sm:$0xf] }
 0x371   : > { %v3190_v24 = vpop.permute.xlu0 %3189  ;;  %v3179_v55 = vpop.permute.xlu1 %3178 }
 0x372   : > { %v3361_v37 = vmul.bf16 %v5855_v52, %v8667_v39  ;;  %v3187_v28 = vrot.slane %v3179_v55, %v6641_v43  ;;  %v3198_v22 = vrot.slane %v3190_v24, %v6641_v43  ;;  %v6248_v52 = vld [vmem:[%s8437_s1 + $0x4] sm:$0xf]  ;;  %v6249_v24 = vld [vmem:[%s8437_s1 + $0x14] sm:$0xf]  ;;  %v6250_v55 = vld [vmem:[%s8437_s1 + $0x8] sm:$0xf] }
 0x374   : > { %v5856_v36 = vcombine.low %v3176_v19, %v3187_v28  ;;  %3404 = vrot.lane.b32.xlu1 %v3361_v37, %s6297_s27  ;;  %v7627_v19 = vld [vmem:[%s8437_s1 + $0x1c] sm:$0xf]  ;;  %v7633_v37 = vld [vmem:[%s8437_s1 + $0x10] sm:$0xf]  ;;  %v7639_v28 = vld [vmem:[%s8437_s1 + $0x24] sm:$0xf] }
 0x375   : > { %v3212_v31 = vpop.permute.xlu0 %3211  ;;  %v3201_v0 = vpop.permute.xlu1 %3200 }
 0x376   : > { %v3362_v32 = vmul.bf16 %v5856_v36, %v8668_v18  ;;  %v3209_v61 = vrot.slane %v3201_v0, %v6641_v43  ;;  %v3220_v58 = vrot.slane %v3212_v31, %v6641_v43  ;;  %v6254_v36 = vld [vmem:[%s8437_s1 + $0x18] sm:$0xf]  ;;  %v7648_v31 = vld [vmem:[%s8437_s1 + $0x2c] sm:$0xf]  ;;  %v7654_v0 = vld [vmem:[%s8437_s1 + $0x20] sm:$0xf] }
 0x378   : > { %v5857_v33 = vcombine.low %v3198_v22, %v3209_v61  ;;  %3406 = vrot.lane.b32.xlu0 %v3362_v32, %s6297_s27  ;;  %v7660_v22 = vld [vmem:[%s8437_s1 + $0x34] sm:$0xf]  ;;  %v7666_v32 = vld [vmem:[%s8437_s1 + $0x28] sm:$0xf]  ;;  %v7672_v61 = vld [vmem:[%s8437_s1 + $0x40] sm:$0xf] }
 0x379   : > { %v3223_v56 = vpop.permute.xlu1 %3222  ;;  %v3234_v10 = vpop.permute.xlu0 %3233 }
 0x37a   : > { %v3363_v21 = vmul.bf16 %v5857_v33, %v8669_v6  ;;  %v3231_v60 = vrot.slane %v3223_v56, %v6641_v43  ;;  %v3242_v13 = vrot.slane %v3234_v10, %v6641_v43  ;;  %v8548_v33 = vmov 7   ;;  %v7680_v56 = vld [vmem:[%s8437_s1 + $0x4c] sm:$0xf] }
 0x37b   : > { %v7700_v10 = vld [vmem:[%s8437_s1 + $0x6c] sm:$0xf] }
 0x37c   : > { %v5858_v27 = vcombine.low %v3220_v58, %v3231_v60  ;;  %3408 = vrot.lane.b32.xlu1 %v3363_v21, %s6297_s27  ;;  %v7686_v58 = vld [vmem:[%s8437_s1 + $0x54] sm:$0xf]  ;;  %v7693_v21 = vld [vmem:[%s8437_s1 + $0x60] sm:$0xf]  ;;  %v8552_v60 = vmov 8  }
 0x37d   : > { %v3245_v16 = vpop.permute.xlu1 %3244 }
 0x37e   : > { %v3364_v1 = vmul.bf16 %v5858_v27, %v8670_v48  ;;  %v3253_v59 = vrot.slane %v3245_v16, %v6641_v43  ;;  %v7706_v27 = vld [vmem:[%s8437_s1 + $0x74] sm:$0xf] }
 0x380   : > { %v5859_v26 = vcombine.low %v3242_v13, %v3253_v59  ;;  %3410 = vrot.lane.b32.xlu0 %v3364_v1, %s6297_s27  ;;  %v7721_v59 = vld [vmem:[%s8437_s1 + $0x30] sm:$0xf] }
 0x382   : > { %v3365_v30 = vmul.bf16 %v5859_v26, %v8671_v42  ;;  %v8674_v42 = vmov 6  }
 0x384   : > { %3448 = vperm.xlu0 %6184, %v7605_v20   ;;  %3412 = vrot.lane.b32.xlu1 %v3365_v30, %s6297_s27  ;;  %v7728_v30 = vld [vmem:[%s8437_s1 + $0x3c] sm:$0xf] }
 0x388   : > { %3481 = vperm.xlu0 %6184, %v7612_v8   ;;  %3459 = vperm.xlu1 %6185, %v6248_v52  }
 0x38c   : > { %3503 = vperm.xlu0 %6184, %v6249_v24   ;;  %3470 = vperm.xlu1 %6185, %v6250_v55  }
 0x390   : > { %3525 = vperm.xlu0 %6184, %v7627_v19   ;;  %3492 = vperm.xlu1 %6185, %v7633_v37  }
 0x394   : > { %3547 = vperm.xlu0 %6184, %v7639_v28   ;;  %3514 = vperm.xlu1 %6185, %v6254_v36  }
 0x398   : > { %3569 = vperm.xlu0 %6184, %v7648_v31   ;;  %3536 = vperm.xlu1 %6185, %v7654_v0  }
 0x39c   : > { %3591 = vperm.xlu0 %6184, %v7660_v22   ;;  %3558 = vperm.xlu1 %6185, %v7666_v32  }
 0x3a0   : > { %3624 = vperm.xlu0 %6184, %v7672_v61   ;;  %6186 = vset.pattern.permute.xlu1 %v8548_v33 }
 0x3a1   : > { %3993 = vperm.xlu1 %6186, %v7605_v20  }
 0x3a4   : > { %3657 = vperm.xlu0 %6184, %v7680_v56  }
 0x3a5   : > { %4015 = vperm.xlu1 %6186, %v6250_v55  }
 0x3a8   : > { %3679 = vperm.xlu0 %6184, %v7686_v58  }
 0x3a9   : > { %4026 = vperm.xlu1 %6186, %v7612_v8  }
 0x3ac   : > { %3712 = vperm.xlu0 %6184, %v7693_v21  }
 0x3ad   : > { %6187 = vset.pattern.permute.xlu1 %v8552_v60 }
 0x3ae   : > { %4549 = vperm.xlu1 %6187, %v6248_v52  }
 0x3b0   : > { %3745 = vperm.xlu0 %6184, %v7700_v10  }
 0x3b2   : > { %4560 = vperm.xlu1 %6187, %v6250_v55  }
 0x3b4   : > { %3767 = vperm.xlu0 %6184, %v7706_v27  }
 0x3b6   : > { %6188 = vset.pattern.permute.xlu1 %v8548_v33 }
 0x3b7   : > { %4037 = vperm.xlu1 %6188, %v7633_v37  }
 0x3b8   : > { %6205 = vset.pattern.permute.xlu0 %v8548_v33 }
 0x3b9   : > { %4004 = vperm.xlu0 %6205, %v6248_v52  }
 0x3ba   : > { %v3383_v16 = vpop.permute.xlu0 %3382 }
 0x3bb   : > { %3431 = vst.msk [vmem:[#allocation2] sm:$0xff] %vm3430_vm11, %v3383_v16  ;;  %4059 = vperm.xlu1 %6188, %v6254_v36  }
 0x3bd   : > { %4048 = vperm.xlu0 %6205, %v6249_v24  }
 0x3be   : > { %v3385_v13 = vpop.permute.xlu1 %3384 }
 0x3bf   : > { %3432 = vst.msk [vmem:[#allocation2 + $0x8] sm:$0xff] %vm3430_vm11, %v3385_v13  ;;  %4070 = vperm.xlu1 %6188, %v7627_v19   ;;  %v7752_v13 = vld [vmem:[%s8437_s1 + $0x5c] sm:$0xf] }
 0x3c1   : > { %4092 = vperm.xlu0 %6205, %v7639_v28  }
 0x3c2   : > { %v3387_v1 = vpop.permute.xlu0 %3386 }
 0x3c3   : > { %3433 = vst.msk [vmem:[#allocation2 + $0x10] sm:$0xff] %vm3430_vm11, %v3387_v1  ;;  %6189 = vset.pattern.permute.xlu1 %v8552_v60 }
 0x3c4   : > { %4593 = vperm.xlu1 %6189, %v6249_v24   ;;  %v7736_v24 = vld [vmem:[%s8437_s1 + $0x44] sm:$0xf] }
 0x3c5   : > { %4125 = vperm.xlu0 %6205, %v7721_v59  }
 0x3c6   : > { %v3389_v26 = vpop.permute.xlu1 %3388 }
 0x3c7   : > { %3434 = vst.msk [vmem:[#allocation2 + $0x18] sm:$0xff] %vm3430_vm11, %v3389_v26  ;;  %v7760_v26 = vld [vmem:[%s8437_s1 + $0x64] sm:$0xf] }
 0x3c8   : > { %4604 = vperm.xlu1 %6189, %v6254_v36   ;;  %v7744_v36 = vld [vmem:[%s8437_s1 + $0x50] sm:$0xf] }
 0x3c9   : > { %4158 = vperm.xlu0 %6205, %v7728_v30  }
 0x3ca   : > { %v3391_v52 = vpop.permute.xlu0 %3390 }
 0x3cb   : > { %3435 = vst.msk [vmem:[#allocation2 + $0x20] sm:$0xff] %vm3430_vm11, %v3391_v52 }
 0x3cc   : > { %6190 = vset.pattern.permute.xlu1 %v8548_v33 }
 0x3cd   : > { %4180 = vperm.xlu0 %6205, %v7736_v24   ;;  %4081 = vperm.xlu1 %6190, %v7654_v0  }
 0x3ce   : > { %v3393_v55 = vpop.permute.xlu1 %3392 }
 0x3cf   : > { %3436 = vst.msk [vmem:[#allocation2 + $0x28] sm:$0xff] %vm3430_vm11, %v3393_v55  ;;  %v7769_v55 = vld [vmem:[%s8437_s1 + $0x70] sm:$0xf] }
 0x3d1   : > { %4213 = vperm.xlu0 %6205, %v7744_v36   ;;  %4103 = vperm.xlu1 %6190, %v7666_v32  }
 0x3d2   : > { %v3395_v16 = vpop.permute.xlu0 %3394 }
 0x3d3   : > { %3437 = vst.msk [vmem:[#allocation2 + $0x30] sm:$0xff] %vm3430_vm11, %v3395_v16 }
 0x3d5   : > { %4246 = vperm.xlu0 %6205, %v7752_v13   ;;  %4114 = vperm.xlu1 %6190, %v7648_v31  }
 0x3d6   : > { %v3397_v1 = vpop.permute.xlu1 %3396 }
 0x3d7   : > { %3438 = vst.msk [vmem:[#allocation2 + $0x38] sm:$0xff] %vm3430_vm11, %v3397_v1  ;;  %v7777_v1 = vld [vmem:[%s8437_s1 + $0x7c] sm:$0xf] }
 0x3d9   : > { %4268 = vperm.xlu0 %6205, %v7760_v26   ;;  %6191 = vset.pattern.permute.xlu1 %v8552_v60 }
 0x3da   : > { %v3399_v52 = vpop.permute.xlu0 %3398  ;;  %4637 = vperm.xlu1 %6191, %v7639_v28  }
 0x3db   : > { %3439 = vst.msk [vmem:[#allocation2 + $0x40] sm:$0xff] %vm3430_vm11, %v3399_v52  ;;  %v6273_v52 = vld [vmem:[%s8437_s1 + $0x38] sm:$0xf] }
 0x3dd   : > { %4301 = vperm.xlu0 %6205, %v7769_v55  }
 0x3de   : > { %4648 = vperm.xlu1 %6191, %v7666_v32   ;;  %v3401_v16 = vpop.permute.xlu1 %3400 }
 0x3df   : > { %3440 = vst.msk [vmem:[#allocation2 + $0x48] sm:$0xff] %vm3430_vm11, %v3401_v16 }
 0x3e1   : > { %4334 = vperm.xlu0 %6205, %v7777_v1  }
 0x3e2   : > { %v3403_v28 = vpop.permute.xlu0 %3402  ;;  %6192 = vset.pattern.permute.xlu1 %v8550_v5 }
 0x3e3   : > { %3441 = vst.msk [vmem:[#allocation2 + $0x50] sm:$0xff] %vm3430_vm11, %v3403_v28  ;;  %3580 = vperm.xlu1 %6192, %v7721_v59  }
 0x3e5   : > { %6207 = vset.pattern.permute.xlu0 %v8552_v60 }
 0x3e6   : > { %4538 = vperm.xlu0 %6207, %v7605_v20   ;;  %v3405_v32 = vpop.permute.xlu1 %3404 }
 0x3e7   : > { %3442 = vst.msk [vmem:[#allocation2 + $0x58] sm:$0xff] %vm3430_vm11, %v3405_v32  ;;  %3602 = vperm.xlu1 %6192, %v6273_v52  }
 0x3ea   : > { %v3407_v16 = vpop.permute.xlu0 %3406  ;;  %4571 = vperm.xlu0 %6207, %v7612_v8  }
 0x3eb   : > { %3443 = vst.msk [vmem:[#allocation2 + $0x60] sm:$0xff] %vm3430_vm11, %v3407_v16  ;;  %3613 = vperm.xlu1 %6192, %v7728_v30  }
 0x3ee   : > { %4582 = vperm.xlu0 %6207, %v7633_v37   ;;  %v3409_v28 = vpop.permute.xlu1 %3408 }
 0x3ef   : > { %3444 = vst.msk [vmem:[#allocation2 + $0x68] sm:$0xff] %vm3430_vm11, %v3409_v28  ;;  %6193 = vset.pattern.permute.xlu1 %v8548_v33 }
 0x3f0   : > { %4136 = vperm.xlu1 %6193, %v7660_v22  }
 0x3f2   : > { %4615 = vperm.xlu0 %6207, %v7627_v19   ;;  %v3411_v20 = vpop.permute.xlu0 %3410 }
 0x3f3   : > { %3445 = vst.msk [vmem:[#allocation2 + $0x70] sm:$0xff] %vm3430_vm11, %v3411_v20 }
 0x3f4   : > { %4147 = vperm.xlu1 %6193, %v6273_v52  }
 0x3f6   : > { %4626 = vperm.xlu0 %6207, %v7654_v0   ;;  %v3413_v8 = vpop.permute.xlu1 %3412 }
 0x3f7   : > { %3446 = vst.msk [vmem:[#allocation2 + $0x78] sm:$0xff] %vm3430_vm11, %v3413_v8 }
 0x3f8   : > { %6194 = vset.pattern.permute.xlu1 %v8552_v60 }
 0x3f9   : > { %4670 = vperm.xlu1 %6194, %v7721_v59  }
 0x3fa   : > { %4659 = vperm.xlu0 %6207, %v7648_v31   ;;  %v6274_v31 = vld [vmem:[%s8437_s1 + $0x48] sm:$0xf] }
 0x3fd   : > { %4692 = vperm.xlu1 %6194, %v6273_v52  }
 0x3fe   : > { %4681 = vperm.xlu0 %6207, %v7660_v22  }
 0x401   : > { %4703 = vperm.xlu1 %6194, %v7728_v30  }
 0x402   : > { %4714 = vperm.xlu0 %6207, %v7672_v61  }
 0x403   : > { %v3449_v19 = vpop.permute.xlu0 %3448 }
 0x404   : > { %v3457_v52 = vrot.slane %v3449_v19, %v6641_v43 }
 0x405   : > { %6195 = vset.pattern.permute.xlu1 %v8550_v5  ;;  %v8672_v5 = vld [vmem:[#allocation8_spill] sm:$0xff] }
 0x406   : > { %4747 = vperm.xlu0 %6207, %v7680_v56   ;;  %3635 = vperm.xlu1 %6195, %v7736_v24  }
 0x407   : > { %v3460_v37 = vpop.permute.xlu1 %3459  ;;  %v7809_v0 = vpop.permute.xlu0 %3481 }
 0x408   : > { %v3468_v16 = vrot.slane %v3460_v37, %v6641_v43 }
 0x40a   : > { %4769 = vperm.xlu0 %6207, %v7686_v58   ;;  %3646 = vperm.xlu1 %6195, %v6274_v31   ;;  %v5860_v8 = vcombine.low %v3457_v52, %v3468_v16 }
 0x40b   : > { %v7815_v22 = vpop.permute.xlu1 %3470  ;;  %v7817_v59 = vpop.permute.xlu0 %3503 }
 0x40c   : > { %v3895_v19 = vmul.bf16 %v5860_v8, %v8672_v5 }
 0x40e   : > { %4802 = vperm.xlu0 %6207, %v7693_v21   ;;  %6196 = vset.pattern.permute.xlu1 %v8548_v33 }
 0x40f   : > { %4169 = vperm.xlu1 %6196, %v7672_v61   ;;  %v7822_v30 = vpop.permute.xlu1 %3492  ;;  %v7824_v32 = vpop.permute.xlu0 %3525 }
 0x412   : > { %4835 = vperm.xlu0 %6207, %v7700_v10  }
 0x413   : > { %4191 = vperm.xlu1 %6196, %v6274_v31   ;;  %v7829_v28 = vpop.permute.xlu1 %3514  ;;  %v7831_v20 = vpop.permute.xlu0 %3547 }
 0x416   : > { %4857 = vperm.xlu0 %6207, %v7706_v27  }
 0x417   : > { %4202 = vperm.xlu1 %6196, %v7680_v56   ;;  %v7835_v61 = vpop.permute.xlu1 %3536  ;;  %v7837_v33 = vpop.permute.xlu0 %3569 }
 0x41a   : > { %3927 = vrot.lane.b32.xlu0 %v3895_v19, %s6300_s23 }
 0x41b   : > { %6197 = vset.pattern.permute.xlu1 %v8552_v60  ;;  %v7842_v37 = vpop.permute.xlu1 %3558  ;;  %v7844_v44 = vpop.permute.xlu0 %3591 }
 0x41c   : > { %4725 = vperm.xlu1 %6197, %v7736_v24   ;;  %v6275_v24 = vld [vmem:[%s8437_s1 + $0x58] sm:$0xf] }
 0x41f   : > { %v7847_v52 = vpop.permute.xlu0 %3624 }
 0x420   : > { %4736 = vperm.xlu1 %6197, %v6274_v31   ;;  %v3994_v56 = vpop.permute.xlu1 %3993 }
 0x421   : > { %v4002_v50 = vrot.slane %v3994_v56, %v6641_v43 }
 0x423   : > { %v7849_v16 = vpop.permute.xlu0 %3657 }
 0x424   : > { %8673 = vst [vmem:[#allocation29_spill] sm:$0xff] %v7849_v16  ;;  %6198 = vset.pattern.permute.xlu1 %v8674_v42  ;;  %v7852_v5 = vpop.permute.xlu1 %4015 }
 0x425   : > { %3668 = vperm.xlu1 %6198, %v7744_v36  }
 0x427   : > { %v7855_v8 = vpop.permute.xlu0 %3679 }
 0x428   : > { %v7857_v19 = vpop.permute.xlu1 %4026 }
 0x429   : > { %3690 = vperm.xlu1 %6198, %v6275_v24  }
 0x42b   : > { %v7862_v60 = vpop.permute.xlu0 %3712 }
 0x42c   : > { %8675 = vst [vmem:[#allocation27_spill] sm:$0xff] %v7862_v60 }
 0x42d   : > { %3701 = vperm.xlu1 %6198, %v7752_v13   ;;  %v4550_v31 = vpop.permute.xlu1 %4549 }
 0x42f   : > { %v7865_v3 = vpop.permute.xlu0 %3745 }
 0x430   : > { %8676 = vst [vmem:[#allocation28_spill] sm:$0xff] %v7865_v3 }
 0x431   : > { %6199 = vset.pattern.permute.xlu1 %v8677_v11  ;;  %v7868_v40 = vpop.permute.xlu1 %4560 }
 0x432   : > { %4224 = vperm.xlu1 %6199, %v7686_v58  }
 0x433   : > { %v7871_v48 = vpop.permute.xlu0 %3767 }
 0x434   : > { %8678 = vst [vmem:[#allocation32_spill] sm:$0xff] %v7871_v48 }
 0x436   : > { %4235 = vperm.xlu1 %6199, %v6275_v24   ;;  %v7873_v6 = vpop.permute.xlu1 %4037 }
 0x438   : > { %v4005_v25 = vpop.permute.xlu0 %4004 }
 0x439   : > { %v4013_v15 = vrot.slane %v4005_v25, %v6641_v43 }
 0x43a   : > { %6200 = vset.pattern.permute.xlu1 %v8679_v2  ;;  %v7878_v18 = vpop.permute.xlu1 %4059 }
 0x43b   : > { %v5876_v3 = vcombine.low %v4002_v50, %v4013_v15  ;;  %4758 = vperm.xlu1 %6200, %v7744_v36   ;;  %v6276_v15 = vld [vmem:[%s8437_s1 + $0x68] sm:$0xf] }
 0x43c   : > { %v4049_v60 = vpop.permute.xlu0 %4048 }
 0x43d   : > { %v4440_v58 = vmul.bf16 %v5876_v3, %v6573_v23  ;;  %v4057_v35 = vrot.slane %v4049_v60, %v6641_v43 }
 0x43e   : > { %v7882_v17 = vpop.permute.xlu1 %4070 }
 0x43f   : > { %4780 = vperm.xlu1 %6200, %v6275_v24   ;;  %4472 = vrot.lane.b32.xlu0 %v4440_v58, %s6301_s26 }
 0x440   : > { %v7885_v48 = vpop.permute.xlu0 %4092 }
 0x443   : > { %4791 = vperm.xlu1 %6200, %v7752_v13   ;;  %v4594_v25 = vpop.permute.xlu1 %4593 }
 0x444   : > { %v7888_v56 = vpop.permute.xlu0 %4125 }
 0x447   : > { %6201 = vset.pattern.permute.xlu1 %v8674_v42  ;;  %v7891_v50 = vpop.permute.xlu1 %4604 }
 0x448   : > { %3723 = vperm.xlu1 %6201, %v7760_v26   ;;  %v7894_v23 = vpop.permute.xlu0 %4158 }
 0x449   : > { %8680 = vst [vmem:[#allocation33_spill] sm:$0xff] %v7894_v23 }
 0x44c   : > { %3734 = vperm.xlu1 %6201, %v6276_v15   ;;  %v7899_v3 = vpop.permute.xlu1 %4081  ;;  %v7901_v36 = vpop.permute.xlu0 %4180 }
 0x450   : > { %6202 = vset.pattern.permute.xlu1 %v8677_v11  ;;  %v7904_v13 = vpop.permute.xlu1 %4103  ;;  %v7906_v24 = vpop.permute.xlu0 %4213 }
 0x451   : > { %8681 = vst [vmem:[#allocation34_spill] sm:$0xff] %v7906_v24  ;;  %4257 = vperm.xlu1 %6202, %v7693_v21  }
 0x454   : > { %v7909_v58 = vpop.permute.xlu1 %4114  ;;  %v7911_v39 = vpop.permute.xlu0 %4246 }
 0x455   : > { %8682 = vst [vmem:[#allocation35_spill] sm:$0xff] %v7911_v39  ;;  %4279 = vperm.xlu1 %6202, %v6276_v15  }
 0x458   : > { %v7913_v12 = vpop.permute.xlu0 %4268 }
 0x459   : > { %8683 = vst [vmem:[#allocation36_spill] sm:$0xff] %v7913_v12  ;;  %4290 = vperm.xlu1 %6202, %v7700_v10   ;;  %v7916_v47 = vpop.permute.xlu1 %4637  ;;  %v3512_v12 = vrot.slane %v7817_v59, %v6641_v43  ;;  %v3501_v10 = vrot.slane %v7822_v30, %v6641_v43  ;;  %v8686_v30 = vld [vmem:[#allocation10_spill] sm:$0xff] }
 0x45c   : > { %v7918_v7 = vpop.permute.xlu0 %4301 }
 0x45d   : > { %8684 = vst [vmem:[#allocation38_spill] sm:$0xff] %v7918_v7  ;;  %6203 = vset.pattern.permute.xlu1 %v8679_v2  ;;  %v7921_v54 = vpop.permute.xlu1 %4648  ;;  %v4558_v7 = vrot.slane %v4550_v31, %v6641_v43  ;;  %v4602_v31 = vrot.slane %v4594_v25, %v6641_v43 }
 0x45e   : > { %4813 = vperm.xlu1 %6203, %v7760_v26  }
 0x460   : > { %v7924_v21 = vpop.permute.xlu0 %4334 }
 0x461   : > { %8685 = vst [vmem:[#allocation40_spill] sm:$0xff] %v7924_v21  ;;  %v5862_v21 = vcombine.low %v3501_v10, %v3512_v12 }
 0x462   : > { %4824 = vperm.xlu1 %6203, %v6276_v15   ;;  %v7926_v24 = vpop.permute.xlu1 %3580 }
 0x463   : > { %v3897_v12 = vmul.bf16 %v5862_v21, %v8686_v30  ;;  %v8687_v30 = vld [vmem:[#allocation13_spill] sm:$0xff] }
 0x465   : > { %v4539_v39 = vpop.permute.xlu0 %4538 }
 0x466   : > { %v4547_v16 = vrot.slane %v4539_v39, %v6641_v43  ;;  %6204 = vset.pattern.permute.xlu1 %v8674_v42  ;;  %v7935_v4 = vpop.permute.xlu1 %3602  ;;  %v6277_v39 = vld [vmem:[%s8437_s1 + $0x78] sm:$0xf]  ;;  %v4046_v42 = vrot.slane %v7873_v6, %v6641_v43  ;;  %v3556_v6 = vrot.slane %v7831_v20, %v6641_v43  ;;  %v4090_v20 = vrot.slane %v7899_v3, %v6641_v43 }
 0x467   : > { %3756 = vperm.xlu1 %6204, %v7769_v55  }
 0x468   : > { %v5892_v26 = vcombine.low %v4547_v16, %v4558_v7  ;;  %v5878_v16 = vcombine.low %v4046_v42, %v4057_v35 }
 0x469   : > { %v7938_v15 = vpop.permute.xlu0 %4571 }
 0x46a   : > { %v4985_v59 = vmul.bf16 %v5892_v26, %v8657_v53  ;;  %v7942_v23 = vpop.permute.xlu1 %3613  ;;  %v3545_v26 = vrot.slane %v7835_v61, %v6641_v43  ;;  %v4442_v21 = vmul.bf16 %v5878_v16, %v6611_v9 }
 0x46b   : > { %3778 = vperm.xlu1 %6204, %v6277_v39  }
 0x46c   : > { %5017 = vrot.lane.b32.xlu0 %v4985_v59, %s6302_s6  ;;  %v5864_v42 = vcombine.low %v3545_v26, %v3556_v6  ;;  %v3490_v26 = vrot.slane %v7809_v0, %v6641_v43 }
 0x46d   : > { %v4583_v7 = vpop.permute.xlu0 %4582 }
 0x46e   : > { %v4591_v60 = vrot.slane %v4583_v7, %v6641_v43  ;;  %v4101_v7 = vrot.slane %v7885_v48, %v6641_v43 }
 0x46f   : > { %3789 = vperm.xlu1 %6204, %v7777_v1   ;;  %v4137_v53 = vpop.permute.xlu1 %4136 }
 0x470   : > { %3931 = vrot.lane.b32.xlu0 %v3897_v12, %s6300_s23  ;;  %v5894_v35 = vcombine.low %v4591_v60, %v4602_v31  ;;  %v5880_v12 = vcombine.low %v4090_v20, %v4101_v7  ;;  %v4646_v60 = vrot.slane %v7916_v47, %v6641_v43  ;;  %v3589_v31 = vrot.slane %v7926_v24, %v6641_v43  ;;  %v8689_v20 = vld [vmem:[#allocation9_spill] sm:$0xff] }
 0x471   : > { %v7955_v10 = vpop.permute.xlu0 %4615  ;;  %v3479_v47 = vrot.slane %v7815_v22, %v6641_v43  ;;  %v4035_v22 = vrot.slane %v7857_v19, %v6641_v43 }
 0x472   : > { %v4987_v61 = vmul.bf16 %v5894_v35, %v8659_v38  ;;  %v4444_v3 = vmul.bf16 %v5880_v12, %v6664_v63  ;;  %v4134_v63 = vrot.slane %v7888_v56, %v6641_v43  ;;  %v4145_v35 = vrot.slane %v4137_v53, %v6641_v43 }
 0x473   : > { %6206 = vset.pattern.permute.xlu1 %v8677_v11  ;;  %v7963_v59 = vpop.permute.xlu1 %4147  ;;  %v4569_v12 = vrot.slane %v7868_v40, %v6641_v43  ;;  %v3523_v40 = vrot.slane %v7829_v28, %v6641_v43 }
 0x474   : > { %4312 = vperm.xlu1 %6206, %v7706_v27   ;;  %4476 = vrot.lane.b32.xlu0 %v4442_v21, %s6301_s26  ;;  %v3899_v27 = vmul.bf16 %v5864_v42, %v8687_v30  ;;  %v5882_v7 = vcombine.low %v4134_v63, %v4145_v35  ;;  %v4079_v63 = vrot.slane %v7882_v17, %v6641_v43  ;;  %v6212_v35 = vld [vmem:[%s8439_s3 + $0x18] sm:$0xff]   ;;  %v8690_v17 = vld [vmem:[#allocation20_spill] sm:$0xff] }
 0x475   : > { %v4627_v25 = vpop.permute.xlu0 %4626 }
 0x476   : > { %v4635_v16 = vrot.slane %v4627_v25, %v6641_v43  ;;  %v5861_v25 = vcombine.low %v3479_v47, %v3490_v26  ;;  %v6211_v26 = vld [vmem:[%s8439_s3 + $0x10] sm:$0xff]  }
 0x478   : > { %4323 = vperm.xlu1 %6206, %v6277_v39   ;;  %5021 = vrot.lane.b32.xlu0 %v4987_v61, %s6302_s6  ;;  %v4671_v9 = vpop.permute.xlu1 %4670  ;;  %v5896_v6 = vcombine.low %v4635_v16, %v4646_v60  ;;  %v3896_v61 = vmul.bf16 %v5861_v25, %v8689_v20 }
 0x479   : > { %v7973_v11 = vpop.permute.xlu0 %4659 }
 0x47a   : > { %v4989_v0 = vmul.bf16 %v5896_v6, %v8661_v51  ;;  %v8688_v51 = vld [vmem:[#allocation16_spill] sm:$0xff] }
 0x47c   : > { %6208 = vset.pattern.permute.xlu1 %v8679_v2  ;;  %3935 = vrot.lane.b32.xlu0 %v3899_v27, %s6300_s23  ;;  %v7981_v48 = vpop.permute.xlu1 %4692  ;;  %v3600_v2 = vrot.slane %v7844_v44, %v6641_v43  ;;  %v6209_v44 = vld [vmem:[%s8439_s3] sm:$0xff]   ;;  %v4580_v27 = vrot.slane %v7938_v15, %v6641_v43  ;;  %v4446_v15 = vmul.bf16 %v5882_v7, %v6714_v14 }
 0x47d   : > { %v4682_v38 = vpop.permute.xlu0 %4681  ;;  %4846 = vperm.xlu1 %6208, %v7769_v55   ;;  %6095 = vmatprep.subr.bf16.mxu0 %v6209_v44  ;;  %v3633_v14 = vrot.slane %v7847_v52, %v6641_v43 }
 0x47e   : > { %v5866_v24 = vcombine.low %v3589_v31, %v3600_v2  ;;  %v4690_v19 = vrot.slane %v4682_v38, %v6641_v43  ;;  %6096 = vmatpush3.bf16.msra.mxu0 %v6209_v44  ;;  %6137 = vmatprep.subr.bf16.mxu1 %v6209_v44  ;;  %v5893_v6 = vcombine.low %v4569_v12, %v4580_v27 }
 0x47f   : > { %6142 = vmatpush3.bf16.msra.mxu1 %v6209_v44 }
 0x480   : > { %4480 = vrot.lane.b32.xlu0 %v4444_v3, %s6301_s26  ;;  %v7994_v21 = vpop.permute.xlu1 %4703  ;;  %v3901_v53 = vmul.bf16 %v5866_v24, %v8688_v51  ;;  %v4986_v24 = vmul.bf16 %v5893_v6, %v8658_v62  ;;  %v4624_v51 = vrot.slane %v7955_v10, %v6641_v43  ;;  %v3578_v10 = vrot.slane %v7837_v33, %v6641_v43 }
 0x481   : > { %v7996_v55 = vpop.permute.xlu0 %4714  ;;  %4868 = vperm.xlu1 %6208, %v6277_v39   ;;  %v4024_v39 = vrot.slane %v7852_v5, %v6641_v43  ;;  %v6210_v5 = vld [vmem:[%s8439_s3 + $0x8] sm:$0xff]   ;;  %v3622_v6 = vrot.slane %v7942_v23, %v6641_v43  ;;  %v8694_v23 = vld [vmem:[#allocation37_spill] sm:$0xff] }
 0x482   : > { %6097 = vmatprep.subr.bf16.mxu0 %v6210_v5  ;;  %6138 = vmatprep.subr.bf16.mxu1 %v6210_v5 }
 0x483   : > { %v5877_v30 = vcombine.low %v4024_v39, %v4035_v22  ;;  %6098 = vmatpush3.bf16.msra.mxu0 %v6210_v5  ;;  %6143 = vmatpush3.bf16.msra.mxu1 %v6210_v5  ;;  %v8691_v39 = vld [vmem:[#allocation11_spill] sm:$0xff] }
 0x484   : > { %5025 = vrot.lane.b32.xlu0 %v4989_v0, %s6302_s6  ;;  %6099 = vmatprep.subr.bf16.mxu0 %v6211_v26  ;;  %v4068_v0 = vrot.slane %v7878_v18, %v6641_v43  ;;  %v6213_v18 = vld [vmem:[%s8439_s3 + $0x20] ss:$0 sps:$4 sm:$0xff]  }
 0x485   : > { %v8010_v42 = vpop.permute.xlu0 %4747  ;;  %4879 = vperm.xlu1 %6208, %v7777_v1   ;;  %v3636_v56 = vpop.permute.xlu1 %3635  ;;  %v4679_v1 = vrot.slane %v4671_v9, %v6641_v43  ;;  %v3534_v9 = vrot.slane %v7824_v32, %v6641_v43  ;;  %v4441_v31 = vmul.bf16 %v5877_v30, %v6576_v45  ;;  %6139 = vmatprep.subr.bf16.mxu1 %v6211_v26 }
 0x486   : > { %v3644_v3 = vrot.slane %v3636_v56, %v6641_v43  ;;  %v3567_v30 = vrot.slane %v7842_v37, %v6641_v43 }
 0x487   : > { %v5898_v38 = vcombine.low %v4679_v1, %v4690_v19  ;;  %6100 = vmatpush3.bf16.msra.mxu0 %v6211_v26  ;;  %v5863_v2 = vcombine.low %v3523_v40, %v3534_v9  ;;  %6144 = vmatpush3.bf16.msra.mxu1 %v6211_v26  ;;  %v5185_v19 = vsel %vm5183_vm12, %v6213_v18, 0  ;;  %v4123_v1 = vrot.slane %v7909_v58, %v6641_v43 }
 0x488   : > { %3939 = vrot.lane.b32.xlu0 %v3901_v53, %s6300_s23  ;;  %v5868_v28 = vcombine.low %v3633_v14, %v3644_v3  ;;  %6101 = vmatprep.subr.bf16.mxu0 %v6212_v35  ;;  %v4613_v53 = vrot.slane %v7891_v50, %v6641_v43  ;;  %v5865_v33 = vcombine.low %v3567_v30, %v3578_v10  ;;  %v8692_v3 = vld [vmem:[#allocation14_spill] sm:$0xff]  ;;  %v8700_v10 = vld [vmem:[#allocation39_spill] sm:$0xff] }
 0x489   : > { %v8025_v16 = vpop.permute.xlu0 %4769  ;;  %3929 = vrot.lane.b32.xlu1 %v3896_v61, %s6300_s23  ;;  %v8028_v60 = vpop.permute.xlu1 %3646  ;;  %v4991_v32 = vmul.bf16 %v5898_v38, %v8663_v41  ;;  %v4189_v41 = vrot.slane %v7901_v36, %v6641_v43  ;;  %6140 = vmatprep.subr.bf16.mxu1 %v6212_v35  ;;  %v3898_v56 = vmul.bf16 %v5863_v2, %v8691_v39 }
 0x48a   : > { %v3903_v62 = vmul.bf16 %v5868_v28, %v8690_v17  ;;  %v5879_v36 = vcombine.low %v4068_v0, %v4079_v63  ;;  %v5895_v27 = vcombine.low %v4613_v53, %v4624_v51  ;;  %v3900_v9 = vmul.bf16 %v5865_v33, %v8692_v3  ;;  %v8699_v53 = vld [vmem:[#allocation34_spill] sm:$0xff] }
 0x48b   : > { %6102 = vmatpush3.bf16.msra.mxu0 %v6212_v35  ;;  %6145 = vmatpush3.bf16.msra.mxu1 %v6212_v35  ;;  %v4668_v40 = vrot.slane %v7973_v11, %v6641_v43  ;;  %v3688_v11 = vrot.slane %v7855_v8, %v6641_v43  ;;  %v4712_v0 = vrot.slane %v7994_v21, %v6641_v43 }
 0x48c   : > { %4484 = vrot.lane.b32.xlu0 %v4446_v15, %s6301_s26  ;;  %6147 = vmatprep.subr.msk.bf16.mxu0 %vm5183_vm12, %v6213_v18  ;;  %v4443_v50 = vmul.bf16 %v5879_v36, %v6636_v34  ;;  %v4988_v37 = vmul.bf16 %v5895_v27, %v8660_v29  ;;  %v4112_v15 = vrot.slane %v7904_v13, %v6641_v43  ;;  %v8698_v36 = vld [vmem:[#allocation29_spill] sm:$0xff] }
 0x48d   : > { %v8043_v47 = vpop.permute.xlu0 %4802  ;;  %4474 = vrot.lane.b32.xlu1 %v4441_v31, %s6301_s26  ;;  %6148 = vmatprep.subr.msk.bf16.mxu1 %vm5183_vm12, %v6213_v18  ;;  %v4657_v29 = vrot.slane %v7921_v54, %v6641_v43  ;;  %v8693_v54 = vld [vmem:[#allocation33_spill] sm:$0xff]  ;;  %v3666_v51 = vrot.slane %v8698_v36, %v6641_v43 }
 0x48e   : > { %v4170_v45 = vpop.permute.xlu1 %4169  ;;  %v4167_v28 = vrot.slane %v8693_v54, %v6641_v43  ;;  %v8707_v54 = vld [vmem:[#allocation24_spill] sm:$0xff] }
 0x48f   : > { %v4178_v52 = vrot.slane %v4170_v45, %v6641_v43  ;;  %6104 = vmatpush3.bf16.msra.mxu0 %v5185_v19  ;;  %6146 = vmatpush3.bf16.msra.mxu1 %v5185_v19  ;;  %v5897_v26 = vcombine.low %v4657_v29, %v4668_v40  ;;  %v4222_v19 = vrot.slane %v8699_v53, %v6641_v43  ;;  %v8704_v29 = vld [vmem:[#allocation41_spill] sm:$0xff] }
 0x490   : > { %5029 = vrot.lane.b32.xlu0 %v4991_v32, %s6302_s6 }
 0x491   : > { %v8059_v25 = vpop.permute.xlu0 %4835  ;;  %5019 = vrot.lane.b32.xlu1 %v4986_v24, %s6302_s6  ;;  %v5884_v22 = vcombine.low %v4178_v52, %v4189_v41  ;;  %v4990_v2 = vmul.bf16 %v5897_v26, %v8694_v23  ;;  %v8695_v52 = vld [vmem:[#allocation23_spill] sm:$0xff] }
 0x492   : > { %v8063_v44 = vpop.permute.xlu1 %4191 }
 0x493   : > { %v4448_v20 = vmul.bf16 %v5884_v22, %v6761_v57  ;;  %v4723_v57 = vrot.slane %v7996_v55, %v6641_v43  ;;  %v5881_v55 = vcombine.low %v4112_v15, %v4123_v1  ;;  %v4200_v27 = vrot.slane %v8063_v44, %v6641_v43 }
 0x494   : > { %3943 = vrot.lane.b32.xlu0 %v3903_v62, %s6300_s23  ;;  %v8697_v62 = vld [vmem:[#allocation12_spill] sm:$0xff]  ;;  %v4756_v1 = vrot.slane %v8010_v42, %v6641_v43  ;;  %v4778_v44 = vrot.slane %v8025_v16, %v6641_v43  ;;  %v8705_v16 = vld [vmem:[#allocation42_spill] sm:$0xff] }
 0x495   : > { %v8074_v7 = vpop.permute.xlu0 %4857  ;;  %3933 = vrot.lane.b32.xlu1 %v3898_v56, %s6300_s23  ;;  %v4445_v13 = vmul.bf16 %v5881_v55, %v6689_v46  ;;  %v4156_v46 = vrot.slane %v7963_v59, %v6641_v43  ;;  %v4701_v59 = vrot.slane %v7981_v48, %v6641_v43  ;;  %v3655_v56 = vrot.slane %v8028_v60, %v6641_v43 }
 0x496   : > { %v8080_v61 = vpop.permute.xlu1 %4202 }
 0x497   : > { %v5883_v41 = vcombine.low %v4156_v46, %v4167_v28  ;;  %v5899_v39 = vcombine.low %v4701_v59, %v4712_v0  ;;  %v5869_v30 = vcombine.low %v3655_v56, %v3666_v51  ;;  %v4211_v60 = vrot.slane %v8080_v61, %v6641_v43  ;;  %v8710_v0 = vld [vmem:[#allocation43_spill] sm:$0xff] }
 0x498   : > { %4488 = vrot.lane.b32.xlu0 %v4448_v20, %s6301_s26 }
 0x499   : > { %v3928_v5 = vpop.permute.xlu0 %3927  ;;  %4478 = vrot.lane.b32.xlu1 %v4443_v50, %s6301_s26  ;;  %v4447_v22 = vmul.bf16 %v5883_v41, %v8697_v62  ;;  %v4992_v20 = vmul.bf16 %v5899_v39, %v8700_v10  ;;  %v8711_v62 = vld [vmem:[#allocation28_spill] sm:$0xff]  ;;  %v8712_v39 = vld [vmem:[#allocation25_spill] sm:$0xff] }
 0x49a   : > { %3976 = vst.msk [vmem:[#allocation2] sm:$0xff] %vm3975_vm13, %v3928_v5 }
 0x49b   : > { %v4726_v34 = vpop.permute.xlu1 %4725 }
 0x49c   : > { %v4734_v12 = vrot.slane %v4726_v34, %v6641_v43 }
 0x49d   : > { %5023 = vrot.lane.b32.xlu1 %v4988_v37, %s6302_s6  ;;  %v8702_v37 = vld [vmem:[#allocation22_spill] sm:$0xff] }
 0x49e   : > { %v5900_v38 = vcombine.low %v4723_v57, %v4734_v12  ;;  %v8701_v57 = vld [vmem:[#allocation17_spill] sm:$0xff]  ;;  %v3904_v34 = vmul.bf16 %v5869_v30, %v8702_v37  ;;  %v5885_v12 = vcombine.low %v4200_v27, %v4211_v60 }
 0x49f   : > { %v4737_v31 = vpop.permute.xlu1 %4736  ;;  %v8715_v60 = vld [vmem:[#allocation21_spill] sm:$0xff] }
 0x4a0   : > { %v4993_v58 = vmul.bf16 %v5900_v38, %v8665_v49  ;;  %v3611_v49 = vrot.slane %v7935_v4, %v6641_v43  ;;  %v8696_v4 = vld [vmem:[#allocation18_spill] sm:$0xff]  ;;  %v4745_v15 = vrot.slane %v4737_v31, %v6641_v43  ;;  %v8703_v38 = vld [vmem:[#allocation15_spill] sm:$0xff] }
 0x4a1   : > { %3937 = vrot.lane.b32.xlu1 %v3900_v9, %s6300_s23  ;;  %v4449_v3 = vmul.bf16 %v5885_v12, %v8703_v38  ;;  %v4811_v12 = vrot.slane %v8043_v47, %v6641_v43 }
 0x4a2   : > { %5033 = vrot.lane.b32.xlu0 %v4993_v58, %s6302_s6  ;;  %v5867_v45 = vcombine.low %v3611_v49, %v3622_v6  ;;  %v5901_v9 = vcombine.low %v4745_v15, %v4756_v1  ;;  %v8716_v1 = vld [vmem:[#allocation5_spill] sm:$0xff] }
 0x4a4   : > { %v3669_v14 = vpop.permute.xlu1 %3668  ;;  %v3902_v35 = vmul.bf16 %v5867_v45, %v8696_v4 }
 0x4a5   : > { %v3677_v32 = vrot.slane %v3669_v14, %v6641_v43  ;;  %4482 = vrot.lane.b32.xlu1 %v4445_v13, %s6301_s26  ;;  %v4994_v13 = vmul.bf16 %v5901_v9, %v8704_v29  ;;  %v8717_v9 = vld [vmem:[#allocation44_spill] sm:$0xff] }
 0x4a7   : > { %v5870_v63 = vcombine.low %v3677_v32, %v3688_v11  ;;  %v8706_v11 = vld [vmem:[#allocation35_spill] sm:$0xff] }
 0x4a8   : > { %v3691_v24 = vpop.permute.xlu1 %3690  ;;  %v4255_v49 = vrot.slane %v8706_v11, %v6641_v43 }
 0x4a9   : > { %v3905_v8 = vmul.bf16 %v5870_v63, %v8695_v52  ;;  %5027 = vrot.lane.b32.xlu1 %v4990_v2, %s6302_s6  ;;  %v3699_v40 = vrot.slane %v3691_v24, %v6641_v43  ;;  %v8708_v2 = vld [vmem:[#allocation19_spill] sm:$0xff] }
 0x4ab   : > { %3947 = vrot.lane.b32.xlu0 %v3905_v8, %s6300_s23  ;;  %v8709_v8 = vld [vmem:[#allocation27_spill] sm:$0xff] }
 0x4ac   : > { %v3702_v17 = vpop.permute.xlu1 %3701  ;;  %v3721_v4 = vrot.slane %v8709_v8, %v6641_v43 }
 0x4ad   : > { %3941 = vrot.lane.b32.xlu1 %v3902_v35, %s6300_s23  ;;  %v3710_v55 = vrot.slane %v3702_v17, %v6641_v43 }
 0x4af   : > { %v5871_v6 = vcombine.low %v3699_v40, %v3710_v55 }
 0x4b1   : > { %v4473_v18 = vpop.permute.xlu0 %4472  ;;  %4486 = vrot.lane.b32.xlu1 %v4447_v22, %s6301_s26  ;;  %v4225_v21 = vpop.permute.xlu1 %4224  ;;  %v3906_v28 = vmul.bf16 %v5871_v6, %v8707_v54  ;;  %v3754_v22 = vrot.slane %v8711_v62, %v6641_v43  ;;  %v8723_v62 = vld [vmem:[#allocation40_spill] sm:$0xff] }
 0x4b2   : > { %4521 = vst.msk [vmem:[#allocation2] sm:$0xff] %vm4520_vm14, %v4473_v18  ;;  %v4233_v48 = vrot.slane %v4225_v21, %v6641_v43  ;;  %v8713_v18 = vld [vmem:[#allocation26_spill] sm:$0xff] }
 0x4b4   : > { %v5886_v50 = vcombine.low %v4222_v19, %v4233_v48  ;;  %v8714_v19 = vld [vmem:[#allocation36_spill] sm:$0xff] }
 0x4b5   : > { %5031 = vrot.lane.b32.xlu1 %v4992_v20, %s6302_s6  ;;  %v4236_v5 = vpop.permute.xlu1 %4235  ;;  %v4277_v48 = vrot.slane %v8714_v19, %v6641_v43 }
 0x4b6   : > { %v4450_v33 = vmul.bf16 %v5886_v50, %v8701_v57  ;;  %v4244_v26 = vrot.slane %v4236_v5, %v6641_v43 }
 0x4b8   : > { %4492 = vrot.lane.b32.xlu0 %v4450_v33, %s6301_s26  ;;  %v5887_v45 = vcombine.low %v4244_v26, %v4255_v49  ;;  %v8719_v26 = vld [vmem:[#allocation32_spill] sm:$0xff] }
 0x4b9   : > { %3945 = vrot.lane.b32.xlu1 %v3904_v34, %s6300_s23 }
 0x4ba   : > { %v4759_v61 = vpop.permute.xlu1 %4758  ;;  %v4451_v63 = vmul.bf16 %v5887_v45, %v8708_v2 }
 0x4bb   : > { %v4767_v42 = vrot.slane %v4759_v61, %v6641_v43 }
 0x4bd   : > { %v5902_v58 = vcombine.low %v4767_v42, %v4778_v44  ;;  %4490 = vrot.lane.b32.xlu1 %v4449_v3, %s6301_s26  ;;  %v4844_v3 = vrot.slane %v8059_v25, %v6641_v43 }
 0x4be   : > { %v4781_v31 = vpop.permute.xlu1 %4780 }
 0x4bf   : > { %v4995_v14 = vmul.bf16 %v5902_v58, %v8705_v16  ;;  %v4789_v23 = vrot.slane %v4781_v31, %v6641_v43  ;;  %v8718_v58 = vld [vmem:[#allocation45_spill] sm:$0xff]  ;;  %v3776_v16 = vrot.slane %v8719_v26, %v6641_v43 }
 0x4c1   : > { %5035 = vrot.lane.b32.xlu1 %v4994_v13, %s6302_s6  ;;  %5037 = vrot.lane.b32.xlu0 %v4995_v14, %s6302_s6 }
 0x4c2   : > { %v4792_v32 = vpop.permute.xlu1 %4791 }
 0x4c3   : > { %v4800_v46 = vrot.slane %v4792_v32, %v6641_v43  ;;  %v8720_v32 = vld [vmem:[#allocation7_spill] sm:$0xff] }
 0x4c5   : > { %3949 = vrot.lane.b32.xlu1 %v3906_v28, %s6300_s23  ;;  %v5903_v24 = vcombine.low %v4789_v23, %v4800_v46 }
 0x4c7   : > { %v3724_v52 = vpop.permute.xlu1 %3723  ;;  %v4996_v17 = vmul.bf16 %v5903_v24, %v8710_v0  ;;  %v8721_v24 = vld [vmem:[#allocation6_spill] sm:$0xff] }
 0x4c8   : > { %v3732_v35 = vrot.slane %v3724_v52, %v6641_v43 }
 0x4c9   : > { %4494 = vrot.lane.b32.xlu1 %v4451_v63, %s6301_s26 }
 0x4ca   : > { %v5872_v41 = vcombine.low %v3721_v4, %v3732_v35  ;;  %v8722_v4 = vld [vmem:[#allocation38_spill] sm:$0xff] }
 0x4cb   : > { %v3735_v59 = vpop.permute.xlu1 %3734  ;;  %v4310_v35 = vrot.slane %v8722_v4, %v6641_v43 }
 0x4cc   : > { %v3907_v56 = vmul.bf16 %v5872_v41, %v8712_v39  ;;  %v3743_v36 = vrot.slane %v3735_v59, %v6641_v43  ;;  %v8724_v39 = vld [vmem:[#allocation4_spill] sm:$0xff] }
 0x4cd   : > { %5039 = vrot.lane.b32.xlu1 %v4996_v17, %s6302_s6 }
 0x4ce   : > { %v5873_v51 = vcombine.low %v3743_v36, %v3754_v22  ;;  %3951 = vrot.lane.b32.xlu0 %v3907_v56, %s6300_s23  ;;  %v4343_v22 = vrot.slane %v8723_v62, %v6641_v43 }
 0x4d0   : > { %v3908_v21 = vmul.bf16 %v5873_v51, %v8713_v18  ;;  %v4258_v53 = vpop.permute.xlu1 %4257 }
 0x4d1   : > { %v4266_v10 = vrot.slane %v4258_v53, %v6641_v43 }
 0x4d2   : > { %3953 = vrot.lane.b32.xlu1 %v3908_v21, %s6300_s23  ;;  %v8725_v21 = vld [vmem:[#allocation3_spill] sm:$0xff] }
 0x4d3   : > { %v5888_v20 = vcombine.low %v4266_v10, %v4277_v48  ;;  %v4866_v48 = vrot.slane %v8074_v7, %v6641_v43 }
 0x4d4   : > { %v4280_v30 = vpop.permute.xlu1 %4279 }
 0x4d5   : > { %v4452_v50 = vmul.bf16 %v5888_v20, %v8715_v60  ;;  %v4288_v5 = vrot.slane %v4280_v30, %v6641_v43 }
 0x4d7   : > { %4496 = vrot.lane.b32.xlu0 %v4452_v50, %s6301_s26  ;;  %v8726_v50 = vld [vmem:[#allocation30_spill] sm:$0xff] }
 0x4d8   : > { %v4291_v27 = vpop.permute.xlu1 %4290 }
 0x4d9   : > { %v4299_v57 = vrot.slane %v4291_v27, %v6641_v43 }
 0x4db   : > { %v5889_v33 = vcombine.low %v4288_v5, %v4299_v57 }
 0x4dd   : > { %v4453_v37 = vmul.bf16 %v5889_v33, %v8716_v1  ;;  %v4814_v34 = vpop.permute.xlu1 %4813 }
 0x4de   : > { %v4822_v15 = vrot.slane %v4814_v34, %v6641_v43  ;;  %v5018_v44 = vpop.permute.xlu0 %5017 }
 0x4df   : > { %5066 = vst.msk [vmem:[#allocation2] sm:$0xff] %vm5065_vm15, %v5018_v44  ;;  %4498 = vrot.lane.b32.xlu1 %v4453_v37, %s6301_s26 }
 0x4e0   : > { %v5904_v61 = vcombine.low %v4811_v12, %v4822_v15  ;;  %v8727_v12 = vld [vmem:[#allocation31_spill] sm:$0xff] }
 0x4e1   : > { %v4825_v38 = vpop.permute.xlu1 %4824 }
 0x4e2   : > { %v4997_v55 = vmul.bf16 %v5904_v61, %v8717_v9  ;;  %v4833_v42 = vrot.slane %v4825_v38, %v6641_v43  ;;  %v3932_v40 = vpop.permute.xlu0 %3931 }
 0x4e3   : > { %3978 = vst.msk [vmem:[#allocation2 + $0x10] sm:$0xff] %vm3975_vm13, %v3932_v40 }
 0x4e4   : > { %v5905_v47 = vcombine.low %v4833_v42, %v4844_v3  ;;  %5041 = vrot.lane.b32.xlu0 %v4997_v55, %s6302_s6 }
 0x4e6   : > { %v4998_v31 = vmul.bf16 %v5905_v47, %v8718_v58  ;;  %v4477_v29 = vpop.permute.xlu0 %4476  ;;  %v3757_v13 = vpop.permute.xlu1 %3756  ;;  %v5082_v6 = vld [vmem:[#allocation2] sm:$0xff] }
 0x4e7   : > { %4523 = vst.msk [vmem:[#allocation2 + $0x10] sm:$0xff] %vm4520_vm14, %v4477_v29  ;;  %v3765_v25 = vrot.slane %v3757_v13, %v6641_v43  ;;  %6105 = vmatprep.mubr.msk.bf16.mxu0 %vm5134_vm0, %v5082_v6 }
 0x4e8   : > { %5043 = vrot.lane.b32.xlu1 %v4998_v31, %s6302_s6 }
 0x4e9   : > { %v5874_v14 = vcombine.low %v3765_v25, %v3776_v16 }
 0x4ea   : > { %v5022_v11 = vpop.permute.xlu0 %5021  ;;  %v3779_v49 = vpop.permute.xlu1 %3778 }
 0x4eb   : > { %v3909_v54 = vmul.bf16 %v5874_v14, %v8720_v32  ;;  %5068 = vst.msk [vmem:[#allocation2 + $0x10] sm:$0xff] %vm5065_vm15, %v5022_v11  ;;  %v3787_v46 = vrot.slane %v3779_v49, %v6641_v43 }
 0x4ed   : > { %3955 = vrot.lane.b32.xlu0 %v3909_v54, %s6300_s23 }
 0x4ee   : > { %v3936_v28 = vpop.permute.xlu0 %3935  ;;  %v3790_v45 = vpop.permute.xlu1 %3789 }
 0x4ef   : > { %3980 = vst.msk [vmem:[#allocation2 + $0x20] sm:$0xff] %vm3975_vm13, %v3936_v28  ;;  %v3798_v23 = vrot.slane %v3790_v45, %v6641_v43 }
 0x4f1   : > { %v5875_v2 = vcombine.low %v3787_v46, %v3798_v23 }
 0x4f2   : > { %v4481_v63 = vpop.permute.xlu0 %4480  ;;  %v5084_v42 = vld [vmem:[#allocation2 + $0x10] sm:$0xff] }
 0x4f3   : > { %v3910_v52 = vmul.bf16 %v5875_v2, %v8721_v24  ;;  %4525 = vst.msk [vmem:[#allocation2 + $0x20] sm:$0xff] %vm4520_vm14, %v4481_v63  ;;  %v4313_v8 = vpop.permute.xlu1 %4312 }
 0x4f4   : > { %v4321_v41 = vrot.slane %v4313_v8, %v6641_v43 }
 0x4f5   : > { %3957 = vrot.lane.b32.xlu1 %v3910_v52, %s6300_s23  ;;  %s8297_s23 = scalar_lea.vmem %s8440_s4, %s5776_s14 }
 0x4f6   : > { %v5890_v0 = vcombine.low %v4310_v35, %v4321_v41  ;;  %v5026_v17 = vpop.permute.xlu0 %5025 }
 0x4f7   : > { %5070 = vst.msk [vmem:[#allocation2 + $0x20] sm:$0xff] %vm5065_vm15, %v5026_v17  ;;  %v4324_v59 = vpop.permute.xlu1 %4323 }
 0x4f8   : > { %v4454_v56 = vmul.bf16 %v5890_v0, %v8724_v39  ;;  %v4332_v36 = vrot.slane %v4324_v59, %v6641_v43 }
 0x4fa   : > { %v5891_v51 = vcombine.low %v4332_v36, %v4343_v22  ;;  %v3940_v18 = vpop.permute.xlu0 %3939  ;;  %4500 = vrot.lane.b32.xlu0 %v4454_v56, %s6301_s26 }
 0x4fb   : > { %3982 = vst.msk [vmem:[#allocation2 + $0x30] sm:$0xff] %vm3975_vm13, %v3940_v18 }
 0x4fc   : > { %v4455_v53 = vmul.bf16 %v5891_v51, %v8725_v21  ;;  %v4847_v19 = vpop.permute.xlu1 %4846 }
 0x4fd   : > { %v4855_v10 = vrot.slane %v4847_v19, %v6641_v43 }
 0x4fe   : > { %v4485_v20 = vpop.permute.xlu0 %4484  ;;  %4502 = vrot.lane.b32.xlu1 %v4455_v53, %s6301_s26  ;;  %v5086_v6 = vld [vmem:[#allocation2 + $0x20] sm:$0xff] }
 0x4ff   : > { %v5906_v30 = vcombine.low %v4855_v10, %v4866_v48  ;;  %4527 = vst.msk [vmem:[#allocation2 + $0x30] sm:$0xff] %vm4520_vm14, %v4485_v20 }
 0x500   : > { %v4869_v60 = vpop.permute.xlu1 %4868 }
 0x501   : > { %v4999_v27 = vmul.bf16 %v5906_v30, %v8726_v50  ;;  %v4877_v33 = vrot.slane %v4869_v60, %v6641_v43 }
 0x502   : > { %v5030_v5 = vpop.permute.xlu0 %5029 }
 0x503   : > { %5072 = vst.msk [vmem:[#allocation2 + $0x30] sm:$0xff] %vm5065_vm15, %v5030_v5  ;;  %5045 = vrot.lane.b32.xlu0 %v4999_v27, %s6302_s6 }
 0x504   : > { %v4880_v57 = vpop.permute.xlu1 %4879 }
 0x505   : > { %v4888_v7 = vrot.slane %v4880_v57, %v6641_v43 }
 0x506   : > { %v3944_v1 = vpop.permute.xlu0 %3943 }
 0x507   : > { %v5907_v37 = vcombine.low %v4877_v33, %v4888_v7  ;;  %3984 = vst.msk [vmem:[#allocation2 + $0x40] sm:$0xff] %vm3975_vm13, %v3944_v1 }
 0x508   : > { %v3930_v34 = vpop.permute.xlu1 %3929 }
 0x509   : > { %v5000_v15 = vmul.bf16 %v5907_v37, %v8727_v12  ;;  %3977 = vst.msk [vmem:[#allocation2 + $0x8] sm:$0xff] %vm3975_vm13, %v3930_v34 }
 0x50a   : > { %v4489_v44 = vpop.permute.xlu0 %4488  ;;  %v5088_v49 = vld [vmem:[#allocation2 + $0x30] sm:$0xff] }
 0x50b   : > { %4529 = vst.msk [vmem:[#allocation2 + $0x40] sm:$0xff] %vm4520_vm14, %v4489_v44  ;;  %5047 = vrot.lane.b32.xlu1 %v5000_v15, %s6302_s6 }
 0x50c   : > { %v4475_v61 = vpop.permute.xlu1 %4474 }
 0x50d   : > { %4522 = vst.msk [vmem:[#allocation2 + $0x8] sm:$0xff] %vm4520_vm14, %v4475_v61 }
 0x510   : > { %v5020_v38 = vpop.permute.xlu1 %5019 }
 0x511   : > { %5067 = vst.msk [vmem:[#allocation2 + $0x8] sm:$0xff] %vm5065_vm15, %v5020_v38 }
 0x514   : > { %v5034_v43 = vpop.permute.xlu0 %5033  ;;  %v3934_v3 = vpop.permute.xlu1 %3933 }
 0x515   : > { %5074 = vst.msk [vmem:[#allocation2 + $0x40] sm:$0xff] %vm5065_vm15, %v5034_v43 }
 0x516   : > { %3979 = vst.msk [vmem:[#allocation2 + $0x18] sm:$0xff] %vm3975_vm13, %v3934_v3 }
 0x518   : > { %v4479_v9 = vpop.permute.xlu1 %4478  ;;  %v5083_v55 = vld [vmem:[#allocation2 + $0x8] sm:$0xff] }
 0x519   : > { %4524 = vst.msk [vmem:[#allocation2 + $0x18] sm:$0xff] %vm4520_vm14, %v4479_v9  ;;  %6106 = vmatmul.mubr.msk.bf16.vlgmr.msra.gmra.mrb[0].mxu0 %vm5134_vm0, %v5083_v55 }
 0x51a   : > { %6109 = vmatprep.mubr.msk.bf16.mxu0 %vm5134_vm0, %v5084_v42 }
 0x51c   : > { %v5024_v40 = vpop.permute.xlu1 %5023  ;;  %v5090_v47 = vld [vmem:[#allocation2 + $0x40] sm:$0xff] }
 0x51d   : > { %5069 = vst.msk [vmem:[#allocation2 + $0x18] sm:$0xff] %vm5065_vm15, %v5024_v40  ;;  %6121 = vmatprep.mubr.msk.bf16.mxu1 %vm5134_vm0, %v5090_v47  ;;  %v3948_v58 = vpop.permute.xlu0 %3947 }
 0x51e   : > { %3986 = vst.msk [vmem:[#allocation2 + $0x50] sm:$0xff] %vm3975_vm13, %v3948_v58 }
 0x520   : > { %v3938_v31 = vpop.permute.xlu1 %3937 }
 0x521   : > { %3981 = vst.msk [vmem:[#allocation2 + $0x28] sm:$0xff] %vm3975_vm13, %v3938_v31 }
 0x524   : > { %v4483_v29 = vpop.permute.xlu1 %4482  ;;  %v5085_v13 = vld [vmem:[#allocation2 + $0x18] sm:$0xff] }
 0x525   : > { %4526 = vst.msk [vmem:[#allocation2 + $0x28] sm:$0xff] %vm4520_vm14, %v4483_v29  ;;  %6110 = vmatmul.mubr.msk.bf16.gmra.mrb[4].mxu0 %vm5134_vm0, %v5085_v13 }
 0x526   : > { %6113 = vmatprep.mubr.msk.bf16.mxu0 %vm5134_vm0, %v5086_v6 }
 0x528   : > { %v5028_v26 = vpop.permute.xlu1 %5027 }
 0x529   : > { %5071 = vst.msk [vmem:[#allocation2 + $0x28] sm:$0xff] %vm5065_vm15, %v5028_v26 }
 0x52a   : > { %v4493_v16 = vpop.permute.xlu0 %4492 }
 0x52b   : > { %4531 = vst.msk [vmem:[#allocation2 + $0x50] sm:$0xff] %vm4520_vm14, %v4493_v16 }
 0x52c   : > { %v3942_v25 = vpop.permute.xlu1 %3941 }
 0x52d   : > { %3983 = vst.msk [vmem:[#allocation2 + $0x38] sm:$0xff] %vm3975_vm13, %v3942_v25 }
 0x530   : > { %v4487_v14 = vpop.permute.xlu1 %4486  ;;  %v5087_v11 = vld [vmem:[#allocation2 + $0x28] sm:$0xff] }
 0x531   : > { %4528 = vst.msk [vmem:[#allocation2 + $0x38] sm:$0xff] %vm4520_vm14, %v4487_v14  ;;  %6114 = vmatmul.mubr.msk.bf16.gmra.mrb[8].mxu0 %vm5134_vm0, %v5087_v11 }
 0x532   : > { %6117 = vmatprep.mubr.msk.bf16.mxu0 %vm5134_vm0, %v5088_v49 }
 0x533   : > { %v5038_v32 = vpop.permute.xlu0 %5037 }
 0x534   : > { %5076 = vst.msk [vmem:[#allocation2 + $0x50] sm:$0xff] %vm5065_vm15, %v5038_v32  ;;  %v5032_v54 = vpop.permute.xlu1 %5031 }
 0x535   : > { %5073 = vst.msk [vmem:[#allocation2 + $0x38] sm:$0xff] %vm5065_vm15, %v5032_v54 }
 0x538   : > { %v3946_v28 = vpop.permute.xlu1 %3945 }
 0x539   : > { %3985 = vst.msk [vmem:[#allocation2 + $0x48] sm:$0xff] %vm3975_vm13, %v3946_v28 }
 0x53b   : > { %v5092_v4 = vld [vmem:[#allocation2 + $0x50] sm:$0xff] }
 0x53c   : > { %v4491_v45 = vpop.permute.xlu1 %4490  ;;  %v5089_v46 = vld [vmem:[#allocation2 + $0x38] sm:$0xff] }
 0x53d   : > { %4530 = vst.msk [vmem:[#allocation2 + $0x48] sm:$0xff] %vm4520_vm14, %v4491_v45  ;;  %6118 = vmatmul.mubr.msk.bf16.gmra.mrb[12].mxu0 %vm5134_vm0, %v5089_v46 }
 0x540   : > { %v3952_v23 = vpop.permute.xlu0 %3951  ;;  %v5036_v2 = vpop.permute.xlu1 %5035 }
 0x541   : > { %3988 = vst.msk [vmem:[#allocation2 + $0x60] sm:$0xff] %vm3975_vm13, %v3952_v23 }
 0x542   : > { %5075 = vst.msk [vmem:[#allocation2 + $0x48] sm:$0xff] %vm5065_vm15, %v5036_v2 }
 0x544   : > { %v3950_v63 = vpop.permute.xlu1 %3949 }
 0x545   : > { %3987 = vst.msk [vmem:[#allocation2 + $0x58] sm:$0xff] %vm3975_vm13, %v3950_v63 }
 0x548   : > { %v4495_v24 = vpop.permute.xlu1 %4494 }
 0x549   : > { %v5091_v52 = vld [vmem:[#allocation2 + $0x48] sm:$0xff]  ;;  %4532 = vst.msk [vmem:[#allocation2 + $0x58] sm:$0xff] %vm4520_vm14, %v4495_v24  ;;  %v4497_v8 = vpop.permute.xlu0 %4496 }
 0x54a   : > { %6122 = vmatmul.mubr.msk.bf16.vlgmr.msra.gmra.mrb[0].mxu1 %vm5134_vm0, %v5091_v52  ;;  %4533 = vst.msk [vmem:[#allocation2 + $0x60] sm:$0xff] %vm4520_vm14, %v4497_v8 }
 0x54b   : > { %6125 = vmatprep.mubr.msk.bf16.mxu1 %vm5134_vm0, %v5092_v4 }
 0x54c   : > { %v5040_v35 = vpop.permute.xlu1 %5039 }
 0x54d   : > { %5077 = vst.msk [vmem:[#allocation2 + $0x58] sm:$0xff] %vm5065_vm15, %v5040_v35 }
 0x550   : > { %v3954_v41 = vpop.permute.xlu1 %3953 }
 0x551   : > { %3989 = vst.msk [vmem:[#allocation2 + $0x68] sm:$0xff] %vm3975_vm13, %v3954_v41 }
 0x554   : > { %v4499_v0 = vpop.permute.xlu1 %4498  ;;  %v5093_v17 = vld [vmem:[#allocation2 + $0x58] sm:$0xff] }
 0x555   : > { %4534 = vst.msk [vmem:[#allocation2 + $0x68] sm:$0xff] %vm4520_vm14, %v4499_v0  ;;  %6126 = vmatmul.mubr.msk.bf16.gmra.mrb[4].mxu1 %vm5134_vm0, %v5093_v17 }
 0x556   : > { %v5042_v59 = vpop.permute.xlu0 %5041 }
 0x557   : > { %5078 = vst.msk [vmem:[#allocation2 + $0x60] sm:$0xff] %vm5065_vm15, %v5042_v59 }
 0x55a   : > { %v5044_v62 = vpop.permute.xlu1 %5043 }
 0x55b   : > { %5079 = vst.msk [vmem:[#allocation2 + $0x68] sm:$0xff] %vm5065_vm15, %v5044_v62 }
 0x55e   : > { %v5094_v22 = vld [vmem:[#allocation2 + $0x60] sm:$0xff] }
 0x55f   : > { %v3956_v39 = vpop.permute.xlu0 %3955  ;;  %6129 = vmatprep.mubr.msk.bf16.mxu1 %vm5134_vm0, %v5094_v22 }
 0x560   : > { %3990 = vst.msk [vmem:[#allocation2 + $0x70] sm:$0xff] %vm3975_vm13, %v3956_v39 }
 0x562   : > { %v5095_v56 = vld [vmem:[#allocation2 + $0x68] sm:$0xff] }
 0x563   : > { %6130 = vmatmul.mubr.msk.bf16.gmra.mrb[8].mxu1 %vm5134_vm0, %v5095_v56 }
 0x567   : > { %v3958_v36 = vpop.permute.xlu1 %3957 }
 0x568   : > { %3991 = vst.msk [vmem:[#allocation2 + $0x78] sm:$0xff] %vm3975_vm13, %v3958_v36 }
 0x56c   : > { %v4501_v51 = vpop.permute.xlu0 %4500 }
 0x56d   : > { %4535 = vst.msk [vmem:[#allocation2 + $0x70] sm:$0xff] %vm4520_vm14, %v4501_v51 }
 0x570   : > { %v4503_v18 = vpop.permute.xlu1 %4502 }
 0x571   : > { %4536 = vst.msk [vmem:[#allocation2 + $0x78] sm:$0xff] %vm4520_vm14, %v4503_v18 }
 0x575   : > { %v5046_v21 = vpop.permute.xlu0 %5045 }
 0x576   : > { %5080 = vst.msk [vmem:[#allocation2 + $0x70] sm:$0xff] %vm5065_vm15, %v5046_v21 }
 0x57d   : > { %v5048_v53 = vpop.permute.xlu1 %5047  ;;  %v5096_v19 = vld [vmem:[#allocation2 + $0x70] sm:$0xff] }
 0x57e   : > { %5081 = vst.msk [vmem:[#allocation2 + $0x78] sm:$0xff] %vm5065_vm15, %v5048_v53  ;;  %6133 = vmatprep.mubr.msk.bf16.mxu1 %vm5134_vm0, %v5096_v19 }
 0x585   : > { %v5097_v48 = vld [vmem:[#allocation2 + $0x78] sm:$0xff] }
 0x586   : > { %6134 = vmatmul.mubr.msk.bf16.gmra.mrb[12].mxu1 %vm5134_vm0, %v5097_v48 }
 0x5ec   : > { %v6107_v10 = vpop.f32.mrb[0].mxu0 }
 0x5ed   : > { %v5965_v20 = vpack.c.bf16 %v6107_v10, %v6107_v10  ;;  %v5221_v30 = vpop.f32.mrb[1].mxu0  ;;  %v5580_v5 = vmul.f32 %v6107_v10, %v6107_v10  ;;  %v5512_v15 = vsel %vm1101_vm3, %v6107_v10, 0.0 }
 0x5ee   : > { %v5963_v60 = vpack.c.bf16 %v5221_v30, %v5221_v30  ;;  %v5578_v50 = vmul.f32 %v5221_v30, %v5221_v30  ;;  %v6108_v27 = vpop.f32.mrb[2].mxu0  ;;  %v5509_v7 = vsel %vm1101_vm3, %v5221_v30, 0.0 }
 0x5ef   : > { %5479 = vst.msk [vmem:[%s8297_s23 + $0x8] sm:$0xf] %vm5476_vm2, %v5965_v20  ;;  %v5966_v57 = vpack.c.bf16 %v6108_v27, %v6108_v27  ;;  %v5224_v33 = vpop.f32.mrb[3].mxu0  ;;  %v5581_v61 = vmul.f32 %v6108_v27, %v6108_v27  ;;  %v5613_v9 = vsel %vm1101_vm3, %v5580_v5, 0.0  ;;  %v5514_v55 = vsel %vm1101_vm3, %v6108_v27, 0.0 }
 0x5f0   : > { %5477 = vst.msk [vmem:[%s8297_s23] sm:$0xf] %vm5476_vm2, %v5963_v60  ;;  %v5964_v1 = vpack.c.bf16 %v5224_v33, %v5224_v33  ;;  %v5510_v37 = vsel %vm1101_vm3, %v5224_v33, 0.0  ;;  %v5579_v34 = vmul.f32 %v5224_v33, %v5224_v33  ;;  %v5610_v44 = vsel %vm1101_vm3, %v5578_v50, 0.0 }
 0x5f1   : > { %5480 = vst.msk [vmem:[%s8297_s23 + $0xc] sm:$0xf] %vm5476_vm2, %v5966_v57  ;;  %v5511_v12 = vadd.f32 %v5510_v37, %v5509_v7  ;;  %v5615_v47 = vsel %vm1101_vm3, %v5581_v61, 0.0 }
 0x5f2   : > { %5478 = vst.msk [vmem:[%s8297_s23 + $0x4] sm:$0xf] %vm5476_vm2, %v5964_v1  ;;  %v5611_v38 = vsel %vm1101_vm3, %v5579_v34, 0.0 }
 0x5f3   : > { %v5513_v43 = vadd.f32 %v5512_v15, %v5511_v12  ;;  %v5612_v3 = vadd.f32 %v5611_v38, %v5610_v44 }
 0x5f5   : > { %v5614_v42 = vadd.f32 %v5613_v9, %v5612_v3  ;;  %v5515_v40 = vadd.f32 %v5514_v55, %v5513_v43 }
 0x5f7   : > { %v5616_v58 = vadd.f32 %v5615_v47, %v5614_v42 }
 0x5f8   : > { %v6111_v31 = vpop.f32.mrb[4].mxu0 }
 0x5f9   : > { %v5969_v29 = vpack.c.bf16 %v6111_v31, %v6111_v31  ;;  %v5237_v13 = vpop.f32.mrb[5].mxu0  ;;  %v5584_v45 = vmul.f32 %v6111_v31, %v6111_v31  ;;  %v5520_v63 = vsel %vm1101_vm3, %v6111_v31, 0.0 }
 0x5fa   : > { %v5967_v6 = vpack.c.bf16 %v5237_v13, %v5237_v13  ;;  %v5516_v26 = vsel %vm1101_vm3, %v5237_v13, 0.0  ;;  %v5582_v16 = vmul.f32 %v5237_v13, %v5237_v13  ;;  %v6112_v25 = vpop.f32.mrb[6].mxu0 }
 0x5fb   : > { %5483 = vst.msk [vmem:[%s8297_s23 + $0x18] sm:$0xf] %vm5476_vm2, %v5969_v29  ;;  %v5517_v14 = vadd.f32 %v5516_v26, %v5515_v40  ;;  %v5970_v11 = vpack.c.bf16 %v6112_v25, %v6112_v25  ;;  %v5240_v49 = vpop.f32.mrb[7].mxu0  ;;  %v5585_v24 = vmul.f32 %v6112_v25, %v6112_v25  ;;  %v5522_v4 = vsel %vm1101_vm3, %v6112_v25, 0.0 }
 0x5fc   : > { %5481 = vst.msk [vmem:[%s8297_s23 + $0x10] sm:$0xf] %vm5476_vm2, %v5967_v6  ;;  %v5617_v32 = vsel %vm1101_vm3, %v5582_v16, 0.0  ;;  %v5968_v54 = vpack.c.bf16 %v5240_v49, %v5240_v49  ;;  %v5518_v28 = vsel %vm1101_vm3, %v5240_v49, 0.0  ;;  %v5583_v2 = vmul.f32 %v5240_v49, %v5240_v49 }
 0x5fd   : > { %v5618_v46 = vadd.f32 %v5617_v32, %v5616_v58  ;;  %5484 = vst.msk [vmem:[%s8297_s23 + $0x1c] sm:$0xf] %vm5476_vm2, %v5970_v11  ;;  %v5519_v23 = vadd.f32 %v5518_v28, %v5517_v14  ;;  %v5621_v41 = vsel %vm1101_vm3, %v5584_v45, 0.0  ;;  %v5623_v59 = vsel %vm1101_vm3, %v5585_v24, 0.0 }
 0x5fe   : > { %5482 = vst.msk [vmem:[%s8297_s23 + $0x14] sm:$0xf] %vm5476_vm2, %v5968_v54  ;;  %v5619_v8 = vsel %vm1101_vm3, %v5583_v2, 0.0 }
 0x5ff   : > { %v5521_v52 = vadd.f32 %v5520_v63, %v5519_v23  ;;  %v5620_v35 = vadd.f32 %v5619_v8, %v5618_v46 }
 0x601   : > { %v5523_v0 = vadd.f32 %v5522_v4, %v5521_v52  ;;  %v5622_v17 = vadd.f32 %v5621_v41, %v5620_v35 }
 0x603   : > { %v5624_v22 = vadd.f32 %v5623_v59, %v5622_v17 }
 0x604   : > { %v6115_v62 = vpop.f32.mrb[8].mxu0 }
 0x605   : > { %v5973_v39 = vpack.c.bf16 %v6115_v62, %v6115_v62  ;;  %v5253_v56 = vpop.f32.mrb[9].mxu0  ;;  %v5588_v60 = vmul.f32 %v6115_v62, %v6115_v62  ;;  %v5528_v57 = vsel %vm1101_vm3, %v6115_v62, 0.0 }
 0x606   : > { %v5971_v36 = vpack.c.bf16 %v5253_v56, %v5253_v56  ;;  %v5524_v51 = vsel %vm1101_vm3, %v5253_v56, 0.0  ;;  %v5586_v18 = vmul.f32 %v5253_v56, %v5253_v56  ;;  %v6116_v21 = vpop.f32.mrb[10].mxu0 }
 0x607   : > { %5487 = vst.msk [vmem:[%s8297_s23 + $0x28] sm:$0xf] %vm5476_vm2, %v5973_v39  ;;  %v5525_v53 = vadd.f32 %v5524_v51, %v5523_v0  ;;  %v5974_v19 = vpack.c.bf16 %v6116_v21, %v6116_v21  ;;  %v5256_v48 = vpop.f32.mrb[11].mxu0  ;;  %v5589_v33 = vmul.f32 %v6116_v21, %v6116_v21  ;;  %v5530_v37 = vsel %vm1101_vm3, %v6116_v21, 0.0 }
 0x608   : > { %5485 = vst.msk [vmem:[%s8297_s23 + $0x20] sm:$0xf] %vm5476_vm2, %v5971_v36  ;;  %v5625_v10 = vsel %vm1101_vm3, %v5586_v18, 0.0  ;;  %v5972_v20 = vpack.c.bf16 %v5256_v48, %v5256_v48  ;;  %v5526_v30 = vsel %vm1101_vm3, %v5256_v48, 0.0  ;;  %v5587_v5 = vmul.f32 %v5256_v48, %v5256_v48 }
 0x609   : > { %v5626_v50 = vadd.f32 %v5625_v10, %v5624_v22  ;;  %5488 = vst.msk [vmem:[%s8297_s23 + $0x2c] sm:$0xf] %vm5476_vm2, %v5974_v19  ;;  %v5527_v27 = vadd.f32 %v5526_v30, %v5525_v53  ;;  %v5629_v12 = vsel %vm1101_vm3, %v5588_v60, 0.0  ;;  %v5631_v61 = vsel %vm1101_vm3, %v5589_v33, 0.0 }
 0x60a   : > { %5486 = vst.msk [vmem:[%s8297_s23 + $0x24] sm:$0xf] %vm5476_vm2, %v5972_v20  ;;  %v5627_v1 = vsel %vm1101_vm3, %v5587_v5, 0.0 }
 0x60b   : > { %v5529_v7 = vadd.f32 %v5528_v57, %v5527_v27  ;;  %v5628_v34 = vadd.f32 %v5627_v1, %v5626_v50 }
 0x60d   : > { %v5531_v15 = vadd.f32 %v5530_v37, %v5529_v7  ;;  %v5630_v44 = vadd.f32 %v5629_v12, %v5628_v34 }
 0x60f   : > { %v5632_v43 = vadd.f32 %v5631_v61, %v5630_v44 }
 0x610   : > { %v6119_v38 = vpop.f32.mrb[12].mxu0 }
 0x611   : > { %v5977_v3 = vpack.c.bf16 %v6119_v38, %v6119_v38  ;;  %v5269_v9 = vpop.f32.mrb[13].mxu0  ;;  %v5592_v16 = vmul.f32 %v6119_v38, %v6119_v38  ;;  %v5536_v49 = vsel %vm1101_vm3, %v6119_v38, 0.0 }
 0x612   : > { %v5975_v55 = vpack.c.bf16 %v5269_v9, %v5269_v9  ;;  %v5532_v42 = vsel %vm1101_vm3, %v5269_v9, 0.0  ;;  %v5590_v40 = vmul.f32 %v5269_v9, %v5269_v9  ;;  %v6120_v47 = vpop.f32.mrb[14].mxu0 }
 0x613   : > { %5491 = vst.msk [vmem:[%s8297_s23 + $0x38] sm:$0xf] %vm5476_vm2, %v5977_v3  ;;  %v5533_v58 = vadd.f32 %v5532_v42, %v5531_v15  ;;  %v5978_v31 = vpack.c.bf16 %v6120_v47, %v6120_v47  ;;  %v5272_v29 = vpop.f32.mrb[15].mxu0  ;;  %v5593_v32 = vmul.f32 %v6120_v47, %v6120_v47  ;;  %v5538_v45 = vsel %vm1101_vm3, %v6120_v47, 0.0 }
 0x614   : > { %5489 = vst.msk [vmem:[%s8297_s23 + $0x30] sm:$0xf] %vm5476_vm2, %v5975_v55  ;;  %v5633_v13 = vsel %vm1101_vm3, %v5590_v40, 0.0  ;;  %v5976_v6 = vpack.c.bf16 %v5272_v29, %v5272_v29  ;;  %v5534_v26 = vsel %vm1101_vm3, %v5272_v29, 0.0  ;;  %v5591_v11 = vmul.f32 %v5272_v29, %v5272_v29 }
 0x615   : > { %v5634_v25 = vadd.f32 %v5633_v13, %v5632_v43  ;;  %5492 = vst.msk [vmem:[%s8297_s23 + $0x3c] sm:$0xf] %vm5476_vm2, %v5978_v31  ;;  %v5535_v14 = vadd.f32 %v5534_v26, %v5533_v58  ;;  %v5637_v23 = vsel %vm1101_vm3, %v5592_v16, 0.0  ;;  %v5639_v24 = vsel %vm1101_vm3, %v5593_v32, 0.0 }
 0x616   : > { %5490 = vst.msk [vmem:[%s8297_s23 + $0x34] sm:$0xf] %vm5476_vm2, %v5976_v6  ;;  %v5635_v28 = vsel %vm1101_vm3, %v5591_v11, 0.0 }
 0x617   : > { %v5537_v54 = vadd.f32 %v5536_v49, %v5535_v14  ;;  %v5636_v46 = vadd.f32 %v5635_v28, %v5634_v25 }
 0x619   : > { %v5539_v2 = vadd.f32 %v5538_v45, %v5537_v54  ;;  %v5638_v63 = vadd.f32 %v5637_v23, %v5636_v46 }
 0x61b   : > { %v5640_v8 = vadd.f32 %v5639_v24, %v5638_v63 }
 0x61d   : > { %v6123_v52 = vpop.f32.mrb[0].mxu1 }
 0x61e   : > { %v5981_v4 = vpack.c.bf16 %v6123_v52, %v6123_v52  ;;  %v5285_v35 = vpop.f32.mrb[1].mxu1  ;;  %v5596_v18 = vmul.f32 %v6123_v52, %v6123_v52  ;;  %v5544_v48 = vsel %vm1101_vm3, %v6123_v52, 0.0 }
 0x61f   : > { %v5979_v41 = vpack.c.bf16 %v5285_v35, %v5285_v35  ;;  %v5540_v0 = vsel %vm1101_vm3, %v5285_v35, 0.0  ;;  %v5594_v17 = vmul.f32 %v5285_v35, %v5285_v35  ;;  %v6124_v59 = vpop.f32.mrb[2].mxu1 }
 0x620   : > { %5495 = vst.msk [vmem:[%s8297_s23 + $0x48] sm:$0xf] %vm5476_vm2, %v5981_v4  ;;  %v5541_v62 = vadd.f32 %v5540_v0, %v5539_v2  ;;  %v5982_v22 = vpack.c.bf16 %v6124_v59, %v6124_v59  ;;  %v5288_v39 = vpop.f32.mrb[3].mxu1  ;;  %v5597_v10 = vmul.f32 %v6124_v59, %v6124_v59  ;;  %v5546_v60 = vsel %vm1101_vm3, %v6124_v59, 0.0 }
 0x621   : > { %5493 = vst.msk [vmem:[%s8297_s23 + $0x40] sm:$0xf] %vm5476_vm2, %v5979_v41  ;;  %v5641_v56 = vsel %vm1101_vm3, %v5594_v17, 0.0  ;;  %v5980_v36 = vpack.c.bf16 %v5288_v39, %v5288_v39  ;;  %v5542_v51 = vsel %vm1101_vm3, %v5288_v39, 0.0  ;;  %v5595_v19 = vmul.f32 %v5288_v39, %v5288_v39 }
 0x622   : > { %v5642_v21 = vadd.f32 %v5641_v56, %v5640_v8  ;;  %5496 = vst.msk [vmem:[%s8297_s23 + $0x4c] sm:$0xf] %vm5476_vm2, %v5982_v22  ;;  %v5543_v53 = vadd.f32 %v5542_v51, %v5541_v62  ;;  %v5645_v27 = vsel %vm1101_vm3, %v5596_v18, 0.0  ;;  %v5647_v33 = vsel %vm1101_vm3, %v5597_v10, 0.0 }
 0x623   : > { %5494 = vst.msk [vmem:[%s8297_s23 + $0x44] sm:$0xf] %vm5476_vm2, %v5980_v36  ;;  %v5643_v30 = vsel %vm1101_vm3, %v5595_v19, 0.0 }
 0x624   : > { %v5545_v20 = vadd.f32 %v5544_v48, %v5543_v53  ;;  %v5644_v50 = vadd.f32 %v5643_v30, %v5642_v21 }
 0x626   : > { %v5547_v5 = vadd.f32 %v5546_v60, %v5545_v20  ;;  %v5646_v57 = vadd.f32 %v5645_v27, %v5644_v50 }
 0x628   : > { %v6127_v7 = vpop.f32.mrb[4].mxu1  ;;  %v5648_v1 = vadd.f32 %v5647_v33, %v5646_v57 }
 0x629   : > { %v5985_v37 = vpack.c.bf16 %v6127_v7, %v6127_v7  ;;  %v5301_v34 = vpop.f32.mrb[5].mxu1  ;;  %v5600_v40 = vmul.f32 %v6127_v7, %v6127_v7  ;;  %v5552_v29 = vsel %vm1101_vm3, %v6127_v7, 0.0 }
 0x62a   : > { %v5983_v12 = vpack.c.bf16 %v5301_v34, %v5301_v34  ;;  %v5548_v15 = vsel %vm1101_vm3, %v5301_v34, 0.0  ;;  %v5598_v44 = vmul.f32 %v5301_v34, %v5301_v34  ;;  %v6128_v61 = vpop.f32.mrb[6].mxu1 }
 0x62b   : > { %5499 = vst.msk [vmem:[%s8297_s23 + $0x58] sm:$0xf] %vm5476_vm2, %v5985_v37  ;;  %v5549_v38 = vadd.f32 %v5548_v15, %v5547_v5  ;;  %v5986_v43 = vpack.c.bf16 %v6128_v61, %v6128_v61  ;;  %v5304_v3 = vpop.f32.mrb[7].mxu1  ;;  %v5601_v13 = vmul.f32 %v6128_v61, %v6128_v61  ;;  %v5554_v16 = vsel %vm1101_vm3, %v6128_v61, 0.0 }
 0x62c   : > { %5497 = vst.msk [vmem:[%s8297_s23 + $0x50] sm:$0xf] %vm5476_vm2, %v5983_v12  ;;  %v5649_v9 = vsel %vm1101_vm3, %v5598_v44, 0.0  ;;  %v5984_v55 = vpack.c.bf16 %v5304_v3, %v5304_v3  ;;  %v5550_v42 = vsel %vm1101_vm3, %v5304_v3, 0.0  ;;  %v5599_v31 = vmul.f32 %v5304_v3, %v5304_v3 }
 0x62d   : > { %v5650_v47 = vadd.f32 %v5649_v9, %v5648_v1  ;;  %5500 = vst.msk [vmem:[%s8297_s23 + $0x5c] sm:$0xf] %vm5476_vm2, %v5986_v43  ;;  %v5551_v58 = vadd.f32 %v5550_v42, %v5549_v38  ;;  %v5653_v14 = vsel %vm1101_vm3, %v5600_v40, 0.0  ;;  %v5655_v32 = vsel %vm1101_vm3, %v5601_v13, 0.0 }
 0x62e   : > { %5498 = vst.msk [vmem:[%s8297_s23 + $0x54] sm:$0xf] %vm5476_vm2, %v5984_v55  ;;  %v5651_v26 = vsel %vm1101_vm3, %v5599_v31, 0.0 }
 0x62f   : > { %v5553_v6 = vadd.f32 %v5552_v29, %v5551_v58  ;;  %v5652_v25 = vadd.f32 %v5651_v26, %v5650_v47 }
 0x631   : > { %v5555_v11 = vadd.f32 %v5554_v16, %v5553_v6  ;;  %v5654_v49 = vadd.f32 %v5653_v14, %v5652_v25 }
 0x633   : > { %v5656_v54 = vadd.f32 %v5655_v32, %v5654_v49 }
 0x636   : > { %v6131_v28 = vpop.f32.mrb[8].mxu1 }
 0x637   : > { %v5989_v45 = vpack.c.bf16 %v6131_v28, %v6131_v28  ;;  %v5317_v46 = vpop.f32.mrb[9].mxu1  ;;  %v5604_v17 = vmul.f32 %v6131_v28, %v6131_v28  ;;  %v5560_v39 = vsel %vm1101_vm3, %v6131_v28, 0.0 }
 0x638   : > { %v5987_v23 = vpack.c.bf16 %v5317_v46, %v5317_v46  ;;  %v5556_v2 = vsel %vm1101_vm3, %v5317_v46, 0.0  ;;  %v5602_v63 = vmul.f32 %v5317_v46, %v5317_v46  ;;  %v6132_v24 = vpop.f32.mrb[10].mxu1 }
 0x639   : > { %5503 = vst.msk [vmem:[%s8297_s23 + $0x68] sm:$0xf] %vm5476_vm2, %v5989_v45  ;;  %v5557_v52 = vadd.f32 %v5556_v2, %v5555_v11  ;;  %v5990_v8 = vpack.c.bf16 %v6132_v24, %v6132_v24  ;;  %v5320_v4 = vpop.f32.mrb[11].mxu1  ;;  %v5605_v56 = vmul.f32 %v6132_v24, %v6132_v24  ;;  %v5562_v18 = vsel %vm1101_vm3, %v6132_v24, 0.0 }
 0x63a   : > { %5501 = vst.msk [vmem:[%s8297_s23 + $0x60] sm:$0xf] %vm5476_vm2, %v5987_v23  ;;  %v5657_v35 = vsel %vm1101_vm3, %v5602_v63, 0.0  ;;  %v5988_v41 = vpack.c.bf16 %v5320_v4, %v5320_v4  ;;  %v5558_v0 = vsel %vm1101_vm3, %v5320_v4, 0.0  ;;  %v5603_v22 = vmul.f32 %v5320_v4, %v5320_v4 }
 0x63b   : > { %v5658_v59 = vadd.f32 %v5657_v35, %v5656_v54  ;;  %5504 = vst.msk [vmem:[%s8297_s23 + $0x6c] sm:$0xf] %vm5476_vm2, %v5990_v8  ;;  %v5559_v62 = vadd.f32 %v5558_v0, %v5557_v52  ;;  %v5661_v53 = vsel %vm1101_vm3, %v5604_v17, 0.0  ;;  %v5663_v10 = vsel %vm1101_vm3, %v5605_v56, 0.0 }
 0x63c   : > { %5502 = vst.msk [vmem:[%s8297_s23 + $0x64] sm:$0xf] %vm5476_vm2, %v5988_v41  ;;  %v5659_v51 = vsel %vm1101_vm3, %v5603_v22, 0.0 }
 0x63d   : > { %v5561_v36 = vadd.f32 %v5560_v39, %v5559_v62  ;;  %v5660_v21 = vadd.f32 %v5659_v51, %v5658_v59 }
 0x63f   : > { %v5563_v19 = vadd.f32 %v5562_v18, %v5561_v36  ;;  %v5662_v48 = vadd.f32 %v5661_v53, %v5660_v21 }
 0x641   : > { %v5664_v20 = vadd.f32 %v5663_v10, %v5662_v48 }
 0x659   : > { %v6135_v30 = vpop.f32.mrb[12].mxu1 }
 0x65a   : > { %v5993_v60 = vpack.c.bf16 %v6135_v30, %v6135_v30  ;;  %v5333_v50 = vpop.f32.mrb[13].mxu1  ;;  %v5608_v44 = vmul.f32 %v6135_v30, %v6135_v30  ;;  %v5568_v3 = vsel %vm1101_vm3, %v6135_v30, 0.0 }
 0x65b   : > { %v5991_v27 = vpack.c.bf16 %v5333_v50, %v5333_v50  ;;  %v5564_v5 = vsel %vm1101_vm3, %v5333_v50, 0.0  ;;  %v5606_v57 = vmul.f32 %v5333_v50, %v5333_v50  ;;  %v6136_v33 = vpop.f32.mrb[14].mxu1 }
 0x65c   : > { %5507 = vst.msk [vmem:[%s8297_s23 + $0x78] sm:$0xf] %vm5476_vm2, %v5993_v60  ;;  %v5565_v7 = vadd.f32 %v5564_v5, %v5563_v19  ;;  %v5994_v1 = vpack.c.bf16 %v6136_v33, %v6136_v33  ;;  %v5336_v37 = vpop.f32.mrb[15].mxu1  ;;  %v5609_v9 = vmul.f32 %v6136_v33, %v6136_v33  ;;  %v5570_v40 = vsel %vm1101_vm3, %v6136_v33, 0.0 }
 0x65d   : > { %5505 = vst.msk [vmem:[%s8297_s23 + $0x70] sm:$0xf] %vm5476_vm2, %v5991_v27  ;;  %v5665_v34 = vsel %vm1101_vm3, %v5606_v57, 0.0  ;;  %v5992_v12 = vpack.c.bf16 %v5336_v37, %v5336_v37  ;;  %v5566_v15 = vsel %vm1101_vm3, %v5336_v37, 0.0  ;;  %v5607_v43 = vmul.f32 %v5336_v37, %v5336_v37 }
 0x65e   : > { %v5666_v61 = vadd.f32 %v5665_v34, %v5664_v20  ;;  %5508 = vst.msk [vmem:[%s8297_s23 + $0x7c] sm:$0xf] %vm5476_vm2, %v5994_v1  ;;  %v5567_v38 = vadd.f32 %v5566_v15, %v5565_v7  ;;  %v5669_v58 = vsel %vm1101_vm3, %v5608_v44, 0.0  ;;  %v5671_v13 = vsel %vm1101_vm3, %v5609_v9, 0.0 }
 0x65f   : > { %5506 = vst.msk [vmem:[%s8297_s23 + $0x74] sm:$0xf] %vm5476_vm2, %v5992_v12  ;;  %v5667_v42 = vsel %vm1101_vm3, %v5607_v43, 0.0  ;;  %vm5681_vm3 = vcmask 58368  }
 0x660   : > { %v5569_v55 = vadd.f32 %v5568_v3, %v5567_v38  ;;  %v5668_v47 = vadd.f32 %v5667_v42, %v5666_v61 }
 0x662   : > { %v5571_v31 = vadd.f32 %v5570_v40, %v5569_v55  ;;  %v5670_v29 = vadd.f32 %v5669_v58, %v5668_v47 }
 0x664   : > { %v5572_v6 = vrot.slane %v5571_v31, 4  ;;  %v5672_v26 = vadd.f32 %v5671_v13, %v5670_v29 }
 0x666   : > { %v5573_v16 = vadd.f32 %v5572_v6, %v5571_v31  ;;  %v5673_v25 = vrot.slane %v5672_v26, 4 }
 0x668   : > { %v5574_v14 = vrot.slane %v5573_v16, 2  ;;  %v5674_v11 = vadd.f32 %v5673_v25, %v5672_v26 }
 0x66a   : > { %v5575_v49 = vadd.f32 %v5574_v14, %v5573_v16  ;;  %v5675_v32 = vrot.slane %v5674_v11, 2 }
 0x66c   : > { %v5576_v54 = vrot.slane %v5575_v49, 1  ;;  %v5676_v28 = vadd.f32 %v5675_v32, %v5674_v11 }
 0x66e   : > { %v5677_v45 = vrot.slane %v5676_v28, 1  ;;  %v5577_v46 = vadd.f32 %v5576_v54, %v5575_v49 }
 0x670   : > { %v5678_v23 = vadd.f32 %v5677_v45, %v5676_v28 }
 0x672   : > { %v5680_v2 = vsel %vm602_vm1, %v5577_v46, %v5678_v23 }
 0x673   : > { %5682 = vst.msk [vmem:[%s238_s25] sm:$0x3] %vm5681_vm3, %v5680_v2 }
 0x674 PF: > { %s16_s18 = sadd.s32 1, %s6284_s18  }
 0x675   : > { %p13_p5 = scmp.ge.s32.totalorder %s16_s18, 4  }
 0x677   :  { %15 = sbr.rel (!%p13_p5) target bundleno = 1 (0x1), region = 78 }

// kernel: double_conv.3
= control target key start
LH: loop header
LB: loop body
LE: loop exit
PB: predicated region body
PF: predicated region fallthrough
CT: control target
= control target key end

     0   :  { %s6386_s15 = smov 0   ;;  %s8505_s0 = inlined_call_operand.vmem [shape: bf16[512,4], index: 0, kind: input, shape index: {}]   ;;  %s8506_s1 = inlined_call_operand.vmem [shape: bf16[256,9], index: 1, kind: input, shape index: {}]   ;;  %s8507_s2 = inlined_call_operand.vmem [shape: bf16[36,8], index: 2, kind: input, shape index: {}]   ;;  %s8508_s3 = inlined_call_operand.vmem [shape: bf16[512,8], index: 3, kind: output, shape index: {0}]   ;;  %s8509_s4 = inlined_call_operand.vmem [shape: f32[2,2,8], index: 4, kind: output, shape index: {1}]  }
   0x1 LB: > { %s6392_s16 = sadd.s32 4294967295, %s6342_s15   ;;  %p5855_p0 = scmp.ge.s32.totalorder %s6342_s15, 1  ;;  %s6342_s15 = sphi %s6386_s15, %s15_s15  }
   0x2   : > { %p166_p1 = scmp.lt.s32.totalorder %s6342_s15, 3 }
   0x4   : > { %p167_p2 = pnand %p5855_p0, %p166_p1 }
   0x6   : > { %170 = sbr.rel (%p167_p2) target bundleno = 1652 (0x674), region = 32 }
   0xd   : > { %v6399_v0 = vld [vmem:[%s8506_s1 + $0x8] sm:$0xf]  ;;  %v6404_v1 = vld [vmem:[%s8506_s1] sm:$0xf]  ;;  %v6344_v2 = vmov 0   ;;  %v6345_v33 = vmov 1   ;;  %v524_v44 = vlaneseq }
   0xe   : > { %6200 = vset.pattern.permute.xlu1 %v6344_v2  ;;  %6199 = vset.pattern.permute.xlu0 %v6344_v2  ;;  %v6411_v3 = vld [vmem:[%s8506_s1 + $0xc] sm:$0xf]  ;;  %v6416_v4 = vld [vmem:[%s8506_s1 + $0x4] sm:$0xf]  ;;  %v6423_v5 = vld [vmem:[%s8506_s1 + $0x14] sm:$0xf] }
   0xf   : > { %542 = vperm.xlu1 %6200, %v6399_v0   ;;  %518 = vperm.xlu0 %6199, %v6404_v1   ;;  %v6428_v6 = vld [vmem:[%s8506_s1 + $0x10] sm:$0xf]  ;;  %v6435_v7 = vld [vmem:[%s8506_s1 + $0x1c] sm:$0xf]  ;;  %v6440_v8 = vld [vmem:[%s8506_s1 + $0x18] sm:$0xf] }
  0x10   : > { %v6447_v9 = vld [vmem:[%s8506_s1 + $0x24] sm:$0xf]  ;;  %v6452_v10 = vld [vmem:[%s8506_s1 + $0x20] sm:$0xf]  ;;  %v6459_v11 = vld [vmem:[%s8506_s1 + $0x2c] sm:$0xf] }
  0x11   : > { %v6464_v12 = vld [vmem:[%s8506_s1 + $0x28] sm:$0xf]  ;;  %v6471_v13 = vld [vmem:[%s8506_s1 + $0x34] sm:$0xf]  ;;  %v6476_v14 = vld [vmem:[%s8506_s1 + $0x30] sm:$0xf] }
  0x12   : > { %v6483_v15 = vld [vmem:[%s8506_s1 + $0x3c] sm:$0xf]  ;;  %v6488_v16 = vld [vmem:[%s8506_s1 + $0x38] sm:$0xf]  ;;  %v6495_v17 = vld [vmem:[%s8506_s1 + $0x44] sm:$0xf] }
  0x13   : > { %554 = vperm.xlu1 %6200, %v6411_v3   ;;  %530 = vperm.xlu0 %6199, %v6416_v4   ;;  %v6500_v18 = vld [vmem:[%s8506_s1 + $0x40] sm:$0xf]  ;;  %v6507_v19 = vld [vmem:[%s8506_s1 + $0x4c] sm:$0xf]  ;;  %v6512_v20 = vld [vmem:[%s8506_s1 + $0x48] sm:$0xf] }
  0x14   : > { %v6519_v21 = vld [vmem:[%s8506_s1 + $0x54] sm:$0xf]  ;;  %v6524_v22 = vld [vmem:[%s8506_s1 + $0x50] sm:$0xf]  ;;  %v6531_v23 = vld [vmem:[%s8506_s1 + $0x5c] sm:$0xf] }
  0x15   : > { %v6536_v24 = vld [vmem:[%s8506_s1 + $0x58] sm:$0xf]  ;;  %v6543_v25 = vld [vmem:[%s8506_s1 + $0x64] sm:$0xf]  ;;  %v6548_v26 = vld [vmem:[%s8506_s1 + $0x60] sm:$0xf] }
  0x16   : > { %8614 = vst [vmem:[#allocation3_spill] sm:$0xff] %v6543_v25  ;;  %8615 = vst [vmem:[#allocation4_spill] sm:$0xff] %v6548_v26  ;;  %v6555_v27 = vld [vmem:[%s8506_s1 + $0x6c] sm:$0xf]  ;;  %v6560_v28 = vld [vmem:[%s8506_s1 + $0x68] sm:$0xf] }
  0x17   : > { %578 = vperm.xlu1 %6200, %v6423_v5   ;;  %566 = vperm.xlu0 %6199, %v6428_v6   ;;  %8616 = vst [vmem:[#allocation5_spill] sm:$0xff] %v6555_v27  ;;  %8617 = vst [vmem:[#allocation6_spill] sm:$0xff] %v6560_v28  ;;  %v6567_v29 = vld [vmem:[%s8506_s1 + $0x74] sm:$0xf]  ;;  %v6572_v30 = vld [vmem:[%s8506_s1 + $0x70] sm:$0xf] }
  0x18   : > { %8618 = vst [vmem:[#allocation7_spill] sm:$0xff] %v6567_v29  ;;  %8619 = vst [vmem:[#allocation8_spill] sm:$0xff] %v6572_v30  ;;  %v6579_v31 = vld [vmem:[%s8506_s1 + $0x7c] sm:$0xf]  ;;  %v6584_v32 = vld [vmem:[%s8506_s1 + $0x78] sm:$0xf] }
  0x19   : > { %8620 = vst [vmem:[#allocation9_spill] sm:$0xff] %v6579_v31  ;;  %8621 = vst [vmem:[#allocation10_spill] sm:$0xff] %v6584_v32  ;;  %s5856_s7 = sshll.u32 %s6392_s16, 5  ;;  %v6346_v46 = vmov 839922192   ;;  %v525_v55 = vshrl.u32 %v524_v44, 7 }
  0x1a   : > { %p197_p3 = scmp.lt.s32.totalorder %s5856_s7, 63  ;;  %v522_v47 = vunpack.c.l.s4 %v6346_v46  ;;  %vm378_vm0 = vsmask.f32 256  ;;  %vm513_vm1 = vcmask 1040384   ;;  %vm285_vm3 = vsmask.f32 4352 }
  0x1b   : > { %602 = vperm.xlu1 %6200, %v6435_v7   ;;  %590 = vperm.xlu0 %6199, %v6440_v8   ;;  %vm514_vm2 = vmand %vm513_vm1, %vm378_vm0  ;;  %vm1012_vm4 = vcmask 31744   ;;  %s6348_s12 = smov 4   ;;  %vm1574_vm5 = vcmask 64544   ;;  %vm1600_vm6 = vsmask.f32 7424  ;;  %vm1666_vm7 = vcmask 1047552  }
  0x1c   : > { %s8823_s7 = smov (!%p197_p3, %s5856_s7), 63  ;;  %v523_v58 = vunpack.c.0.s8 %v522_v47  ;;  %vm7045_vm8 = vmand %vm1666_vm7, %vm1600_vm6  ;;  %s6350_s13 = smov 8   ;;  %vm2197_vm9 = vcmask 97344   ;;  %vm2746_vm10 = vcmask 130144   ;;  %vm2811_vm11 = vcmask 162944  }
  0x1d   : > { %s5857_s8 = sshll.u32 %s8823_s7, 2  ;;  %s6352_s17 = smov 12   ;;  %vm3365_vm12 = vcmask 195744   ;;  %vm5263_vm13 = vcmask 1041408   ;;  %vm4064_vm14 = vcmask 228544   ;;  %vm4609_vm15 = vcmask 261344  }
  0x1e   : > { %s6621_s11 = scalar_lea.vmem %s8505_s0, %s5857_s8  ;;  %s6353_s18 = smov 16  }
  0x1f   : > { %626 = vperm.xlu1 %6200, %v6447_v9   ;;  %614 = vperm.xlu0 %6199, %v6452_v10   ;;  %v213_v34 = vld [vmem:[%s6621_s11] sm:$0xf]  ;;  %v214_v35 = vld [vmem:[%s6621_s11 + $0x4] sm:$0xf]  ;;  %v6628_v36 = vld [vmem:[%s6621_s11 + $0x7c] sm:$0xf]  ;;  %s8366_s26 = scalar_lea.vmem %s8508_s3, %s5857_s8 }
  0x20   : > { %v6631_v37 = vld [vmem:[%s6621_s11 + $0x74] sm:$0xf]  ;;  %v6634_v38 = vld [vmem:[%s6621_s11 + $0x78] sm:$0xf]  ;;  %v6636_v39 = vcombine.low %v213_v34, %v214_v35  ;;  %v5862_v40 = vcombine.low %v6628_v36, %v6628_v36  ;;  %v215_v42 = vld [vmem:[%s6621_s11 + $0x8] sm:$0xf] }
  0x21   : > { %v5861_v41 = vcombine.low %v6631_v37, %v6634_v38  ;;  %v216_v43 = vld [vmem:[%s6621_s11 + $0xc] sm:$0xf]  ;;  %v217_v49 = vld [vmem:[%s6621_s11 + $0x10] sm:$0xf]  ;;  %v218_v54 = vld [vmem:[%s6621_s11 + $0x14] sm:$0xf] }
  0x22   : > { %8622 = vst [vmem:[#allocation11_spill] sm:$0xff] %v6636_v39  ;;  %v8511_v45 = vshrl.u32 %v6636_v39, 16  ;;  %v295_v48 = vshrl.u32 %v5862_v40, 16  ;;  %v298_v52 = vshll.u32 %v5862_v40, 16  ;;  %v6650_v53 = vcombine.low %v215_v42, %v216_v43  ;;  %v219_v61 = vld [vmem:[%s6621_s11 + $0x18] sm:$0xf] }
  0x23   : > { %650 = vperm.xlu1 %6200, %v6459_v11   ;;  %638 = vperm.xlu0 %6199, %v6464_v12   ;;  %v287_v50 = vshrl.u32 %v5861_v41, 16  ;;  %v290_v51 = vshll.u32 %v5861_v41, 16  ;;  %v8512_v57 = vshll.u32 %v6636_v39, 16  ;;  %v6656_v60 = vcombine.low %v217_v49, %v218_v54  ;;  %v220_v62 = vld [vmem:[%s6621_s11 + $0x1c] sm:$0xf]  ;;  %s6355_s19 = smov 20  }
  0x24   : > { %v382_v56 = vrot.slane %v8511_v45, 7  ;;  %v297_v59 = vrot.slane %v295_v48, 3  ;;  %v8510_v34 = vshrl.u32 %v6650_v53, 16  ;;  %v6665_v42 = vcombine.low %v219_v61, %v220_v62  ;;  %v224_v45 = vld [vmem:[%s6621_s11 + $0x2c] sm:$0xf]  ;;  %s6358_s21 = smov 24  }
  0x25   : > { %v289_v63 = vrot.slane %v287_v50, 3  ;;  %v292_v2 = vrot.slane %v290_v51, 4  ;;  %v6667_v43 = vsub.s32 %v523_v58, %v525_v55  ;;  %v8515_v44 = vshll.u32 %v6650_v53, 16  ;;  %v221_v51 = vld [vmem:[%s6621_s11 + $0x20] sm:$0xf]  ;;  %s6359_s28 = smov 28  }
  0x26   : > { %v385_v41 = vor.u32 %v8512_v57, %v382_v56  ;;  %v389_v48 = vrot.slane %v8510_v34, 7  ;;  %v8517_v49 = vshrl.u32 %v6656_v60, 16  ;;  %v6347_v50 = vmov 2   ;;  %s6360_s14 = smov 32   ;;  %p208_p4 = scmp.lt.s32.totalorder %s6392_s16, 1 }
  0x27   : > { %674 = vperm.xlu1 %6200, %v6471_v13   ;;  %662 = vperm.xlu0 %6199, %v6476_v14   ;;  %v6672_v46 = vor.u32 %v292_v2, %v289_v63  ;;  %v8518_v61 = vshll.u32 %v6665_v42, 16 }
  0x28   : > { %v6679_v55 = vsel %vm514_vm2, %v297_v59, %v385_v41  ;;  %v392_v41 = vor.u32 %v8515_v44, %v389_v48  ;;  %vm5214_vm2 = vcmask 293888   ;;  %s8825_s16 = smov (!%p208_p4, %s6392_s16), 1 }
  0x29   : > { %8623 = vst [vmem:[#allocation12_spill] sm:$0xff] %v6672_v46  ;;  %8624 = vst [vmem:[#allocation13_spill] sm:$0xff] %v6679_v55  ;;  %s5860_s7 = sshll.u32 %s8825_s16, 1 }
  0x2b   : > { %698 = vperm.xlu1 %6200, %v6483_v15   ;;  %686 = vperm.xlu0 %6199, %v6488_v16  }
  0x2f   : > { %722 = vperm.xlu1 %6200, %v6495_v17   ;;  %710 = vperm.xlu0 %6199, %v6500_v18  }
  0x33   : > { %746 = vperm.xlu1 %6200, %v6507_v19   ;;  %734 = vperm.xlu0 %6199, %v6512_v20  }
  0x37   : > { %770 = vperm.xlu1 %6200, %v6519_v21   ;;  %758 = vperm.xlu0 %6199, %v6524_v22  }
  0x3b   : > { %794 = vperm.xlu1 %6200, %v6531_v23   ;;  %782 = vperm.xlu0 %6199, %v6536_v24  }
  0x3f   : > { %818 = vperm.xlu1 %6200, %v6543_v25   ;;  %806 = vperm.xlu0 %6199, %v6548_v26  }
  0x43   : > { %842 = vperm.xlu1 %6200, %v6555_v27   ;;  %830 = vperm.xlu0 %6199, %v6560_v28  }
  0x47   : > { %866 = vperm.xlu1 %6200, %v6567_v29   ;;  %854 = vperm.xlu0 %6199, %v6572_v30  }
  0x4b   : > { %890 = vperm.xlu1 %6200, %v6579_v31   ;;  %878 = vperm.xlu0 %6199, %v6584_v32  }
  0x4f   : > { %6202 = vset.pattern.permute.xlu1 %v6345_v33  ;;  %6201 = vset.pattern.permute.xlu0 %v6345_v33  ;;  %v300_v33 = vrot.slane %v298_v52, 4  ;;  %v222_v52 = vld [vmem:[%s6621_s11 + $0x24] sm:$0xf] }
  0x50   : > { %1058 = vperm.xlu1 %6202, %v6416_v4   ;;  %1047 = vperm.xlu0 %6201, %v6404_v1   ;;  %v6697_v57 = vcombine.low %v221_v51, %v222_v52  ;;  %v226_v51 = vld [vmem:[%s6621_s11 + $0x34] sm:$0xf]  ;;  %v6709_v52 = vsel %vm378_vm0, %v382_v56, %v392_v41 }
  0x51   : > { %v301_v47 = vor.u32 %v300_v33, %v297_v59  ;;  %8626 = vst [vmem:[#allocation15_spill] sm:$0xff] %v6709_v52 }
  0x53   : > { %v6691_v59 = vsel %vm285_vm3, %v6672_v46, %v301_v47 }
  0x54   : > { %1069 = vperm.xlu1 %6202, %v6399_v0   ;;  %1080 = vperm.xlu0 %6201, %v6411_v3   ;;  %8625 = vst [vmem:[#allocation14_spill] sm:$0xff] %v6691_v59 }
  0x58   : > { %1091 = vperm.xlu1 %6202, %v6428_v6   ;;  %1102 = vperm.xlu0 %6201, %v6423_v5  }
  0x5c   : > { %1113 = vperm.xlu1 %6202, %v6440_v8   ;;  %1124 = vperm.xlu0 %6201, %v6435_v7  }
  0x60   : > { %1135 = vperm.xlu1 %6202, %v6452_v10   ;;  %1146 = vperm.xlu0 %6201, %v6447_v9  }
  0x64   : > { %1157 = vperm.xlu1 %6202, %v6464_v12   ;;  %1168 = vperm.xlu0 %6201, %v6459_v11  }
  0x68   : > { %1179 = vperm.xlu1 %6202, %v6476_v14   ;;  %1190 = vperm.xlu0 %6201, %v6471_v13  }
  0x6c   : > { %1201 = vperm.xlu1 %6202, %v6488_v16   ;;  %1212 = vperm.xlu0 %6201, %v6483_v15  }
  0x70   : > { %1223 = vperm.xlu1 %6202, %v6500_v18   ;;  %1234 = vperm.xlu0 %6201, %v6495_v17  }
  0x74   : > { %1245 = vperm.xlu1 %6202, %v6512_v20   ;;  %1256 = vperm.xlu0 %6201, %v6507_v19  }
  0x78   : > { %1267 = vperm.xlu1 %6202, %v6524_v22   ;;  %1278 = vperm.xlu0 %6201, %v6519_v21  }
  0x7c   : > { %1289 = vperm.xlu1 %6202, %v6536_v24   ;;  %1300 = vperm.xlu0 %6201, %v6531_v23  }
  0x80   : > { %1311 = vperm.xlu1 %6202, %v6548_v26   ;;  %1322 = vperm.xlu0 %6201, %v6543_v25  }
  0x84   : > { %1333 = vperm.xlu1 %6202, %v6560_v28   ;;  %1344 = vperm.xlu0 %6201, %v6555_v27  }
  0x88   : > { %1355 = vperm.xlu1 %6202, %v6572_v30   ;;  %1366 = vperm.xlu0 %6201, %v6567_v29  }
  0x8c   : > { %1377 = vperm.xlu1 %6202, %v6584_v32   ;;  %1388 = vperm.xlu0 %6201, %v6579_v31  }
  0x8e   : > { %v543_v35 = vpop.permute.xlu1 %542  ;;  %v519_v40 = vpop.permute.xlu0 %518 }
  0x8f   : > { %v551_v63 = vrot.slane %v543_v35, %v6667_v43  ;;  %v527_v2 = vrot.slane %v519_v40, %v6667_v43  ;;  %v397_v35 = vrot.slane %v8517_v49, 7  ;;  %v225_v49 = vld [vmem:[%s6621_s11 + $0x30] sm:$0xf] }
  0x90   : > { %6203 = vset.pattern.permute.xlu1 %v6347_v50  ;;  %6204 = vset.pattern.permute.xlu0 %v6347_v50  ;;  %v223_v50 = vld [vmem:[%s6621_s11 + $0x28] sm:$0xf] }
  0x91   : > { %v6700_v31 = vcombine.low %v223_v50, %v224_v45  ;;  %v8628_v45 = vshrl.u32 %v6665_v42, 16 }
  0x92   : > { %v555_v54 = vpop.permute.xlu1 %554  ;;  %v531_v58 = vpop.permute.xlu0 %530 }
  0x93   : > { %v563_v33 = vrot.slane %v555_v54, %v6667_v43  ;;  %v539_v34 = vrot.slane %v531_v58, %v6667_v43 }
  0x95   : > { %v5879_v40 = vcombine.low %v551_v63, %v563_v33  ;;  %v5878_v54 = vcombine.low %v527_v2, %v539_v34  ;;  %v8627_v34 = vshll.u32 %v6656_v60, 16  ;;  %v405_v2 = vrot.slane %v8628_v45, 7 }
  0x96   : > { %v579_v62 = vpop.permute.xlu1 %578  ;;  %v567_v58 = vpop.permute.xlu0 %566  ;;  %v8519_v33 = vshrl.u32 %v6697_v57, 16 }
  0x97   : > { %v997_v47 = vmul.bf16 %v5879_v40, %v6679_v55  ;;  %v996_v46 = vmul.bf16 %v5878_v54, %v6691_v59  ;;  %v587_v44 = vrot.slane %v579_v62, %v6667_v43  ;;  %v575_v32 = vrot.slane %v567_v58, %v6667_v43  ;;  %v232_v55 = vld [vmem:[%s6621_s11 + $0x4c] sm:$0xf] }
  0x98   : > { %v400_v63 = vor.u32 %v8627_v34, %v397_v35  ;;  %v6718_v54 = vcombine.low %v225_v49, %v226_v51  ;;  %v8522_v34 = vshll.u32 %v6697_v57, 16  ;;  %v228_v51 = vld [vmem:[%s6621_s11 + $0x3c] sm:$0xf] }
  0x99   : > { %v5880_v50 = vcombine.low %v575_v32, %v587_v44  ;;  %1013 = vst.msk [vmem:[#allocation2] sm:$0xff] %vm1012_vm4, %v996_v46  ;;  %1014 = vst.msk [vmem:[#allocation2 + $0x8] sm:$0xff] %vm1012_vm4, %v997_v47  ;;  %v408_v32 = vor.u32 %v8518_v61, %v405_v2  ;;  %v413_v44 = vrot.slane %v8519_v33, 7  ;;  %v8523_v46 = vshrl.u32 %v6700_v31, 16  ;;  %v227_v47 = vld [vmem:[%s6621_s11 + $0x38] sm:$0xf] }
  0x9a   : > { %v603_v62 = vpop.permute.xlu1 %602  ;;  %v591_v40 = vpop.permute.xlu0 %590  ;;  %8629 = vst [vmem:[#allocation16_spill] sm:$0xff] %v6718_v54  ;;  %v6725_v45 = vsel %vm378_vm0, %v389_v48, %v400_v63  ;;  %v6747_v59 = vcombine.low %v227_v47, %v228_v51  ;;  %v8634_v51 = vshll.u32 %v6700_v31, 16 }
  0x9b   : > { %v998_v56 = vmul.bf16 %v5880_v50, %v6709_v52  ;;  %v611_v41 = vrot.slane %v603_v62, %v6667_v43  ;;  %v599_v58 = vrot.slane %v591_v40, %v6667_v43  ;;  %8630 = vst [vmem:[#allocation17_spill] sm:$0xff] %v6725_v45 }
  0x9d   : > { %v5881_v49 = vcombine.low %v599_v58, %v611_v41  ;;  %1015 = vst.msk [vmem:[#allocation2 + $0x10] sm:$0xff] %vm1012_vm4, %v998_v56  ;;  %v6741_v41 = vsel %vm378_vm0, %v397_v35, %v408_v32  ;;  %v416_v58 = vor.u32 %v8522_v34, %v413_v44  ;;  %v421_v56 = vrot.slane %v8523_v46, 7 }
  0x9e   : > { %v627_v50 = vpop.permute.xlu1 %626  ;;  %v615_v62 = vpop.permute.xlu0 %614  ;;  %8631 = vst [vmem:[#allocation18_spill] sm:$0xff] %v6741_v41  ;;  %v8632_v35 = vshrl.u32 %v6718_v54, 16 }
  0x9f   : > { %v999_v63 = vmul.bf16 %v5881_v49, %v6725_v45  ;;  %v635_v40 = vrot.slane %v627_v50, %v6667_v43  ;;  %v623_v61 = vrot.slane %v615_v62, %v6667_v43  ;;  %v229_v49 = vld [vmem:[%s6621_s11 + $0x40] sm:$0xf]  ;;  %v230_v50 = vld [vmem:[%s6621_s11 + $0x44] sm:$0xf]  ;;  %v231_v45 = vld [vmem:[%s6621_s11 + $0x48] sm:$0xf] }
  0xa0   : > { %v429_v32 = vrot.slane %v8632_v35, 7  ;;  %v6764_v52 = vcombine.low %v229_v49, %v230_v50  ;;  %v233_v49 = vld [vmem:[%s6621_s11 + $0x50] sm:$0xf]  ;;  %v6783_v29 = vcombine.low %v231_v45, %v232_v55  ;;  %v8641_v55 = vshll.u32 %v6747_v59, 16 }
  0xa1   : > { %v5882_v48 = vcombine.low %v623_v61, %v635_v40  ;;  %1016 = vst.msk [vmem:[#allocation2 + $0x18] sm:$0xff] %vm1012_vm4, %v999_v63  ;;  %v6759_v61 = vsel %vm378_vm0, %v405_v2, %v416_v58  ;;  %v424_v63 = vor.u32 %v8634_v51, %v421_v56 }
  0xa2   : > { %v651_v62 = vpop.permute.xlu1 %650  ;;  %v639_v33 = vpop.permute.xlu0 %638  ;;  %8633 = vst [vmem:[#allocation19_spill] sm:$0xff] %v6759_v61  ;;  %8635 = vst [vmem:[#allocation20_spill] sm:$0xff] %v6764_v52 }
  0xa3   : > { %v1000_v34 = vmul.bf16 %v5882_v48, %v6741_v41  ;;  %v659_v46 = vrot.slane %v651_v62, %v6667_v43  ;;  %v647_v47 = vrot.slane %v639_v33, %v6667_v43  ;;  %v8636_v33 = vshll.u32 %v6718_v54, 16 }
  0xa4   : > { %v6778_v50 = vsel %vm378_vm0, %v413_v44, %v424_v63 }
  0xa5   : > { %v5883_v35 = vcombine.low %v647_v47, %v659_v46  ;;  %1017 = vst.msk [vmem:[#allocation2 + $0x20] sm:$0xff] %vm1012_vm4, %v1000_v34  ;;  %v432_v41 = vor.u32 %v8636_v33, %v429_v32  ;;  %v234_v46 = vld [vmem:[%s6621_s11 + $0x54] sm:$0xf]  ;;  %8637 = vst [vmem:[#allocation21_spill] sm:$0xff] %v6778_v50  ;;  %v8638_v34 = vshrl.u32 %v6747_v59, 16 }
  0xa6   : > { %v675_v48 = vpop.permute.xlu1 %674  ;;  %v663_v62 = vpop.permute.xlu0 %662  ;;  %v6786_v40 = vcombine.low %v233_v49, %v234_v46  ;;  %v236_v33 = vld [vmem:[%s6621_s11 + $0x5c] sm:$0xf]  ;;  %v8645_v49 = vshll.u32 %v6764_v52, 16 }
  0xa7   : > { %v1001_v2 = vmul.bf16 %v5883_v35, %v6759_v61  ;;  %v683_v58 = vrot.slane %v675_v48, %v6667_v43  ;;  %v671_v51 = vrot.slane %v663_v62, %v6667_v43  ;;  %v437_v47 = vrot.slane %v8638_v34, 7  ;;  %v235_v34 = vld [vmem:[%s6621_s11 + $0x58] sm:$0xf] }
  0xa8   : > { %8639 = vst [vmem:[#allocation22_spill] sm:$0xff] %v6786_v40  ;;  %v6791_v44 = vsel %vm378_vm0, %v421_v56, %v432_v41 }
  0xa9   : > { %v5884_v35 = vcombine.low %v671_v51, %v683_v58  ;;  %1018 = vst.msk [vmem:[#allocation2 + $0x28] sm:$0xff] %vm1012_vm4, %v1001_v2  ;;  %8640 = vst [vmem:[#allocation23_spill] sm:$0xff] %v6791_v44  ;;  %v440_v45 = vor.u32 %v8641_v55, %v437_v47  ;;  %v8642_v2 = vshrl.u32 %v6764_v52, 16 }
  0xaa   : > { %v699_v48 = vpop.permute.xlu1 %698  ;;  %v687_v62 = vpop.permute.xlu0 %686 }
  0xab   : > { %v1002_v61 = vmul.bf16 %v5884_v35, %v6778_v50  ;;  %v707_v30 = vrot.slane %v699_v48, %v6667_v43  ;;  %v695_v63 = vrot.slane %v687_v62, %v6667_v43  ;;  %v445_v58 = vrot.slane %v8642_v2, 7 }
  0xac   : > { %v6804_v48 = vcombine.low %v235_v34, %v236_v33  ;;  %v6810_v51 = vsel %vm378_vm0, %v429_v32, %v440_v45  ;;  %v237_v33 = vld [vmem:[%s6621_s11 + $0x60] sm:$0xf]  ;;  %v238_v34 = vld [vmem:[%s6621_s11 + $0x64] sm:$0xf]  ;;  %v8647_v32 = vshrl.u32 %v6786_v40, 16 }
  0xad   : > { %v5885_v46 = vcombine.low %v695_v63, %v707_v30  ;;  %1019 = vst.msk [vmem:[#allocation2 + $0x30] sm:$0xff] %vm1012_vm4, %v1002_v61  ;;  %8644 = vst [vmem:[#allocation25_spill] sm:$0xff] %v6810_v51  ;;  %v448_v30 = vor.u32 %v8645_v49, %v445_v58  ;;  %v8646_v61 = vshrl.u32 %v6783_v29, 16  ;;  %v6832_v27 = vcombine.low %v237_v33, %v238_v34 }
  0xae   : > { %v723_v41 = vpop.permute.xlu1 %722  ;;  %v711_v56 = vpop.permute.xlu0 %710  ;;  %8643 = vst [vmem:[#allocation24_spill] sm:$0xff] %v6804_v48  ;;  %v461_v45 = vrot.slane %v8647_v32, 7  ;;  %v239_v32 = vld [vmem:[%s6621_s11 + $0x68] sm:$0xf] }
  0xaf   : > { %v1003_v62 = vmul.bf16 %v5885_v46, %v6791_v44  ;;  %v731_v55 = vrot.slane %v723_v41, %v6667_v43  ;;  %v719_v2 = vrot.slane %v711_v56, %v6667_v43  ;;  %v453_v63 = vrot.slane %v8646_v61, 7  ;;  %8649 = vst [vmem:[#allocation26_spill] sm:$0xff] %v6832_v27  ;;  %v240_v56 = vld [vmem:[%s6621_s11 + $0x6c] sm:$0xf] }
  0xb1   : > { %v5886_v35 = vcombine.low %v719_v2, %v731_v55  ;;  %1020 = vst.msk [vmem:[#allocation2 + $0x38] sm:$0xff] %vm1012_vm4, %v1003_v62  ;;  %v6828_v2 = vsel %vm378_vm0, %v437_v47, %v448_v30  ;;  %v8648_v62 = vshll.u32 %v6783_v29, 16 }
  0xb2   : > { %v747_v46 = vpop.permute.xlu1 %746  ;;  %v735_v41 = vpop.permute.xlu0 %734 }
  0xb3   : > { %v1004_v61 = vmul.bf16 %v5886_v35, %v6810_v51  ;;  %v755_v50 = vrot.slane %v747_v46, %v6667_v43  ;;  %v743_v55 = vrot.slane %v735_v41, %v6667_v43  ;;  %v456_v44 = vor.u32 %v8648_v62, %v453_v63 }
  0xb4   : > { %v8650_v46 = vshll.u32 %v6786_v40, 16  ;;  %v8651_v41 = vshrl.u32 %v6804_v48, 16 }
  0xb5   : > { %v5887_v28 = vcombine.low %v743_v55, %v755_v50  ;;  %1021 = vst.msk [vmem:[#allocation2 + $0x40] sm:$0xff] %vm1012_vm4, %v1004_v61  ;;  %v8539_v50 = vshll.u32 %v6804_v48, 16  ;;  %v6846_v34 = vsel %vm378_vm0, %v445_v58, %v456_v44  ;;  %v8538_v61 = vshrl.u32 %v6832_v27, 16 }
  0xb6   : > { %v771_v49 = vpop.permute.xlu1 %770  ;;  %v759_v35 = vpop.permute.xlu0 %758  ;;  %v464_v51 = vor.u32 %v8650_v46, %v461_v45  ;;  %v469_v47 = vrot.slane %v8651_v41, 7  ;;  %v6849_v55 = vcombine.low %v239_v32, %v240_v56  ;;  %v241_v46 = vld [vmem:[%s6621_s11 + $0x70] sm:$0xf]  ;;  %v8541_v32 = vshll.u32 %v6832_v27, 16 }
  0xb7   : > { %v1005_v30 = vmul.bf16 %v5887_v28, %v6828_v2  ;;  %v779_v62 = vrot.slane %v771_v49, %v6667_v43  ;;  %v767_v33 = vrot.slane %v759_v35, %v6667_v43  ;;  %v477_v56 = vrot.slane %v8538_v61, 7 }
  0xb8   : > { %8652 = vst [vmem:[#allocation27_spill] sm:$0xff] %v6849_v55  ;;  %v6854_v28 = vsel %vm378_vm0, %v453_v63, %v464_v51  ;;  %v472_v58 = vor.u32 %v8539_v50, %v469_v47 }
  0xb9   : > { %v5888_v25 = vcombine.low %v767_v33, %v779_v62  ;;  %1022 = vst.msk [vmem:[#allocation2 + $0x48] sm:$0xff] %vm1012_vm4, %v1005_v30  ;;  %v8540_v30 = vshrl.u32 %v6849_v55, 16  ;;  %v6866_v62 = vcombine.low %v241_v46, %v6631_v37  ;;  %v480_v50 = vor.u32 %v8541_v32, %v477_v56 }
  0xba   : > { %v795_v41 = vpop.permute.xlu1 %794  ;;  %v783_v26 = vpop.permute.xlu0 %782  ;;  %v8543_v46 = vshll.u32 %v6849_v55, 16 }
  0xbb   : > { %v1006_v49 = vmul.bf16 %v5888_v25, %v6846_v34  ;;  %v803_v35 = vrot.slane %v795_v41, %v6667_v43  ;;  %v791_v44 = vrot.slane %v783_v26, %v6667_v43  ;;  %8653 = vst [vmem:[#allocation28_spill] sm:$0xff] %v6866_v62  ;;  %v6872_v41 = vsel %vm378_vm0, %v461_v45, %v472_v58 }
  0xbc   : > { %v485_v37 = vrot.slane %v8540_v30, 7 }
  0xbd   : > { %v5889_v51 = vcombine.low %v791_v44, %v803_v35  ;;  %1023 = vst.msk [vmem:[#allocation2 + $0x50] sm:$0xff] %vm1012_vm4, %v1006_v49  ;;  %v8542_v49 = vshrl.u32 %v6866_v62, 16 }
  0xbe   : > { %v819_v25 = vpop.permute.xlu1 %818  ;;  %v807_v63 = vpop.permute.xlu0 %806  ;;  %v488_v30 = vor.u32 %v8543_v46, %v485_v37 }
  0xbf   : > { %v1007_v26 = vmul.bf16 %v5889_v51, %v6854_v28  ;;  %v827_v33 = vrot.slane %v819_v25, %v6667_v43  ;;  %v815_v61 = vrot.slane %v807_v63, %v6667_v43  ;;  %v6886_v63 = vsel %vm378_vm0, %v469_v47, %v480_v50 }
  0xc0   : > { %v6892_v32 = vrot.slane %v8542_v49, 7  ;;  %v6900_v50 = vsel %vm378_vm0, %v477_v56, %v488_v30 }
  0xc1   : > { %v5890_v35 = vcombine.low %v815_v61, %v827_v33  ;;  %1024 = vst.msk [vmem:[#allocation2 + $0x58] sm:$0xff] %vm1012_vm4, %v1007_v26  ;;  %v8544_v61 = vshll.u32 %v6866_v62, 16 }
  0xc2   : > { %v843_v44 = vpop.permute.xlu1 %842  ;;  %v831_v51 = vpop.permute.xlu0 %830 }
  0xc3   : > { %v1008_v45 = vmul.bf16 %v5890_v35, %v6872_v41  ;;  %v851_v58 = vrot.slane %v843_v44, %v6667_v43  ;;  %v839_v25 = vrot.slane %v831_v51, %v6667_v43  ;;  %v496_v49 = vor.u32 %v8544_v61, %v6892_v32 }
  0xc5   : > { %v5891_v26 = vcombine.low %v839_v25, %v851_v58  ;;  %1025 = vst.msk [vmem:[#allocation2 + $0x60] sm:$0xff] %vm1012_vm4, %v1008_v45 }
  0xc6   : > { %v867_v33 = vpop.permute.xlu1 %866  ;;  %v855_v35 = vpop.permute.xlu0 %854 }
  0xc7   : > { %v1009_v44 = vmul.bf16 %v5891_v26, %v6886_v63  ;;  %v875_v51 = vrot.slane %v867_v33, %v6667_v43  ;;  %v863_v47 = vrot.slane %v855_v35, %v6667_v43  ;;  %v6910_v35 = vsel %vm378_vm0, %v485_v37, %v496_v49 }
  0xc9   : > { %v5892_v46 = vcombine.low %v863_v47, %v875_v51  ;;  %1026 = vst.msk [vmem:[#allocation2 + $0x68] sm:$0xff] %vm1012_vm4, %v1009_v44 }
  0xca   : > { %v891_v58 = vpop.permute.xlu1 %890  ;;  %v879_v45 = vpop.permute.xlu0 %878 }
  0xcb   : > { %v1010_v25 = vmul.bf16 %v5892_v46, %v6900_v50  ;;  %v899_v26 = vrot.slane %v891_v58, %v6667_v43  ;;  %v887_v33 = vrot.slane %v879_v45, %v6667_v43  ;;  %v6918_v46 = vcombine.low %v6634_v38, %v6628_v36 }
  0xcd   : > { %v5893_v56 = vcombine.low %v887_v33, %v899_v26  ;;  %1027 = vst.msk [vmem:[#allocation2 + $0x70] sm:$0xff] %vm1012_vm4, %v1010_v25  ;;  %8654 = vst [vmem:[#allocation29_spill] sm:$0xff] %v6918_v46 }
  0xcf   : > { %v1011_v30 = vmul.bf16 %v5893_v56, %v6910_v35  ;;  %v1059_v61 = vpop.permute.xlu1 %1058  ;;  %v1048_v51 = vpop.permute.xlu0 %1047 }
  0xd0   : > { %v1067_v44 = vrot.slane %v1059_v61, %v6667_v43  ;;  %v1056_v47 = vrot.slane %v1048_v51, %v6667_v43 }
  0xd1   : > { %1028 = vst.msk [vmem:[#allocation2 + $0x78] sm:$0xff] %vm1012_vm4, %v1011_v30  ;;  %vm5589_vm4 = vcmask 64512  }
  0xd2   : > { %v5895_v58 = vcombine.low %v1056_v47, %v1067_v44 }
  0xd3   : > { %v1070_v37 = vpop.permute.xlu1 %1069  ;;  %v1081_v49 = vpop.permute.xlu0 %1080 }
  0xd4   : > { %v1078_v45 = vrot.slane %v1070_v37, %v6667_v43  ;;  %v1089_v25 = vrot.slane %v1081_v49, %v6667_v43  ;;  %v1494_v26 = vmul.bf16 %v5895_v58, %v6918_v46 }
  0xd6   : > { %v5896_v33 = vcombine.low %v1078_v45, %v1089_v25  ;;  %1526 = vrot.lane.b32.xlu1 %v1494_v26, %s6348_s12 }
  0xd7   : > { %v1092_v61 = vpop.permute.xlu1 %1091  ;;  %v1103_v56 = vpop.permute.xlu0 %1102 }
  0xd8   : > { %v1100_v36 = vrot.slane %v1092_v61, %v6667_v43  ;;  %v1111_v38 = vrot.slane %v1103_v56, %v6667_v43  ;;  %v1495_v30 = vmul.bf16 %v5896_v33, %v6636_v39 }
  0xda   : > { %v5897_v51 = vcombine.low %v1100_v36, %v1111_v38  ;;  %1528 = vrot.lane.b32.xlu0 %v1495_v30, %s6348_s12 }
  0xdb   : > { %v1114_v44 = vpop.permute.xlu1 %1113  ;;  %v1125_v47 = vpop.permute.xlu0 %1124 }
  0xdc   : > { %v1122_v37 = vrot.slane %v1114_v44, %v6667_v43  ;;  %v1133_v58 = vrot.slane %v1125_v47, %v6667_v43  ;;  %v1496_v49 = vmul.bf16 %v5897_v51, %v6650_v53 }
  0xde   : > { %v5898_v45 = vcombine.low %v1122_v37, %v1133_v58  ;;  %1530 = vrot.lane.b32.xlu1 %v1496_v49, %s6348_s12 }
  0xdf   : > { %v1136_v25 = vpop.permute.xlu1 %1135  ;;  %v1147_v26 = vpop.permute.xlu0 %1146 }
  0xe0   : > { %v1144_v61 = vrot.slane %v1136_v25, %v6667_v43  ;;  %v1155_v33 = vrot.slane %v1147_v26, %v6667_v43  ;;  %v1497_v56 = vmul.bf16 %v5898_v45, %v6656_v60 }
  0xe2   : > { %v5899_v36 = vcombine.low %v1144_v61, %v1155_v33  ;;  %1532 = vrot.lane.b32.xlu0 %v1497_v56, %s6348_s12 }
  0xe3   : > { %v1158_v38 = vpop.permute.xlu1 %1157  ;;  %v1169_v30 = vpop.permute.xlu0 %1168 }
  0xe4   : > { %v1166_v44 = vrot.slane %v1158_v38, %v6667_v43  ;;  %v1177_v51 = vrot.slane %v1169_v30, %v6667_v43  ;;  %v1498_v47 = vmul.bf16 %v5899_v36, %v6665_v42 }
  0xe6   : > { %v5900_v37 = vcombine.low %v1166_v44, %v1177_v51  ;;  %1534 = vrot.lane.b32.xlu1 %v1498_v47, %s6348_s12 }
  0xe7   : > { %v1180_v58 = vpop.permute.xlu1 %1179  ;;  %v1191_v49 = vpop.permute.xlu0 %1190 }
  0xe8   : > { %v1188_v25 = vrot.slane %v1180_v58, %v6667_v43  ;;  %v1199_v45 = vrot.slane %v1191_v49, %v6667_v43  ;;  %v1499_v26 = vmul.bf16 %v5900_v37, %v6697_v57 }
  0xea   : > { %v5901_v61 = vcombine.low %v1188_v25, %v1199_v45  ;;  %1536 = vrot.lane.b32.xlu0 %v1499_v26, %s6348_s12 }
  0xeb   : > { %v1202_v33 = vpop.permute.xlu1 %1201  ;;  %v1213_v56 = vpop.permute.xlu0 %1212 }
  0xec   : > { %v1210_v38 = vrot.slane %v1202_v33, %v6667_v43  ;;  %v1221_v36 = vrot.slane %v1213_v56, %v6667_v43  ;;  %v1500_v30 = vmul.bf16 %v5901_v61, %v6700_v31 }
  0xee   : > { %v5902_v44 = vcombine.low %v1210_v38, %v1221_v36  ;;  %1538 = vrot.lane.b32.xlu1 %v1500_v30, %s6348_s12 }
  0xef   : > { %v1224_v51 = vpop.permute.xlu1 %1223  ;;  %v1235_v47 = vpop.permute.xlu0 %1234 }
  0xf0   : > { %v1232_v58 = vrot.slane %v1224_v51, %v6667_v43  ;;  %v1243_v37 = vrot.slane %v1235_v47, %v6667_v43  ;;  %v1501_v49 = vmul.bf16 %v5902_v44, %v6718_v54 }
  0xf2   : > { %v5903_v25 = vcombine.low %v1232_v58, %v1243_v37  ;;  %1540 = vrot.lane.b32.xlu0 %v1501_v49, %s6348_s12 }
  0xf3   : > { %v1246_v45 = vpop.permute.xlu1 %1245  ;;  %v1257_v26 = vpop.permute.xlu0 %1256 }
  0xf4   : > { %v1254_v33 = vrot.slane %v1246_v45, %v6667_v43  ;;  %v1265_v61 = vrot.slane %v1257_v26, %v6667_v43  ;;  %v1502_v56 = vmul.bf16 %v5903_v25, %v6747_v59 }
  0xf6   : > { %v5904_v38 = vcombine.low %v1254_v33, %v1265_v61  ;;  %1542 = vrot.lane.b32.xlu1 %v1502_v56, %s6348_s12 }
  0xf7   : > { %v1268_v36 = vpop.permute.xlu1 %1267  ;;  %v1279_v30 = vpop.permute.xlu0 %1278 }
  0xf8   : > { %v1276_v51 = vrot.slane %v1268_v36, %v6667_v43  ;;  %v1287_v44 = vrot.slane %v1279_v30, %v6667_v43  ;;  %v1503_v47 = vmul.bf16 %v5904_v38, %v6764_v52 }
  0xfa   : > { %v5905_v58 = vcombine.low %v1276_v51, %v1287_v44  ;;  %1544 = vrot.lane.b32.xlu0 %v1503_v47, %s6348_s12 }
  0xfb   : > { %v1290_v37 = vpop.permute.xlu1 %1289  ;;  %v1301_v49 = vpop.permute.xlu0 %1300 }
  0xfc   : > { %v1298_v45 = vrot.slane %v1290_v37, %v6667_v43  ;;  %v1309_v25 = vrot.slane %v1301_v49, %v6667_v43  ;;  %v1504_v26 = vmul.bf16 %v5905_v58, %v6783_v29 }
  0xfe   : > { %v5906_v33 = vcombine.low %v1298_v45, %v1309_v25  ;;  %1546 = vrot.lane.b32.xlu1 %v1504_v26, %s6348_s12 }
  0xff   : > { %v1312_v61 = vpop.permute.xlu1 %1311  ;;  %v1323_v56 = vpop.permute.xlu0 %1322 }
 0x100   : > { %v1320_v36 = vrot.slane %v1312_v61, %v6667_v43  ;;  %v1331_v38 = vrot.slane %v1323_v56, %v6667_v43  ;;  %v1505_v30 = vmul.bf16 %v5906_v33, %v6786_v40 }
 0x102   : > { %v5907_v51 = vcombine.low %v1320_v36, %v1331_v38  ;;  %1548 = vrot.lane.b32.xlu0 %v1505_v30, %s6348_s12 }
 0x103   : > { %v1334_v44 = vpop.permute.xlu1 %1333  ;;  %v1345_v47 = vpop.permute.xlu0 %1344 }
 0x104   : > { %v1342_v37 = vrot.slane %v1334_v44, %v6667_v43  ;;  %v1353_v58 = vrot.slane %v1345_v47, %v6667_v43  ;;  %v1506_v49 = vmul.bf16 %v5907_v51, %v6804_v48 }
 0x106   : > { %v5908_v45 = vcombine.low %v1342_v37, %v1353_v58  ;;  %1550 = vrot.lane.b32.xlu1 %v1506_v49, %s6348_s12 }
 0x107   : > { %v1356_v25 = vpop.permute.xlu1 %1355  ;;  %v1367_v26 = vpop.permute.xlu0 %1366 }
 0x108   : > { %v1364_v61 = vrot.slane %v1356_v25, %v6667_v43  ;;  %v1375_v33 = vrot.slane %v1367_v26, %v6667_v43  ;;  %v1507_v56 = vmul.bf16 %v5908_v45, %v6832_v27  ;;  %v8545_v45 = vshll.u32 %v6918_v46, 16 }
 0x109   : > { %v8546_v25 = vshrl.u32 %v6918_v46, 16 }
 0x10a   : > { %v5909_v36 = vcombine.low %v1364_v61, %v1375_v33  ;;  %1552 = vrot.lane.b32.xlu0 %v1507_v56, %s6348_s12  ;;  %v7035_v26 = vrot.slane %v8545_v45, 1  ;;  %v8665_v56 = vshll.u32 %v6636_v39, 16  ;;  %v7330_v45 = vld [vmem:[%s8506_s1 + $0x4c] sm:$0xf] }
 0x10b   : > { %v1378_v38 = vpop.permute.xlu1 %1377  ;;  %v1389_v30 = vpop.permute.xlu0 %1388 }
 0x10c   : > { %v1386_v44 = vrot.slane %v1378_v38, %v6667_v43  ;;  %v1397_v51 = vrot.slane %v1389_v30, %v6667_v43  ;;  %v1508_v47 = vmul.bf16 %v5909_v36, %v6849_v55  ;;  %v7040_v33 = vor.u32 %v7035_v26, %v8546_v25  ;;  %v7336_v25 = vld [vmem:[%s8506_s1 + $0x40] sm:$0xf] }
 0x10d   : > { %v1601_v36 = vrot.slane %v8665_v56, 1  ;;  %v8666_v38 = vmov 0 }
 0x10e   : > { %v5910_v37 = vcombine.low %v1386_v44, %v1397_v51  ;;  %1554 = vrot.lane.b32.xlu1 %v1508_v47, %s6348_s12  ;;  %v8667_v38 = vsel %vm7045_vm8, 4294967295, %v8666_v38 }
 0x110   : > { %v1509_v58 = vmul.bf16 %v5910_v37, %v6866_v62  ;;  %v7054_v37 = vsel %vm7045_vm8, %v7040_v33, %v1601_v36 }
 0x112   : > { %1670 = vperm.xlu1 %6203, %v6404_v1   ;;  %1556 = vrot.lane.b32.xlu0 %v1509_v58, %s6348_s12  ;;  %v8656_v1 = vld [vmem:[#allocation3_spill] sm:$0xff]  ;;  %v8670_v58 = vshrl.u32 %v6636_v39, 16 }
 0x113   : > { %8664 = vst [vmem:[#allocation3_spill] sm:$0xff] %v7040_v33  ;;  %v7360_v33 = vld [vmem:[%s8506_s1 + $0x50] sm:$0xf] }
 0x116   : > { %1692 = vperm.xlu1 %6203, %v6399_v0   ;;  %1681 = vperm.xlu0 %6204, %v6416_v4   ;;  %v8655_v0 = vld [vmem:[#allocation4_spill] sm:$0xff] }
 0x117   : > { %8663 = vst [vmem:[#allocation4_spill] sm:$0xff] %v7035_v26  ;;  %v7372_v26 = vld [vmem:[%s8506_s1 + $0x58] sm:$0xf] }
 0x11a   : > { %1703 = vperm.xlu1 %6203, %v6411_v3   ;;  %1714 = vperm.xlu0 %6204, %v6428_v6   ;;  %v8657_v3 = vld [vmem:[#allocation6_spill] sm:$0xff]  ;;  %v8659_v6 = vld [vmem:[#allocation8_spill] sm:$0xff] }
 0x11b   : > { %8668 = vst [vmem:[#allocation6_spill] sm:$0xff] %v8667_v38  ;;  %v7354_v38 = vld [vmem:[%s8506_s1 + $0x5c] sm:$0xf] }
 0x11c   : > { %8716 = vst [vmem:[#allocation43_spill] sm:$0xff] %v7354_v38 }
 0x11e   : > { %1725 = vperm.xlu1 %6203, %v6423_v5   ;;  %1736 = vperm.xlu0 %6204, %v6440_v8   ;;  %v8658_v5 = vld [vmem:[#allocation5_spill] sm:$0xff]  ;;  %v8660_v8 = vld [vmem:[#allocation7_spill] sm:$0xff] }
 0x11f   : > { %8669 = vst [vmem:[#allocation5_spill] sm:$0xff] %v7054_v37 }
 0x122   : > { %1747 = vperm.xlu1 %6203, %v6435_v7   ;;  %1758 = vperm.xlu0 %6204, %v6452_v10  }
 0x126   : > { %1769 = vperm.xlu1 %6203, %v6447_v9   ;;  %1780 = vperm.xlu0 %6204, %v6464_v12   ;;  %v8661_v9 = vld [vmem:[#allocation10_spill] sm:$0xff] }
 0x12a   : > { %1791 = vperm.xlu1 %6203, %v6459_v11   ;;  %1802 = vperm.xlu0 %6204, %v6476_v14   ;;  %v8662_v11 = vld [vmem:[#allocation9_spill] sm:$0xff] }
 0x12e   : > { %1813 = vperm.xlu1 %6203, %v6471_v13   ;;  %1824 = vperm.xlu0 %6204, %v6488_v16   ;;  %v6349_v13 = vmov 3  }
 0x132   : > { %1835 = vperm.xlu1 %6203, %v6483_v15   ;;  %1846 = vperm.xlu0 %6204, %v6500_v18  }
 0x136   : > { %1857 = vperm.xlu1 %6203, %v6495_v17   ;;  %1868 = vperm.xlu0 %6204, %v6512_v20  }
 0x13a   : > { %1879 = vperm.xlu1 %6203, %v6507_v19   ;;  %1890 = vperm.xlu0 %6204, %v6524_v22  }
 0x13e   : > { %1901 = vperm.xlu1 %6203, %v6519_v21   ;;  %1912 = vperm.xlu0 %6204, %v6536_v24  }
 0x142   : > { %1923 = vperm.xlu1 %6203, %v6531_v23   ;;  %1934 = vperm.xlu0 %6204, %v8655_v0   ;;  %v7058_v0 = vor.u32 %v1601_v36, %v8670_v58  ;;  %v8680_v58 = vshrl.u32 %v6665_v42, 16 }
 0x144   : > { %8671 = vst [vmem:[#allocation8_spill] sm:$0xff] %v7058_v0 }
 0x146   : > { %1945 = vperm.xlu1 %6203, %v8656_v1   ;;  %1956 = vperm.xlu0 %6204, %v8657_v3   ;;  %v8672_v1 = vshll.u32 %v6650_v53, 16 }
 0x148   : > { %v1527_v4 = vpop.permute.xlu1 %1526  ;;  %v1603_v3 = vrot.slane %v8672_v1, 1 }
 0x149   : > { %1575 = vst.msk [vmem:[#allocation2] sm:$0xff] %vm1574_vm5, %v1527_v4 }
 0x14a   : > { %1967 = vperm.xlu1 %6203, %v8658_v5   ;;  %1978 = vperm.xlu0 %6204, %v8659_v6  }
 0x14c   : > { %v1529_v7 = vpop.permute.xlu0 %1528 }
 0x14d   : > { %1576 = vst.msk [vmem:[#allocation2 + $0x8] sm:$0xff] %vm1574_vm5, %v1529_v7 }
 0x14e   : > { %1989 = vperm.xlu1 %6203, %v8660_v8   ;;  %2000 = vperm.xlu0 %6204, %v8661_v9  }
 0x150   : > { %v1531_v10 = vpop.permute.xlu1 %1530 }
 0x151   : > { %1577 = vst.msk [vmem:[#allocation2 + $0x10] sm:$0xff] %vm1574_vm5, %v1531_v10  ;;  %v7067_v10 = vsel %vm1600_vm6, %v7058_v0, %v1603_v3  ;;  %v7342_v0 = vld [vmem:[%s8506_s1 + $0x54] sm:$0xf] }
 0x152   : > { %2011 = vperm.xlu1 %6203, %v8662_v11   ;;  %6205 = vset.pattern.permute.xlu0 %v6349_v13  ;;  %8673 = vst [vmem:[#allocation7_spill] sm:$0xff] %v7067_v10  ;;  %v8674_v11 = vshll.u32 %v6656_v60, 16  ;;  %8715 = vst [vmem:[#allocation42_spill] sm:$0xff] %v7342_v0 }
 0x154   : > { %v1533_v12 = vpop.permute.xlu0 %1532 }
 0x155   : > { %1578 = vst.msk [vmem:[#allocation2 + $0x18] sm:$0xff] %vm1574_vm5, %v1533_v12  ;;  %v1606_v12 = vrot.slane %v8674_v11, 1 }
 0x156   : > { %6206 = vset.pattern.permute.xlu1 %v6349_v13  ;;  %v8675_v13 = vshrl.u32 %v6650_v53, 16 }
 0x158   : > { %v1535_v14 = vpop.permute.xlu1 %1534 }
 0x159   : > { %1579 = vst.msk [vmem:[#allocation2 + $0x20] sm:$0xff] %vm1574_vm5, %v1535_v14  ;;  %v1605_v14 = vor.u32 %v1603_v3, %v8675_v13  ;;  %v8681_v3 = vshll.u32 %v6697_v57, 16  ;;  %v8683_v13 = vshrl.u32 %v6697_v57, 16 }
 0x15c   : > { %v1537_v15 = vpop.permute.xlu0 %1536 }
 0x15d   : > { %1580 = vst.msk [vmem:[#allocation2 + $0x28] sm:$0xff] %vm1574_vm5, %v1537_v15 }
 0x160   : > { %v1539_v16 = vpop.permute.xlu1 %1538 }
 0x161   : > { %1581 = vst.msk [vmem:[#allocation2 + $0x30] sm:$0xff] %vm1574_vm5, %v1539_v16 }
 0x164   : > { %v1541_v17 = vpop.permute.xlu0 %1540 }
 0x165   : > { %1582 = vst.msk [vmem:[#allocation2 + $0x38] sm:$0xff] %vm1574_vm5, %v1541_v17 }
 0x168   : > { %v1543_v18 = vpop.permute.xlu1 %1542 }
 0x169   : > { %1583 = vst.msk [vmem:[#allocation2 + $0x40] sm:$0xff] %vm1574_vm5, %v1543_v18 }
 0x16c   : > { %v1545_v19 = vpop.permute.xlu0 %1544 }
 0x16d   : > { %1584 = vst.msk [vmem:[#allocation2 + $0x48] sm:$0xff] %vm1574_vm5, %v1545_v19 }
 0x170   : > { %v1547_v20 = vpop.permute.xlu1 %1546 }
 0x171   : > { %1585 = vst.msk [vmem:[#allocation2 + $0x50] sm:$0xff] %vm1574_vm5, %v1547_v20 }
 0x174   : > { %v1549_v21 = vpop.permute.xlu0 %1548 }
 0x175   : > { %1586 = vst.msk [vmem:[#allocation2 + $0x58] sm:$0xff] %vm1574_vm5, %v1549_v21  ;;  %v7078_v21 = vsel %vm1600_vm6, %v1605_v14, %v1606_v12 }
 0x176   : > { %8676 = vst [vmem:[#allocation10_spill] sm:$0xff] %v7078_v21 }
 0x178   : > { %v1551_v22 = vpop.permute.xlu1 %1550 }
 0x179   : > { %1587 = vst.msk [vmem:[#allocation2 + $0x60] sm:$0xff] %vm1574_vm5, %v1551_v22  ;;  %v8677_v22 = vshrl.u32 %v6656_v60, 16 }
 0x17c   : > { %v1553_v23 = vpop.permute.xlu0 %1552 }
 0x17d   : > { %1588 = vst.msk [vmem:[#allocation2 + $0x68] sm:$0xff] %vm1574_vm5, %v1553_v23  ;;  %v1608_v23 = vor.u32 %v1606_v12, %v8677_v22 }
 0x180   : > { %v1555_v24 = vpop.permute.xlu1 %1554 }
 0x181   : > { %1589 = vst.msk [vmem:[#allocation2 + $0x70] sm:$0xff] %vm1574_vm5, %v1555_v24  ;;  %v8678_v24 = vshll.u32 %v6665_v42, 16 }
 0x184   : > { %v1557_v49 = vpop.permute.xlu0 %1556 }
 0x185   : > { %1590 = vst.msk [vmem:[#allocation2 + $0x78] sm:$0xff] %vm1574_vm5, %v1557_v49  ;;  %v1609_v49 = vrot.slane %v8678_v24, 1  ;;  %vm5762_vm5 = vcmask 58368  }
 0x187   : > { %v1611_v1 = vor.u32 %v1609_v49, %v8680_v58 }
 0x191   : > { %v1671_v61 = vpop.permute.xlu1 %1670 }
 0x192   : > { %v1679_v51 = vrot.slane %v1671_v61, %v6667_v43 }
 0x195   : > { %v1693_v30 = vpop.permute.xlu1 %1692  ;;  %v1682_v44 = vpop.permute.xlu0 %1681 }
 0x196   : > { %v1690_v47 = vrot.slane %v1682_v44, %v6667_v43  ;;  %v1701_v7 = vrot.slane %v1693_v30, %v6667_v43 }
 0x198   : > { %v5912_v4 = vcombine.low %v1679_v51, %v1690_v47  ;;  %v7089_v47 = vsel %vm1600_vm6, %v1608_v23, %v1609_v49  ;;  %v8686_v49 = vshrl.u32 %v6700_v31, 16 }
 0x199   : > { %v1704_v5 = vpop.permute.xlu1 %1703  ;;  %v1715_v6 = vpop.permute.xlu0 %1714  ;;  %8679 = vst [vmem:[#allocation9_spill] sm:$0xff] %v7089_v47 }
 0x19a   : > { %v2117_v8 = vmul.bf16 %v5912_v4, %v7054_v37  ;;  %v1712_v9 = vrot.slane %v1704_v5, %v6667_v43  ;;  %v1723_v19 = vrot.slane %v1715_v6, %v6667_v43  ;;  %v1612_v4 = vrot.slane %v8681_v3, 1  ;;  %v7348_v37 = vld [vmem:[%s8506_s1 + $0x48] sm:$0xf] }
 0x19c   : > { %v5913_v15 = vcombine.low %v1701_v7, %v1712_v9  ;;  %2149 = vrot.lane.b32.xlu0 %v2117_v8, %s6350_s13  ;;  %v7100_v12 = vsel %vm1600_vm6, %v1611_v1, %v1612_v4  ;;  %v1614_v14 = vor.u32 %v1612_v4, %v8683_v13 }
 0x19d   : > { %v1726_v16 = vpop.permute.xlu1 %1725  ;;  %v1737_v17 = vpop.permute.xlu0 %1736  ;;  %8682 = vst [vmem:[#allocation30_spill] sm:$0xff] %v7100_v12 }
 0x19e   : > { %v2118_v18 = vmul.bf16 %v5913_v15, %v7067_v10  ;;  %v1734_v20 = vrot.slane %v1726_v16, %v6667_v43  ;;  %v1745_v44 = vrot.slane %v1737_v17, %v6667_v43  ;;  %v8684_v15 = vshll.u32 %v6700_v31, 16 }
 0x1a0   : > { %v5914_v61 = vcombine.low %v1723_v19, %v1734_v20  ;;  %2151 = vrot.lane.b32.xlu1 %v2118_v18, %s6350_s13  ;;  %v1615_v16 = vrot.slane %v8684_v15, 1 }
 0x1a1   : > { %v1748_v56 = vpop.permute.xlu1 %1747  ;;  %v1759_v36 = vpop.permute.xlu0 %1758 }
 0x1a2   : > { %v2119_v30 = vmul.bf16 %v5914_v61, %v7078_v21  ;;  %v1756_v51 = vrot.slane %v1748_v56, %v6667_v43  ;;  %v1767_v9 = vrot.slane %v1759_v36, %v6667_v43  ;;  %v7111_v24 = vsel %vm1600_vm6, %v1614_v14, %v1615_v16 }
 0x1a3   : > { %8685 = vst [vmem:[#allocation31_spill] sm:$0xff] %v7111_v24  ;;  %v1617_v61 = vor.u32 %v1615_v16, %v8686_v49  ;;  %v8687_v56 = vshll.u32 %v6718_v54, 16 }
 0x1a4   : > { %v5915_v5 = vcombine.low %v1745_v44, %v1756_v51  ;;  %2153 = vrot.lane.b32.xlu0 %v2119_v30, %s6350_s13 }
 0x1a5   : > { %v1770_v6 = vpop.permute.xlu1 %1769  ;;  %v1781_v7 = vpop.permute.xlu0 %1780  ;;  %v1618_v36 = vrot.slane %v8687_v56, 1 }
 0x1a6   : > { %v2120_v8 = vmul.bf16 %v5915_v5, %v7089_v47  ;;  %v1778_v11 = vrot.slane %v1770_v6, %v6667_v43  ;;  %v1789_v22 = vrot.slane %v1781_v7, %v6667_v43  ;;  %v8689_v5 = vshrl.u32 %v6718_v54, 16 }
 0x1a7   : > { %v7122_v4 = vsel %vm1600_vm6, %v1617_v61, %v1618_v36  ;;  %v8690_v7 = vshll.u32 %v6747_v59, 16 }
 0x1a8   : > { %v5916_v17 = vcombine.low %v1767_v9, %v1778_v11  ;;  %2155 = vrot.lane.b32.xlu1 %v2120_v8, %s6350_s13  ;;  %8688 = vst [vmem:[#allocation32_spill] sm:$0xff] %v7122_v4  ;;  %v1620_v6 = vor.u32 %v1618_v36, %v8689_v5 }
 0x1a9   : > { %v1792_v18 = vpop.permute.xlu1 %1791  ;;  %v1803_v19 = vpop.permute.xlu0 %1802  ;;  %v1621_v8 = vrot.slane %v8690_v7, 1 }
 0x1aa   : > { %v2121_v20 = vmul.bf16 %v5916_v17, %v7100_v12  ;;  %v1800_v23 = vrot.slane %v1792_v18, %v6667_v43  ;;  %v1811_v1 = vrot.slane %v1803_v19, %v6667_v43  ;;  %v8692_v18 = vshrl.u32 %v6747_v59, 16 }
 0x1ab   : > { %v7133_v17 = vsel %vm1600_vm6, %v1620_v6, %v1621_v8 }
 0x1ac   : > { %v5917_v30 = vcombine.low %v1789_v22, %v1800_v23  ;;  %2157 = vrot.lane.b32.xlu0 %v2121_v20, %s6350_s13  ;;  %8691 = vst [vmem:[#allocation33_spill] sm:$0xff] %v7133_v17  ;;  %v1623_v19 = vor.u32 %v1621_v8, %v8692_v18  ;;  %v8693_v20 = vshll.u32 %v6764_v52, 16 }
 0x1ad   : > { %v1814_v44 = vpop.permute.xlu1 %1813  ;;  %v1825_v51 = vpop.permute.xlu0 %1824 }
 0x1ae   : > { %v2122_v58 = vmul.bf16 %v5917_v30, %v7111_v24  ;;  %v1822_v3 = vrot.slane %v1814_v44, %v6667_v43  ;;  %v1833_v15 = vrot.slane %v1825_v51, %v6667_v43  ;;  %v1624_v22 = vrot.slane %v8693_v20, 1 }
 0x1af   : > { %v8695_v51 = vshrl.u32 %v6764_v52, 16 }
 0x1b0   : > { %v5918_v9 = vcombine.low %v1811_v1, %v1822_v3  ;;  %2159 = vrot.lane.b32.xlu1 %v2122_v58, %s6350_s13  ;;  %v7144_v44 = vsel %vm1600_vm6, %v1623_v19, %v1624_v22  ;;  %v8696_v1 = vshll.u32 %v6783_v29, 16 }
 0x1b1   : > { %v1836_v11 = vpop.permute.xlu1 %1835  ;;  %v1847_v13 = vpop.permute.xlu0 %1846  ;;  %8694 = vst [vmem:[#allocation34_spill] sm:$0xff] %v7144_v44  ;;  %v1626_v58 = vor.u32 %v1624_v22, %v8695_v51  ;;  %v8702_v51 = vshll.u32 %v6804_v48, 16 }
 0x1b2   : > { %v2123_v14 = vmul.bf16 %v5918_v9, %v7122_v4  ;;  %v1844_v16 = vrot.slane %v1836_v11, %v6667_v43  ;;  %v1855_v36 = vrot.slane %v1847_v13, %v6667_v43  ;;  %v1627_v3 = vrot.slane %v8696_v1, 1 }
 0x1b4   : > { %v5919_v23 = vcombine.low %v1833_v15, %v1844_v16  ;;  %2161 = vrot.lane.b32.xlu0 %v2123_v14, %s6350_s13  ;;  %v7155_v13 = vsel %vm1600_vm6, %v1626_v58, %v1627_v3  ;;  %v8698_v14 = vshrl.u32 %v6783_v29, 16  ;;  %v8699_v16 = vshll.u32 %v6786_v40, 16 }
 0x1b5   : > { %v1858_v49 = vpop.permute.xlu1 %1857  ;;  %v1869_v61 = vpop.permute.xlu0 %1868  ;;  %8697 = vst [vmem:[#allocation35_spill] sm:$0xff] %v7155_v13  ;;  %v1633_v58 = vrot.slane %v8702_v51, 1  ;;  %v8708_v51 = vshll.u32 %v6849_v55, 16 }
 0x1b6   : > { %v2124_v56 = vmul.bf16 %v5919_v23, %v7133_v17  ;;  %v1866_v30 = vrot.slane %v1858_v49, %v6667_v43  ;;  %v1877_v9 = vrot.slane %v1869_v61, %v6667_v43  ;;  %v1629_v15 = vor.u32 %v1627_v3, %v8698_v14 }
 0x1b7   : > { %v1630_v18 = vrot.slane %v8699_v16, 1 }
 0x1b8   : > { %v5920_v5 = vcombine.low %v1855_v36, %v1866_v30  ;;  %2163 = vrot.lane.b32.xlu1 %v2124_v56, %s6350_s13  ;;  %v8701_v36 = vshrl.u32 %v6786_v40, 16 }
 0x1b9   : > { %v1880_v6 = vpop.permute.xlu1 %1879  ;;  %v1891_v7 = vpop.permute.xlu0 %1890  ;;  %v7166_v56 = vsel %vm1600_vm6, %v1629_v15, %v1630_v18  ;;  %v8705_v15 = vshll.u32 %v6832_v27, 16 }
 0x1ba   : > { %v2125_v8 = vmul.bf16 %v5920_v5, %v7144_v44  ;;  %v1888_v11 = vrot.slane %v1880_v6, %v6667_v43  ;;  %v1899_v49 = vrot.slane %v1891_v7, %v6667_v43  ;;  %8700 = vst [vmem:[#allocation36_spill] sm:$0xff] %v7166_v56  ;;  %v1632_v30 = vor.u32 %v1630_v18, %v8701_v36  ;;  %v7410_v44 = vld [vmem:[%s8506_s1 + $0x70] sm:$0xf] }
 0x1bb   : > { %v1636_v16 = vrot.slane %v8705_v15, 1  ;;  %v8707_v36 = vshrl.u32 %v6832_v27, 16  ;;  %8723 = vst [vmem:[#allocation50_spill] sm:$0xff] %v7410_v44 }
 0x1bc   : > { %v5921_v19 = vcombine.low %v1877_v9, %v1888_v11  ;;  %2165 = vrot.lane.b32.xlu0 %v2125_v8, %s6350_s13  ;;  %v7177_v9 = vsel %vm1600_vm6, %v1632_v30, %v1633_v58  ;;  %v8704_v11 = vshrl.u32 %v6804_v48, 16 }
 0x1bd   : > { %v1902_v20 = vpop.permute.xlu1 %1901  ;;  %v1913_v22 = vpop.permute.xlu0 %1912  ;;  %8703 = vst [vmem:[#allocation37_spill] sm:$0xff] %v7177_v9  ;;  %v1638_v30 = vor.u32 %v1636_v16, %v8707_v36 }
 0x1be   : > { %v2126_v23 = vmul.bf16 %v5921_v19, %v7155_v13  ;;  %v1910_v61 = vrot.slane %v1902_v20, %v6667_v43  ;;  %v1921_v7 = vrot.slane %v1913_v22, %v6667_v43  ;;  %v1635_v14 = vor.u32 %v1633_v58, %v8704_v11 }
 0x1bf   : > { %v1639_v58 = vrot.slane %v8708_v51, 1 }
 0x1c0   : > { %v5922_v1 = vcombine.low %v1899_v49, %v1910_v61  ;;  %2167 = vrot.lane.b32.xlu1 %v2126_v23, %s6350_s13  ;;  %v7188_v61 = vsel %vm1600_vm6, %v1635_v14, %v1636_v16  ;;  %v8710_v16 = vshrl.u32 %v6849_v55, 16 }
 0x1c1   : > { %v1924_v3 = vpop.permute.xlu1 %1923  ;;  %v1935_v5 = vpop.permute.xlu0 %1934  ;;  %8706 = vst [vmem:[#allocation38_spill] sm:$0xff] %v7188_v61  ;;  %v7200_v15 = vsel %vm1600_vm6, %v1638_v30, %v1639_v58 }
 0x1c2   : > { %v2127_v6 = vmul.bf16 %v5922_v1, %v7166_v56  ;;  %v1932_v8 = vrot.slane %v1924_v3, %v6667_v43  ;;  %v1943_v22 = vrot.slane %v1935_v5, %v6667_v43  ;;  %v6255_v1 = vld [vmem:[%s6621_s11 + $0x78] sm:$0xf]  ;;  %8709 = vst [vmem:[#allocation39_spill] sm:$0xff] %v7200_v15  ;;  %v7397_v56 = vld [vmem:[%s8506_s1 + $0x68] sm:$0xf] }
 0x1c3   : > { %v5911_v3 = vcombine.low %v6255_v1, %v6255_v1  ;;  %8721 = vst [vmem:[#allocation48_spill] sm:$0xff] %v7397_v56 }
 0x1c4   : > { %v5923_v18 = vcombine.low %v1921_v7, %v1932_v8  ;;  %2169 = vrot.lane.b32.xlu0 %v2127_v6, %s6350_s13 }
 0x1c5   : > { %v1946_v19 = vpop.permute.xlu1 %1945  ;;  %v1957_v20 = vpop.permute.xlu0 %1956 }
 0x1c6   : > { %v2128_v23 = vmul.bf16 %v5923_v18, %v7177_v9  ;;  %v1954_v49 = vrot.slane %v1946_v19, %v6667_v43  ;;  %v1965_v11 = vrot.slane %v1957_v20, %v6667_v43  ;;  %v1641_v18 = vor.u32 %v1639_v58, %v8710_v16  ;;  %v7391_v9 = vld [vmem:[%s8506_s1 + $0x74] sm:$0xf] }
 0x1c7   : > { %v8711_v19 = vshll.u32 %v6866_v62, 16  ;;  %v8713_v58 = vshrl.u32 %v6866_v62, 16  ;;  %8720 = vst [vmem:[#allocation47_spill] sm:$0xff] %v7391_v9 }
 0x1c8   : > { %v5924_v6 = vcombine.low %v1943_v22, %v1954_v49  ;;  %2171 = vrot.lane.b32.xlu1 %v2128_v23, %s6350_s13  ;;  %v1646_v22 = vshll.u32 %v5911_v3, 16 }
 0x1c9   : > { %v1968_v7 = vpop.permute.xlu1 %1967  ;;  %v1979_v8 = vpop.permute.xlu0 %1978  ;;  %v1642_v36 = vrot.slane %v8711_v19, 1 }
 0x1ca   : > { %v2129_v5 = vmul.bf16 %v5924_v6, %v7188_v61  ;;  %v1976_v14 = vrot.slane %v1968_v7, %v6667_v43  ;;  %v1987_v20 = vrot.slane %v1979_v8, %v6667_v43  ;;  %v1648_v16 = vrot.slane %v1646_v22, 1  ;;  %v7234_v22 = vld [vmem:[%s8506_s1 + $0xc] sm:$0xf] }
 0x1cb   : > { %v7211_v30 = vsel %vm1600_vm6, %v1641_v18, %v1642_v36  ;;  %v7215_v7 = vor.u32 %v1642_v36, %v8713_v58  ;;  %v7227_v36 = vld [vmem:[%s8506_s1] sm:$0xf]  ;;  %v7270_v58 = vld [vmem:[%s8506_s1 + $0x24] sm:$0xf] }
 0x1cc   : > { %v5925_v49 = vcombine.low %v1965_v11, %v1976_v14  ;;  %2173 = vrot.lane.b32.xlu0 %v2129_v5, %s6350_s13  ;;  %8712 = vst [vmem:[#allocation40_spill] sm:$0xff] %v7211_v30 }
 0x1cd   : > { %v1990_v23 = vpop.permute.xlu1 %1989  ;;  %v2001_v6 = vpop.permute.xlu0 %2000  ;;  %8714 = vst [vmem:[#allocation41_spill] sm:$0xff] %v7215_v7  ;;  %v1649_v18 = vsel %vm1600_vm6, %v7215_v7, %v1648_v16  ;;  %v7276_v16 = vld [vmem:[%s8506_s1 + $0x18] sm:$0xf]  ;;  %v7366_v7 = vld [vmem:[%s8506_s1 + $0x64] sm:$0xf] }
 0x1ce   : > { %v2130_v51 = vmul.bf16 %v5925_v49, %v7200_v15  ;;  %v1998_v1 = vrot.slane %v1990_v23, %v6667_v43  ;;  %v2009_v14 = vrot.slane %v2001_v6, %v6667_v43  ;;  %v7240_v23 = vld [vmem:[%s8506_s1 + $0x4] sm:$0xf]  ;;  %v7264_v6 = vld [vmem:[%s8506_s1 + $0x10] sm:$0xf]  ;;  %8717 = vst [vmem:[#allocation44_spill] sm:$0xff] %v7366_v7 }
 0x1cf   : > { %v7384_v15 = vld [vmem:[%s8506_s1 + $0x60] sm:$0xf] }
 0x1d0   : > { %v5926_v3 = vcombine.low %v1987_v20, %v1998_v1  ;;  %2175 = vrot.lane.b32.xlu1 %v2130_v51, %s6350_s13  ;;  %v7246_v51 = vld [vmem:[%s8506_s1 + $0x14] sm:$0xf]  ;;  %v7252_v20 = vld [vmem:[%s8506_s1 + $0x8] sm:$0xf]  ;;  %v7258_v1 = vld [vmem:[%s8506_s1 + $0x1c] sm:$0xf] }
 0x1d1   : > { %v2012_v5 = vpop.permute.xlu1 %2011  ;;  %8719 = vst [vmem:[#allocation46_spill] sm:$0xff] %v7384_v15 }
 0x1d2   : > { %v2131_v11 = vmul.bf16 %v5926_v3, %v7211_v30  ;;  %v2020_v8 = vrot.slane %v2012_v5, %v6667_v43  ;;  %v7282_v3 = vld [vmem:[%s8506_s1 + $0x2c] sm:$0xf]  ;;  %v7288_v5 = vld [vmem:[%s8506_s1 + $0x20] sm:$0xf] }
 0x1d3   : > { %v7378_v30 = vld [vmem:[%s8506_s1 + $0x6c] sm:$0xf] }
 0x1d4   : > { %v5927_v19 = vcombine.low %v2009_v14, %v2020_v8  ;;  %2177 = vrot.lane.b32.xlu0 %v2131_v11, %s6350_s13  ;;  %v7294_v11 = vld [vmem:[%s8506_s1 + $0x34] sm:$0xf]  ;;  %v7300_v14 = vld [vmem:[%s8506_s1 + $0x28] sm:$0xf]  ;;  %v7306_v8 = vld [vmem:[%s8506_s1 + $0x3c] sm:$0xf] }
 0x1d5   : > { %8718 = vst [vmem:[#allocation45_spill] sm:$0xff] %v7378_v30 }
 0x1d6   : > { %v2132_v49 = vmul.bf16 %v5927_v19, %v1649_v18  ;;  %v7312_v18 = vld [vmem:[%s8506_s1 + $0x30] sm:$0xf]  ;;  %v7318_v19 = vld [vmem:[%s8506_s1 + $0x44] sm:$0xf] }
 0x1d8   : > { %2219 = vperm.xlu0 %6205, %v7227_v36   ;;  %2179 = vrot.lane.b32.xlu1 %v2132_v49, %s6350_s13  ;;  %v7324_v49 = vld [vmem:[%s8506_s1 + $0x38] sm:$0xf] }
 0x1dc   : > { %2252 = vperm.xlu0 %6205, %v7234_v22   ;;  %2230 = vperm.xlu1 %6206, %v7240_v23  }
 0x1e0   : > { %2274 = vperm.xlu0 %6205, %v7246_v51   ;;  %2241 = vperm.xlu1 %6206, %v7252_v20  }
 0x1e4   : > { %2296 = vperm.xlu0 %6205, %v7258_v1   ;;  %2263 = vperm.xlu1 %6206, %v7264_v6  }
 0x1e8   : > { %2318 = vperm.xlu0 %6205, %v7270_v58   ;;  %2285 = vperm.xlu1 %6206, %v7276_v16  }
 0x1ec   : > { %2340 = vperm.xlu0 %6205, %v7282_v3   ;;  %2307 = vperm.xlu1 %6206, %v7288_v5  }
 0x1f0   : > { %2362 = vperm.xlu0 %6205, %v7294_v11   ;;  %2329 = vperm.xlu1 %6206, %v7300_v14  }
 0x1f4   : > { %2384 = vperm.xlu0 %6205, %v7306_v8   ;;  %2351 = vperm.xlu1 %6206, %v7312_v18  }
 0x1f8   : > { %2406 = vperm.xlu0 %6205, %v7318_v19   ;;  %2373 = vperm.xlu1 %6206, %v7324_v49  }
 0x1fc   : > { %2428 = vperm.xlu0 %6205, %v7330_v45   ;;  %2395 = vperm.xlu1 %6206, %v7336_v25  }
 0x200   : > { %2450 = vperm.xlu0 %6205, %v7342_v0   ;;  %2417 = vperm.xlu1 %6206, %v7348_v37  }
 0x204   : > { %2472 = vperm.xlu0 %6205, %v7354_v38   ;;  %2439 = vperm.xlu1 %6206, %v7360_v33  }
 0x208   : > { %2494 = vperm.xlu0 %6205, %v7366_v7   ;;  %2461 = vperm.xlu1 %6206, %v7372_v26   ;;  %v8725_v7 = vld [vmem:[#allocation13_spill] sm:$0xff] }
 0x20c   : > { %2516 = vperm.xlu0 %6205, %v7378_v30   ;;  %2483 = vperm.xlu1 %6206, %v7384_v15   ;;  %v8726_v15 = vld [vmem:[#allocation15_spill] sm:$0xff] }
 0x20e   : > { %v2150_v61 = vpop.permute.xlu0 %2149 }
 0x20f   : > { %2198 = vst.msk [vmem:[#allocation2] sm:$0xff] %vm2197_vm9, %v2150_v61  ;;  %v7404_v61 = vld [vmem:[%s8506_s1 + $0x7c] sm:$0xf] }
 0x210   : > { %2538 = vperm.xlu0 %6205, %v7391_v9   ;;  %2505 = vperm.xlu1 %6206, %v7397_v56   ;;  %8722 = vst [vmem:[#allocation49_spill] sm:$0xff] %v7404_v61 }
 0x212   : > { %v2152_v13 = vpop.permute.xlu1 %2151 }
 0x213   : > { %2199 = vst.msk [vmem:[#allocation2 + $0x8] sm:$0xff] %vm2197_vm9, %v2152_v13  ;;  %v7417_v13 = vld [vmem:[%s8506_s1 + $0x78] sm:$0xf] }
 0x214   : > { %2560 = vperm.xlu0 %6205, %v7404_v61   ;;  %2527 = vperm.xlu1 %6206, %v7410_v44   ;;  %8724 = vst [vmem:[#allocation51_spill] sm:$0xff] %v7417_v13 }
 0x216   : > { %v2154_v17 = vpop.permute.xlu0 %2153 }
 0x217   : > { %2200 = vst.msk [vmem:[#allocation2 + $0x10] sm:$0xff] %vm2197_vm9, %v2154_v17 }
 0x218   : > { %2549 = vperm.xlu1 %6206, %v7417_v13  }
 0x21a   : > { %v2156_v4 = vpop.permute.xlu1 %2155 }
 0x21b   : > { %2201 = vst.msk [vmem:[#allocation2 + $0x18] sm:$0xff] %vm2197_vm9, %v2156_v4 }
 0x21e   : > { %v2158_v24 = vpop.permute.xlu0 %2157 }
 0x21f   : > { %2202 = vst.msk [vmem:[#allocation2 + $0x20] sm:$0xff] %vm2197_vm9, %v2158_v24  ;;  %v6351_v24 = vmov 5  }
 0x220   : > { %6207 = vset.pattern.permute.xlu1 %v6351_v24  ;;  %6208 = vset.pattern.permute.xlu0 %v6351_v24 }
 0x222   : > { %v2160_v12 = vpop.permute.xlu1 %2159 }
 0x223   : > { %2203 = vst.msk [vmem:[#allocation2 + $0x28] sm:$0xff] %vm2197_vm9, %v2160_v12 }
 0x226   : > { %v2162_v47 = vpop.permute.xlu0 %2161 }
 0x227   : > { %2204 = vst.msk [vmem:[#allocation2 + $0x30] sm:$0xff] %vm2197_vm9, %v2162_v47 }
 0x22a   : > { %v2164_v17 = vpop.permute.xlu1 %2163 }
 0x22b   : > { %2205 = vst.msk [vmem:[#allocation2 + $0x38] sm:$0xff] %vm2197_vm9, %v2164_v17 }
 0x22e   : > { %v2166_v21 = vpop.permute.xlu0 %2165 }
 0x22f   : > { %2206 = vst.msk [vmem:[#allocation2 + $0x40] sm:$0xff] %vm2197_vm9, %v2166_v21 }
 0x232   : > { %v2168_v10 = vpop.permute.xlu1 %2167 }
 0x233   : > { %2207 = vst.msk [vmem:[#allocation2 + $0x48] sm:$0xff] %vm2197_vm9, %v2168_v10 }
 0x236   : > { %v2170_v61 = vpop.permute.xlu0 %2169 }
 0x237   : > { %2208 = vst.msk [vmem:[#allocation2 + $0x50] sm:$0xff] %vm2197_vm9, %v2170_v61 }
 0x23a   : > { %v2172_v4 = vpop.permute.xlu1 %2171 }
 0x23b   : > { %2209 = vst.msk [vmem:[#allocation2 + $0x58] sm:$0xff] %vm2197_vm9, %v2172_v4 }
 0x23e   : > { %v2174_v12 = vpop.permute.xlu0 %2173 }
 0x23f   : > { %2210 = vst.msk [vmem:[#allocation2 + $0x60] sm:$0xff] %vm2197_vm9, %v2174_v12 }
 0x242   : > { %v2176_v47 = vpop.permute.xlu1 %2175 }
 0x243   : > { %2211 = vst.msk [vmem:[#allocation2 + $0x68] sm:$0xff] %vm2197_vm9, %v2176_v47 }
 0x246   : > { %v2178_v17 = vpop.permute.xlu0 %2177 }
 0x247   : > { %2212 = vst.msk [vmem:[#allocation2 + $0x70] sm:$0xff] %vm2197_vm9, %v2178_v17 }
 0x24a   : > { %v2180_v21 = vpop.permute.xlu1 %2179 }
 0x24b   : > { %2213 = vst.msk [vmem:[#allocation2 + $0x78] sm:$0xff] %vm2197_vm9, %v2180_v21 }
 0x257   : > { %v2220_v10 = vpop.permute.xlu0 %2219 }
 0x258   : > { %v2228_v61 = vrot.slane %v2220_v10, %v6667_v43 }
 0x25b   : > { %v2253_v9 = vpop.permute.xlu0 %2252  ;;  %v2231_v4 = vpop.permute.xlu1 %2230 }
 0x25c   : > { %v2239_v13 = vrot.slane %v2231_v4, %v6667_v43  ;;  %v2261_v12 = vrot.slane %v2253_v9, %v6667_v43 }
 0x25e   : > { %v5928_v24 = vcombine.low %v2228_v61, %v2239_v13 }
 0x25f   : > { %v2275_v30 = vpop.permute.xlu0 %2274  ;;  %v2242_v44 = vpop.permute.xlu1 %2241 }
 0x260   : > { %v2666_v47 = vmul.bf16 %v5928_v24, %v8725_v7  ;;  %v2250_v56 = vrot.slane %v2242_v44, %v6667_v43  ;;  %v2283_v10 = vrot.slane %v2275_v30, %v6667_v43  ;;  %v8727_v44 = vld [vmem:[#allocation17_spill] sm:$0xff] }
 0x262   : > { %v5929_v17 = vcombine.low %v2250_v56, %v2261_v12  ;;  %2698 = vrot.lane.b32.xlu1 %v2666_v47, %s6352_s17 }
 0x263   : > { %v2297_v21 = vpop.permute.xlu0 %2296  ;;  %v2264_v38 = vpop.permute.xlu1 %2263 }
 0x264   : > { %v2667_v0 = vmul.bf16 %v5929_v17, %v8726_v15  ;;  %v2272_v13 = vrot.slane %v2264_v38, %v6667_v43  ;;  %v2305_v24 = vrot.slane %v2297_v21, %v6667_v43  ;;  %v8728_v17 = vld [vmem:[#allocation18_spill] sm:$0xff] }
 0x266   : > { %v5930_v61 = vcombine.low %v2272_v13, %v2283_v10  ;;  %2700 = vrot.lane.b32.xlu0 %v2667_v0, %s6352_s17 }
 0x267   : > { %v2319_v9 = vpop.permute.xlu0 %2318  ;;  %v2286_v4 = vpop.permute.xlu1 %2285 }
 0x268   : > { %v2668_v56 = vmul.bf16 %v5930_v61, %v8727_v44  ;;  %v2294_v12 = vrot.slane %v2286_v4, %v6667_v43  ;;  %v2327_v15 = vrot.slane %v2319_v9, %v6667_v43  ;;  %v8729_v44 = vld [vmem:[#allocation19_spill] sm:$0xff] }
 0x26a   : > { %v5931_v47 = vcombine.low %v2294_v12, %v2305_v24  ;;  %2702 = vrot.lane.b32.xlu1 %v2668_v56, %s6352_s17 }
 0x26b   : > { %v2341_v7 = vpop.permute.xlu0 %2340  ;;  %v2308_v30 = vpop.permute.xlu1 %2307 }
 0x26c   : > { %v2669_v38 = vmul.bf16 %v5931_v47, %v8728_v17  ;;  %v2316_v10 = vrot.slane %v2308_v30, %v6667_v43  ;;  %v2349_v61 = vrot.slane %v2341_v7, %v6667_v43  ;;  %v8730_v17 = vld [vmem:[#allocation21_spill] sm:$0xff] }
 0x26e   : > { %v5932_v0 = vcombine.low %v2316_v10, %v2327_v15  ;;  %2704 = vrot.lane.b32.xlu0 %v2669_v38, %s6352_s17 }
 0x26f   : > { %v2363_v13 = vpop.permute.xlu0 %2362  ;;  %v2330_v21 = vpop.permute.xlu1 %2329 }
 0x270   : > { %v2670_v4 = vmul.bf16 %v5932_v0, %v8729_v44  ;;  %v2338_v24 = vrot.slane %v2330_v21, %v6667_v43  ;;  %v2371_v47 = vrot.slane %v2363_v13, %v6667_v43  ;;  %v8731_v44 = vld [vmem:[#allocation23_spill] sm:$0xff] }
 0x272   : > { %v5933_v56 = vcombine.low %v2338_v24, %v2349_v61  ;;  %2706 = vrot.lane.b32.xlu1 %v2670_v4, %s6352_s17 }
 0x273   : > { %v2385_v12 = vpop.permute.xlu0 %2384  ;;  %v2352_v9 = vpop.permute.xlu1 %2351 }
 0x274   : > { %v2671_v30 = vmul.bf16 %v5933_v56, %v8730_v17  ;;  %v2360_v15 = vrot.slane %v2352_v9, %v6667_v43  ;;  %v2393_v0 = vrot.slane %v2385_v12, %v6667_v43  ;;  %v8732_v17 = vld [vmem:[#allocation25_spill] sm:$0xff] }
 0x276   : > { %v5934_v38 = vcombine.low %v2360_v15, %v2371_v47  ;;  %2708 = vrot.lane.b32.xlu0 %v2671_v30, %s6352_s17 }
 0x277   : > { %v2407_v10 = vpop.permute.xlu0 %2406  ;;  %v2374_v7 = vpop.permute.xlu1 %2373 }
 0x278   : > { %v2672_v21 = vmul.bf16 %v5934_v38, %v8731_v44  ;;  %v2382_v61 = vrot.slane %v2374_v7, %v6667_v43  ;;  %v2415_v56 = vrot.slane %v2407_v10, %v6667_v43 }
 0x27a   : > { %v5935_v4 = vcombine.low %v2382_v61, %v2393_v0  ;;  %2710 = vrot.lane.b32.xlu1 %v2672_v21, %s6352_s17 }
 0x27b   : > { %v2429_v24 = vpop.permute.xlu0 %2428  ;;  %v2396_v13 = vpop.permute.xlu1 %2395 }
 0x27c   : > { %v2673_v9 = vmul.bf16 %v5935_v4, %v8732_v17  ;;  %v2404_v47 = vrot.slane %v2396_v13, %v6667_v43  ;;  %v2437_v38 = vrot.slane %v2429_v24, %v6667_v43 }
 0x27e   : > { %v5936_v30 = vcombine.low %v2404_v47, %v2415_v56  ;;  %2712 = vrot.lane.b32.xlu0 %v2673_v9, %s6352_s17 }
 0x27f   : > { %v2451_v15 = vpop.permute.xlu0 %2450  ;;  %v2418_v12 = vpop.permute.xlu1 %2417 }
 0x280   : > { %v2674_v7 = vmul.bf16 %v5936_v30, %v6828_v2  ;;  %v2426_v0 = vrot.slane %v2418_v12, %v6667_v43  ;;  %v2459_v61 = vrot.slane %v2451_v15, %v6667_v43 }
 0x282   : > { %v5937_v44 = vcombine.low %v2426_v0, %v2437_v38  ;;  %2714 = vrot.lane.b32.xlu1 %v2674_v7, %s6352_s17 }
 0x283   : > { %v2473_v21 = vpop.permute.xlu0 %2472  ;;  %v2440_v10 = vpop.permute.xlu1 %2439 }
 0x284   : > { %v2675_v4 = vmul.bf16 %v5937_v44, %v6846_v34  ;;  %v2448_v13 = vrot.slane %v2440_v10, %v6667_v43  ;;  %v2481_v2 = vrot.slane %v2473_v21, %v6667_v43 }
 0x286   : > { %v5938_v56 = vcombine.low %v2448_v13, %v2459_v61  ;;  %2716 = vrot.lane.b32.xlu0 %v2675_v4, %s6352_s17  ;;  %v8733_v4 = vshrl.u32 %v6918_v46, 16 }
 0x287   : > { %v2495_v17 = vpop.permute.xlu0 %2494  ;;  %v2462_v24 = vpop.permute.xlu1 %2461 }
 0x288   : > { %v2676_v9 = vmul.bf16 %v5938_v56, %v6854_v28  ;;  %v2470_v47 = vrot.slane %v2462_v24, %v6667_v43  ;;  %v2503_v34 = vrot.slane %v2495_v17, %v6667_v43  ;;  %v2214_v13 = vrot.slane %v8733_v4, 7 }
 0x28a   : > { %v5939_v30 = vcombine.low %v2470_v47, %v2481_v2  ;;  %2718 = vrot.lane.b32.xlu1 %v2676_v9, %s6352_s17  ;;  %v8734_v47 = vshll.u32 %v6918_v46, 16 }
 0x28b   : > { %v2517_v12 = vpop.permute.xlu0 %2516  ;;  %v2484_v15 = vpop.permute.xlu1 %2483 }
 0x28c   : > { %v2677_v38 = vmul.bf16 %v5939_v30, %v6872_v41  ;;  %v2492_v7 = vrot.slane %v2484_v15, %v6667_v43  ;;  %v2525_v28 = vrot.slane %v2517_v12, %v6667_v43  ;;  %v2215_v30 = vor.u32 %v2214_v13, %v8734_v47  ;;  %v8737_v13 = vld [vmem:[#allocation43_spill] sm:$0xff] }
 0x28d   : > { %v8742_v47 = vld [vmem:[#allocation51_spill] sm:$0xff] }
 0x28e   : > { %v5940_v0 = vcombine.low %v2492_v7, %v2503_v34  ;;  %2720 = vrot.lane.b32.xlu0 %v2677_v38, %s6352_s17  ;;  %v2216_v7 = vsel %vm378_vm0, %v6892_v32, %v2215_v30  ;;  %v8743_v30 = vld [vmem:[#allocation47_spill] sm:$0xff]  ;;  %vm5161_vm0 = vcmask 294144  }
 0x28f   : > { %v2539_v44 = vpop.permute.xlu0 %2538  ;;  %v2506_v21 = vpop.permute.xlu1 %2505 }
 0x290   : > { %v2678_v10 = vmul.bf16 %v5940_v0, %v6886_v63  ;;  %v2514_v61 = vrot.slane %v2506_v21, %v6667_v43  ;;  %v2547_v17 = vrot.slane %v2539_v44, %v6667_v43 }
 0x292   : > { %v5941_v56 = vcombine.low %v2514_v61, %v2525_v28  ;;  %2722 = vrot.lane.b32.xlu1 %v2678_v10, %s6352_s17  ;;  %v8735_v61 = vld [vmem:[#allocation42_spill] sm:$0xff] }
 0x293   : > { %v2528_v41 = vpop.permute.xlu1 %2527  ;;  %v2561_v9 = vpop.permute.xlu0 %2560 }
 0x294   : > { %v2679_v24 = vmul.bf16 %v5941_v56, %v6900_v50  ;;  %v2536_v2 = vrot.slane %v2528_v41, %v6667_v43  ;;  %v2569_v15 = vrot.slane %v2561_v9, %v6667_v43  ;;  %v8738_v41 = vld [vmem:[#allocation48_spill] sm:$0xff] }
 0x296   : > { %v5942_v63 = vcombine.low %v2536_v2, %v2547_v17  ;;  %2724 = vrot.lane.b32.xlu0 %v2679_v24, %s6352_s17  ;;  %v8739_v17 = vld [vmem:[#allocation44_spill] sm:$0xff]  ;;  %v8741_v2 = vld [vmem:[#allocation45_spill] sm:$0xff] }
 0x297   : > { %v2550_v12 = vpop.permute.xlu1 %2549 }
 0x298   : > { %v2680_v34 = vmul.bf16 %v5942_v63, %v6910_v35  ;;  %v2558_v38 = vrot.slane %v2550_v12, %v6667_v43  ;;  %v8744_v12 = vld [vmem:[#allocation49_spill] sm:$0xff] }
 0x29a   : > { %v5943_v50 = vcombine.low %v2558_v38, %v2569_v15  ;;  %2726 = vrot.lane.b32.xlu1 %v2680_v34, %s6352_s17  ;;  %v8598_v34 = vmov 6  }
 0x29c   : > { %v2681_v0 = vmul.bf16 %v5943_v50, %v2216_v7 }
 0x29e   : > { %2728 = vrot.lane.b32.xlu0 %v2681_v0, %s6352_s17  ;;  %2763 = vrot.lane.b32.xlu1 %v6636_v39, %s6353_s18  ;;  %v8750_v39 = vld [vmem:[#allocation32_spill] sm:$0xff] }
 0x2a2   : > { %2765 = vrot.lane.b32.xlu0 %v6650_v53, %s6353_s18  ;;  %2767 = vrot.lane.b32.xlu1 %v6656_v60, %s6353_s18 }
 0x2a6   : > { %2769 = vrot.lane.b32.xlu0 %v6665_v42, %s6353_s18  ;;  %2771 = vrot.lane.b32.xlu1 %v6697_v57, %s6353_s18 }
 0x2aa   : > { %2773 = vrot.lane.b32.xlu0 %v6700_v31, %s6353_s18  ;;  %2775 = vrot.lane.b32.xlu1 %v6718_v54, %s6353_s18  ;;  %v6317_v54 = vld [vmem:[%s6621_s11 + $0x28] sm:$0xf] }
 0x2ae   : > { %2777 = vrot.lane.b32.xlu0 %v6747_v59, %s6353_s18  ;;  %2779 = vrot.lane.b32.xlu1 %v6764_v52, %s6353_s18 }
 0x2b2   : > { %2781 = vrot.lane.b32.xlu0 %v6783_v29, %s6353_s18  ;;  %2783 = vrot.lane.b32.xlu1 %v6786_v40, %s6353_s18 }
 0x2b6   : > { %2785 = vrot.lane.b32.xlu0 %v6804_v48, %s6353_s18  ;;  %2787 = vrot.lane.b32.xlu1 %v6832_v27, %s6353_s18  ;;  %v8754_v27 = vld [vmem:[#allocation36_spill] sm:$0xff]  ;;  %v8756_v48 = vld [vmem:[#allocation38_spill] sm:$0xff] }
 0x2ba   : > { %2789 = vrot.lane.b32.xlu0 %v6849_v55, %s6353_s18  ;;  %2791 = vrot.lane.b32.xlu1 %v6866_v62, %s6353_s18  ;;  %v8752_v62 = vld [vmem:[#allocation34_spill] sm:$0xff]  ;;  %v8753_v55 = vld [vmem:[#allocation35_spill] sm:$0xff] }
 0x2be   : > { %2793 = vrot.lane.b32.xlu0 %v6918_v46, %s6353_s18  ;;  %2838 = vperm.xlu1 %6207, %v7227_v36   ;;  %v8751_v46 = vld [vmem:[#allocation33_spill] sm:$0xff] }
 0x2c2   : > { %2849 = vperm.xlu0 %6208, %v7240_v23   ;;  %2860 = vperm.xlu1 %6207, %v7252_v20  }
 0x2c6   : > { %2882 = vperm.xlu0 %6208, %v7264_v6   ;;  %2871 = vperm.xlu1 %6207, %v7234_v22  }
 0x2ca   : > { %2904 = vperm.xlu0 %6208, %v7276_v16   ;;  %2893 = vperm.xlu1 %6207, %v7246_v51  }
 0x2ce   : > { %2926 = vperm.xlu0 %6208, %v7288_v5   ;;  %2915 = vperm.xlu1 %6207, %v7258_v1  }
 0x2d2   : > { %2948 = vperm.xlu0 %6208, %v7300_v14   ;;  %2937 = vperm.xlu1 %6207, %v7270_v58  }
 0x2d4   : > { %v2699_v32 = vpop.permute.xlu1 %2698 }
 0x2d5   : > { %2747 = vst.msk [vmem:[#allocation2] sm:$0xff] %vm2746_vm10, %v2699_v32 }
 0x2d6   : > { %2970 = vperm.xlu0 %6208, %v7312_v18   ;;  %2959 = vperm.xlu1 %6207, %v7282_v3  }
 0x2d8   : > { %v2701_v35 = vpop.permute.xlu0 %2700 }
 0x2d9   : > { %2748 = vst.msk [vmem:[#allocation2 + $0x8] sm:$0xff] %vm2746_vm10, %v2701_v35 }
 0x2da   : > { %2992 = vperm.xlu0 %6208, %v7324_v49   ;;  %2981 = vperm.xlu1 %6207, %v7294_v11  }
 0x2dc   : > { %v2703_v44 = vpop.permute.xlu1 %2702 }
 0x2dd   : > { %2749 = vst.msk [vmem:[#allocation2 + $0x10] sm:$0xff] %vm2746_vm10, %v2703_v44 }
 0x2de   : > { %3014 = vperm.xlu0 %6208, %v7336_v25   ;;  %3003 = vperm.xlu1 %6207, %v7306_v8  }
 0x2e0   : > { %v2705_v21 = vpop.permute.xlu0 %2704 }
 0x2e1   : > { %2750 = vst.msk [vmem:[#allocation2 + $0x18] sm:$0xff] %vm2746_vm10, %v2705_v21 }
 0x2e2   : > { %3036 = vperm.xlu0 %6208, %v7348_v37   ;;  %3025 = vperm.xlu1 %6207, %v7318_v19   ;;  %v8736_v37 = vld [vmem:[#allocation46_spill] sm:$0xff] }
 0x2e4   : > { %v2707_v28 = vpop.permute.xlu1 %2706 }
 0x2e5   : > { %2751 = vst.msk [vmem:[#allocation2 + $0x20] sm:$0xff] %vm2746_vm10, %v2707_v28 }
 0x2e6   : > { %3058 = vperm.xlu0 %6208, %v7360_v33   ;;  %3047 = vperm.xlu1 %6207, %v7330_v45  }
 0x2e8   : > { %v2709_v10 = vpop.permute.xlu0 %2708 }
 0x2e9   : > { %2752 = vst.msk [vmem:[#allocation2 + $0x28] sm:$0xff] %vm2746_vm10, %v2709_v10 }
 0x2ea   : > { %3080 = vperm.xlu0 %6208, %v7372_v26   ;;  %3069 = vperm.xlu1 %6207, %v8735_v61   ;;  %v8740_v26 = vld [vmem:[#allocation50_spill] sm:$0xff] }
 0x2ec   : > { %v2711_v4 = vpop.permute.xlu1 %2710 }
 0x2ed   : > { %2753 = vst.msk [vmem:[#allocation2 + $0x30] sm:$0xff] %vm2746_vm10, %v2711_v4 }
 0x2ee   : > { %3102 = vperm.xlu0 %6208, %v8736_v37   ;;  %3091 = vperm.xlu1 %6207, %v8737_v13  }
 0x2f0   : > { %v2713_v56 = vpop.permute.xlu0 %2712 }
 0x2f1   : > { %2754 = vst.msk [vmem:[#allocation2 + $0x38] sm:$0xff] %vm2746_vm10, %v2713_v56 }
 0x2f2   : > { %3124 = vperm.xlu0 %6208, %v8738_v41   ;;  %3113 = vperm.xlu1 %6207, %v8739_v17  }
 0x2f4   : > { %v2715_v24 = vpop.permute.xlu1 %2714 }
 0x2f5   : > { %2755 = vst.msk [vmem:[#allocation2 + $0x40] sm:$0xff] %vm2746_vm10, %v2715_v24 }
 0x2f6   : > { %3146 = vperm.xlu0 %6208, %v8740_v26   ;;  %3135 = vperm.xlu1 %6207, %v8741_v2  }
 0x2f8   : > { %v2717_v9 = vpop.permute.xlu0 %2716 }
 0x2f9   : > { %2756 = vst.msk [vmem:[#allocation2 + $0x48] sm:$0xff] %vm2746_vm10, %v2717_v9 }
 0x2fa   : > { %3168 = vperm.xlu0 %6208, %v8742_v47   ;;  %3157 = vperm.xlu1 %6207, %v8743_v30  }
 0x2fc   : > { %v2719_v63 = vpop.permute.xlu1 %2718 }
 0x2fd   : > { %2757 = vst.msk [vmem:[#allocation2 + $0x50] sm:$0xff] %vm2746_vm10, %v2719_v63 }
 0x2fe   : > { %3179 = vperm.xlu1 %6207, %v8744_v12   ;;  %6209 = vset.pattern.permute.xlu0 %v8598_v34 }
 0x300   : > { %v2721_v15 = vpop.permute.xlu0 %2720 }
 0x301   : > { %2758 = vst.msk [vmem:[#allocation2 + $0x58] sm:$0xff] %vm2746_vm10, %v2721_v15 }
 0x302   : > { %6210 = vset.pattern.permute.xlu1 %v8598_v34  ;;  %v8749_v34 = vld [vmem:[#allocation31_spill] sm:$0xff] }
 0x304   : > { %v2723_v38 = vpop.permute.xlu1 %2722 }
 0x305   : > { %2759 = vst.msk [vmem:[#allocation2 + $0x60] sm:$0xff] %vm2746_vm10, %v2723_v38 }
 0x308   : > { %v2725_v7 = vpop.permute.xlu0 %2724 }
 0x309   : > { %2760 = vst.msk [vmem:[#allocation2 + $0x68] sm:$0xff] %vm2746_vm10, %v2725_v7 }
 0x30c   : > { %v2727_v50 = vpop.permute.xlu1 %2726 }
 0x30d   : > { %2761 = vst.msk [vmem:[#allocation2 + $0x70] sm:$0xff] %vm2746_vm10, %v2727_v50 }
 0x310   : > { %v2729_v0 = vpop.permute.xlu0 %2728  ;;  %v2764_v32 = vpop.permute.xlu1 %2763 }
 0x311   : > { %2762 = vst.msk [vmem:[#allocation2 + $0x78] sm:$0xff] %vm2746_vm10, %v2729_v0 }
 0x312   : > { %2812 = vst.msk [vmem:[#allocation2] sm:$0xff] %vm2811_vm11, %v2764_v32 }
 0x314   : > { %v2768_v35 = vpop.permute.xlu1 %2767  ;;  %v2766_v44 = vpop.permute.xlu0 %2765 }
 0x315   : > { %2814 = vst.msk [vmem:[#allocation2 + $0x10] sm:$0xff] %vm2811_vm11, %v2768_v35  ;;  %2813 = vst.msk [vmem:[#allocation2 + $0x8] sm:$0xff] %vm2811_vm11, %v2766_v44 }
 0x318   : > { %v2772_v21 = vpop.permute.xlu1 %2771  ;;  %v2770_v28 = vpop.permute.xlu0 %2769 }
 0x319   : > { %2816 = vst.msk [vmem:[#allocation2 + $0x20] sm:$0xff] %vm2811_vm11, %v2772_v21  ;;  %2815 = vst.msk [vmem:[#allocation2 + $0x18] sm:$0xff] %vm2811_vm11, %v2770_v28 }
 0x31c   : > { %v2776_v10 = vpop.permute.xlu1 %2775  ;;  %v2774_v4 = vpop.permute.xlu0 %2773 }
 0x31d   : > { %2818 = vst.msk [vmem:[#allocation2 + $0x30] sm:$0xff] %vm2811_vm11, %v2776_v10  ;;  %2817 = vst.msk [vmem:[#allocation2 + $0x28] sm:$0xff] %vm2811_vm11, %v2774_v4  ;;  %v8745_v4 = vld [vmem:[#allocation7_spill] sm:$0xff] }
 0x320   : > { %v2780_v56 = vpop.permute.xlu1 %2779  ;;  %v2778_v41 = vpop.permute.xlu0 %2777 }
 0x321   : > { %2820 = vst.msk [vmem:[#allocation2 + $0x40] sm:$0xff] %vm2811_vm11, %v2780_v56  ;;  %2819 = vst.msk [vmem:[#allocation2 + $0x38] sm:$0xff] %vm2811_vm11, %v2778_v41 }
 0x324   : > { %v2784_v24 = vpop.permute.xlu1 %2783  ;;  %v2782_v9 = vpop.permute.xlu0 %2781 }
 0x325   : > { %2822 = vst.msk [vmem:[#allocation2 + $0x50] sm:$0xff] %vm2811_vm11, %v2784_v24  ;;  %2821 = vst.msk [vmem:[#allocation2 + $0x48] sm:$0xff] %vm2811_vm11, %v2782_v9 }
 0x328   : > { %v2788_v47 = vpop.permute.xlu1 %2787  ;;  %v2786_v63 = vpop.permute.xlu0 %2785 }
 0x329   : > { %2824 = vst.msk [vmem:[#allocation2 + $0x60] sm:$0xff] %vm2811_vm11, %v2788_v47  ;;  %2823 = vst.msk [vmem:[#allocation2 + $0x58] sm:$0xff] %vm2811_vm11, %v2786_v63 }
 0x32c   : > { %v2792_v15 = vpop.permute.xlu1 %2791  ;;  %v2790_v38 = vpop.permute.xlu0 %2789 }
 0x32d   : > { %2826 = vst.msk [vmem:[#allocation2 + $0x70] sm:$0xff] %vm2811_vm11, %v2792_v15  ;;  %2825 = vst.msk [vmem:[#allocation2 + $0x68] sm:$0xff] %vm2811_vm11, %v2790_v38  ;;  %v8746_v38 = vld [vmem:[#allocation10_spill] sm:$0xff] }
 0x330   : > { %v2794_v7 = vpop.permute.xlu0 %2793 }
 0x331   : > { %2827 = vst.msk [vmem:[#allocation2 + $0x78] sm:$0xff] %vm2811_vm11, %v2794_v7 }
 0x33d   : > { %v2839_v50 = vpop.permute.xlu1 %2838 }
 0x33e   : > { %v2847_v35 = vrot.slane %v2839_v50, %v6667_v43 }
 0x341   : > { %v2850_v0 = vpop.permute.xlu0 %2849  ;;  %v2861_v32 = vpop.permute.xlu1 %2860 }
 0x342   : > { %v2858_v44 = vrot.slane %v2850_v0, %v6667_v43  ;;  %v2869_v41 = vrot.slane %v2861_v32, %v6667_v43 }
 0x344   : > { %v5945_v21 = vcombine.low %v2847_v35, %v2858_v44 }
 0x345   : > { %v2883_v28 = vpop.permute.xlu0 %2882  ;;  %v2872_v10 = vpop.permute.xlu1 %2871 }
 0x346   : > { %v3285_v56 = vmul.bf16 %v5945_v21, %v8745_v4  ;;  %v2880_v24 = vrot.slane %v2872_v10, %v6667_v43  ;;  %v2891_v15 = vrot.slane %v2883_v28, %v6667_v43  ;;  %v8747_v21 = vld [vmem:[#allocation9_spill] sm:$0xff] }
 0x348   : > { %v5946_v9 = vcombine.low %v2869_v41, %v2880_v24  ;;  %3317 = vrot.lane.b32.xlu0 %v3285_v56, %s6355_s19 }
 0x349   : > { %v2905_v47 = vpop.permute.xlu0 %2904  ;;  %v2894_v63 = vpop.permute.xlu1 %2893 }
 0x34a   : > { %v3286_v7 = vmul.bf16 %v5946_v9, %v8746_v38  ;;  %v2902_v50 = vrot.slane %v2894_v63, %v6667_v43  ;;  %v2913_v32 = vrot.slane %v2905_v47, %v6667_v43  ;;  %v8748_v9 = vld [vmem:[#allocation30_spill] sm:$0xff] }
 0x34c   : > { %v5947_v0 = vcombine.low %v2891_v15, %v2902_v50  ;;  %3319 = vrot.lane.b32.xlu1 %v3286_v7, %s6355_s19 }
 0x34d   : > { %v2927_v35 = vpop.permute.xlu0 %2926  ;;  %v2916_v44 = vpop.permute.xlu1 %2915 }
 0x34e   : > { %v3287_v10 = vmul.bf16 %v5947_v0, %v8747_v21  ;;  %v2924_v4 = vrot.slane %v2916_v44, %v6667_v43  ;;  %v2935_v24 = vrot.slane %v2927_v35, %v6667_v43 }
 0x350   : > { %v5948_v56 = vcombine.low %v2913_v32, %v2924_v4  ;;  %3321 = vrot.lane.b32.xlu0 %v3287_v10, %s6355_s19 }
 0x351   : > { %v2949_v41 = vpop.permute.xlu0 %2948  ;;  %v2938_v28 = vpop.permute.xlu1 %2937 }
 0x352   : > { %v3288_v63 = vmul.bf16 %v5948_v56, %v8748_v9  ;;  %v2946_v15 = vrot.slane %v2938_v28, %v6667_v43  ;;  %v2957_v0 = vrot.slane %v2949_v41, %v6667_v43 }
 0x354   : > { %v5949_v7 = vcombine.low %v2935_v24, %v2946_v15  ;;  %3323 = vrot.lane.b32.xlu1 %v3288_v63, %s6355_s19 }
 0x355   : > { %v2971_v50 = vpop.permute.xlu0 %2970  ;;  %v2960_v47 = vpop.permute.xlu1 %2959 }
 0x356   : > { %v3289_v44 = vmul.bf16 %v5949_v7, %v8749_v34  ;;  %v2968_v32 = vrot.slane %v2960_v47, %v6667_v43  ;;  %v2979_v56 = vrot.slane %v2971_v50, %v6667_v43 }
 0x358   : > { %v5950_v10 = vcombine.low %v2957_v0, %v2968_v32  ;;  %3325 = vrot.lane.b32.xlu0 %v3289_v44, %s6355_s19 }
 0x359   : > { %v2993_v4 = vpop.permute.xlu0 %2992  ;;  %v2982_v35 = vpop.permute.xlu1 %2981 }
 0x35a   : > { %v3290_v28 = vmul.bf16 %v5950_v10, %v8750_v39  ;;  %v2990_v24 = vrot.slane %v2982_v35, %v6667_v43  ;;  %v3001_v7 = vrot.slane %v2993_v4, %v6667_v43 }
 0x35c   : > { %v5951_v63 = vcombine.low %v2979_v56, %v2990_v24  ;;  %3327 = vrot.lane.b32.xlu1 %v3290_v28, %s6355_s19 }
 0x35d   : > { %v3015_v15 = vpop.permute.xlu0 %3014  ;;  %v3004_v41 = vpop.permute.xlu1 %3003 }
 0x35e   : > { %v3291_v47 = vmul.bf16 %v5951_v63, %v8751_v46  ;;  %v3012_v0 = vrot.slane %v3004_v41, %v6667_v43  ;;  %v3023_v10 = vrot.slane %v3015_v15, %v6667_v43 }
 0x360   : > { %v5952_v44 = vcombine.low %v3001_v7, %v3012_v0  ;;  %3329 = vrot.lane.b32.xlu0 %v3291_v47, %s6355_s19 }
 0x361   : > { %v3037_v32 = vpop.permute.xlu0 %3036  ;;  %v3026_v50 = vpop.permute.xlu1 %3025 }
 0x362   : > { %v3292_v35 = vmul.bf16 %v5952_v44, %v8752_v62  ;;  %v3034_v56 = vrot.slane %v3026_v50, %v6667_v43  ;;  %v3045_v63 = vrot.slane %v3037_v32, %v6667_v43 }
 0x364   : > { %v5953_v28 = vcombine.low %v3023_v10, %v3034_v56  ;;  %3331 = vrot.lane.b32.xlu1 %v3292_v35, %s6355_s19 }
 0x365   : > { %v3059_v24 = vpop.permute.xlu0 %3058  ;;  %v3048_v4 = vpop.permute.xlu1 %3047 }
 0x366   : > { %v3293_v41 = vmul.bf16 %v5953_v28, %v8753_v55  ;;  %v3056_v7 = vrot.slane %v3048_v4, %v6667_v43  ;;  %v3067_v44 = vrot.slane %v3059_v24, %v6667_v43  ;;  %v8755_v4 = vld [vmem:[#allocation37_spill] sm:$0xff] }
 0x368   : > { %v5954_v47 = vcombine.low %v3045_v63, %v3056_v7  ;;  %3333 = vrot.lane.b32.xlu0 %v3293_v41, %s6355_s19 }
 0x369   : > { %v3081_v0 = vpop.permute.xlu0 %3080  ;;  %v3070_v15 = vpop.permute.xlu1 %3069 }
 0x36a   : > { %v3294_v50 = vmul.bf16 %v5954_v47, %v8754_v27  ;;  %v3078_v10 = vrot.slane %v3070_v15, %v6667_v43  ;;  %v3089_v28 = vrot.slane %v3081_v0, %v6667_v43  ;;  %v6321_v27 = vld [vmem:[%s6621_s11 + $0x40] sm:$0xf] }
 0x36c   : > { %v5955_v35 = vcombine.low %v3067_v44, %v3078_v10  ;;  %3335 = vrot.lane.b32.xlu1 %v3294_v50, %s6355_s19  ;;  %v6288_v50 = vld [vmem:[%s6621_s11] sm:$0xf] }
 0x36d   : > { %v3103_v32 = vpop.permute.xlu0 %3102  ;;  %v3092_v56 = vpop.permute.xlu1 %3091  ;;  %v5944_v10 = vcombine.low %v6288_v50, %v6288_v50 }
 0x36e   : > { %v3295_v63 = vmul.bf16 %v5955_v35, %v8755_v4  ;;  %v3100_v41 = vrot.slane %v3092_v56, %v6667_v43  ;;  %v3111_v47 = vrot.slane %v3103_v32, %v6667_v43 }
 0x36f   : > { %v2832_v4 = vshll.u32 %v5944_v10, 16 }
 0x370   : > { %v5956_v7 = vcombine.low %v3089_v28, %v3100_v41  ;;  %3337 = vrot.lane.b32.xlu0 %v3295_v63, %s6355_s19  ;;  %v8757_v28 = vld [vmem:[#allocation39_spill] sm:$0xff] }
 0x371   : > { %v3125_v24 = vpop.permute.xlu0 %3124  ;;  %v3114_v40 = vpop.permute.xlu1 %3113 }
 0x372   : > { %v3296_v15 = vmul.bf16 %v5956_v7, %v8756_v48  ;;  %v3122_v44 = vrot.slane %v3114_v40, %v6667_v43  ;;  %v3133_v56 = vrot.slane %v3125_v24, %v6667_v43  ;;  %v8758_v7 = vld [vmem:[#allocation40_spill] sm:$0xff]  ;;  %v8760_v48 = vld [vmem:[#allocation41_spill] sm:$0xff] }
 0x374   : > { %v5957_v55 = vcombine.low %v3111_v47, %v3122_v44  ;;  %3339 = vrot.lane.b32.xlu1 %v3296_v15, %s6355_s19  ;;  %v8759_v44 = vld [vmem:[#allocation4_spill] sm:$0xff] }
 0x375   : > { %v3147_v0 = vpop.permute.xlu0 %3146  ;;  %v3136_v35 = vpop.permute.xlu1 %3135  ;;  %v7645_v24 = vsel %vm1600_vm6, %v8760_v48, %v8759_v44 }
 0x376   : > { %v3297_v41 = vmul.bf16 %v5957_v55, %v8757_v28  ;;  %v3144_v63 = vrot.slane %v3136_v35, %v6667_v43  ;;  %v3155_v40 = vrot.slane %v3147_v0, %v6667_v43  ;;  %8761 = vst [vmem:[#allocation15_spill] sm:$0xff] %v7645_v24  ;;  %v2834_v55 = vrot.slane %v2832_v4, 1 }
 0x377   : > { %v8612_v4 = vmov 7  }
 0x378   : > { %v5958_v52 = vcombine.low %v3133_v56, %v3144_v63  ;;  %3341 = vrot.lane.b32.xlu0 %v3297_v41, %s6355_s19 }
 0x379   : > { %v3158_v32 = vpop.permute.xlu1 %3157  ;;  %v3169_v15 = vpop.permute.xlu0 %3168 }
 0x37a   : > { %v3298_v50 = vmul.bf16 %v5958_v52, %v8758_v7  ;;  %v3166_v47 = vrot.slane %v3158_v32, %v6667_v43  ;;  %v3177_v35 = vrot.slane %v3169_v15, %v6667_v43  ;;  %v8762_v52 = vld [vmem:[#allocation3_spill] sm:$0xff] }
 0x37b   : > { %v2836_v63 = vsel %vm7045_vm8, %v8762_v52, %v2834_v55 }
 0x37c   : > { %v5959_v28 = vcombine.low %v3155_v40, %v3166_v47  ;;  %3343 = vrot.lane.b32.xlu1 %v3298_v50, %s6355_s19  ;;  %v6296_v40 = vld [vmem:[%s8506_s1 + $0x4c] sm:$0xf] }
 0x37d   : > { %v3180_v10 = vpop.permute.xlu1 %3179 }
 0x37e   : > { %v3299_v56 = vmul.bf16 %v5959_v28, %v7645_v24  ;;  %v3188_v0 = vrot.slane %v3180_v10, %v6667_v43  ;;  %v8608_v28 = vmov 8   ;;  %v6310_v24 = vld [vmem:[%s6621_s11 + $0x20] sm:$0xf] }
 0x380   : > { %v5960_v32 = vcombine.low %v3177_v35, %v3188_v0  ;;  %3345 = vrot.lane.b32.xlu0 %v3299_v56, %s6355_s19  ;;  %v6298_v35 = vld [vmem:[%s8506_s1 + $0x54] sm:$0xf]  ;;  %v6299_v56 = vld [vmem:[%s8506_s1 + $0x48] sm:$0xf] }
 0x382   : > { %v3300_v48 = vmul.bf16 %v5960_v32, %v2836_v63 }
 0x384   : > { %3537 = vperm.xlu0 %6209, %v7227_v36   ;;  %3347 = vrot.lane.b32.xlu1 %v3300_v48, %s6355_s19 }
 0x388   : > { %3570 = vperm.xlu0 %6209, %v7234_v22   ;;  %3548 = vperm.xlu1 %6210, %v7240_v23  }
 0x38c   : > { %3592 = vperm.xlu0 %6209, %v7246_v51   ;;  %3559 = vperm.xlu1 %6210, %v7252_v20  }
 0x390   : > { %3614 = vperm.xlu0 %6209, %v7258_v1   ;;  %3581 = vperm.xlu1 %6210, %v7264_v6  }
 0x394   : > { %3636 = vperm.xlu0 %6209, %v7270_v58   ;;  %3603 = vperm.xlu1 %6210, %v7276_v16  }
 0x398   : > { %3658 = vperm.xlu0 %6209, %v7282_v3   ;;  %3625 = vperm.xlu1 %6210, %v7288_v5  }
 0x39c   : > { %3680 = vperm.xlu0 %6209, %v7294_v11   ;;  %3647 = vperm.xlu1 %6210, %v7300_v14  }
 0x3a0   : > { %3713 = vperm.xlu0 %6209, %v7336_v25   ;;  %6211 = vset.pattern.permute.xlu1 %v8612_v4 }
 0x3a1   : > { %4082 = vperm.xlu1 %6211, %v7227_v36  }
 0x3a4   : > { %3746 = vperm.xlu0 %6209, %v7330_v45  }
 0x3a5   : > { %4104 = vperm.xlu1 %6211, %v7252_v20  }
 0x3a8   : > { %3768 = vperm.xlu0 %6209, %v8735_v61  }
 0x3a9   : > { %4115 = vperm.xlu1 %6211, %v7234_v22  }
 0x3ac   : > { %3801 = vperm.xlu0 %6209, %v8736_v37  }
 0x3ad   : > { %6212 = vset.pattern.permute.xlu1 %v8608_v28 }
 0x3ae   : > { %4645 = vperm.xlu1 %6212, %v7240_v23  }
 0x3b0   : > { %3834 = vperm.xlu0 %6209, %v8741_v2  }
 0x3b2   : > { %4656 = vperm.xlu1 %6212, %v7252_v20  }
 0x3b4   : > { %3856 = vperm.xlu0 %6209, %v8743_v30   ;;  %v6295_v30 = vld [vmem:[%s6621_s11 + $0x10] sm:$0xf] }
 0x3b6   : > { %6213 = vset.pattern.permute.xlu1 %v8612_v4 }
 0x3b7   : > { %4126 = vperm.xlu1 %6213, %v7264_v6  }
 0x3b8   : > { %6230 = vset.pattern.permute.xlu0 %v8612_v4 }
 0x3b9   : > { %4093 = vperm.xlu0 %6230, %v7240_v23  }
 0x3ba   : > { %v3318_v45 = vpop.permute.xlu0 %3317 }
 0x3bb   : > { %3366 = vst.msk [vmem:[#allocation2] sm:$0xff] %vm3365_vm12, %v3318_v45  ;;  %4148 = vperm.xlu1 %6213, %v7276_v16   ;;  %v7779_v45 = vld [vmem:[%s8506_s1 + $0x60] sm:$0xf] }
 0x3bd   : > { %4137 = vperm.xlu0 %6230, %v7246_v51  }
 0x3be   : > { %v3320_v61 = vpop.permute.xlu1 %3319 }
 0x3bf   : > { %3367 = vst.msk [vmem:[#allocation2 + $0x8] sm:$0xff] %vm3365_vm12, %v3320_v61  ;;  %4159 = vperm.xlu1 %6213, %v7258_v1   ;;  %v6301_v61 = vld [vmem:[%s8506_s1 + $0x40] sm:$0xf] }
 0x3c1   : > { %4181 = vperm.xlu0 %6230, %v7270_v58  }
 0x3c2   : > { %v3322_v20 = vpop.permute.xlu0 %3321 }
 0x3c3   : > { %3368 = vst.msk [vmem:[#allocation2 + $0x10] sm:$0xff] %vm3365_vm12, %v3322_v20  ;;  %6214 = vset.pattern.permute.xlu1 %v8608_v28 }
 0x3c4   : > { %4689 = vperm.xlu1 %6214, %v7246_v51  }
 0x3c5   : > { %4214 = vperm.xlu0 %6230, %v7312_v18  }
 0x3c6   : > { %v3324_v23 = vpop.permute.xlu1 %3323 }
 0x3c7   : > { %3369 = vst.msk [vmem:[#allocation2 + $0x18] sm:$0xff] %vm3365_vm12, %v3324_v23 }
 0x3c8   : > { %4700 = vperm.xlu1 %6214, %v7276_v16  }
 0x3c9   : > { %4247 = vperm.xlu0 %6230, %v7306_v8  }
 0x3ca   : > { %v3326_v37 = vpop.permute.xlu0 %3325 }
 0x3cb   : > { %3370 = vst.msk [vmem:[#allocation2 + $0x20] sm:$0xff] %vm3365_vm12, %v3326_v37 }
 0x3cc   : > { %6215 = vset.pattern.permute.xlu1 %v8612_v4 }
 0x3cd   : > { %4269 = vperm.xlu0 %6230, %v7318_v19   ;;  %4170 = vperm.xlu1 %6215, %v7288_v5  }
 0x3ce   : > { %v3328_v2 = vpop.permute.xlu1 %3327 }
 0x3cf   : > { %3371 = vst.msk [vmem:[#allocation2 + $0x28] sm:$0xff] %vm3365_vm12, %v3328_v2 }
 0x3d1   : > { %4302 = vperm.xlu0 %6230, %v7360_v33   ;;  %4192 = vperm.xlu1 %6215, %v7300_v14  }
 0x3d2   : > { %v3330_v51 = vpop.permute.xlu0 %3329 }
 0x3d3   : > { %3372 = vst.msk [vmem:[#allocation2 + $0x30] sm:$0xff] %vm3365_vm12, %v3330_v51 }
 0x3d5   : > { %4335 = vperm.xlu0 %6230, %v8737_v13   ;;  %4203 = vperm.xlu1 %6215, %v7282_v3   ;;  %v8764_v13 = vmov 6  }
 0x3d6   : > { %v3332_v16 = vpop.permute.xlu1 %3331 }
 0x3d7   : > { %3373 = vst.msk [vmem:[#allocation2 + $0x38] sm:$0xff] %vm3365_vm12, %v3332_v16 }
 0x3d9   : > { %4357 = vperm.xlu0 %6230, %v8739_v17   ;;  %6216 = vset.pattern.permute.xlu1 %v8608_v28 }
 0x3da   : > { %v3334_v19 = vpop.permute.xlu0 %3333  ;;  %4733 = vperm.xlu1 %6216, %v7270_v58  }
 0x3db   : > { %3374 = vst.msk [vmem:[#allocation2 + $0x40] sm:$0xff] %vm3365_vm12, %v3334_v19  ;;  %v7797_v19 = vld [vmem:[%s8506_s1 + $0x6c] sm:$0xf] }
 0x3dd   : > { %4390 = vperm.xlu0 %6230, %v8740_v26   ;;  %v6294_v26 = vld [vmem:[%s6621_s11 + $0xc] sm:$0xf] }
 0x3de   : > { %4744 = vperm.xlu1 %6216, %v7300_v14   ;;  %v3336_v33 = vpop.permute.xlu1 %3335 }
 0x3df   : > { %3375 = vst.msk [vmem:[#allocation2 + $0x48] sm:$0xff] %vm3365_vm12, %v3336_v33 }
 0x3e1   : > { %4423 = vperm.xlu0 %6230, %v8744_v12   ;;  %v5962_v12 = vcombine.low %v6294_v26, %v6295_v30  ;;  %v6304_v30 = vld [vmem:[%s8506_s1 + $0x50] sm:$0xf] }
 0x3e2   : > { %v3338_v3 = vpop.permute.xlu0 %3337  ;;  %6217 = vset.pattern.permute.xlu1 %v8764_v13 }
 0x3e3   : > { %3376 = vst.msk [vmem:[#allocation2 + $0x50] sm:$0xff] %vm3365_vm12, %v3338_v3  ;;  %3669 = vperm.xlu1 %6217, %v7312_v18   ;;  %v3405_v55 = vshrl.u32 %v5962_v12, 16  ;;  %v3408_v10 = vshll.u32 %v5962_v12, 16 }
 0x3e5   : > { %6232 = vset.pattern.permute.xlu0 %v8608_v28  ;;  %v3407_v32 = vrot.slane %v3405_v55, 3  ;;  %v3410_v48 = vrot.slane %v3408_v10, 4 }
 0x3e6   : > { %4634 = vperm.xlu0 %6232, %v7227_v36   ;;  %v3340_v58 = vpop.permute.xlu1 %3339 }
 0x3e7   : > { %3377 = vst.msk [vmem:[#allocation2 + $0x58] sm:$0xff] %vm3365_vm12, %v3340_v58  ;;  %3691 = vperm.xlu1 %6217, %v7324_v49   ;;  %v7792_v16 = vor.u32 %v3410_v48, %v3407_v32 }
 0x3ea   : > { %v3342_v14 = vpop.permute.xlu0 %3341  ;;  %4667 = vperm.xlu0 %6232, %v7234_v22  }
 0x3eb   : > { %3378 = vst.msk [vmem:[#allocation2 + $0x60] sm:$0xff] %vm3365_vm12, %v3342_v14  ;;  %3702 = vperm.xlu1 %6217, %v7306_v8   ;;  %v6292_v8 = vld [vmem:[%s6621_s11 + $0x4] sm:$0xf] }
 0x3ee   : > { %4678 = vperm.xlu0 %6232, %v7264_v6   ;;  %v3344_v17 = vpop.permute.xlu1 %3343  ;;  %v6290_v6 = vld [vmem:[%s8506_s1 + $0x34] sm:$0xf] }
 0x3ef   : > { %3379 = vst.msk [vmem:[#allocation2 + $0x68] sm:$0xff] %vm3365_vm12, %v3344_v17  ;;  %6218 = vset.pattern.permute.xlu1 %v8612_v4  ;;  %v7809_v17 = vld [vmem:[%s8506_s1 + $0x74] sm:$0xf] }
 0x3f0   : > { %4225 = vperm.xlu1 %6218, %v7294_v11  }
 0x3f2   : > { %4711 = vperm.xlu0 %6232, %v7258_v1   ;;  %v3346_v36 = vpop.permute.xlu0 %3345  ;;  %v6289_v1 = vld [vmem:[%s8506_s1 + $0x2c] sm:$0xf] }
 0x3f3   : > { %3380 = vst.msk [vmem:[#allocation2 + $0x70] sm:$0xff] %vm3365_vm12, %v3346_v36 }
 0x3f4   : > { %4236 = vperm.xlu1 %6218, %v7324_v49  }
 0x3f6   : > { %4722 = vperm.xlu0 %6232, %v7288_v5   ;;  %v3348_v22 = vpop.permute.xlu1 %3347  ;;  %v6291_v5 = vld [vmem:[%s8506_s1 + $0x3c] sm:$0xf] }
 0x3f7   : > { %3381 = vst.msk [vmem:[#allocation2 + $0x78] sm:$0xff] %vm3365_vm12, %v3348_v22 }
 0x3f8   : > { %6219 = vset.pattern.permute.xlu1 %v8608_v28 }
 0x3f9   : > { %4766 = vperm.xlu1 %6219, %v7312_v18   ;;  %v7753_v18 = vld [vmem:[%s6621_s11 + $0x8] sm:$0xf] }
 0x3fa   : > { %4755 = vperm.xlu0 %6232, %v6289_v1   ;;  %8765 = vst [vmem:[#allocation17_spill] sm:$0xff] %v7753_v18 }
 0x3fd   : > { %4788 = vperm.xlu1 %6219, %v7324_v49   ;;  %v5961_v49 = vcombine.low %v6292_v8, %v7753_v18 }
 0x3fe   : > { %4777 = vperm.xlu0 %6232, %v6290_v6  }
 0x3ff   : > { %v3397_v15 = vshrl.u32 %v5961_v49, 16  ;;  %v3400_v44 = vshll.u32 %v5961_v49, 16 }
 0x401   : > { %4799 = vperm.xlu1 %6219, %v6291_v5   ;;  %v3399_v41 = vrot.slane %v3397_v15, 3  ;;  %v3402_v63 = vrot.slane %v3400_v44, 4  ;;  %v6306_v15 = vld [vmem:[%s8506_s1 + $0x5c] sm:$0xf] }
 0x402   : > { %4810 = vperm.xlu0 %6232, %v7336_v25   ;;  %v6297_v25 = vld [vmem:[%s8506_s1 + $0x44] sm:$0xf] }
 0x403   : > { %v3538_v11 = vpop.permute.xlu0 %3537  ;;  %v3403_v51 = vor.u32 %v3402_v63, %v3399_v41 }
 0x404   : > { %v3546_v37 = vrot.slane %v3538_v11, %v6667_v43 }
 0x405   : > { %6220 = vset.pattern.permute.xlu1 %v8764_v13  ;;  %v3412_v14 = vsel %vm285_vm3, %v3403_v51, %v7792_v16 }
 0x406   : > { %4843 = vperm.xlu0 %6232, %v6296_v40   ;;  %3724 = vperm.xlu1 %6220, %v6297_v25  }
 0x407   : > { %v3549_v50 = vpop.permute.xlu1 %3548  ;;  %v7764_v47 = vpop.permute.xlu0 %3570 }
 0x408   : > { %v3557_v2 = vrot.slane %v3549_v50, %v6667_v43 }
 0x40a   : > { %4865 = vperm.xlu0 %6232, %v6298_v35   ;;  %3735 = vperm.xlu1 %6220, %v6299_v56   ;;  %v5975_v58 = vcombine.low %v3546_v37, %v3557_v2 }
 0x40b   : > { %v7772_v0 = vpop.permute.xlu1 %3559  ;;  %v7774_v52 = vpop.permute.xlu0 %3592 }
 0x40c   : > { %v3984_v1 = vmul.bf16 %v5975_v58, %v3412_v14 }
 0x40e   : > { %4898 = vperm.xlu0 %6232, %v7779_v45   ;;  %6221 = vset.pattern.permute.xlu1 %v8612_v4 }
 0x40f   : > { %4258 = vperm.xlu1 %6221, %v6301_v61   ;;  %v7786_v20 = vpop.permute.xlu1 %3581  ;;  %v7788_v23 = vpop.permute.xlu0 %3614 }
 0x412   : > { %4931 = vperm.xlu0 %6232, %v7797_v19  }
 0x413   : > { %4280 = vperm.xlu1 %6221, %v6299_v56   ;;  %v7800_v33 = vpop.permute.xlu1 %3603  ;;  %v7802_v3 = vpop.permute.xlu0 %3636 }
 0x416   : > { %4953 = vperm.xlu0 %6232, %v7809_v17  }
 0x417   : > { %4291 = vperm.xlu1 %6221, %v6296_v40   ;;  %v7812_v36 = vpop.permute.xlu1 %3625  ;;  %v7814_v22 = vpop.permute.xlu0 %3658 }
 0x41a   : > { %4016 = vrot.lane.b32.xlu0 %v3984_v1, %s6358_s21 }
 0x41b   : > { %6222 = vset.pattern.permute.xlu1 %v8608_v28  ;;  %v7818_v6 = vpop.permute.xlu1 %3647  ;;  %v7820_v5 = vpop.permute.xlu0 %3680 }
 0x41c   : > { %4821 = vperm.xlu1 %6222, %v6297_v25   ;;  %v6305_v25 = vld [vmem:[%s8506_s1 + $0x58] sm:$0xf] }
 0x41f   : > { %v7822_v11 = vpop.permute.xlu0 %3713 }
 0x420   : > { %4832 = vperm.xlu1 %6222, %v6299_v56   ;;  %v4083_v8 = vpop.permute.xlu1 %4082 }
 0x421   : > { %v4091_v32 = vrot.slane %v4083_v8, %v6667_v43 }
 0x423   : > { %v7824_v49 = vpop.permute.xlu0 %3746 }
 0x424   : > { %8766 = vst [vmem:[#allocation18_spill] sm:$0xff] %v7824_v49  ;;  %6223 = vset.pattern.permute.xlu1 %v8764_v13  ;;  %v7827_v26 = vpop.permute.xlu1 %4104 }
 0x425   : > { %3757 = vperm.xlu1 %6223, %v6304_v30  }
 0x427   : > { %v7832_v12 = vpop.permute.xlu0 %3768 }
 0x428   : > { %8767 = vst [vmem:[#allocation19_spill] sm:$0xff] %v7832_v12  ;;  %v7834_v40 = vpop.permute.xlu1 %4115 }
 0x429   : > { %3779 = vperm.xlu1 %6223, %v6305_v25  }
 0x42b   : > { %v7839_v50 = vpop.permute.xlu0 %3801 }
 0x42c   : > { %8768 = vst [vmem:[#allocation21_spill] sm:$0xff] %v7839_v50  ;;  %v6312_v50 = vld [vmem:[%s6621_s11 + $0x18] sm:$0xf] }
 0x42d   : > { %3790 = vperm.xlu1 %6223, %v6306_v15   ;;  %v7844_v44 = vpop.permute.xlu1 %4645 }
 0x42f   : > { %v7846_v55 = vpop.permute.xlu0 %3834 }
 0x430   : > { %8769 = vst [vmem:[#allocation23_spill] sm:$0xff] %v7846_v55  ;;  %v6311_v55 = vld [vmem:[%s6621_s11 + $0x14] sm:$0xf] }
 0x431   : > { %6224 = vset.pattern.permute.xlu1 %v8612_v4  ;;  %v7849_v10 = vpop.permute.xlu1 %4656 }
 0x432   : > { %4313 = vperm.xlu1 %6224, %v6298_v35  }
 0x433   : > { %v7851_v56 = vpop.permute.xlu0 %3856 }
 0x434   : > { %8770 = vst [vmem:[#allocation25_spill] sm:$0xff] %v7851_v56  ;;  %v6309_v56 = vld [vmem:[%s6621_s11 + $0x1c] sm:$0xf] }
 0x436   : > { %4324 = vperm.xlu1 %6224, %v6305_v25   ;;  %v7853_v41 = vpop.permute.xlu1 %4126 }
 0x438   : > { %v4094_v63 = vpop.permute.xlu0 %4093 }
 0x439   : > { %v4102_v48 = vrot.slane %v4094_v63, %v6667_v43 }
 0x43a   : > { %6225 = vset.pattern.permute.xlu1 %v8608_v28  ;;  %v7858_v61 = vpop.permute.xlu1 %4148 }
 0x43b   : > { %v5991_v37 = vcombine.low %v4091_v32, %v4102_v48  ;;  %4854 = vperm.xlu1 %6225, %v6304_v30  }
 0x43c   : > { %v7860_v2 = vpop.permute.xlu0 %4137 }
 0x43d   : > { %v4529_v35 = vmul.bf16 %v5991_v37, %v6650_v53  ;;  %v6307_v53 = vld [vmem:[%s8506_s1 + $0x64] sm:$0xf] }
 0x43e   : > { %v7863_v51 = vpop.permute.xlu1 %4159 }
 0x43f   : > { %4876 = vperm.xlu1 %6225, %v6305_v25   ;;  %4561 = vrot.lane.b32.xlu0 %v4529_v35, %s6359_s28  ;;  %v6308_v25 = vld [vmem:[%s8506_s1 + $0x68] sm:$0xf] }
 0x440   : > { %v7866_v58 = vpop.permute.xlu0 %4181 }
 0x443   : > { %4887 = vperm.xlu1 %6225, %v6306_v15   ;;  %v7868_v14 = vpop.permute.xlu1 %4689 }
 0x444   : > { %v7870_v1 = vpop.permute.xlu0 %4214 }
 0x447   : > { %6226 = vset.pattern.permute.xlu1 %v8764_v13  ;;  %v7873_v8 = vpop.permute.xlu1 %4700 }
 0x448   : > { %3812 = vperm.xlu1 %6226, %v6307_v53   ;;  %v7878_v30 = vpop.permute.xlu0 %4247 }
 0x449   : > { %8771 = vst [vmem:[#allocation42_spill] sm:$0xff] %v7878_v30 }
 0x44c   : > { %3823 = vperm.xlu1 %6226, %v6308_v25   ;;  %v7883_v15 = vpop.permute.xlu1 %4170  ;;  %v7885_v63 = vpop.permute.xlu0 %4269 }
 0x450   : > { %6227 = vset.pattern.permute.xlu1 %v8612_v4  ;;  %v7888_v32 = vpop.permute.xlu1 %4192  ;;  %v7890_v48 = vpop.permute.xlu0 %4302  ;;  %v5964_v4 = vcombine.low %v6309_v56, %v6310_v24 }
 0x451   : > { %8772 = vst [vmem:[#allocation46_spill] sm:$0xff] %v7888_v32  ;;  %8773 = vst [vmem:[#allocation43_spill] sm:$0xff] %v7890_v48  ;;  %4346 = vperm.xlu1 %6227, %v7779_v45   ;;  %v5963_v48 = vcombine.low %v6311_v55, %v6312_v50  ;;  %v8777_v45 = vmov 8   ;;  %v6322_v32 = vld [vmem:[%s6621_s11 + $0x34] sm:$0xf] }
 0x452   : > { %v3426_v46 = vshll.u32 %v5964_v4, 16 }
 0x453   : > { %v3417_v30 = vshll.u32 %v5963_v48, 16 }
 0x454   : > { %v7893_v37 = vpop.permute.xlu1 %4203  ;;  %v7895_v35 = vpop.permute.xlu0 %4335 }
 0x455   : > { %8774 = vst [vmem:[#allocation48_spill] sm:$0xff] %v7895_v35  ;;  %4368 = vperm.xlu1 %6227, %v6308_v25   ;;  %v3423_v35 = vshrl.u32 %v5964_v4, 16  ;;  %v3419_v50 = vrot.slane %v3417_v30, 4  ;;  %v3590_v4 = vrot.slane %v7786_v20, %v6667_v43  ;;  %v6313_v30 = vld [vmem:[%s6621_s11 + $0x2c] sm:$0xf] }
 0x457   : > { %v3425_v56 = vrot.slane %v3423_v35, 3 }
 0x458   : > { %v7897_v28 = vpop.permute.xlu0 %4357 }
 0x459   : > { %8775 = vst [vmem:[#allocation44_spill] sm:$0xff] %v7897_v28  ;;  %4379 = vperm.xlu1 %6227, %v7797_v19   ;;  %v7900_v18 = vpop.permute.xlu1 %4733  ;;  %v3414_v19 = vshrl.u32 %v5963_v48, 16  ;;  %v4654_v48 = vrot.slane %v7844_v44, %v6667_v43 }
 0x45b   : > { %v3416_v12 = vrot.slane %v3414_v19, 3  ;;  %v6314_v19 = vld [vmem:[%s6621_s11 + $0x30] sm:$0xf] }
 0x45c   : > { %v7904_v7 = vpop.permute.xlu0 %4390 }
 0x45d   : > { %8776 = vst [vmem:[#allocation50_spill] sm:$0xff] %v7904_v7  ;;  %6228 = vset.pattern.permute.xlu1 %v8777_v45  ;;  %v7909_v49 = vpop.permute.xlu1 %4744  ;;  %v3428_v7 = vrot.slane %v3426_v46, 4  ;;  %v7935_v44 = vor.u32 %v3419_v50, %v3416_v12 }
 0x45e   : > { %8778 = vst [vmem:[#allocation45_spill] sm:$0xff] %v7909_v49  ;;  %4909 = vperm.xlu1 %6228, %v6307_v53   ;;  %v3601_v53 = vrot.slane %v7774_v52, %v6667_v43  ;;  %v7932_v52 = vld [vmem:[%s8506_s1 + $0x70] sm:$0xf] }
 0x45f   : > { %v7925_v46 = vor.u32 %v3428_v7, %v3425_v56  ;;  %v4146_v56 = vrot.slane %v7860_v2, %v6667_v43  ;;  %v4135_v2 = vrot.slane %v7853_v41, %v6667_v43 }
 0x460   : > { %v7911_v28 = vpop.permute.xlu0 %4423  ;;  %v5977_v7 = vcombine.low %v3590_v4, %v3601_v53 }
 0x461   : > { %8779 = vst [vmem:[#allocation51_spill] sm:$0xff] %v7911_v28  ;;  %v5966_v28 = vcombine.low %v6313_v30, %v6314_v19 }
 0x462   : > { %4920 = vperm.xlu1 %6228, %v6308_v25   ;;  %v7913_v24 = vpop.permute.xlu1 %3669 }
 0x463   : > { %v3444_v12 = vshll.u32 %v5966_v28, 16 }
 0x465   : > { %v4635_v55 = vpop.permute.xlu0 %4634 }
 0x466   : > { %v4643_v25 = vrot.slane %v4635_v55, %v6667_v43  ;;  %6229 = vset.pattern.permute.xlu1 %v8764_v13  ;;  %v7923_v35 = vpop.permute.xlu1 %3691  ;;  %v6316_v55 = vld [vmem:[%s6621_s11 + $0x24] sm:$0xf] }
 0x467   : > { %8780 = vst [vmem:[#allocation47_spill] sm:$0xff] %v7923_v35  ;;  %3845 = vperm.xlu1 %6229, %v7932_v52   ;;  %v5965_v13 = vcombine.low %v6316_v55, %v6317_v54  ;;  %v3430_v35 = vsel %vm285_vm3, %v7935_v44, %v7925_v46  ;;  %v7952_v54 = vld [vmem:[%s8506_s1 + $0x78] sm:$0xf]  ;;  %v3446_v55 = vrot.slane %v3444_v12, 4 }
 0x468   : > { %v6008_v20 = vcombine.low %v4643_v25, %v4654_v48  ;;  %v3441_v48 = vshrl.u32 %v5966_v28, 16  ;;  %v3986_v4 = vmul.bf16 %v5977_v7, %v3430_v35  ;;  %v5993_v25 = vcombine.low %v4135_v2, %v4146_v56 }
 0x469   : > { %v7939_v49 = vpop.permute.xlu0 %4667  ;;  %v3435_v50 = vshll.u32 %v5965_v13, 16 }
 0x46a   : > { %v5081_v30 = vmul.bf16 %v6008_v20, %v8746_v38  ;;  %v7944_v19 = vpop.permute.xlu1 %3702  ;;  %v3432_v38 = vshrl.u32 %v5965_v13, 16  ;;  %v3443_v20 = vrot.slane %v3441_v48, 3  ;;  %v4698_v13 = vrot.slane %v7868_v14, %v6667_v43  ;;  %v6320_v14 = vld [vmem:[%s6621_s11 + $0x3c] sm:$0xf] }
 0x46b   : > { %8781 = vst [vmem:[#allocation49_spill] sm:$0xff] %v7944_v19  ;;  %3867 = vperm.xlu1 %6229, %v7952_v54   ;;  %v7962_v19 = vld [vmem:[%s8506_s1 + $0x7c] sm:$0xf]  ;;  %v3437_v7 = vrot.slane %v3435_v50, 4  ;;  %v3634_v48 = vrot.slane %v7812_v36, %v6667_v43  ;;  %v4531_v12 = vmul.bf16 %v5993_v25, %v6665_v42  ;;  %v6323_v36 = vld [vmem:[%s6621_s11 + $0x38] sm:$0xf] }
 0x46c   : > { %5113 = vrot.lane.b32.xlu0 %v5081_v30, %s6360_s14  ;;  %v3434_v35 = vrot.slane %v3432_v38, 3  ;;  %v3645_v30 = vrot.slane %v7802_v3, %v6667_v43  ;;  %v8782_v38 = vmov 7   ;;  %v5967_v34 = vcombine.low %v6322_v32, %v6323_v36  ;;  %v6324_v36 = vld [vmem:[%s6621_s11 + $0x4c] sm:$0xf] }
 0x46d   : > { %v4679_v53 = vpop.permute.xlu0 %4678 }
 0x46e   : > { %v4687_v28 = vrot.slane %v4679_v53, %v6667_v43  ;;  %v7977_v53 = vor.u32 %v3446_v55, %v3443_v20  ;;  %v7986_v3 = vor.u32 %v3437_v7, %v3434_v35  ;;  %v5979_v25 = vcombine.low %v3634_v48, %v3645_v30 }
 0x46f   : > { %3878 = vperm.xlu1 %6229, %v7962_v19   ;;  %v7965_v41 = vpop.permute.xlu1 %4225  ;;  %v3450_v35 = vshrl.u32 %v5967_v34, 16 }
 0x470   : > { %4020 = vrot.lane.b32.xlu0 %v3986_v4, %s6358_s21  ;;  %v6010_v2 = vcombine.low %v4687_v28, %v4698_v13  ;;  %v5968_v4 = vcombine.low %v6320_v14, %v6321_v27  ;;  %v4190_v28 = vrot.slane %v7866_v58, %v6667_v43  ;;  %v4179_v27 = vrot.slane %v7883_v15, %v6667_v43 }
 0x471   : > { %v7970_v56 = vpop.permute.xlu0 %4711  ;;  %v3453_v58 = vshll.u32 %v5967_v34, 16  ;;  %v3452_v34 = vrot.slane %v3450_v35, 3 }
 0x472   : > { %v5083_v20 = vmul.bf16 %v6010_v2, %v8748_v9  ;;  %v3459_v55 = vshrl.u32 %v5968_v4, 16  ;;  %v3462_v13 = vshll.u32 %v5968_v4, 16  ;;  %v5995_v9 = vcombine.low %v4179_v27, %v4190_v28 }
 0x473   : > { %6231 = vset.pattern.permute.xlu1 %v8782_v38  ;;  %v7982_v50 = vpop.permute.xlu1 %4236  ;;  %v4742_v2 = vrot.slane %v7900_v18, %v6667_v43  ;;  %v3455_v4 = vrot.slane %v3453_v58, 4  ;;  %v3678_v18 = vrot.slane %v7913_v24, %v6667_v43  ;;  %v3579_v27 = vrot.slane %v7764_v47, %v6667_v43 }
 0x474   : > { %4401 = vperm.xlu1 %6231, %v7809_v17   ;;  %4565 = vrot.lane.b32.xlu0 %v4531_v12, %s6359_s28  ;;  %v3448_v17 = vsel %vm285_vm3, %v7986_v3, %v7977_v53  ;;  %v3461_v48 = vrot.slane %v3459_v55, 3  ;;  %v3464_v12 = vrot.slane %v3462_v13, 4  ;;  %v4533_v28 = vmul.bf16 %v5995_v9, %v6700_v31  ;;  %v6326_v55 = vld [vmem:[%s6621_s11 + $0x44] sm:$0xf]  ;;  %v6327_v13 = vld [vmem:[%s6621_s11 + $0x48] sm:$0xf] }
 0x475   : > { %v4723_v42 = vpop.permute.xlu0 %4722  ;;  %v3988_v15 = vmul.bf16 %v5979_v25, %v3448_v17  ;;  %v5969_v35 = vcombine.low %v6326_v55, %v6327_v13  ;;  %v8030_v24 = vor.u32 %v3455_v4, %v3452_v34 }
 0x476   : > { %v4731_v30 = vrot.slane %v4723_v42, %v6667_v43  ;;  %v6325_v42 = vld [vmem:[%s6621_s11 + $0x50] sm:$0xf]  ;;  %v8021_v17 = vor.u32 %v3464_v12, %v3461_v48  ;;  %v4124_v12 = vrot.slane %v7834_v40, %v6667_v43 }
 0x477   : > { %v5970_v25 = vcombine.low %v6324_v36, %v6325_v42  ;;  %v3468_v34 = vshrl.u32 %v5969_v35, 16 }
 0x478   : > { %4412 = vperm.xlu1 %6231, %v7952_v54   ;;  %5117 = vrot.lane.b32.xlu0 %v5083_v20, %s6360_s14  ;;  %v8000_v32 = vpop.permute.xlu1 %4766  ;;  %v3568_v20 = vrot.slane %v7772_v0, %v6667_v43 }
 0x479   : > { %v8002_v7 = vpop.permute.xlu0 %4755  ;;  %v3477_v47 = vshrl.u32 %v5970_v25, 16  ;;  %v3480_v0 = vshll.u32 %v5970_v25, 16 }
 0x47a   : > { %v5976_v48 = vcombine.low %v3568_v20, %v3579_v27 }
 0x47b   : > { %v3479_v40 = vrot.slane %v3477_v47, 3 }
 0x47c   : > { %6233 = vset.pattern.permute.xlu1 %v8777_v45  ;;  %4024 = vrot.lane.b32.xlu0 %v3988_v15, %s6358_s21  ;;  %v8009_v14 = vpop.permute.xlu1 %4788  ;;  %v6012_v45 = vcombine.low %v4731_v30, %v4742_v2  ;;  %v4223_v15 = vrot.slane %v7870_v1, %v6667_v43  ;;  %v3466_v2 = vsel %vm285_vm3, %v8030_v24, %v8021_v17  ;;  %v3471_v1 = vshll.u32 %v5969_v35, 16 }
 0x47d   : > { %v4778_v38 = vpop.permute.xlu0 %4777  ;;  %4942 = vperm.xlu1 %6233, %v7932_v52   ;;  %v3689_v52 = vrot.slane %v7820_v5, %v6667_v43  ;;  %v4234_v5 = vrot.slane %v7965_v41, %v6667_v43  ;;  %v4113_v41 = vrot.slane %v7827_v26, %v6667_v43  ;;  %v4775_v26 = vrot.slane %v8000_v32, %v6667_v43 }
 0x47e   : > { %v5085_v30 = vmul.bf16 %v6012_v45, %v8750_v39  ;;  %v4786_v25 = vrot.slane %v4778_v38, %v6667_v43  ;;  %v3470_v45 = vrot.slane %v3468_v34, 3  ;;  %v3473_v27 = vrot.slane %v3471_v1, 4 }
 0x47f   : > { %v5981_v9 = vcombine.low %v3678_v18, %v3689_v52  ;;  %v5997_v42 = vcombine.low %v4223_v15, %v4234_v5  ;;  %v3623_v32 = vrot.slane %v7788_v23, %v6667_v43  ;;  %v3612_v35 = vrot.slane %v7800_v33, %v6667_v43 }
 0x480   : > { %4569 = vrot.lane.b32.xlu0 %v4533_v28, %s6359_s28  ;;  %v8028_v31 = vpop.permute.xlu1 %4799  ;;  %v3482_v28 = vrot.slane %v3480_v0, 4  ;;  %v6014_v55 = vcombine.low %v4775_v26, %v4786_v25  ;;  %v6252_v0 = vld [vmem:[%s8507_s2] sm:$0xff]   ;;  %v8081_v15 = vor.u32 %v3473_v27, %v3470_v45  ;;  %v6330_v27 = vld [vmem:[%s6621_s11 + $0x54] sm:$0xf]  ;;  %v6331_v26 = vld [vmem:[%s6621_s11 + $0x58] sm:$0xf] }
 0x481   : > { %v8032_v58 = vpop.permute.xlu0 %4810  ;;  %4964 = vperm.xlu1 %6233, %v7952_v54   ;;  %v3421_v54 = vsel %vm285_vm3, %v7792_v16, %v7935_v44  ;;  %v3990_v36 = vmul.bf16 %v5981_v9, %v3466_v2  ;;  %v5992_v16 = vcombine.low %v4113_v41, %v4124_v12  ;;  %v4676_v44 = vrot.slane %v7939_v49, %v6667_v43 }
 0x482   : > { %v3985_v18 = vmul.bf16 %v5976_v48, %v3421_v54  ;;  %v4535_v52 = vmul.bf16 %v5997_v42, %v6747_v59  ;;  %v8068_v49 = vor.u32 %v3482_v28, %v3479_v40  ;;  %v3722_v59 = vrot.slane %v7822_v11, %v6667_v43  ;;  %6128 = vmatprep.subr.bf16.mxu0 %v6252_v0  ;;  %v6328_v28 = vld [vmem:[%s6621_s11 + $0x5c] sm:$0xf] }
 0x483   : > { %v5087_v23 = vmul.bf16 %v6014_v55, %v8752_v62  ;;  %6129 = vmatpush3.bf16.msra.mxu0 %v6252_v0  ;;  %6166 = vmatprep.subr.bf16.mxu1 %v6252_v0  ;;  %v5978_v11 = vcombine.low %v3612_v35, %v3623_v32  ;;  %v6253_v62 = vld [vmem:[%s8507_s2 + $0x8] sm:$0xff]   ;;  %v3439_v2 = vsel %vm285_vm3, %v7925_v46, %v7986_v3 }
 0x484   : > { %5121 = vrot.lane.b32.xlu0 %v5085_v30, %s6360_s14  ;;  %v4168_v30 = vrot.slane %v7863_v51, %v6667_v43  ;;  %6169 = vmatpush3.bf16.msra.mxu1 %v6252_v0  ;;  %v4278_v54 = vrot.slane %v7885_v63, %v6667_v43  ;;  %v4157_v51 = vrot.slane %v7858_v61, %v6667_v43  ;;  %v6254_v61 = vld [vmem:[%s8507_s2 + $0x10] ss:$0 sps:$4 sm:$0x33]  }
 0x485   : > { %v8051_v39 = vpop.permute.xlu0 %4843  ;;  %4975 = vperm.xlu1 %6233, %v7962_v19   ;;  %v3725_v4 = vpop.permute.xlu1 %3724  ;;  %v4665_v19 = vrot.slane %v7849_v10, %v6667_v43  ;;  %v4530_v10 = vmul.bf16 %v5992_v16, %v6656_v60  ;;  %v3484_v60 = vsel %vm285_vm3, %v8081_v15, %v8068_v49  ;;  %6130 = vmatprep.subr.bf16.mxu0 %v6253_v62 }
 0x486   : > { %v3733_v13 = vrot.slane %v3725_v4, %v6667_v43  ;;  %6167 = vmatprep.subr.bf16.mxu1 %v6253_v62  ;;  %v3987_v46 = vmul.bf16 %v5978_v11, %v3439_v2  ;;  %v5994_v63 = vcombine.low %v4157_v51, %v4168_v30  ;;  %v4720_v3 = vrot.slane %v7970_v56, %v6667_v43  ;;  %v8786_v2 = vld [vmem:[#allocation45_spill] sm:$0xff] }
 0x487   : > { %v6009_v47 = vcombine.low %v4665_v19, %v4676_v44  ;;  %6131 = vmatpush3.bf16.msra.mxu0 %v6253_v62  ;;  %v4709_v40 = vrot.slane %v7873_v8, %v6667_v43  ;;  %v3667_v56 = vrot.slane %v7814_v22, %v6667_v43  ;;  %v3656_v8 = vrot.slane %v7818_v6, %v6667_v43 }
 0x488   : > { %4028 = vrot.lane.b32.xlu0 %v3990_v36, %s6358_s21  ;;  %v5983_v33 = vcombine.low %v3722_v59, %v3733_v13  ;;  %6170 = vmatpush3.bf16.msra.mxu1 %v6253_v62  ;;  %v5265_v36 = vsel %vm5263_vm13, %v6254_v61, 0  ;;  %v4532_v44 = vmul.bf16 %v5994_v63, %v6697_v57  ;;  %v5971_v22 = vcombine.low %v6330_v27, %v6331_v26  ;;  %v8783_v13 = vld [vmem:[#allocation31_spill] sm:$0xff]  ;;  %v8792_v27 = vld [vmem:[#allocation33_spill] sm:$0xff] }
 0x489   : > { %v8062_v20 = vpop.permute.xlu0 %4865  ;;  %4018 = vrot.lane.b32.xlu1 %v3985_v18, %s6358_s21  ;;  %v8065_v38 = vpop.permute.xlu1 %3735  ;;  %v5082_v48 = vmul.bf16 %v6009_v47, %v8747_v21  ;;  %6172 = vmatprep.subr.msk.bf16.mxu0 %vm5263_vm13, %v6254_v61  ;;  %v6329_v18 = vld [vmem:[%s6621_s11 + $0x60] sm:$0xf]  ;;  %v6011_v45 = vcombine.low %v4709_v40, %v4720_v3  ;;  %v4819_v19 = vrot.slane %v8032_v58, %v6667_v43  ;;  %v8784_v58 = vld [vmem:[#allocation46_spill] sm:$0xff] }
 0x48a   : > { %v3992_v34 = vmul.bf16 %v5983_v33, %v3484_v60  ;;  %v5972_v16 = vcombine.low %v6328_v28, %v6329_v18  ;;  %6173 = vmatprep.subr.msk.bf16.mxu1 %vm5263_vm13, %v6254_v61  ;;  %v5980_v55 = vcombine.low %v3656_v8, %v3667_v56  ;;  %v4212_v57 = vrot.slane %v7893_v37, %v6667_v43  ;;  %v8789_v40 = vld [vmem:[#allocation19_spill] sm:$0xff]  ;;  %v8791_v18 = vld [vmem:[#allocation42_spill] sm:$0xff] }
 0x48b   : > { %6133 = vmatpush3.bf16.msra.mxu0 %v5265_v36  ;;  %v5084_v32 = vmul.bf16 %v6011_v45, %v8783_v13  ;;  %v3486_v47 = vshrl.u32 %v5971_v22, 16  ;;  %v3489_v0 = vshll.u32 %v5971_v22, 16  ;;  %v4764_v30 = vrot.slane %v8002_v7, %v6667_v43  ;;  %v8790_v56 = vld [vmem:[#allocation47_spill] sm:$0xff] }
 0x48c   : > { %4573 = vrot.lane.b32.xlu0 %v4535_v52, %s6359_s28  ;;  %6171 = vmatpush3.bf16.msra.mxu1 %v5265_v36  ;;  %v3495_v52 = vshrl.u32 %v5972_v16, 16  ;;  %v3498_v6 = vshll.u32 %v5972_v16, 16  ;;  %v3777_v36 = vrot.slane %v8789_v40, %v6667_v43  ;;  %v4256_v16 = vrot.slane %v8791_v18, %v6667_v43 }
 0x48d   : > { %v8084_v9 = vpop.permute.xlu0 %4898  ;;  %4563 = vrot.lane.b32.xlu1 %v4530_v10, %s6359_s28  ;;  %v3457_v10 = vsel %vm285_vm3, %v7977_v53, %v8030_v24  ;;  %v3488_v53 = vrot.slane %v3486_v47, 3  ;;  %v3491_v24 = vrot.slane %v3489_v0, 4  ;;  %v4245_v45 = vrot.slane %v7982_v50, %v6667_v43  ;;  %v6333_v47 = vld [vmem:[%s6621_s11 + $0x68] sm:$0xf] }
 0x48e   : > { %v4259_v5 = vpop.permute.xlu1 %4258  ;;  %v3497_v33 = vrot.slane %v3495_v52, 3  ;;  %v3989_v37 = vmul.bf16 %v5980_v55, %v3457_v10  ;;  %v4797_v13 = vrot.slane %v8009_v14, %v6667_v43  ;;  %v6332_v10 = vld [vmem:[%s6621_s11 + $0x64] sm:$0xf]  ;;  %v4874_v40 = vrot.slane %v8062_v20, %v6667_v43 }
 0x48f   : > { %v4267_v12 = vrot.slane %v4259_v5, %v6667_v43  ;;  %v3500_v5 = vrot.slane %v3498_v6, 4  ;;  %v3492_v3 = vor.u32 %v3491_v24, %v3488_v53  ;;  %v5998_v55 = vcombine.low %v4245_v45, %v4256_v16  ;;  %v8795_v14 = vld [vmem:[#allocation43_spill] sm:$0xff] }
 0x490   : > { %5125 = vrot.lane.b32.xlu0 %v5087_v23, %s6360_s14  ;;  %v4201_v23 = vrot.slane %v8784_v58, %v6667_v43  ;;  %v5973_v0 = vcombine.low %v6332_v10, %v6333_v47 }
 0x491   : > { %v8106_v21 = vpop.permute.xlu0 %4931  ;;  %5115 = vrot.lane.b32.xlu1 %v5082_v48, %s6360_s14  ;;  %v5999_v1 = vcombine.low %v4267_v12, %v4278_v54  ;;  %v8785_v12 = vld [vmem:[#allocation36_spill] sm:$0xff]  ;;  %v4753_v54 = vrot.slane %v8786_v2, %v6667_v43  ;;  %v8158_v51 = vor.u32 %v3500_v5, %v3497_v33  ;;  %v8796_v5 = vld [vmem:[#allocation35_spill] sm:$0xff] }
 0x492   : > { %v8109_v41 = vpop.permute.xlu1 %4280  ;;  %v5996_v11 = vcombine.low %v4201_v23, %v4212_v57  ;;  %v4808_v57 = vrot.slane %v8028_v31, %v6667_v43  ;;  %v8794_v31 = vld [vmem:[#allocation18_spill] sm:$0xff]  ;;  %v3504_v53 = vshrl.u32 %v5973_v0, 16  ;;  %v3507_v24 = vshll.u32 %v5973_v0, 16 }
 0x493   : > { %v4537_v42 = vmul.bf16 %v5999_v1, %v6783_v29  ;;  %v6013_v63 = vcombine.low %v4753_v54, %v4764_v30  ;;  %v3502_v8 = vsel %vm285_vm3, %v3492_v3, %v8158_v51  ;;  %v3493_v30 = vsel %vm285_vm3, %v8068_v49, %v3492_v3  ;;  %v8797_v54 = vld [vmem:[#allocation24_spill] sm:$0xff]  ;;  %v6335_v3 = vld [vmem:[%s6621_s11 + $0x70] sm:$0xf] }
 0x494   : > { %4032 = vrot.lane.b32.xlu0 %v3992_v34, %s6358_s21  ;;  %v8787_v34 = vld [vmem:[#allocation16_spill] sm:$0xff] }
 0x495   : > { %v8119_v4 = vpop.permute.xlu0 %4953  ;;  %4022 = vrot.lane.b32.xlu1 %v3987_v46, %s6358_s21  ;;  %v4534_v1 = vmul.bf16 %v5996_v11, %v8787_v34  ;;  %v8788_v46 = vld [vmem:[#allocation49_spill] sm:$0xff]  ;;  %v5086_v26 = vmul.bf16 %v6013_v63, %v8792_v27  ;;  %v3509_v63 = vrot.slane %v3507_v24, 4 }
 0x496   : > { %v8125_v25 = vpop.permute.xlu1 %4291  ;;  %v3711_v7 = vrot.slane %v8788_v46, %v6667_v43 }
 0x497   : > { %v4300_v11 = vrot.slane %v8125_v25, %v6667_v43 }
 0x498   : > { %4577 = vrot.lane.b32.xlu0 %v4537_v42, %s6359_s28  ;;  %v3700_v42 = vrot.slane %v8790_v56, %v6667_v43  ;;  %v8798_v56 = vld [vmem:[#allocation22_spill] sm:$0xff] }
 0x499   : > { %v4017_v29 = vpop.permute.xlu0 %4016  ;;  %4567 = vrot.lane.b32.xlu1 %v4532_v44, %s6359_s28 }
 0x49a   : > { %4065 = vst.msk [vmem:[#allocation2] sm:$0xff] %vm4064_vm14, %v4017_v29  ;;  %v5982_v44 = vcombine.low %v3700_v42, %v3711_v7  ;;  %v3475_v29 = vsel %vm285_vm3, %v8021_v17, %v8081_v15  ;;  %v6015_v15 = vcombine.low %v4797_v13, %v4808_v57  ;;  %v3506_v7 = vrot.slane %v3504_v53, 3  ;;  %v8801_v57 = vld [vmem:[#allocation48_spill] sm:$0xff] }
 0x49b   : > { %v4822_v35 = vpop.permute.xlu1 %4821 }
 0x49c   : > { %v4830_v59 = vrot.slane %v4822_v35, %v6667_v43  ;;  %v3991_v6 = vmul.bf16 %v5982_v44, %v3475_v29  ;;  %v3744_v35 = vrot.slane %v8065_v38, %v6667_v43  ;;  %v5088_v38 = vmul.bf16 %v6015_v15, %v8796_v5  ;;  %v8804_v5 = vld [vmem:[#allocation39_spill] sm:$0xff] }
 0x49d   : > { %5119 = vrot.lane.b32.xlu1 %v5084_v32, %s6360_s14  ;;  %v8793_v32 = vld [vmem:[#allocation20_spill] sm:$0xff]  ;;  %v3510_v18 = vor.u32 %v3509_v63, %v3506_v7  ;;  %v8808_v63 = vld [vmem:[#allocation27_spill] sm:$0xff] }
 0x49e   : > { %v6016_v60 = vcombine.low %v4819_v19, %v4830_v59  ;;  %v4536_v17 = vmul.bf16 %v5998_v55, %v8793_v32  ;;  %v3755_v59 = vrot.slane %v8794_v31, %v6667_v43 }
 0x49f   : > { %v8151_v48 = vpop.permute.xlu1 %4832  ;;  %v3511_v55 = vsel %vm285_vm3, %v8158_v51, %v3510_v18  ;;  %v8802_v51 = vld [vmem:[#allocation26_spill] sm:$0xff] }
 0x4a0   : > { %v5089_v62 = vmul.bf16 %v6016_v60, %v8785_v12  ;;  %v4311_v60 = vrot.slane %v8795_v14, %v6667_v43  ;;  %v4841_v49 = vrot.slane %v8151_v48, %v6667_v43 }
 0x4a1   : > { %4026 = vrot.lane.b32.xlu1 %v3989_v37, %s6358_s21  ;;  %v5984_v37 = vcombine.low %v3744_v35, %v3755_v59 }
 0x4a2   : > { %5129 = vrot.lane.b32.xlu0 %v5089_v62, %s6360_s14  ;;  %v4289_v62 = vrot.slane %v8109_v41, %v6667_v43  ;;  %v6334_v41 = vld [vmem:[%s6621_s11 + $0x6c] sm:$0xf] }
 0x4a3   : > { %v3993_v25 = vmul.bf16 %v5984_v37, %v3493_v30 }
 0x4a4   : > { %v3758_v61 = vpop.permute.xlu1 %3757  ;;  %v6000_v46 = vcombine.low %v4289_v62, %v4300_v11  ;;  %v8805_v11 = vld [vmem:[#allocation23_spill] sm:$0xff] }
 0x4a5   : > { %v3766_v28 = vrot.slane %v3758_v61, %v6667_v43  ;;  %4571 = vrot.lane.b32.xlu1 %v4534_v1, %s6359_s28  ;;  %v4852_v1 = vrot.slane %v8051_v39, %v6667_v43  ;;  %v5974_v61 = vcombine.low %v6334_v41, %v6335_v3  ;;  %v3843_v30 = vrot.slane %v8805_v11, %v6667_v43  ;;  %v8816_v11 = vld [vmem:[#allocation51_spill] sm:$0xff] }
 0x4a6   : > { %v4538_v39 = vmul.bf16 %v6000_v46, %v8798_v56  ;;  %v8809_v56 = vld [vmem:[#allocation28_spill] sm:$0xff] }
 0x4a7   : > { %v5985_v22 = vcombine.low %v3766_v28, %v3777_v36  ;;  %v6017_v42 = vcombine.low %v4841_v49, %v4852_v1  ;;  %v3513_v44 = vshrl.u32 %v5974_v61, 16  ;;  %v3516_v45 = vshll.u32 %v5974_v61, 16  ;;  %v8807_v1 = vld [vmem:[#allocation44_spill] sm:$0xff] }
 0x4a8   : > { %v3780_v19 = vpop.permute.xlu1 %3779 }
 0x4a9   : > { %v3994_v52 = vmul.bf16 %v5985_v22, %v3502_v8  ;;  %5123 = vrot.lane.b32.xlu1 %v5086_v26, %s6360_s14  ;;  %v3788_v16 = vrot.slane %v3780_v19, %v6667_v43  ;;  %v8799_v26 = vld [vmem:[#allocation37_spill] sm:$0xff]  ;;  %v3515_v19 = vrot.slane %v3513_v44, 3  ;;  %v3518_v13 = vrot.slane %v3516_v45, 4  ;;  %v8810_v45 = vld [vmem:[#allocation40_spill] sm:$0xff] }
 0x4aa   : > { %v5090_v22 = vmul.bf16 %v6017_v42, %v8799_v26  ;;  %v4940_v44 = vrot.slane %v8106_v21, %v6667_v43 }
 0x4ab   : > { %4036 = vrot.lane.b32.xlu0 %v3994_v52, %s6358_s21  ;;  %v8800_v52 = vld [vmem:[#allocation38_spill] sm:$0xff]  ;;  %v3519_v47 = vor.u32 %v3518_v13, %v3515_v19 }
 0x4ac   : > { %v3791_v50 = vpop.permute.xlu1 %3790 }
 0x4ad   : > { %4030 = vrot.lane.b32.xlu1 %v3991_v6, %s6358_s21  ;;  %v3799_v28 = vrot.slane %v3791_v50, %v6667_v43  ;;  %v4344_v50 = vrot.slane %v8801_v57, %v6667_v43  ;;  %v8812_v57 = vld [vmem:[#allocation25_spill] sm:$0xff] }
 0x4af   : > { %v5986_v20 = vcombine.low %v3788_v16, %v3799_v28  ;;  %v4907_v28 = vrot.slane %v8084_v9, %v6667_v43 }
 0x4b1   : > { %v4562_v58 = vpop.permute.xlu0 %4561  ;;  %4575 = vrot.lane.b32.xlu1 %v4536_v17, %s6359_s28  ;;  %v4314_v23 = vpop.permute.xlu1 %4313  ;;  %v3995_v17 = vmul.bf16 %v5986_v20, %v3511_v55  ;;  %v8811_v20 = vld [vmem:[#allocation15_spill] sm:$0xff] }
 0x4b2   : > { %4610 = vst.msk [vmem:[#allocation2] sm:$0xff] %vm4609_vm15, %v4562_v58  ;;  %v4322_v33 = vrot.slane %v4314_v23, %v6667_v43  ;;  %v8803_v58 = vld [vmem:[#allocation21_spill] sm:$0xff] }
 0x4b3   : > { %v3810_v23 = vrot.slane %v8803_v58, %v6667_v43 }
 0x4b4   : > { %v6001_v12 = vcombine.low %v4311_v60, %v4322_v33  ;;  %v3520_v60 = vsel %vm285_vm3, %v3510_v18, %v3519_v47 }
 0x4b5   : > { %5127 = vrot.lane.b32.xlu1 %v5088_v38, %s6360_s14  ;;  %v4325_v2 = vpop.permute.xlu1 %4324 }
 0x4b6   : > { %v4539_v34 = vmul.bf16 %v6001_v12, %v8797_v54  ;;  %v4333_v29 = vrot.slane %v4325_v2, %v6667_v43  ;;  %v8806_v12 = vld [vmem:[#allocation12_spill] sm:$0xff] }
 0x4b7   : > { %v3521_v62 = vsel %vm285_vm3, %v3519_v47, %v8806_v12  ;;  %vm5556_vm3 = vcmask 60416  }
 0x4b8   : > { %4581 = vrot.lane.b32.xlu0 %v4539_v34, %s6359_s28  ;;  %v6002_v15 = vcombine.low %v4333_v29, %v4344_v50  ;;  %v3865_v50 = vrot.slane %v8812_v57, %v6667_v43 }
 0x4b9   : > { %4034 = vrot.lane.b32.xlu1 %v3993_v25, %s6358_s21  ;;  %v4366_v25 = vrot.slane %v8807_v1, %v6667_v43  ;;  %v8819_v1 = vld [vmem:[#allocation11_spill] sm:$0xff] }
 0x4ba   : > { %v4855_v36 = vpop.permute.xlu1 %4854  ;;  %v4540_v0 = vmul.bf16 %v6002_v15, %v8802_v51 }
 0x4bb   : > { %v4863_v48 = vrot.slane %v4855_v36, %v6667_v43 }
 0x4bd   : > { %v6018_v8 = vcombine.low %v4863_v48, %v4874_v40  ;;  %4579 = vrot.lane.b32.xlu1 %v4538_v39, %s6359_s28 }
 0x4be   : > { %v4877_v27 = vpop.permute.xlu1 %4876 }
 0x4bf   : > { %v5091_v6 = vmul.bf16 %v6018_v8, %v8800_v52  ;;  %v4885_v10 = vrot.slane %v4877_v27, %v6667_v43 }
 0x4c1   : > { %5131 = vrot.lane.b32.xlu1 %v5090_v22, %s6360_s14  ;;  %5133 = vrot.lane.b32.xlu0 %v5091_v6, %s6360_s14 }
 0x4c2   : > { %v4888_v32 = vpop.permute.xlu1 %4887 }
 0x4c3   : > { %v4896_v35 = vrot.slane %v4888_v32, %v6667_v43 }
 0x4c5   : > { %4038 = vrot.lane.b32.xlu1 %v3995_v17, %s6358_s21  ;;  %v6019_v31 = vcombine.low %v4885_v10, %v4896_v35  ;;  %v8813_v17 = vld [vmem:[#allocation14_spill] sm:$0xff] }
 0x4c7   : > { %v3813_v59 = vpop.permute.xlu1 %3812  ;;  %v5092_v38 = vmul.bf16 %v6019_v31, %v8804_v5 }
 0x4c8   : > { %v3821_v14 = vrot.slane %v3813_v59, %v6667_v43  ;;  %v8814_v59 = vld [vmem:[#allocation13_spill] sm:$0xff] }
 0x4c9   : > { %4583 = vrot.lane.b32.xlu1 %v4540_v0, %s6359_s28 }
 0x4ca   : > { %v5987_v33 = vcombine.low %v3810_v23, %v3821_v14  ;;  %v8815_v14 = vld [vmem:[#allocation50_spill] sm:$0xff] }
 0x4cb   : > { %v3824_v37 = vpop.permute.xlu1 %3823 }
 0x4cc   : > { %v3996_v53 = vmul.bf16 %v5987_v33, %v3520_v60  ;;  %v3832_v24 = vrot.slane %v3824_v37, %v6667_v43  ;;  %v4399_v60 = vrot.slane %v8815_v14, %v6667_v43 }
 0x4cd   : > { %5135 = vrot.lane.b32.xlu1 %v5092_v38, %s6360_s14 }
 0x4ce   : > { %v5988_v2 = vcombine.low %v3832_v24, %v3843_v30  ;;  %4040 = vrot.lane.b32.xlu0 %v3996_v53, %s6358_s21  ;;  %v4432_v30 = vrot.slane %v8816_v11, %v6667_v43  ;;  %v8817_v53 = vld [vmem:[#allocation29_spill] sm:$0xff] }
 0x4d0   : > { %v3997_v54 = vmul.bf16 %v5988_v2, %v3521_v62  ;;  %v4347_v34 = vpop.permute.xlu1 %4346 }
 0x4d1   : > { %v4355_v46 = vrot.slane %v4347_v34, %v6667_v43 }
 0x4d2   : > { %4042 = vrot.lane.b32.xlu1 %v3997_v54, %s6358_s21  ;;  %v8818_v54 = vld [vmem:[#allocation17_spill] sm:$0xff] }
 0x4d3   : > { %v6003_v49 = vcombine.low %v4355_v46, %v4366_v25  ;;  %v6007_v34 = vcombine.low %v8818_v54, %v8818_v54 }
 0x4d4   : > { %v4369_v7 = vpop.permute.xlu1 %4368 }
 0x4d5   : > { %v4541_v41 = vmul.bf16 %v6003_v49, %v8808_v63  ;;  %v4377_v61 = vrot.slane %v4369_v7, %v6667_v43  ;;  %v4962_v49 = vrot.slane %v8119_v4, %v6667_v43 }
 0x4d7   : > { %4585 = vrot.lane.b32.xlu0 %v4541_v41, %s6359_s28  ;;  %v4628_v41 = vshll.u32 %v6007_v34, 16 }
 0x4d8   : > { %v4380_v3 = vpop.permute.xlu1 %4379 }
 0x4d9   : > { %v4388_v40 = vrot.slane %v4380_v3, %v6667_v43 }
 0x4db   : > { %v6004_v36 = vcombine.low %v4377_v61, %v4388_v40  ;;  %v8820_v40 = vld [vmem:[#allocation5_spill] sm:$0xff] }
 0x4dd   : > { %v4542_v39 = vmul.bf16 %v6004_v36, %v8809_v56  ;;  %v4910_v42 = vpop.permute.xlu1 %4909 }
 0x4de   : > { %v4918_v48 = vrot.slane %v4910_v42, %v6667_v43  ;;  %v5114_v18 = vpop.permute.xlu0 %5113 }
 0x4df   : > { %5162 = vst.msk [vmem:[#allocation2] sm:$0xff] %vm5161_vm0, %v5114_v18  ;;  %4587 = vrot.lane.b32.xlu1 %v4542_v39, %s6359_s28  ;;  %v4630_v39 = vrot.slane %v4628_v41, 1 }
 0x4e0   : > { %v6020_v16 = vcombine.low %v4907_v28, %v4918_v48  ;;  %v8821_v48 = vld [vmem:[#allocation8_spill] sm:$0xff] }
 0x4e1   : > { %v4921_v8 = vpop.permute.xlu1 %4920  ;;  %v4631_v18 = vsel %vm1600_vm6, %v8821_v48, %v4630_v39 }
 0x4e2   : > { %v5093_v27 = vmul.bf16 %v6020_v16, %v8810_v45  ;;  %v4929_v26 = vrot.slane %v4921_v8, %v6667_v43  ;;  %v4021_v22 = vpop.permute.xlu0 %4020 }
 0x4e3   : > { %4067 = vst.msk [vmem:[#allocation2 + $0x10] sm:$0xff] %vm4064_vm14, %v4021_v22 }
 0x4e4   : > { %v6021_v9 = vcombine.low %v4929_v26, %v4940_v44  ;;  %5137 = vrot.lane.b32.xlu0 %v5093_v27, %s6360_s14 }
 0x4e6   : > { %v5094_v29 = vmul.bf16 %v6021_v9, %v8811_v20  ;;  %v4566_v52 = vpop.permute.xlu0 %4565  ;;  %v3846_v6 = vpop.permute.xlu1 %3845  ;;  %v5178_v55 = vld [vmem:[#allocation2] sm:$0xff] }
 0x4e7   : > { %4612 = vst.msk [vmem:[#allocation2 + $0x10] sm:$0xff] %vm4609_vm15, %v4566_v52  ;;  %v3854_v21 = vrot.slane %v3846_v6, %v6667_v43  ;;  %6134 = vmatprep.mubr.msk.bf16.mxu0 %vm5214_vm2, %v5178_v55 }
 0x4e8   : > { %5139 = vrot.lane.b32.xlu1 %v5094_v29, %s6360_s14 }
 0x4e9   : > { %v5989_v19 = vcombine.low %v3854_v21, %v3865_v50 }
 0x4ea   : > { %v5118_v13 = vpop.permute.xlu0 %5117  ;;  %v3868_v32 = vpop.permute.xlu1 %3867 }
 0x4eb   : > { %v3998_v15 = vmul.bf16 %v5989_v19, %v8813_v17  ;;  %5164 = vst.msk [vmem:[#allocation2 + $0x10] sm:$0xff] %vm5161_vm0, %v5118_v13  ;;  %v3876_v47 = vrot.slane %v3868_v32, %v6667_v43 }
 0x4ed   : > { %4044 = vrot.lane.b32.xlu0 %v3998_v15, %s6358_s21 }
 0x4ee   : > { %v4025_v35 = vpop.permute.xlu0 %4024  ;;  %v3879_v10 = vpop.permute.xlu1 %3878 }
 0x4ef   : > { %4069 = vst.msk [vmem:[#allocation2 + $0x20] sm:$0xff] %vm4064_vm14, %v4025_v35  ;;  %v3887_v51 = vrot.slane %v3879_v10, %v6667_v43 }
 0x4f1   : > { %v5990_v0 = vcombine.low %v3876_v47, %v3887_v51 }
 0x4f2   : > { %v4570_v31 = vpop.permute.xlu0 %4569  ;;  %v5180_v52 = vld [vmem:[#allocation2 + $0x10] sm:$0xff] }
 0x4f3   : > { %v3999_v58 = vmul.bf16 %v5990_v0, %v8814_v59  ;;  %4614 = vst.msk [vmem:[#allocation2 + $0x20] sm:$0xff] %vm4609_vm15, %v4570_v31  ;;  %v4402_v23 = vpop.permute.xlu1 %4401 }
 0x4f4   : > { %v4410_v33 = vrot.slane %v4402_v23, %v6667_v43 }
 0x4f5   : > { %4046 = vrot.lane.b32.xlu1 %v3999_v58, %s6358_s21 }
 0x4f6   : > { %v6005_v5 = vcombine.low %v4399_v60, %v4410_v33  ;;  %v5122_v38 = vpop.permute.xlu0 %5121 }
 0x4f7   : > { %5166 = vst.msk [vmem:[#allocation2 + $0x20] sm:$0xff] %vm5161_vm0, %v5122_v38  ;;  %v4413_v37 = vpop.permute.xlu1 %4412 }
 0x4f8   : > { %v4543_v24 = vmul.bf16 %v6005_v5, %v8817_v53  ;;  %v4421_v12 = vrot.slane %v4413_v37, %v6667_v43 }
 0x4fa   : > { %v6006_v62 = vcombine.low %v4421_v12, %v4432_v30  ;;  %v4029_v2 = vpop.permute.xlu0 %4028  ;;  %4589 = vrot.lane.b32.xlu0 %v4543_v24, %s6359_s28 }
 0x4fb   : > { %4071 = vst.msk [vmem:[#allocation2 + $0x30] sm:$0xff] %vm4064_vm14, %v4029_v2 }
 0x4fc   : > { %v4544_v25 = vmul.bf16 %v6006_v62, %v8819_v1  ;;  %v4943_v46 = vpop.permute.xlu1 %4942 }
 0x4fd   : > { %v4951_v7 = vrot.slane %v4943_v46, %v6667_v43 }
 0x4fe   : > { %v4574_v63 = vpop.permute.xlu0 %4573  ;;  %4591 = vrot.lane.b32.xlu1 %v4544_v25, %s6359_s28  ;;  %v5182_v13 = vld [vmem:[#allocation2 + $0x20] sm:$0xff]  ;;  %s211_s28 = scalar_lea.vmem %s8509_s4, %s5860_s7 }
 0x4ff   : > { %v6022_v3 = vcombine.low %v4951_v7, %v4962_v49  ;;  %4616 = vst.msk [vmem:[#allocation2 + $0x30] sm:$0xff] %vm4609_vm15, %v4574_v63 }
 0x500   : > { %v4965_v61 = vpop.permute.xlu1 %4964 }
 0x501   : > { %v5095_v36 = vmul.bf16 %v6022_v3, %v8820_v40  ;;  %v4973_v4 = vrot.slane %v4965_v61, %v6667_v43 }
 0x502   : > { %v5126_v56 = vpop.permute.xlu0 %5125 }
 0x503   : > { %5168 = vst.msk [vmem:[#allocation2 + $0x30] sm:$0xff] %vm5161_vm0, %v5126_v56  ;;  %5141 = vrot.lane.b32.xlu0 %v5095_v36, %s6360_s14 }
 0x504   : > { %v4976_v42 = vpop.permute.xlu1 %4975 }
 0x505   : > { %v4984_v28 = vrot.slane %v4976_v42, %v6667_v43 }
 0x506   : > { %v4033_v16 = vpop.permute.xlu0 %4032 }
 0x507   : > { %v6023_v8 = vcombine.low %v4973_v4, %v4984_v28  ;;  %4073 = vst.msk [vmem:[#allocation2 + $0x40] sm:$0xff] %vm4064_vm14, %v4033_v16 }
 0x508   : > { %v4019_v44 = vpop.permute.xlu1 %4018 }
 0x509   : > { %v5096_v45 = vmul.bf16 %v6023_v8, %v4631_v18  ;;  %4066 = vst.msk [vmem:[#allocation2 + $0x8] sm:$0xff] %vm4064_vm14, %v4019_v44 }
 0x50a   : > { %v4578_v27 = vpop.permute.xlu0 %4577  ;;  %v5184_v47 = vld [vmem:[#allocation2 + $0x30] sm:$0xff] }
 0x50b   : > { %4618 = vst.msk [vmem:[#allocation2 + $0x40] sm:$0xff] %vm4609_vm15, %v4578_v27  ;;  %5143 = vrot.lane.b32.xlu1 %v5096_v45, %s6360_s14 }
 0x50c   : > { %v4564_v26 = vpop.permute.xlu1 %4563 }
 0x50d   : > { %4611 = vst.msk [vmem:[#allocation2 + $0x8] sm:$0xff] %vm4609_vm15, %v4564_v26 }
 0x510   : > { %v5116_v43 = vpop.permute.xlu1 %5115 }
 0x511   : > { %5163 = vst.msk [vmem:[#allocation2 + $0x8] sm:$0xff] %vm5161_vm0, %v5116_v43 }
 0x514   : > { %v5130_v22 = vpop.permute.xlu0 %5129  ;;  %v4023_v9 = vpop.permute.xlu1 %4022 }
 0x515   : > { %5170 = vst.msk [vmem:[#allocation2 + $0x40] sm:$0xff] %vm5161_vm0, %v5130_v22 }
 0x516   : > { %4068 = vst.msk [vmem:[#allocation2 + $0x18] sm:$0xff] %vm4064_vm14, %v4023_v9 }
 0x518   : > { %v4568_v20 = vpop.permute.xlu1 %4567  ;;  %v5179_v29 = vld [vmem:[#allocation2 + $0x8] sm:$0xff] }
 0x519   : > { %4613 = vst.msk [vmem:[#allocation2 + $0x18] sm:$0xff] %vm4609_vm15, %v4568_v20  ;;  %6135 = vmatmul.mubr.msk.bf16.vlgmr.msra.gmra.mrb[0].mxu0 %vm5214_vm2, %v5179_v29 }
 0x51a   : > { %6138 = vmatprep.mubr.msk.bf16.mxu0 %vm5214_vm2, %v5180_v52 }
 0x51c   : > { %v5120_v6 = vpop.permute.xlu1 %5119  ;;  %v5186_v55 = vld [vmem:[#allocation2 + $0x40] sm:$0xff] }
 0x51d   : > { %5165 = vst.msk [vmem:[#allocation2 + $0x18] sm:$0xff] %vm5161_vm0, %v5120_v6  ;;  %6150 = vmatprep.mubr.msk.bf16.mxu1 %vm5214_vm2, %v5186_v55  ;;  %v4037_v57 = vpop.permute.xlu0 %4036 }
 0x51e   : > { %4075 = vst.msk [vmem:[#allocation2 + $0x50] sm:$0xff] %vm4064_vm14, %v4037_v57 }
 0x520   : > { %v4027_v50 = vpop.permute.xlu1 %4026 }
 0x521   : > { %4070 = vst.msk [vmem:[#allocation2 + $0x28] sm:$0xff] %vm4064_vm14, %v4027_v50 }
 0x524   : > { %v4572_v21 = vpop.permute.xlu1 %4571  ;;  %v5181_v19 = vld [vmem:[#allocation2 + $0x18] sm:$0xff] }
 0x525   : > { %4615 = vst.msk [vmem:[#allocation2 + $0x28] sm:$0xff] %vm4609_vm15, %v4572_v21  ;;  %6139 = vmatmul.mubr.msk.bf16.gmra.mrb[4].mxu0 %vm5214_vm2, %v5181_v19 }
 0x526   : > { %6142 = vmatprep.mubr.msk.bf16.mxu0 %vm5214_vm2, %v5182_v13 }
 0x528   : > { %v5124_v32 = vpop.permute.xlu1 %5123 }
 0x529   : > { %5167 = vst.msk [vmem:[#allocation2 + $0x28] sm:$0xff] %vm5161_vm0, %v5124_v32 }
 0x52a   : > { %v4582_v17 = vpop.permute.xlu0 %4581 }
 0x52b   : > { %4620 = vst.msk [vmem:[#allocation2 + $0x50] sm:$0xff] %vm4609_vm15, %v4582_v17 }
 0x52c   : > { %v4031_v15 = vpop.permute.xlu1 %4030 }
 0x52d   : > { %4072 = vst.msk [vmem:[#allocation2 + $0x38] sm:$0xff] %vm4064_vm14, %v4031_v15 }
 0x530   : > { %v4576_v35 = vpop.permute.xlu1 %4575  ;;  %v5183_v10 = vld [vmem:[#allocation2 + $0x28] sm:$0xff] }
 0x531   : > { %4617 = vst.msk [vmem:[#allocation2 + $0x38] sm:$0xff] %vm4609_vm15, %v4576_v35  ;;  %6143 = vmatmul.mubr.msk.bf16.gmra.mrb[8].mxu0 %vm5214_vm2, %v5183_v10 }
 0x532   : > { %6146 = vmatprep.mubr.msk.bf16.mxu0 %vm5214_vm2, %v5184_v47 }
 0x533   : > { %v5134_v51 = vpop.permute.xlu0 %5133 }
 0x534   : > { %5172 = vst.msk [vmem:[#allocation2 + $0x50] sm:$0xff] %vm5161_vm0, %v5134_v51  ;;  %v5128_v0 = vpop.permute.xlu1 %5127 }
 0x535   : > { %5169 = vst.msk [vmem:[#allocation2 + $0x38] sm:$0xff] %vm5161_vm0, %v5128_v0 }
 0x538   : > { %v4035_v31 = vpop.permute.xlu1 %4034 }
 0x539   : > { %4074 = vst.msk [vmem:[#allocation2 + $0x48] sm:$0xff] %vm4064_vm14, %v4035_v31 }
 0x53b   : > { %v5188_v37 = vld [vmem:[#allocation2 + $0x50] sm:$0xff] }
 0x53c   : > { %v4580_v59 = vpop.permute.xlu1 %4579  ;;  %v5185_v58 = vld [vmem:[#allocation2 + $0x38] sm:$0xff] }
 0x53d   : > { %4619 = vst.msk [vmem:[#allocation2 + $0x48] sm:$0xff] %vm4609_vm15, %v4580_v59  ;;  %6147 = vmatmul.mubr.msk.bf16.gmra.mrb[12].mxu0 %vm5214_vm2, %v5185_v58 }
 0x540   : > { %v4041_v23 = vpop.permute.xlu0 %4040  ;;  %v5132_v14 = vpop.permute.xlu1 %5131 }
 0x541   : > { %4077 = vst.msk [vmem:[#allocation2 + $0x60] sm:$0xff] %vm4064_vm14, %v4041_v23 }
 0x542   : > { %5171 = vst.msk [vmem:[#allocation2 + $0x48] sm:$0xff] %vm5161_vm0, %v5132_v14 }
 0x544   : > { %v4039_v60 = vpop.permute.xlu1 %4038 }
 0x545   : > { %4076 = vst.msk [vmem:[#allocation2 + $0x58] sm:$0xff] %vm4064_vm14, %v4039_v60 }
 0x548   : > { %v4584_v33 = vpop.permute.xlu1 %4583 }
 0x549   : > { %v5187_v5 = vld [vmem:[#allocation2 + $0x48] sm:$0xff]  ;;  %4621 = vst.msk [vmem:[#allocation2 + $0x58] sm:$0xff] %vm4609_vm15, %v4584_v33  ;;  %v4586_v38 = vpop.permute.xlu0 %4585 }
 0x54a   : > { %6151 = vmatmul.mubr.msk.bf16.vlgmr.msra.gmra.mrb[0].mxu1 %vm5214_vm2, %v5187_v5  ;;  %4622 = vst.msk [vmem:[#allocation2 + $0x60] sm:$0xff] %vm4609_vm15, %v4586_v38 }
 0x54b   : > { %6154 = vmatprep.mubr.msk.bf16.mxu1 %vm5214_vm2, %v5188_v37 }
 0x54c   : > { %v5136_v11 = vpop.permute.xlu1 %5135 }
 0x54d   : > { %5173 = vst.msk [vmem:[#allocation2 + $0x58] sm:$0xff] %vm5161_vm0, %v5136_v11 }
 0x550   : > { %v4043_v30 = vpop.permute.xlu1 %4042 }
 0x551   : > { %4078 = vst.msk [vmem:[#allocation2 + $0x68] sm:$0xff] %vm4064_vm14, %v4043_v30 }
 0x554   : > { %v4588_v53 = vpop.permute.xlu1 %4587  ;;  %v5189_v24 = vld [vmem:[#allocation2 + $0x58] sm:$0xff] }
 0x555   : > { %4623 = vst.msk [vmem:[#allocation2 + $0x68] sm:$0xff] %vm4609_vm15, %v4588_v53  ;;  %6155 = vmatmul.mubr.msk.bf16.gmra.mrb[4].mxu1 %vm5214_vm2, %v5189_v24 }
 0x556   : > { %v5138_v12 = vpop.permute.xlu0 %5137 }
 0x557   : > { %5174 = vst.msk [vmem:[#allocation2 + $0x60] sm:$0xff] %vm5161_vm0, %v5138_v12 }
 0x55a   : > { %v5140_v62 = vpop.permute.xlu1 %5139 }
 0x55b   : > { %5175 = vst.msk [vmem:[#allocation2 + $0x68] sm:$0xff] %vm5161_vm0, %v5140_v62 }
 0x55e   : > { %v5190_v2 = vld [vmem:[#allocation2 + $0x60] sm:$0xff] }
 0x55f   : > { %v4045_v54 = vpop.permute.xlu0 %4044  ;;  %6158 = vmatprep.mubr.msk.bf16.mxu1 %vm5214_vm2, %v5190_v2 }
 0x560   : > { %4079 = vst.msk [vmem:[#allocation2 + $0x70] sm:$0xff] %vm4064_vm14, %v4045_v54 }
 0x562   : > { %v5191_v34 = vld [vmem:[#allocation2 + $0x68] sm:$0xff] }
 0x563   : > { %6159 = vmatmul.mubr.msk.bf16.gmra.mrb[8].mxu1 %vm5214_vm2, %v5191_v34 }
 0x567   : > { %v4047_v1 = vpop.permute.xlu1 %4046 }
 0x568   : > { %4080 = vst.msk [vmem:[#allocation2 + $0x78] sm:$0xff] %vm4064_vm14, %v4047_v1 }
 0x56c   : > { %v4590_v25 = vpop.permute.xlu0 %4589 }
 0x56d   : > { %4624 = vst.msk [vmem:[#allocation2 + $0x70] sm:$0xff] %vm4609_vm15, %v4590_v25 }
 0x570   : > { %v4592_v46 = vpop.permute.xlu1 %4591 }
 0x571   : > { %4625 = vst.msk [vmem:[#allocation2 + $0x78] sm:$0xff] %vm4609_vm15, %v4592_v46 }
 0x575   : > { %v5142_v49 = vpop.permute.xlu0 %5141 }
 0x576   : > { %5176 = vst.msk [vmem:[#allocation2 + $0x70] sm:$0xff] %vm5161_vm0, %v5142_v49 }
 0x57d   : > { %v5144_v7 = vpop.permute.xlu1 %5143  ;;  %v5192_v63 = vld [vmem:[#allocation2 + $0x70] sm:$0xff] }
 0x57e   : > { %5177 = vst.msk [vmem:[#allocation2 + $0x78] sm:$0xff] %vm5161_vm0, %v5144_v7  ;;  %6162 = vmatprep.mubr.msk.bf16.mxu1 %vm5214_vm2, %v5192_v63 }
 0x585   : > { %v5193_v41 = vld [vmem:[#allocation2 + $0x78] sm:$0xff] }
 0x586   : > { %6163 = vmatmul.mubr.msk.bf16.gmra.mrb[12].mxu1 %vm5214_vm2, %v5193_v41 }
 0x5ec   : > { %v6136_v3 = vpop.f32.mrb[0].mxu0 }
 0x5ed   : > { %v6079_v61 = vpack.c.bf16 %v6136_v3, %v6136_v3  ;;  %v5301_v40 = vpop.f32.mrb[1].mxu0  ;;  %v5661_v42 = vmul.f32 %v6136_v3, %v6136_v3  ;;  %v5593_v45 = vsel %vm5589_vm4, %v6136_v3, 0.0 }
 0x5ee   : > { %v6077_v36 = vpack.c.bf16 %v5301_v40, %v5301_v40  ;;  %v5659_v56 = vmul.f32 %v5301_v40, %v5301_v40  ;;  %v6137_v39 = vpop.f32.mrb[2].mxu0  ;;  %v5590_v48 = vsel %vm5589_vm4, %v5301_v40, 0.0 }
 0x5ef   : > { %5559 = vst.msk [vmem:[%s8366_s26 + $0x8] sm:$0xf] %vm5556_vm3, %v6079_v61  ;;  %v6080_v4 = vpack.c.bf16 %v6137_v39, %v6137_v39  ;;  %v5304_v28 = vpop.f32.mrb[3].mxu0  ;;  %v5662_v26 = vmul.f32 %v6137_v39, %v6137_v39  ;;  %v5694_v20 = vsel %vm5589_vm4, %v5661_v42, 0.0  ;;  %v5595_v29 = vsel %vm5589_vm4, %v6137_v39, 0.0 }
 0x5f0   : > { %5557 = vst.msk [vmem:[%s8366_s26] sm:$0xf] %vm5556_vm3, %v6077_v36  ;;  %v6078_v18 = vpack.c.bf16 %v5304_v28, %v5304_v28  ;;  %v5591_v16 = vsel %vm5589_vm4, %v5304_v28, 0.0  ;;  %v5660_v8 = vmul.f32 %v5304_v28, %v5304_v28  ;;  %v5691_v27 = vsel %vm5589_vm4, %v5659_v56, 0.0 }
 0x5f1   : > { %5560 = vst.msk [vmem:[%s8366_s26 + $0xc] sm:$0xf] %vm5556_vm3, %v6080_v4  ;;  %v5592_v44 = vadd.f32 %v5591_v16, %v5590_v48  ;;  %v5696_v55 = vsel %vm5589_vm4, %v5662_v26, 0.0 }
 0x5f2   : > { %5558 = vst.msk [vmem:[%s8366_s26 + $0x4] sm:$0xf] %vm5556_vm3, %v6078_v18  ;;  %v5692_v43 = vsel %vm5589_vm4, %v5660_v8, 0.0 }
 0x5f3   : > { %v5594_v22 = vadd.f32 %v5593_v45, %v5592_v44  ;;  %v5693_v9 = vadd.f32 %v5692_v43, %v5691_v27 }
 0x5f5   : > { %v5695_v52 = vadd.f32 %v5694_v20, %v5693_v9  ;;  %v5596_v6 = vadd.f32 %v5595_v29, %v5594_v22 }
 0x5f7   : > { %v5697_v57 = vadd.f32 %v5696_v55, %v5695_v52 }
 0x5f8   : > { %v6140_v50 = vpop.f32.mrb[4].mxu0 }
 0x5f9   : > { %v6083_v21 = vpack.c.bf16 %v6140_v50, %v6140_v50  ;;  %v5317_v19 = vpop.f32.mrb[5].mxu0  ;;  %v5665_v59 = vmul.f32 %v6140_v50, %v6140_v50  ;;  %v5601_v60 = vsel %vm5589_vm4, %v6140_v50, 0.0 }
 0x5fa   : > { %v6081_v13 = vpack.c.bf16 %v5317_v19, %v5317_v19  ;;  %v5597_v32 = vsel %vm5589_vm4, %v5317_v19, 0.0  ;;  %v5663_v17 = vmul.f32 %v5317_v19, %v5317_v19  ;;  %v6141_v15 = vpop.f32.mrb[6].mxu0 }
 0x5fb   : > { %5563 = vst.msk [vmem:[%s8366_s26 + $0x18] sm:$0xf] %vm5556_vm3, %v6083_v21  ;;  %v5598_v35 = vadd.f32 %v5597_v32, %v5596_v6  ;;  %v6084_v10 = vpack.c.bf16 %v6141_v15, %v6141_v15  ;;  %v5320_v47 = vpop.f32.mrb[7].mxu0  ;;  %v5666_v33 = vmul.f32 %v6141_v15, %v6141_v15  ;;  %v5603_v37 = vsel %vm5589_vm4, %v6141_v15, 0.0 }
 0x5fc   : > { %5561 = vst.msk [vmem:[%s8366_s26 + $0x10] sm:$0xf] %vm5556_vm3, %v6081_v13  ;;  %v5698_v51 = vsel %vm5589_vm4, %v5663_v17, 0.0  ;;  %v6082_v0 = vpack.c.bf16 %v5320_v47, %v5320_v47  ;;  %v5599_v31 = vsel %vm5589_vm4, %v5320_v47, 0.0  ;;  %v5664_v14 = vmul.f32 %v5320_v47, %v5320_v47 }
 0x5fd   : > { %v5699_v58 = vadd.f32 %v5698_v51, %v5697_v57  ;;  %5564 = vst.msk [vmem:[%s8366_s26 + $0x1c] sm:$0xf] %vm5556_vm3, %v6084_v10  ;;  %v5600_v23 = vadd.f32 %v5599_v31, %v5598_v35  ;;  %v5702_v30 = vsel %vm5589_vm4, %v5665_v59, 0.0  ;;  %v5704_v12 = vsel %vm5589_vm4, %v5666_v33, 0.0 }
 0x5fe   : > { %5562 = vst.msk [vmem:[%s8366_s26 + $0x14] sm:$0xf] %vm5556_vm3, %v6082_v0  ;;  %v5700_v38 = vsel %vm5589_vm4, %v5664_v14, 0.0 }
 0x5ff   : > { %v5602_v5 = vadd.f32 %v5601_v60, %v5600_v23  ;;  %v5701_v11 = vadd.f32 %v5700_v38, %v5699_v58 }
 0x601   : > { %v5604_v53 = vadd.f32 %v5603_v37, %v5602_v5  ;;  %v5703_v24 = vadd.f32 %v5702_v30, %v5701_v11 }
 0x603   : > { %v5705_v2 = vadd.f32 %v5704_v12, %v5703_v24 }
 0x604   : > { %v6144_v62 = vpop.f32.mrb[8].mxu0 }
 0x605   : > { %v6087_v54 = vpack.c.bf16 %v6144_v62, %v6144_v62  ;;  %v5333_v34 = vpop.f32.mrb[9].mxu0  ;;  %v5669_v36 = vmul.f32 %v6144_v62, %v6144_v62  ;;  %v5609_v4 = vsel %vm5589_vm4, %v6144_v62, 0.0 }
 0x606   : > { %v6085_v1 = vpack.c.bf16 %v5333_v34, %v5333_v34  ;;  %v5605_v25 = vsel %vm5589_vm4, %v5333_v34, 0.0  ;;  %v5667_v46 = vmul.f32 %v5333_v34, %v5333_v34  ;;  %v6145_v49 = vpop.f32.mrb[10].mxu0 }
 0x607   : > { %5567 = vst.msk [vmem:[%s8366_s26 + $0x28] sm:$0xf] %vm5556_vm3, %v6087_v54  ;;  %v5606_v7 = vadd.f32 %v5605_v25, %v5604_v53  ;;  %v6088_v63 = vpack.c.bf16 %v6145_v49, %v6145_v49  ;;  %v5336_v41 = vpop.f32.mrb[11].mxu0  ;;  %v5670_v28 = vmul.f32 %v6145_v49, %v6145_v49  ;;  %v5611_v16 = vsel %vm5589_vm4, %v6145_v49, 0.0 }
 0x608   : > { %5565 = vst.msk [vmem:[%s8366_s26 + $0x20] sm:$0xf] %vm5556_vm3, %v6085_v1  ;;  %v5706_v3 = vsel %vm5589_vm4, %v5667_v46, 0.0  ;;  %v6086_v61 = vpack.c.bf16 %v5336_v41, %v5336_v41  ;;  %v5607_v40 = vsel %vm5589_vm4, %v5336_v41, 0.0  ;;  %v5668_v42 = vmul.f32 %v5336_v41, %v5336_v41 }
 0x609   : > { %v5707_v56 = vadd.f32 %v5706_v3, %v5705_v2  ;;  %5568 = vst.msk [vmem:[%s8366_s26 + $0x2c] sm:$0xf] %vm5556_vm3, %v6088_v63  ;;  %v5608_v39 = vadd.f32 %v5607_v40, %v5606_v7  ;;  %v5710_v44 = vsel %vm5589_vm4, %v5669_v36, 0.0  ;;  %v5712_v26 = vsel %vm5589_vm4, %v5670_v28, 0.0 }
 0x60a   : > { %5566 = vst.msk [vmem:[%s8366_s26 + $0x24] sm:$0xf] %vm5556_vm3, %v6086_v61  ;;  %v5708_v18 = vsel %vm5589_vm4, %v5668_v42, 0.0 }
 0x60b   : > { %v5610_v48 = vadd.f32 %v5609_v4, %v5608_v39  ;;  %v5709_v8 = vadd.f32 %v5708_v18, %v5707_v56 }
 0x60d   : > { %v5612_v45 = vadd.f32 %v5611_v16, %v5610_v48  ;;  %v5711_v27 = vadd.f32 %v5710_v44, %v5709_v8 }
 0x60f   : > { %v5713_v22 = vadd.f32 %v5712_v26, %v5711_v27 }
 0x610   : > { %v6148_v43 = vpop.f32.mrb[12].mxu0 }
 0x611   : > { %v6091_v9 = vpack.c.bf16 %v6148_v43, %v6148_v43  ;;  %v5349_v20 = vpop.f32.mrb[13].mxu0  ;;  %v5673_v17 = vmul.f32 %v6148_v43, %v6148_v43  ;;  %v5617_v47 = vsel %vm5589_vm4, %v6148_v43, 0.0 }
 0x612   : > { %v6089_v29 = vpack.c.bf16 %v5349_v20, %v5349_v20  ;;  %v5613_v52 = vsel %vm5589_vm4, %v5349_v20, 0.0  ;;  %v5671_v6 = vmul.f32 %v5349_v20, %v5349_v20  ;;  %v6149_v55 = vpop.f32.mrb[14].mxu0 }
 0x613   : > { %5571 = vst.msk [vmem:[%s8366_s26 + $0x38] sm:$0xf] %vm5556_vm3, %v6091_v9  ;;  %v5614_v57 = vadd.f32 %v5613_v52, %v5612_v45  ;;  %v6092_v50 = vpack.c.bf16 %v6149_v55, %v6149_v55  ;;  %v5352_v21 = vpop.f32.mrb[15].mxu0  ;;  %v5674_v51 = vmul.f32 %v6149_v55, %v6149_v55  ;;  %v5619_v59 = vsel %vm5589_vm4, %v6149_v55, 0.0 }
 0x614   : > { %5569 = vst.msk [vmem:[%s8366_s26 + $0x30] sm:$0xf] %vm5556_vm3, %v6089_v29  ;;  %v5714_v19 = vsel %vm5589_vm4, %v5671_v6, 0.0  ;;  %v6090_v13 = vpack.c.bf16 %v5352_v21, %v5352_v21  ;;  %v5615_v32 = vsel %vm5589_vm4, %v5352_v21, 0.0  ;;  %v5672_v10 = vmul.f32 %v5352_v21, %v5352_v21 }
 0x615   : > { %v5715_v15 = vadd.f32 %v5714_v19, %v5713_v22  ;;  %5572 = vst.msk [vmem:[%s8366_s26 + $0x3c] sm:$0xf] %vm5556_vm3, %v6092_v50  ;;  %v5616_v35 = vadd.f32 %v5615_v32, %v5614_v57  ;;  %v5718_v23 = vsel %vm5589_vm4, %v5673_v17, 0.0  ;;  %v5720_v33 = vsel %vm5589_vm4, %v5674_v51, 0.0 }
 0x616   : > { %5570 = vst.msk [vmem:[%s8366_s26 + $0x34] sm:$0xf] %vm5556_vm3, %v6090_v13  ;;  %v5716_v31 = vsel %vm5589_vm4, %v5672_v10, 0.0 }
 0x617   : > { %v5618_v0 = vadd.f32 %v5617_v47, %v5616_v35  ;;  %v5717_v58 = vadd.f32 %v5716_v31, %v5715_v15 }
 0x619   : > { %v5620_v14 = vadd.f32 %v5619_v59, %v5618_v0  ;;  %v5719_v60 = vadd.f32 %v5718_v23, %v5717_v58 }
 0x61b   : > { %v5721_v38 = vadd.f32 %v5720_v33, %v5719_v60 }
 0x61d   : > { %v6152_v5 = vpop.f32.mrb[0].mxu1 }
 0x61e   : > { %v6095_v37 = vpack.c.bf16 %v6152_v5, %v6152_v5  ;;  %v5365_v11 = vpop.f32.mrb[1].mxu1  ;;  %v5677_v46 = vmul.f32 %v6152_v5, %v6152_v5  ;;  %v5625_v41 = vsel %vm5589_vm4, %v6152_v5, 0.0 }
 0x61f   : > { %v6093_v30 = vpack.c.bf16 %v5365_v11, %v5365_v11  ;;  %v5621_v53 = vsel %vm5589_vm4, %v5365_v11, 0.0  ;;  %v5675_v24 = vmul.f32 %v5365_v11, %v5365_v11  ;;  %v6153_v12 = vpop.f32.mrb[2].mxu1 }
 0x620   : > { %5575 = vst.msk [vmem:[%s8366_s26 + $0x48] sm:$0xf] %vm5556_vm3, %v6095_v37  ;;  %v5622_v62 = vadd.f32 %v5621_v53, %v5620_v14  ;;  %v6096_v2 = vpack.c.bf16 %v6153_v12, %v6153_v12  ;;  %v5368_v54 = vpop.f32.mrb[3].mxu1  ;;  %v5678_v3 = vmul.f32 %v6153_v12, %v6153_v12  ;;  %v5627_v36 = vsel %vm5589_vm4, %v6153_v12, 0.0 }
 0x621   : > { %5573 = vst.msk [vmem:[%s8366_s26 + $0x40] sm:$0xf] %vm5556_vm3, %v6093_v30  ;;  %v5722_v34 = vsel %vm5589_vm4, %v5675_v24, 0.0  ;;  %v6094_v1 = vpack.c.bf16 %v5368_v54, %v5368_v54  ;;  %v5623_v25 = vsel %vm5589_vm4, %v5368_v54, 0.0  ;;  %v5676_v63 = vmul.f32 %v5368_v54, %v5368_v54 }
 0x622   : > { %v5723_v49 = vadd.f32 %v5722_v34, %v5721_v38  ;;  %5576 = vst.msk [vmem:[%s8366_s26 + $0x4c] sm:$0xf] %vm5556_vm3, %v6096_v2  ;;  %v5624_v7 = vadd.f32 %v5623_v25, %v5622_v62  ;;  %v5726_v39 = vsel %vm5589_vm4, %v5677_v46, 0.0  ;;  %v5728_v28 = vsel %vm5589_vm4, %v5678_v3, 0.0 }
 0x623   : > { %5574 = vst.msk [vmem:[%s8366_s26 + $0x44] sm:$0xf] %vm5556_vm3, %v6094_v1  ;;  %v5724_v40 = vsel %vm5589_vm4, %v5676_v63, 0.0 }
 0x624   : > { %v5626_v61 = vadd.f32 %v5625_v41, %v5624_v7  ;;  %v5725_v56 = vadd.f32 %v5724_v40, %v5723_v49 }
 0x626   : > { %v5628_v42 = vadd.f32 %v5627_v36, %v5626_v61  ;;  %v5727_v4 = vadd.f32 %v5726_v39, %v5725_v56 }
 0x628   : > { %v6156_v48 = vpop.f32.mrb[4].mxu1  ;;  %v5729_v18 = vadd.f32 %v5728_v28, %v5727_v4 }
 0x629   : > { %v6099_v16 = vpack.c.bf16 %v6156_v48, %v6156_v48  ;;  %v5381_v8 = vpop.f32.mrb[5].mxu1  ;;  %v5681_v6 = vmul.f32 %v6156_v48, %v6156_v48  ;;  %v5633_v21 = vsel %vm5589_vm4, %v6156_v48, 0.0 }
 0x62a   : > { %v6097_v44 = vpack.c.bf16 %v5381_v8, %v5381_v8  ;;  %v5629_v45 = vsel %vm5589_vm4, %v5381_v8, 0.0  ;;  %v5679_v27 = vmul.f32 %v5381_v8, %v5381_v8  ;;  %v6157_v26 = vpop.f32.mrb[6].mxu1 }
 0x62b   : > { %5579 = vst.msk [vmem:[%s8366_s26 + $0x58] sm:$0xf] %vm5556_vm3, %v6099_v16  ;;  %v5630_v43 = vadd.f32 %v5629_v45, %v5628_v42  ;;  %v6100_v22 = vpack.c.bf16 %v6157_v26, %v6157_v26  ;;  %v5384_v9 = vpop.f32.mrb[7].mxu1  ;;  %v5682_v19 = vmul.f32 %v6157_v26, %v6157_v26  ;;  %v5635_v17 = vsel %vm5589_vm4, %v6157_v26, 0.0 }
 0x62c   : > { %5577 = vst.msk [vmem:[%s8366_s26 + $0x50] sm:$0xf] %vm5556_vm3, %v6097_v44  ;;  %v5730_v20 = vsel %vm5589_vm4, %v5679_v27, 0.0  ;;  %v6098_v29 = vpack.c.bf16 %v5384_v9, %v5384_v9  ;;  %v5631_v52 = vsel %vm5589_vm4, %v5384_v9, 0.0  ;;  %v5680_v50 = vmul.f32 %v5384_v9, %v5384_v9 }
 0x62d   : > { %v5731_v55 = vadd.f32 %v5730_v20, %v5729_v18  ;;  %5580 = vst.msk [vmem:[%s8366_s26 + $0x5c] sm:$0xf] %vm5556_vm3, %v6100_v22  ;;  %v5632_v57 = vadd.f32 %v5631_v52, %v5630_v43  ;;  %v5734_v35 = vsel %vm5589_vm4, %v5681_v6, 0.0  ;;  %v5736_v51 = vsel %vm5589_vm4, %v5682_v19, 0.0 }
 0x62e   : > { %5578 = vst.msk [vmem:[%s8366_s26 + $0x54] sm:$0xf] %vm5556_vm3, %v6098_v29  ;;  %v5732_v32 = vsel %vm5589_vm4, %v5680_v50, 0.0 }
 0x62f   : > { %v5634_v13 = vadd.f32 %v5633_v21, %v5632_v57  ;;  %v5733_v15 = vadd.f32 %v5732_v32, %v5731_v55 }
 0x631   : > { %v5636_v10 = vadd.f32 %v5635_v17, %v5634_v13  ;;  %v5735_v47 = vadd.f32 %v5734_v35, %v5733_v15 }
 0x633   : > { %v5737_v0 = vadd.f32 %v5736_v51, %v5735_v47 }
 0x636   : > { %v6160_v31 = vpop.f32.mrb[8].mxu1 }
 0x637   : > { %v6103_v59 = vpack.c.bf16 %v6160_v31, %v6160_v31  ;;  %v5397_v58 = vpop.f32.mrb[9].mxu1  ;;  %v5685_v24 = vmul.f32 %v6160_v31, %v6160_v31  ;;  %v5641_v54 = vsel %vm5589_vm4, %v6160_v31, 0.0 }
 0x638   : > { %v6101_v23 = vpack.c.bf16 %v5397_v58, %v5397_v58  ;;  %v5637_v14 = vsel %vm5589_vm4, %v5397_v58, 0.0  ;;  %v5683_v60 = vmul.f32 %v5397_v58, %v5397_v58  ;;  %v6161_v33 = vpop.f32.mrb[10].mxu1 }
 0x639   : > { %5583 = vst.msk [vmem:[%s8366_s26 + $0x68] sm:$0xf] %vm5556_vm3, %v6103_v59  ;;  %v5638_v5 = vadd.f32 %v5637_v14, %v5636_v10  ;;  %v6104_v38 = vpack.c.bf16 %v6161_v33, %v6161_v33  ;;  %v5400_v37 = vpop.f32.mrb[11].mxu1  ;;  %v5686_v34 = vmul.f32 %v6161_v33, %v6161_v33  ;;  %v5643_v46 = vsel %vm5589_vm4, %v6161_v33, 0.0 }
 0x63a   : > { %5581 = vst.msk [vmem:[%s8366_s26 + $0x60] sm:$0xf] %vm5556_vm3, %v6101_v23  ;;  %v5738_v11 = vsel %vm5589_vm4, %v5683_v60, 0.0  ;;  %v6102_v30 = vpack.c.bf16 %v5400_v37, %v5400_v37  ;;  %v5639_v53 = vsel %vm5589_vm4, %v5400_v37, 0.0  ;;  %v5684_v2 = vmul.f32 %v5400_v37, %v5400_v37 }
 0x63b   : > { %v5739_v12 = vadd.f32 %v5738_v11, %v5737_v0  ;;  %5584 = vst.msk [vmem:[%s8366_s26 + $0x6c] sm:$0xf] %vm5556_vm3, %v6104_v38  ;;  %v5640_v62 = vadd.f32 %v5639_v53, %v5638_v5  ;;  %v5742_v7 = vsel %vm5589_vm4, %v5685_v24, 0.0  ;;  %v5744_v3 = vsel %vm5589_vm4, %v5686_v34, 0.0 }
 0x63c   : > { %5582 = vst.msk [vmem:[%s8366_s26 + $0x64] sm:$0xf] %vm5556_vm3, %v6102_v30  ;;  %v5740_v25 = vsel %vm5589_vm4, %v5684_v2, 0.0 }
 0x63d   : > { %v5642_v1 = vadd.f32 %v5641_v54, %v5640_v62  ;;  %v5741_v49 = vadd.f32 %v5740_v25, %v5739_v12 }
 0x63f   : > { %v5644_v63 = vadd.f32 %v5643_v46, %v5642_v1  ;;  %v5743_v41 = vadd.f32 %v5742_v7, %v5741_v49 }
 0x641   : > { %v5745_v61 = vadd.f32 %v5744_v3, %v5743_v41 }
 0x659   : > { %v6164_v40 = vpop.f32.mrb[12].mxu1 }
 0x65a   : > { %v6107_v36 = vpack.c.bf16 %v6164_v40, %v6164_v40  ;;  %v5413_v56 = vpop.f32.mrb[13].mxu1  ;;  %v5689_v27 = vmul.f32 %v6164_v40, %v6164_v40  ;;  %v5649_v9 = vsel %vm5589_vm4, %v6164_v40, 0.0 }
 0x65b   : > { %v6105_v39 = vpack.c.bf16 %v5413_v56, %v5413_v56  ;;  %v5645_v42 = vsel %vm5589_vm4, %v5413_v56, 0.0  ;;  %v5687_v4 = vmul.f32 %v5413_v56, %v5413_v56  ;;  %v6165_v28 = vpop.f32.mrb[14].mxu1 }
 0x65c   : > { %5587 = vst.msk [vmem:[%s8366_s26 + $0x78] sm:$0xf] %vm5556_vm3, %v6107_v36  ;;  %v5646_v48 = vadd.f32 %v5645_v42, %v5644_v63  ;;  %v6108_v18 = vpack.c.bf16 %v6165_v28, %v6165_v28  ;;  %v5416_v16 = vpop.f32.mrb[15].mxu1  ;;  %v5690_v20 = vmul.f32 %v6165_v28, %v6165_v28  ;;  %v5651_v6 = vsel %vm5589_vm4, %v6165_v28, 0.0 }
 0x65d   : > { %5585 = vst.msk [vmem:[%s8366_s26 + $0x70] sm:$0xf] %vm5556_vm3, %v6105_v39  ;;  %v5746_v8 = vsel %vm5589_vm4, %v5687_v4, 0.0  ;;  %v6106_v44 = vpack.c.bf16 %v5416_v16, %v5416_v16  ;;  %v5647_v45 = vsel %vm5589_vm4, %v5416_v16, 0.0  ;;  %v5688_v22 = vmul.f32 %v5416_v16, %v5416_v16 }
 0x65e   : > { %v5747_v26 = vadd.f32 %v5746_v8, %v5745_v61  ;;  %5588 = vst.msk [vmem:[%s8366_s26 + $0x7c] sm:$0xf] %vm5556_vm3, %v6108_v18  ;;  %v5648_v43 = vadd.f32 %v5647_v45, %v5646_v48  ;;  %v5750_v57 = vsel %vm5589_vm4, %v5689_v27, 0.0  ;;  %v5752_v19 = vsel %vm5589_vm4, %v5690_v20, 0.0 }
 0x65f   : > { %5586 = vst.msk [vmem:[%s8366_s26 + $0x74] sm:$0xf] %vm5556_vm3, %v6106_v44  ;;  %v5748_v52 = vsel %vm5589_vm4, %v5688_v22, 0.0 }
 0x660   : > { %v5650_v29 = vadd.f32 %v5649_v9, %v5648_v43  ;;  %v5749_v55 = vadd.f32 %v5748_v52, %v5747_v26 }
 0x662   : > { %v5652_v50 = vadd.f32 %v5651_v6, %v5650_v29  ;;  %v5751_v21 = vadd.f32 %v5750_v57, %v5749_v55 }
 0x664   : > { %v5653_v13 = vrot.slane %v5652_v50, 4  ;;  %v5753_v32 = vadd.f32 %v5752_v19, %v5751_v21 }
 0x666   : > { %v5654_v17 = vadd.f32 %v5653_v13, %v5652_v50  ;;  %v5754_v15 = vrot.slane %v5753_v32, 4 }
 0x668   : > { %v5655_v35 = vrot.slane %v5654_v17, 2  ;;  %v5755_v10 = vadd.f32 %v5754_v15, %v5753_v32 }
 0x66a   : > { %v5656_v47 = vadd.f32 %v5655_v35, %v5654_v17  ;;  %v5756_v51 = vrot.slane %v5755_v10, 2 }
 0x66c   : > { %v5657_v0 = vrot.slane %v5656_v47, 1  ;;  %v5757_v31 = vadd.f32 %v5756_v51, %v5755_v10 }
 0x66e   : > { %v5758_v59 = vrot.slane %v5757_v31, 1  ;;  %v5658_v58 = vadd.f32 %v5657_v0, %v5656_v47 }
 0x670   : > { %v5759_v23 = vadd.f32 %v5758_v59, %v5757_v31 }
 0x672   : > { %v5761_v14 = vsel %vm513_vm1, %v5658_v58, %v5759_v23 }
 0x673   : > { %5763 = vst.msk [vmem:[%s211_s28] sm:$0x3] %vm5762_vm5, %v5761_v14 }
 0x674 PF: > { %s15_s15 = sadd.s32 1, %s6342_s15  }
 0x675   : > { %p12_p5 = scmp.ge.s32.totalorder %s15_s15, 4  }
 0x677   :  { %14 = sbr.rel (!%p12_p5) target bundleno = 1 (0x1), region = 74 }

</bundles_post_ra>
